<compile_context>
chip_gen: v5e
topology: v5e:2x2
jax: 0.10.0
libtpu: 0.0.40
codegen_flags: <defaults>
</compile_context>

<pallas_src>
import functools

import jax
import jax.numpy as jnp
from jax.experimental import pallas as pl
from jax.experimental.pallas import tpu as pltpu

IN_FEATURES = 28 * 28   # 784
HIDDEN = 512
OUT_FEATURES = 10
OUT_PAD = 128           # lane-dense padded output width (minimum: 128)


def _round_up(a, m):
    return ((a + m - 1) // m) * m


def mlp_kernel(x_ref, w1_ref, b1_ref, w2_ref, b2_ref, w3_ref, b3_ref, o_ref):
    tm = x_ref.shape[0]
    half = tm // 2          # TM is a multiple of 16 -> half is a multiple of 8 (f32 sublane)

    # Two independent sub-tile chains (static unroll) so the VPU epilogue of one
    # sub-tile (bias + ReLU + bf16 cast) overlaps the MXU matmul of the other.
    for s in range(2):
        r0 = s * half       # static Python int -> aligned static slice

        # Layer 1: cast the f32 input tile to bf16 in-kernel, (half,784)@(784,512), f32 acc.
        xs = x_ref[pl.ds(r0, half), :].astype(jnp.bfloat16)
        h = jnp.dot(xs, w1_ref[...], preferred_element_type=jnp.float32)
        h = jnp.maximum(h + b1_ref[...], 0.0).astype(jnp.bfloat16)

        # Layer 2: (half,512)@(512,512), f32 acc; bias + ReLU in f32.
        h = jnp.dot(h, w2_ref[...], preferred_element_type=jnp.float32)
        h = jnp.maximum(h + b2_ref[...], 0.0).astype(jnp.bfloat16)

        # Layer 3: (half,512)@(512,128)  (N padded 10 -> 128, lane-dense store).
        logits = jnp.dot(h, w3_ref[...], preferred_element_type=jnp.float32)
        o_ref[pl.ds(r0, half), :] = (logits + b3_ref[...]).astype(o_ref.dtype)


def _choose_tile(batch, tm_max):
    """Pick (TM, B_pad, n_tiles): TM multiple of 16, minimal padding, grid>=2 for megacore."""
    tm_max = max(_round_up(tm_max, 16), 16)
    b16 = _round_up(max(batch, 1), 16)
    n_tiles = -(-b16 // tm_max)                 # cdiv
    if n_tiles < 2 and b16 >= 32:
        n_tiles = 2                             # keep both v7x TensorCores busy
    tm = _round_up(-(-b16 // n_tiles), 16)
    return tm, tm * n_tiles, n_tiles


@functools.partial(jax.jit, static_argnames=("tm", "single_buffer_residents"))
def mlp_forward(x_nchw, kernel_params, *, tm=512, single_buffer_residents=True):
    """x_nchw: (B, 1, 28, 28) f32.  kernel_params: bf16 weights (in,out), f32 biases,
    last layer padded to N=128.  Returns (B, 10) f32 logits."""
    w1, b1, w2, b2, w3, b3 = kernel_params
    B = x_nchw.shape[0]

    # nn.Flatten(): row-major flatten of all dims after batch. Stays f32; the bf16
    # cast happens inside the kernel (no extra HBM round trip).
    x2d = x_nchw.reshape(B, -1)

    TM, B_pad, n_tiles = _choose_tile(B, tm)
    if B_pad != B:
        x2d = jnp.pad(x2d, ((0, B_pad - B), (0, 0)))

    K = x2d.shape[1]          # 784
    N_pad = w3.shape[1]       # 128

    def resident(shape):
        # Full-array block, constant index_map -> stays in VMEM across all grid steps.
        index_map = lambda i: (0,) * len(shape)
        if single_buffer_residents:
            return pl.BlockSpec(shape, index_map, pipeline_mode=pl.Buffered(1))
        return pl.BlockSpec(shape, index_map)

    out = pl.pallas_call(
        mlp_kernel,
        out_shape=jax.ShapeDtypeStruct((B_pad, N_pad), jnp.float32),
        grid_spec=pltpu.PrefetchScalarGridSpec(
            num_scalar_prefetch=0,
            grid=(n_tiles,),
            in_specs=[
                pl.BlockSpec((TM, K), lambda i: (i, 0)),   # f32 x tile, pipelined over batch
                resident(w1.shape),                        # (784, 512) bf16
                resident(b1.shape),                        # (1, 512)   f32
                resident(w2.shape),                        # (512, 512) bf16
                resident(b2.shape),                        # (1, 512)   f32
                resident(w3.shape),                        # (512, 128) bf16
                resident(b3.shape),                        # (1, 128)   f32
            ],
            out_specs=pl.BlockSpec((TM, N_pad), lambda i: (i, 0)),
        ),
        compiler_params=pltpu.CompilerParams(
            dimension_semantics=("parallel",),
            vmem_limit_bytes=32 << 20,
        ),
    )(x2d, w1, b1, w2, b2, w3, b3)

    # Drop batch padding and the lane padding of the last layer.
    return out[:B, :OUT_FEATURES]


def init_params(key):
    """PyTorch-default init, f32, stored transposed as (in, out)."""
    k1, k2, k3, k4, k5, k6 = jax.random.split(key, 6)

    def linear(kw, kb, fan_in, fan_out):
        bound = 1.0 / (fan_in ** 0.5)  # U(-1/sqrt(fan_in), 1/sqrt(fan_in))
        w = jax.random.uniform(kw, (fan_in, fan_out), jnp.float32, -bound, bound)
        b = jax.random.uniform(kb, (1, fan_out), jnp.float32, -bound, bound)
        return w, b

    w1, b1 = linear(k1, k2, IN_FEATURES, HIDDEN)
    w2, b2 = linear(k3, k4, HIDDEN, HIDDEN)
    w3, b3 = linear(k5, k6, HIDDEN, OUT_FEATURES)
    return (w1, b1, w2, b2, w3, b3)


def prepare_kernel_params(params_f32):
    """Cast weights to bf16 and zero-pad the last layer's N from 10 to 128."""
    w1, b1, w2, b2, w3, b3 = params_f32
    w3p = jnp.zeros((w3.shape[0], OUT_PAD), jnp.float32).at[:, :OUT_FEATURES].set(w3)
    b3p = jnp.zeros((1, OUT_PAD), jnp.float32).at[:, :OUT_FEATURES].set(b3)
    return (
        w1.astype(jnp.bfloat16), b1,
        w2.astype(jnp.bfloat16), b2,
        w3p.astype(jnp.bfloat16), b3p,
    )


def reference_forward(x_nchw, kernel_params):
    """Pure-JAX reference mirroring the kernel's bf16/f32 mixed precision."""
    w1, b1, w2, b2, w3, b3 = kernel_params
    B = x_nchw.shape[0]
    x = x_nchw.reshape(B, -1).astype(jnp.bfloat16)
    h = jnp.dot(x, w1, preferred_element_type=jnp.float32) + b1
    h = jnp.maximum(h, 0.0)
    h = jnp.dot(h.astype(jnp.bfloat16), w2, preferred_element_type=jnp.float32) + b2
    h = jnp.maximum(h, 0.0)
    h = jnp.dot(h.astype(jnp.bfloat16), w3, preferred_element_type=jnp.float32) + b3
    return h[:, :OUT_FEATURES]


if __name__ == "__main__":
    key = jax.random.PRNGKey(0)
    kx, kp = jax.random.split(key)

    # Small batch of MNIST-shaped inputs, NCHW like PyTorch: (B, 1, 28, 28)
    B = 2
    x = jax.random.normal(kx, (B, 1, 28, 28), dtype=jnp.float32)

    params_f32 = init_params(kp)
    kernel_params = prepare_kernel_params(params_f32)

    try:
        logits = mlp_forward(x, kernel_params)
        jax.block_until_ready(logits)
    except Exception:
        # Fallback for jax builds that reject pipeline_mode=pl.Buffered(1) on BlockSpec:
        # identical kernel, default (double-buffered) resident weight specs.
        logits = mlp_forward(x, kernel_params, single_buffer_residents=False)
        jax.block_until_ready(logits)

    ref = reference_forward(x, kernel_params)
    assert logits.shape == (B, OUT_FEATURES)
    assert jnp.allclose(logits, ref, atol=2e-2, rtol=2e-2), (
        float(jnp.max(jnp.abs(logits - ref)))
    )

    print("KERNEL_OK")
</pallas_src>

<mosaic_0001>
module attributes {stable_mosaic.version = 11 : i64} {
  func.func @mlp_kernel(%arg0: i32, %arg1: memref<16x784xf32, #tpu.memory_space<vmem>>, %arg2: memref<784x512xbf16, #tpu.memory_space<vmem>>, %arg3: memref<1x512xf32, #tpu.memory_space<vmem>>, %arg4: memref<512x512xbf16, #tpu.memory_space<vmem>>, %arg5: memref<1x512xf32, #tpu.memory_space<vmem>>, %arg6: memref<512x128xbf16, #tpu.memory_space<vmem>>, %arg7: memref<1x128xf32, #tpu.memory_space<vmem>>, %arg8: memref<16x128xf32, #tpu.memory_space<vmem>>) attributes {dimension_semantics = [#tpu.dimension_semantics<parallel>], iteration_bounds = array<i64: 1>, scalar_prefetch = 0 : i64, scratch_operands = 0 : i64, tpu.core_type = #tpu.core_type<tc>, window_params = [{transform_indices = @transform_0, window_bounds = array<i64: 16, 784>}, {pipeline_mode = #tpu.pipeline_mode<synchronous>, transform_indices = @transform_1, window_bounds = array<i64: 784, 512>}, {pipeline_mode = #tpu.pipeline_mode<synchronous>, transform_indices = @transform_2, window_bounds = array<i64: 1, 512>}, {pipeline_mode = #tpu.pipeline_mode<synchronous>, transform_indices = @transform_3, window_bounds = array<i64: 512, 512>}, {pipeline_mode = #tpu.pipeline_mode<synchronous>, transform_indices = @transform_4, window_bounds = array<i64: 1, 512>}, {pipeline_mode = #tpu.pipeline_mode<synchronous>, transform_indices = @transform_5, window_bounds = array<i64: 512, 128>}, {pipeline_mode = #tpu.pipeline_mode<synchronous>, transform_indices = @transform_6, window_bounds = array<i64: 1, 128>}, {transform_indices = @transform_7, window_bounds = array<i64: 16, 128>}]} {
    %c0 = arith.constant 0 : index
    %c0_0 = arith.constant 0 : index
    %0 = vector.load %arg1[%c0, %c0_0] : memref<16x784xf32, #tpu.memory_space<vmem>>, vector<8x784xf32>
    %1 = arith.truncf %0 : vector<8x784xf32> to vector<8x784xbf16>
    %c0_1 = arith.constant 0 : index
    %c0_2 = arith.constant 0 : index
    %2 = vector.load %arg2[%c0_1, %c0_2] : memref<784x512xbf16, #tpu.memory_space<vmem>>, vector<784x512xbf16>
    %cst = arith.constant dense<0.000000e+00> : vector<8x512xf32>
    %3 = tpu.matmul %1, %2, %cst {dimension_numbers = #tpu.dot_dimension_numbers<[1], [0], [0], [1], [0, 0, 1, 1], [], []>} : vector<8x784xbf16>, vector<784x512xbf16>, vector<8x512xf32> -> vector<8x512xf32>
    %c0_3 = arith.constant 0 : index
    %c0_4 = arith.constant 0 : index
    %4 = vector.load %arg3[%c0_3, %c0_4] : memref<1x512xf32, #tpu.memory_space<vmem>>, vector<1x512xf32>
    %5 = vector.broadcast %4 : vector<1x512xf32> to vector<8x512xf32>
    %6 = arith.addf %3, %5 : vector<8x512xf32>
    %cst_5 = arith.constant 0.000000e+00 : f32
    %7 = vector.broadcast %cst_5 : f32 to vector<8x512xf32>
    %8 = arith.maximumf %6, %7 : vector<8x512xf32>
    %9 = arith.truncf %8 : vector<8x512xf32> to vector<8x512xbf16>
    %c0_6 = arith.constant 0 : index
    %c0_7 = arith.constant 0 : index
    %10 = vector.load %arg4[%c0_6, %c0_7] : memref<512x512xbf16, #tpu.memory_space<vmem>>, vector<512x512xbf16>
    %cst_8 = arith.constant dense<0.000000e+00> : vector<8x512xf32>
    %11 = tpu.matmul %9, %10, %cst_8 {dimension_numbers = #tpu.dot_dimension_numbers<[1], [0], [0], [1], [0, 0, 1, 1], [], []>} : vector<8x512xbf16>, vector<512x512xbf16>, vector<8x512xf32> -> vector<8x512xf32>
    %c0_9 = arith.constant 0 : index
    %c0_10 = arith.constant 0 : index
    %12 = vector.load %arg5[%c0_9, %c0_10] : memref<1x512xf32, #tpu.memory_space<vmem>>, vector<1x512xf32>
    %13 = vector.broadcast %12 : vector<1x512xf32> to vector<8x512xf32>
    %14 = arith.addf %11, %13 : vector<8x512xf32>
    %cst_11 = arith.constant 0.000000e+00 : f32
    %15 = vector.broadcast %cst_11 : f32 to vector<8x512xf32>
    %16 = arith.maximumf %14, %15 : vector<8x512xf32>
    %17 = arith.truncf %16 : vector<8x512xf32> to vector<8x512xbf16>
    %c0_12 = arith.constant 0 : index
    %c0_13 = arith.constant 0 : index
    %18 = vector.load %arg6[%c0_12, %c0_13] : memref<512x128xbf16, #tpu.memory_space<vmem>>, vector<512x128xbf16>
    %cst_14 = arith.constant dense<0.000000e+00> : vector<8x128xf32>
    %19 = tpu.matmul %17, %18, %cst_14 {dimension_numbers = #tpu.dot_dimension_numbers<[1], [0], [0], [1], [0, 0, 1, 1], [], []>} : vector<8x512xbf16>, vector<512x128xbf16>, vector<8x128xf32> -> vector<8x128xf32>
    %c0_15 = arith.constant 0 : index
    %c0_16 = arith.constant 0 : index
    %20 = vector.load %arg7[%c0_15, %c0_16] : memref<1x128xf32, #tpu.memory_space<vmem>>, vector<1x128xf32>
    %21 = vector.broadcast %20 : vector<1x128xf32> to vector<8x128xf32>
    %22 = arith.addf %19, %21 : vector<8x128xf32>
    %c0_17 = arith.constant 0 : index
    %c0_18 = arith.constant 0 : index
    %23 = vector.load %arg8[%c0_17, %c0_18] : memref<16x128xf32, #tpu.memory_space<vmem>>, vector<8x128xf32>
    tpu.vector_store %arg8[%c0_17, %c0_18], %22 {strides = array<i32>} : memref<16x128xf32, #tpu.memory_space<vmem>>, vector<8x128xf32>,
    %c8 = arith.constant 8 : index
    %c0_19 = arith.constant 0 : index
    %24 = vector.load %arg1[%c8, %c0_19] : memref<16x784xf32, #tpu.memory_space<vmem>>, vector<8x784xf32>
    %25 = arith.truncf %24 : vector<8x784xf32> to vector<8x784xbf16>
    %c0_20 = arith.constant 0 : index
    %c0_21 = arith.constant 0 : index
    %26 = vector.load %arg2[%c0_20, %c0_21] : memref<784x512xbf16, #tpu.memory_space<vmem>>, vector<784x512xbf16>
    %cst_22 = arith.constant dense<0.000000e+00> : vector<8x512xf32>
    %27 = tpu.matmul %25, %26, %cst_22 {dimension_numbers = #tpu.dot_dimension_numbers<[1], [0], [0], [1], [0, 0, 1, 1], [], []>} : vector<8x784xbf16>, vector<784x512xbf16>, vector<8x512xf32> -> vector<8x512xf32>
    %c0_23 = arith.constant 0 : index
    %c0_24 = arith.constant 0 : index
    %28 = vector.load %arg3[%c0_23, %c0_24] : memref<1x512xf32, #tpu.memory_space<vmem>>, vector<1x512xf32>
    %29 = vector.broadcast %28 : vector<1x512xf32> to vector<8x512xf32>
    %30 = arith.addf %27, %29 : vector<8x512xf32>
    %cst_25 = arith.constant 0.000000e+00 : f32
    %31 = vector.broadcast %cst_25 : f32 to vector<8x512xf32>
    %32 = arith.maximumf %30, %31 : vector<8x512xf32>
    %33 = arith.truncf %32 : vector<8x512xf32> to vector<8x512xbf16>
    %c0_26 = arith.constant 0 : index
    %c0_27 = arith.constant 0 : index
    %34 = vector.load %arg4[%c0_26, %c0_27] : memref<512x512xbf16, #tpu.memory_space<vmem>>, vector<512x512xbf16>
    %cst_28 = arith.constant dense<0.000000e+00> : vector<8x512xf32>
    %35 = tpu.matmul %33, %34, %cst_28 {dimension_numbers = #tpu.dot_dimension_numbers<[1], [0], [0], [1], [0, 0, 1, 1], [], []>} : vector<8x512xbf16>, vector<512x512xbf16>, vector<8x512xf32> -> vector<8x512xf32>
    %c0_29 = arith.constant 0 : index
    %c0_30 = arith.constant 0 : index
    %36 = vector.load %arg5[%c0_29, %c0_30] : memref<1x512xf32, #tpu.memory_space<vmem>>, vector<1x512xf32>
    %37 = vector.broadcast %36 : vector<1x512xf32> to vector<8x512xf32>
    %38 = arith.addf %35, %37 : vector<8x512xf32>
    %cst_31 = arith.constant 0.000000e+00 : f32
    %39 = vector.broadcast %cst_31 : f32 to vector<8x512xf32>
    %40 = arith.maximumf %38, %39 : vector<8x512xf32>
    %41 = arith.truncf %40 : vector<8x512xf32> to vector<8x512xbf16>
    %c0_32 = arith.constant 0 : index
    %c0_33 = arith.constant 0 : index
    %42 = vector.load %arg6[%c0_32, %c0_33] : memref<512x128xbf16, #tpu.memory_space<vmem>>, vector<512x128xbf16>
    %cst_34 = arith.constant dense<0.000000e+00> : vector<8x128xf32>
    %43 = tpu.matmul %41, %42, %cst_34 {dimension_numbers = #tpu.dot_dimension_numbers<[1], [0], [0], [1], [0, 0, 1, 1], [], []>} : vector<8x512xbf16>, vector<512x128xbf16>, vector<8x128xf32> -> vector<8x128xf32>
    %c0_35 = arith.constant 0 : index
    %c0_36 = arith.constant 0 : index
    %44 = vector.load %arg7[%c0_35, %c0_36] : memref<1x128xf32, #tpu.memory_space<vmem>>, vector<1x128xf32>
    %45 = vector.broadcast %44 : vector<1x128xf32> to vector<8x128xf32>
    %46 = arith.addf %43, %45 : vector<8x128xf32>
    %c8_37 = arith.constant 8 : index
    %c0_38 = arith.constant 0 : index
    %47 = vector.load %arg8[%c8_37, %c0_38] : memref<16x128xf32, #tpu.memory_space<vmem>>, vector<8x128xf32>
    tpu.vector_store %arg8[%c8_37, %c0_38], %46 {strides = array<i32>} : memref<16x128xf32, #tpu.memory_space<vmem>>, vector<8x128xf32>,
    return
  }
  func.func @transform_0(%arg0: i32) -> (i32, i32) {
    %c0_i32 = arith.constant 0 : i32
    %c0_i32_0 = arith.constant 0 : i32
    return %arg0, %c0_i32 : i32, i32
  }
  func.func @transform_1(%arg0: i32) -> (i32, i32) {
    %c0_i32 = arith.constant 0 : i32
    %c0_i32_0 = arith.constant 0 : i32
    %c0_i32_1 = arith.constant 0 : i32
    return %c0_i32, %c0_i32_0 : i32, i32
  }
  func.func @transform_2(%arg0: i32) -> (i32, i32) {
    %c0_i32 = arith.constant 0 : i32
    %c0_i32_0 = arith.constant 0 : i32
    %c0_i32_1 = arith.constant 0 : i32
    return %c0_i32, %c0_i32_0 : i32, i32
  }
  func.func @transform_3(%arg0: i32) -> (i32, i32) {
    %c0_i32 = arith.constant 0 : i32
    %c0_i32_0 = arith.constant 0 : i32
    %c0_i32_1 = arith.constant 0 : i32
    return %c0_i32, %c0_i32_0 : i32, i32
  }
  func.func @transform_4(%arg0: i32) -> (i32, i32) {
    %c0_i32 = arith.constant 0 : i32
    %c0_i32_0 = arith.constant 0 : i32
    %c0_i32_1 = arith.constant 0 : i32
    return %c0_i32, %c0_i32_0 : i32, i32
  }
  func.func @transform_5(%arg0: i32) -> (i32, i32) {
    %c0_i32 = arith.constant 0 : i32
    %c0_i32_0 = arith.constant 0 : i32
    %c0_i32_1 = arith.constant 0 : i32
    return %c0_i32, %c0_i32_0 : i32, i32
  }
  func.func @transform_6(%arg0: i32) -> (i32, i32) {
    %c0_i32 = arith.constant 0 : i32
    %c0_i32_0 = arith.constant 0 : i32
    %c0_i32_1 = arith.constant 0 : i32
    return %c0_i32, %c0_i32_0 : i32, i32
  }
  func.func @transform_7(%arg0: i32) -> (i32, i32) {
    %c0_i32 = arith.constant 0 : i32
    %c0_i32_0 = arith.constant 0 : i32
    return %arg0, %c0_i32 : i32, i32
  }
}

module attributes {stable_mosaic.version = 11 : i64} {
  func.func @mlp_kernel(%arg0: i32, %arg1: memref<16x784xf32, #tpu.memory_space<vmem>>, %arg2: memref<784x512xbf16, #tpu.memory_space<vmem>>, %arg3: memref<1x512xf32, #tpu.memory_space<vmem>>, %arg4: memref<512x512xbf16, #tpu.memory_space<vmem>>, %arg5: memref<1x512xf32, #tpu.memory_space<vmem>>, %arg6: memref<512x128xbf16, #tpu.memory_space<vmem>>, %arg7: memref<1x128xf32, #tpu.memory_space<vmem>>, %arg8: memref<16x128xf32, #tpu.memory_space<vmem>>) attributes {dimension_semantics = [#tpu.dimension_semantics<parallel>], iteration_bounds = array<i64: 1>, scalar_prefetch = 0 : i64, scratch_operands = 0 : i64, tpu.core_type = #tpu.core_type<tc>, window_params = [{transform_indices = @transform_0, window_bounds = array<i64: 16, 784>}, {pipeline_mode = #tpu.pipeline_mode<synchronous>, transform_indices = @transform_1, window_bounds = array<i64: 784, 512>}, {pipeline_mode = #tpu.pipeline_mode<synchronous>, transform_indices = @transform_2, window_bounds = array<i64: 1, 512>}, {pipeline_mode = #tpu.pipeline_mode<synchronous>, transform_indices = @transform_3, window_bounds = array<i64: 512, 512>}, {pipeline_mode = #tpu.pipeline_mode<synchronous>, transform_indices = @transform_4, window_bounds = array<i64: 1, 512>}, {pipeline_mode = #tpu.pipeline_mode<synchronous>, transform_indices = @transform_5, window_bounds = array<i64: 512, 128>}, {pipeline_mode = #tpu.pipeline_mode<synchronous>, transform_indices = @transform_6, window_bounds = array<i64: 1, 128>}, {transform_indices = @transform_7, window_bounds = array<i64: 16, 128>}]} {
    %c0 = arith.constant 0 : index
    %c0_0 = arith.constant 0 : index
    %0 = vector.load %arg1[%c0, %c0_0] : memref<16x784xf32, #tpu.memory_space<vmem>>, vector<8x784xf32>
    %1 = arith.truncf %0 : vector<8x784xf32> to vector<8x784xbf16>
    %c0_1 = arith.constant 0 : index
    %c0_2 = arith.constant 0 : index
    %2 = vector.load %arg2[%c0_1, %c0_2] : memref<784x512xbf16, #tpu.memory_space<vmem>>, vector<784x512xbf16>
    %cst = arith.constant dense<0.000000e+00> : vector<8x512xf32>
    %3 = tpu.matmul %1, %2, %cst {dimension_numbers = #tpu.dot_dimension_numbers<[1], [0], [0], [1], [0, 0, 1, 1], [], []>} : vector<8x784xbf16>, vector<784x512xbf16>, vector<8x512xf32> -> vector<8x512xf32>
    %c0_3 = arith.constant 0 : index
    %c0_4 = arith.constant 0 : index
    %4 = vector.load %arg3[%c0_3, %c0_4] : memref<1x512xf32, #tpu.memory_space<vmem>>, vector<1x512xf32>
    %5 = vector.broadcast %4 : vector<1x512xf32> to vector<8x512xf32>
    %6 = arith.addf %3, %5 : vector<8x512xf32>
    %cst_5 = arith.constant 0.000000e+00 : f32
    %7 = vector.broadcast %cst_5 : f32 to vector<8x512xf32>
    %8 = arith.maximumf %6, %7 : vector<8x512xf32>
    %9 = arith.truncf %8 : vector<8x512xf32> to vector<8x512xbf16>
    %c0_6 = arith.constant 0 : index
    %c0_7 = arith.constant 0 : index
    %10 = vector.load %arg4[%c0_6, %c0_7] : memref<512x512xbf16, #tpu.memory_space<vmem>>, vector<512x512xbf16>
    %cst_8 = arith.constant dense<0.000000e+00> : vector<8x512xf32>
    %11 = tpu.matmul %9, %10, %cst_8 {dimension_numbers = #tpu.dot_dimension_numbers<[1], [0], [0], [1], [0, 0, 1, 1], [], []>} : vector<8x512xbf16>, vector<512x512xbf16>, vector<8x512xf32> -> vector<8x512xf32>
    %c0_9 = arith.constant 0 : index
    %c0_10 = arith.constant 0 : index
    %12 = vector.load %arg5[%c0_9, %c0_10] : memref<1x512xf32, #tpu.memory_space<vmem>>, vector<1x512xf32>
    %13 = vector.broadcast %12 : vector<1x512xf32> to vector<8x512xf32>
    %14 = arith.addf %11, %13 : vector<8x512xf32>
    %cst_11 = arith.constant 0.000000e+00 : f32
    %15 = vector.broadcast %cst_11 : f32 to vector<8x512xf32>
    %16 = arith.maximumf %14, %15 : vector<8x512xf32>
    %17 = arith.truncf %16 : vector<8x512xf32> to vector<8x512xbf16>
    %c0_12 = arith.constant 0 : index
    %c0_13 = arith.constant 0 : index
    %18 = vector.load %arg6[%c0_12, %c0_13] : memref<512x128xbf16, #tpu.memory_space<vmem>>, vector<512x128xbf16>
    %cst_14 = arith.constant dense<0.000000e+00> : vector<8x128xf32>
    %19 = tpu.matmul %17, %18, %cst_14 {dimension_numbers = #tpu.dot_dimension_numbers<[1], [0], [0], [1], [0, 0, 1, 1], [], []>} : vector<8x512xbf16>, vector<512x128xbf16>, vector<8x128xf32> -> vector<8x128xf32>
    %c0_15 = arith.constant 0 : index
    %c0_16 = arith.constant 0 : index
    %20 = vector.load %arg7[%c0_15, %c0_16] : memref<1x128xf32, #tpu.memory_space<vmem>>, vector<1x128xf32>
    %21 = vector.broadcast %20 : vector<1x128xf32> to vector<8x128xf32>
    %22 = arith.addf %19, %21 : vector<8x128xf32>
    %c0_17 = arith.constant 0 : index
    %c0_18 = arith.constant 0 : index
    %23 = vector.load %arg8[%c0_17, %c0_18] : memref<16x128xf32, #tpu.memory_space<vmem>>, vector<8x128xf32>
    tpu.vector_store %arg8[%c0_17, %c0_18], %22 {strides = array<i32>} : memref<16x128xf32, #tpu.memory_space<vmem>>, vector<8x128xf32>,
    %c8 = arith.constant 8 : index
    %c0_19 = arith.constant 0 : index
    %24 = vector.load %arg1[%c8, %c0_19] : memref<16x784xf32, #tpu.memory_space<vmem>>, vector<8x784xf32>
    %25 = arith.truncf %24 : vector<8x784xf32> to vector<8x784xbf16>
    %c0_20 = arith.constant 0 : index
    %c0_21 = arith.constant 0 : index
    %26 = vector.load %arg2[%c0_20, %c0_21] : memref<784x512xbf16, #tpu.memory_space<vmem>>, vector<784x512xbf16>
    %cst_22 = arith.constant dense<0.000000e+00> : vector<8x512xf32>
    %27 = tpu.matmul %25, %26, %cst_22 {dimension_numbers = #tpu.dot_dimension_numbers<[1], [0], [0], [1], [0, 0, 1, 1], [], []>} : vector<8x784xbf16>, vector<784x512xbf16>, vector<8x512xf32> -> vector<8x512xf32>
    %c0_23 = arith.constant 0 : index
    %c0_24 = arith.constant 0 : index
    %28 = vector.load %arg3[%c0_23, %c0_24] : memref<1x512xf32, #tpu.memory_space<vmem>>, vector<1x512xf32>
    %29 = vector.broadcast %28 : vector<1x512xf32> to vector<8x512xf32>
    %30 = arith.addf %27, %29 : vector<8x512xf32>
    %cst_25 = arith.constant 0.000000e+00 : f32
    %31 = vector.broadcast %cst_25 : f32 to vector<8x512xf32>
    %32 = arith.maximumf %30, %31 : vector<8x512xf32>
    %33 = arith.truncf %32 : vector<8x512xf32> to vector<8x512xbf16>
    %c0_26 = arith.constant 0 : index
    %c0_27 = arith.constant 0 : index
    %34 = vector.load %arg4[%c0_26, %c0_27] : memref<512x512xbf16, #tpu.memory_space<vmem>>, vector<512x512xbf16>
    %cst_28 = arith.constant dense<0.000000e+00> : vector<8x512xf32>
    %35 = tpu.matmul %33, %34, %cst_28 {dimension_numbers = #tpu.dot_dimension_numbers<[1], [0], [0], [1], [0, 0, 1, 1], [], []>} : vector<8x512xbf16>, vector<512x512xbf16>, vector<8x512xf32> -> vector<8x512xf32>
    %c0_29 = arith.constant 0 : index
    %c0_30 = arith.constant 0 : index
    %36 = vector.load %arg5[%c0_29, %c0_30] : memref<1x512xf32, #tpu.memory_space<vmem>>, vector<1x512xf32>
    %37 = vector.broadcast %36 : vector<1x512xf32> to vector<8x512xf32>
    %38 = arith.addf %35, %37 : vector<8x512xf32>
    %cst_31 = arith.constant 0.000000e+00 : f32
    %39 = vector.broadcast %cst_31 : f32 to vector<8x512xf32>
    %40 = arith.maximumf %38, %39 : vector<8x512xf32>
    %41 = arith.truncf %40 : vector<8x512xf32> to vector<8x512xbf16>
    %c0_32 = arith.constant 0 : index
    %c0_33 = arith.constant 0 : index
    %42 = vector.load %arg6[%c0_32, %c0_33] : memref<512x128xbf16, #tpu.memory_space<vmem>>, vector<512x128xbf16>
    %cst_34 = arith.constant dense<0.000000e+00> : vector<8x128xf32>
    %43 = tpu.matmul %41, %42, %cst_34 {dimension_numbers = #tpu.dot_dimension_numbers<[1], [0], [0], [1], [0, 0, 1, 1], [], []>} : vector<8x512xbf16>, vector<512x128xbf16>, vector<8x128xf32> -> vector<8x128xf32>
    %c0_35 = arith.constant 0 : index
    %c0_36 = arith.constant 0 : index
    %44 = vector.load %arg7[%c0_35, %c0_36] : memref<1x128xf32, #tpu.memory_space<vmem>>, vector<1x128xf32>
    %45 = vector.broadcast %44 : vector<1x128xf32> to vector<8x128xf32>
    %46 = arith.addf %43, %45 : vector<8x128xf32>
    %c8_37 = arith.constant 8 : index
    %c0_38 = arith.constant 0 : index
    %47 = vector.load %arg8[%c8_37, %c0_38] : memref<16x128xf32, #tpu.memory_space<vmem>>, vector<8x128xf32>
    tpu.vector_store %arg8[%c8_37, %c0_38], %46 {strides = array<i32>} : memref<16x128xf32, #tpu.memory_space<vmem>>, vector<8x128xf32>,
    return
  }
  func.func @transform_0(%arg0: i32) -> (i32, i32) {
    %c0_i32 = arith.constant 0 : i32
    %c0_i32_0 = arith.constant 0 : i32
    return %arg0, %c0_i32 : i32, i32
  }
  func.func @transform_1(%arg0: i32) -> (i32, i32) {
    %c0_i32 = arith.constant 0 : i32
    %c0_i32_0 = arith.constant 0 : i32
    %c0_i32_1 = arith.constant 0 : i32
    return %c0_i32, %c0_i32_0 : i32, i32
  }
  func.func @transform_2(%arg0: i32) -> (i32, i32) {
    %c0_i32 = arith.constant 0 : i32
    %c0_i32_0 = arith.constant 0 : i32
    %c0_i32_1 = arith.constant 0 : i32
    return %c0_i32, %c0_i32_0 : i32, i32
  }
  func.func @transform_3(%arg0: i32) -> (i32, i32) {
    %c0_i32 = arith.constant 0 : i32
    %c0_i32_0 = arith.constant 0 : i32
    %c0_i32_1 = arith.constant 0 : i32
    return %c0_i32, %c0_i32_0 : i32, i32
  }
  func.func @transform_4(%arg0: i32) -> (i32, i32) {
    %c0_i32 = arith.constant 0 : i32
    %c0_i32_0 = arith.constant 0 : i32
    %c0_i32_1 = arith.constant 0 : i32
    return %c0_i32, %c0_i32_0 : i32, i32
  }
  func.func @transform_5(%arg0: i32) -> (i32, i32) {
    %c0_i32 = arith.constant 0 : i32
    %c0_i32_0 = arith.constant 0 : i32
    %c0_i32_1 = arith.constant 0 : i32
    return %c0_i32, %c0_i32_0 : i32, i32
  }
  func.func @transform_6(%arg0: i32) -> (i32, i32) {
    %c0_i32 = arith.constant 0 : i32
    %c0_i32_0 = arith.constant 0 : i32
    %c0_i32_1 = arith.constant 0 : i32
    return %c0_i32, %c0_i32_0 : i32, i32
  }
  func.func @transform_7(%arg0: i32) -> (i32, i32) {
    %c0_i32 = arith.constant 0 : i32
    %c0_i32_0 = arith.constant 0 : i32
    return %arg0, %c0_i32 : i32, i32
  }
}

</mosaic_0001>

<bundles_post_ra>
// kernel: mlp_forward.1
= control target key start
LH: loop header
LB: loop body
LE: loop exit
PB: predicated region body
PF: predicated region fallthrough
CT: control target
= control target key end

     0   :  { %12 = vsyncpa [#allocation3], 0  ;;  %s10063_s0 = inlined_call_operand.vmem [shape: f32[16,784], index: 0, kind: input, shape index: {}]   ;;  %s10064_s1 = inlined_call_operand.hbm [shape: bf16[784,512], index: 1, kind: input, shape index: {}]   ;;  %s10065_s2 = inlined_call_operand.vmem [shape: f32[1,512], index: 2, kind: input, shape index: {}]   ;;  %s10066_s3 = inlined_call_operand.hbm [shape: bf16[512,512], index: 3, kind: input, shape index: {}]   ;;  %s10067_s4 = inlined_call_operand.vmem [shape: f32[1,512], index: 4, kind: input, shape index: {}]   ;;  %s10068_s5 = inlined_call_operand.vmem [shape: bf16[512,128], index: 5, kind: input, shape index: {}]   ;;  %s10069_s6 = inlined_call_operand.vmem [shape: f32[1,128], index: 6, kind: input, shape index: {}]   ;;  %s10070_s7 = inlined_call_operand.vmem [shape: f32[16,128], index: 7, kind: output, shape index: {}]  }
   0x1   :  { %s20_s26 = sshll.u32 %s10064_s1, 4  ;;  %s21_s26 = int_to_ptr.hbm [resolvable:$true] %s20_s26 }
   0x2   :  { %13 = vsyncpa [#allocation5], 0  ;;  %s9456_s27 = smov [#allocation2]   ;;  %s35_s8 = sshll.u32 %s10066_s3, 4  ;;  %s36_s8 = int_to_ptr.hbm [resolvable:$true] %s35_s8 }
   0x3   :  { %s22_s28 = sshll.u32 %s9456_s27, 4  ;;  %s9457_s9 = smov 256   ;;  %s23_s28 = int_to_ptr.vmem [resolvable:$true] %s22_s28 }
   0x4   :  { %s9458_s10 = smov 16   ;;  %s9459_s11 = smov [#allocation4]  }
   0x5   :  { %28 = dma.hbm_to_vmem [thread:$0]  %s21_s26, 25088, %s23_s28, [#allocation3], %s9457_s9, %s9457_s9, %s9458_s10  }
   0x6   :  { %s37_s12 = sshll.u32 %s9459_s11, 4  ;;  %s38_s12 = int_to_ptr.vmem [resolvable:$true] %s37_s12 }
   0x7   :  { %43 = dma.hbm_to_vmem [thread:$0]  %s36_s8, 16384, %s38_s12, [#allocation5], %s9457_s9, %s9457_s9, %s9458_s10  }
   0x8   :  { %9452 = dma.done.wait [#allocation3], 25088  }
   0x9   :  { %9453 = vsyncadd [#allocation3], 4294942208 }
   0xa   :  { %9454 = dma.done.wait [#allocation5], 16384  }
   0xb   :  { %9455 = vsyncadd [#allocation5], 4294950912  ;;  %v5944_v0 = vld [vmem:[#allocation2 + $0xe0] sm:$0xf]  ;;  %v8716_v1 = vld [vmem:[#allocation2 + $0xec] sm:$0xf0] }
   0xc   :  { %v6072_v2 = vld [vmem:[#allocation2 + $0x1e0] sm:$0xf]  ;;  %v5945_v3 = vor.u32 %v8716_v1, %v5944_v0  ;;  %v8748_v4 = vld [vmem:[#allocation2 + $0x1ec] sm:$0xf0]  ;;  %vm1259_vm0 = vcmask 130048  }
   0xd   :  { %v6200_v5 = vld [vmem:[#allocation2 + $0x2e0] sm:$0xf]  ;;  %v8780_v6 = vld [vmem:[#allocation2 + $0x2ec] sm:$0xf0]  ;;  %v6073_v7 = vor.u32 %v8748_v4, %v6072_v2 }
   0xe   :  { %v6201_v8 = vor.u32 %v8780_v6, %v6200_v5  ;;  %v6328_v9 = vld [vmem:[#allocation2 + $0x3e0] sm:$0xf]  ;;  %v8812_v10 = vld [vmem:[#allocation2 + $0x3ec] sm:$0xf0]  ;;  %1263 = vmatpush.bf16.msra.mxu0 %v5945_v3 }
   0xf   :  { %v5928_v11 = vld [vmem:[#allocation2 + $0xc0] sm:$0xf]  ;;  %v6329_v12 = vor.u32 %v8812_v10, %v6328_v9  ;;  %v8712_v13 = vld [vmem:[#allocation2 + $0xcc] sm:$0xf0]  ;;  %1276 = vmatpush.bf16.msra.mxu1 %v6073_v7 }
  0x10   :  { %v6056_v14 = vld [vmem:[#allocation2 + $0x1c0] sm:$0xf]  ;;  %v8744_v15 = vld [vmem:[#allocation2 + $0x1cc] sm:$0xf0]  ;;  %1289 = vmatpush.bf16.msra.mxu2 %v6201_v8  ;;  %v5929_v16 = vor.u32 %v8712_v13, %v5928_v11 }
  0x11   :  { %v6057_v17 = vor.u32 %v8744_v15, %v6056_v14  ;;  %v6184_v18 = vld [vmem:[#allocation2 + $0x2c0] sm:$0xf]  ;;  %v8776_v19 = vld [vmem:[#allocation2 + $0x2cc] sm:$0xf0]  ;;  %1302 = vmatpush.bf16.msra.mxu3 %v6329_v12 }
  0x12   :  { %v6312_v20 = vld [vmem:[#allocation2 + $0x3c0] sm:$0xf]  ;;  %v6185_v21 = vor.u32 %v8776_v19, %v6184_v18  ;;  %v8808_v22 = vld [vmem:[#allocation2 + $0x3cc] sm:$0xf0]  ;;  %1264 = vmatpush.bf16.msra.mxu0 %v5929_v16 }
  0x13   :  { %v5912_v23 = vld [vmem:[#allocation2 + $0xa0] sm:$0xf]  ;;  %v8708_v24 = vld [vmem:[#allocation2 + $0xac] sm:$0xf0]  ;;  %v6313_v25 = vor.u32 %v8808_v22, %v6312_v20  ;;  %1277 = vmatpush.bf16.msra.mxu1 %v6057_v17 }
  0x14   :  { %v6040_v26 = vld [vmem:[#allocation2 + $0x1a0] sm:$0xf]  ;;  %v8740_v27 = vld [vmem:[#allocation2 + $0x1ac] sm:$0xf0]  ;;  %v5913_v29 = vor.u32 %v8708_v24, %v5912_v23  ;;  %1290 = vmatpush.bf16.msra.mxu2 %v6185_v21 }
  0x15   :  { %v6168_v28 = vld [vmem:[#allocation2 + $0x2a0] sm:$0xf]  ;;  %v8772_v30 = vld [vmem:[#allocation2 + $0x2ac] sm:$0xf0]  ;;  %v6041_v33 = vor.u32 %v8740_v27, %v6040_v26  ;;  %1303 = vmatpush.bf16.msra.mxu3 %v6313_v25 }
  0x16   :  { %v6296_v31 = vld [vmem:[#allocation2 + $0x3a0] sm:$0xf]  ;;  %v8804_v32 = vld [vmem:[#allocation2 + $0x3ac] sm:$0xf0]  ;;  %v6169_v34 = vor.u32 %v8772_v30, %v6168_v28  ;;  %1265 = vmatpush.bf16.msra.mxu0 %v5913_v29 }
  0x17   :  { %v5896_v35 = vld [vmem:[#allocation2 + $0x80] sm:$0xf]  ;;  %v8704_v36 = vld [vmem:[#allocation2 + $0x8c] sm:$0xf0]  ;;  %v6297_v38 = vor.u32 %v8804_v32, %v6296_v31  ;;  %1278 = vmatpush.bf16.msra.mxu1 %v6041_v33  ;;  %v8714_v33 = vld [vmem:[#allocation2 + $0xe4] sm:$0xf] }
  0x18   :  { %v6024_v37 = vld [vmem:[#allocation2 + $0x180] sm:$0xf]  ;;  %v8736_v39 = vld [vmem:[#allocation2 + $0x18c] sm:$0xf0]  ;;  %v5897_v44 = vor.u32 %v8704_v36, %v5896_v35  ;;  %1291 = vmatpush.bf16.msra.mxu2 %v6169_v34  ;;  %v5946_v34 = vld [vmem:[#allocation2 + $0xf0] sm:$0xf0] }
  0x19   :  { %v6152_v40 = vld [vmem:[#allocation2 + $0x280] sm:$0xf]  ;;  %v8768_v41 = vld [vmem:[#allocation2 + $0x28c] sm:$0xf0]  ;;  %v6025_v45 = vor.u32 %v8736_v39, %v6024_v37  ;;  %1304 = vmatpush.bf16.msra.mxu3 %v6297_v38 }
  0x1a   :  { %v6280_v42 = vld [vmem:[#allocation2 + $0x380] sm:$0xf]  ;;  %v8800_v43 = vld [vmem:[#allocation2 + $0x38c] sm:$0xf0]  ;;  %v6153_v46 = vor.u32 %v8768_v41, %v6152_v40  ;;  %1266 = vmatpush.bf16.msra.mxu0 %v5897_v44  ;;  %v6074_v44 = vld [vmem:[#allocation2 + $0x1f0] sm:$0xf0] }
  0x1b   :  { %v5880_v47 = vld [vmem:[#allocation2 + $0x60] sm:$0xf]  ;;  %v8700_v48 = vld [vmem:[#allocation2 + $0x6c] sm:$0xf0]  ;;  %v6281_v50 = vor.u32 %v8800_v43, %v6280_v42  ;;  %1279 = vmatpush.bf16.msra.mxu1 %v6025_v45  ;;  %v8746_v43 = vld [vmem:[#allocation2 + $0x1e4] sm:$0xf] }
  0x1c   :  { %v6008_v49 = vld [vmem:[#allocation2 + $0x160] sm:$0xf]  ;;  %v8732_v51 = vld [vmem:[#allocation2 + $0x16c] sm:$0xf0]  ;;  %v5881_v56 = vor.u32 %v8700_v48, %v5880_v47  ;;  %1292 = vmatpush.bf16.msra.mxu2 %v6153_v46  ;;  %v62_v45 = vld [vmem:[%s10063_s0 + $0x18] sm:$0xff]  ;;  %v5949_v47 = vor.u32 %v8714_v33, %v5946_v34 }
  0x1d   :  { %v6136_v52 = vld [vmem:[#allocation2 + $0x260] sm:$0xf]  ;;  %v8764_v53 = vld [vmem:[#allocation2 + $0x26c] sm:$0xf0]  ;;  %v6009_v57 = vor.u32 %v8732_v51, %v6008_v49  ;;  %1305 = vmatpush.bf16.msra.mxu3 %v6281_v50 }
  0x1e   :  { %v6264_v54 = vld [vmem:[#allocation2 + $0x360] sm:$0xf]  ;;  %v8796_v55 = vld [vmem:[#allocation2 + $0x36c] sm:$0xf0]  ;;  %v6137_v58 = vor.u32 %v8764_v53, %v6136_v52  ;;  %1267 = vmatpush.bf16.msra.mxu0 %v5881_v56  ;;  %v8710_v53 = vld [vmem:[#allocation2 + $0xc4] sm:$0xf] }
  0x1f   :  { %v5864_v59 = vld [vmem:[#allocation2 + $0x40] sm:$0xf]  ;;  %v8696_v60 = vld [vmem:[#allocation2 + $0x4c] sm:$0xf0]  ;;  %v6265_v62 = vor.u32 %v8796_v55, %v6264_v54  ;;  %1280 = vmatpush.bf16.msra.mxu1 %v6009_v57  ;;  %v5930_v54 = vld [vmem:[#allocation2 + $0xd0] sm:$0xf0]  ;;  %v9519_v57 = vpack.c.bf16 %v62_v45, %v62_v45 }
  0x20   :  { %v5992_v61 = vld [vmem:[#allocation2 + $0x140] sm:$0xf]  ;;  %v8728_v63 = vld [vmem:[#allocation2 + $0x14c] sm:$0xf0]  ;;  %v5865_v4 = vor.u32 %v8696_v60, %v5864_v59  ;;  %1293 = vmatpush.bf16.msra.mxu2 %v6137_v58  ;;  %v60_v58 = vld [vmem:[%s10063_s0 + $0x8] sm:$0xff]  ;;  %v6077_v59 = vor.u32 %v8746_v43, %v6074_v44 }
  0x21   :  { %v6120_v0 = vld [vmem:[#allocation2 + $0x240] sm:$0xf]  ;;  %v8760_v1 = vld [vmem:[#allocation2 + $0x24c] sm:$0xf0]  ;;  %v5993_v5 = vor.u32 %v8728_v63, %v5992_v61  ;;  %1306 = vmatpush.bf16.msra.mxu3 %v6265_v62  ;;  %v8742_v61 = vld [vmem:[#allocation2 + $0x1c4] sm:$0xf] }
  0x22   :  { %v6248_v2 = vld [vmem:[#allocation2 + $0x340] sm:$0xf]  ;;  %v8792_v3 = vld [vmem:[#allocation2 + $0x34c] sm:$0xf0]  ;;  %v6121_v6 = vor.u32 %v8760_v1, %v6120_v0  ;;  %1268 = vmatpush.bf16.msra.mxu0 %v5865_v4  ;;  %v6058_v62 = vld [vmem:[#allocation2 + $0x1d0] sm:$0xf0]  ;;  %v5933_v0 = vor.u32 %v8710_v53, %v5930_v54 }
  0x23   :  { %v5848_v7 = vld [vmem:[#allocation2 + $0x20] sm:$0xf]  ;;  %v8692_v8 = vld [vmem:[#allocation2 + $0x2c] sm:$0xf0]  ;;  %v6249_v10 = vor.u32 %v8792_v3, %v6248_v2  ;;  %1281 = vmatpush.bf16.msra.mxu1 %v5993_v5  ;;  %v8706_v5 = vld [vmem:[#allocation2 + $0xa4] sm:$0xf] }
  0x24   :  { %v5976_v9 = vld [vmem:[#allocation2 + $0x120] sm:$0xf]  ;;  %v8724_v11 = vld [vmem:[#allocation2 + $0x12c] sm:$0xf0]  ;;  %v5849_v16 = vor.u32 %v8692_v8, %v5848_v7  ;;  %1294 = vmatpush.bf16.msra.mxu2 %v6121_v6  ;;  %v5914_v6 = vld [vmem:[#allocation2 + $0xb0] sm:$0xf0]  ;;  %v9526_v7 = vpack.c.bf16 %v60_v58, %v60_v58  ;;  %v6061_v8 = vor.u32 %v8742_v61, %v6058_v62 }
  0x25   :  { %v6104_v12 = vld [vmem:[#allocation2 + $0x220] sm:$0xf]  ;;  %v8756_v13 = vld [vmem:[#allocation2 + $0x22c] sm:$0xf0]  ;;  %v5977_v20 = vor.u32 %v8724_v11, %v5976_v9  ;;  %1307 = vmatpush.bf16.msra.mxu3 %v6249_v10  ;;  %v8738_v10 = vld [vmem:[#allocation2 + $0x1a4] sm:$0xf] }
  0x26   :  { %v6232_v14 = vld [vmem:[#allocation2 + $0x320] sm:$0xf]  ;;  %v8788_v15 = vld [vmem:[#allocation2 + $0x32c] sm:$0xf0]  ;;  %v6105_v21 = vor.u32 %v8756_v13, %v6104_v12  ;;  %1269 = vmatpush.bf16.msra.mxu0 %v5849_v16  ;;  %v6042_v11 = vld [vmem:[#allocation2 + $0x1b0] sm:$0xf0]  ;;  %v5917_v13 = vor.u32 %v8706_v5, %v5914_v6 }
  0x27   :  { %v5832_v17 = vld [vmem:[#allocation2] sm:$0xf]  ;;  %v8688_v18 = vld [vmem:[#allocation2 + $0xc] sm:$0xf0]  ;;  %v6233_v25 = vor.u32 %v8788_v15, %v6232_v14  ;;  %1282 = vmatpush.bf16.msra.mxu1 %v5977_v20  ;;  %v6045_v20 = vor.u32 %v8738_v10, %v6042_v11  ;;  %v8694_v43 = vld [vmem:[#allocation2 + $0x44] sm:$0xf] }
  0x28   :  { %v5960_v19 = vld [vmem:[#allocation2 + $0x100] sm:$0xf]  ;;  %v8720_v22 = vld [vmem:[#allocation2 + $0x10c] sm:$0xf0]  ;;  %v5833_v32 = vor.u32 %v8688_v18, %v5832_v17  ;;  %1295 = vmatpush.bf16.msra.mxu2 %v6105_v21  ;;  %v8702_v18 = vld [vmem:[#allocation2 + $0x84] sm:$0xf] }
  0x29   :  { %v6088_v23 = vld [vmem:[#allocation2 + $0x200] sm:$0xf]  ;;  %v8752_v24 = vld [vmem:[#allocation2 + $0x20c] sm:$0xf0]  ;;  %v5961_v36 = vor.u32 %v8720_v22, %v5960_v19  ;;  %1308 = vmatpush.bf16.msra.mxu3 %v6233_v25  ;;  %v5898_v19 = vld [vmem:[#allocation2 + $0x90] sm:$0xf0] }
  0x2a   :  { %v6216_v26 = vld [vmem:[#allocation2 + $0x300] sm:$0xf]  ;;  %v8784_v27 = vld [vmem:[#allocation2 + $0x30c] sm:$0xf0]  ;;  %v6089_v37 = vor.u32 %v8752_v24, %v6088_v23  ;;  %1270 = vmatpush.bf16.msra.mxu0 %v5833_v32  ;;  %v8734_v22 = vld [vmem:[#allocation2 + $0x184] sm:$0xf]  ;;  %v5901_v25 = vor.u32 %v8702_v18, %v5898_v19 }
  0x2b   :  { %v6456_v28 = vld [vmem:[#allocation2 + $0x4e0] sm:$0xf]  ;;  %v8844_v29 = vld [vmem:[#allocation2 + $0x4ec] sm:$0xf0]  ;;  %v6217_v41 = vor.u32 %v8784_v27, %v6216_v26  ;;  %1283 = vmatpush.bf16.msra.mxu1 %v5961_v36  ;;  %v6026_v23 = vld [vmem:[#allocation2 + $0x190] sm:$0xf0] }
  0x2c   :  { %v6584_v30 = vld [vmem:[#allocation2 + $0x5e0] sm:$0xf]  ;;  %v8876_v31 = vld [vmem:[#allocation2 + $0x5ec] sm:$0xf0]  ;;  %v6457_v42 = vor.u32 %v8844_v29, %v6456_v28  ;;  %1296 = vmatpush.bf16.msra.mxu2 %v6089_v37  ;;  %v6029_v33 = vor.u32 %v8734_v22, %v6026_v23  ;;  %v6010_v36 = vld [vmem:[#allocation2 + $0x170] sm:$0xf0] }
  0x2d   :  { %v61_v35 = vld [vmem:[%s10063_s0 + $0x10] sm:$0xff]  ;;  %v6600_v38 = vld [vmem:[#allocation2 + $0x600] sm:$0xf]  ;;  %v6585_v46 = vor.u32 %v8876_v31, %v6584_v30  ;;  %1309 = vmatpush.bf16.msra.mxu3 %v6217_v41  ;;  %v8698_v30 = vld [vmem:[#allocation2 + $0x64] sm:$0xf] }
  0x2e   :  { %v8880_v39 = vld [vmem:[#allocation2 + $0x60c] sm:$0xf0]  ;;  %v59_v40 = vld [vmem:[%s10063_s0] sm:$0xff]  ;;  %v9515_v51 = vpack.c.bf16 %v61_v35, %v61_v35  ;;  %1315 = vmatpush.bf16.msrb.mxu0 %v6457_v42  ;;  %1284 = vmatmul.bf16.vlgmr.msra.gmra.mxu1 %v9526_v7  ;;  %v5882_v31 = vld [vmem:[#allocation2 + $0x70] sm:$0xf0] }
  0x2f   :  { %v6440_v48 = vld [vmem:[#allocation2 + $0x4c0] sm:$0xf]  ;;  %v8840_v49 = vld [vmem:[#allocation2 + $0x4cc] sm:$0xf0]  ;;  %v9517_v55 = vpack.c.bf16 %v59_v40, %v59_v40  ;;  %v6601_v56 = vor.u32 %v8880_v39, %v6600_v38  ;;  %1328 = vmatpush.bf16.msrb.mxu1 %v6585_v46  ;;  %v8730_v35 = vld [vmem:[#allocation2 + $0x164] sm:$0xf]  ;;  %v5885_v38 = vor.u32 %v8698_v30, %v5882_v31 }
  0x30   :  { %v6568_v50 = vld [vmem:[#allocation2 + $0x5c0] sm:$0xf]  ;;  %v8872_v52 = vld [vmem:[#allocation2 + $0x5cc] sm:$0xf0]  ;;  %v6441_v60 = vor.u32 %v8840_v49, %v6440_v48  ;;  %1297 = vmatmul.bf16.vlgmr.msra.gmra.mxu2 %v9515_v51  ;;  %1310 = vmatmul.bf16.vlgmr.msra.gmra.mxu3 %v9519_v57  ;;  %v5866_v44 = vld [vmem:[#allocation2 + $0x50] sm:$0xf0]  ;;  %v6013_v46 = vor.u32 %v8730_v35, %v6010_v36 }
  0x31   :  { %1354 = vmatpush.bf16.msrb.mxu3 %v5949_v47  ;;  %v6569_v63 = vor.u32 %v8872_v52, %v6568_v50  ;;  %v6424_v1 = vld [vmem:[#allocation2 + $0x4a0] sm:$0xf]  ;;  %v8836_v2 = vld [vmem:[#allocation2 + $0x4ac] sm:$0xf0]  ;;  %1271 = vmatmul.bf16.vlgmr.msra.gmra.mxu0 %v9517_v55  ;;  %v8726_v48 = vld [vmem:[#allocation2 + $0x144] sm:$0xf]  ;;  %v5869_v52 = vor.u32 %v8694_v43, %v5866_v44 }
  0x32   :  { %v6552_v3 = vld [vmem:[#allocation2 + $0x5a0] sm:$0xf]  ;;  %v8868_v4 = vld [vmem:[#allocation2 + $0x5ac] sm:$0xf0]  ;;  %1348 = vmatpush.bf16.msrb.mxu2 %v6601_v56  ;;  %1316 = vmatpush.bf16.msrb.mxu0 %v6441_v60  ;;  %v6425_v9 = vor.u32 %v8836_v2, %v6424_v1  ;;  %v5994_v49 = vld [vmem:[#allocation2 + $0x150] sm:$0xf0] }
  0x33   :  { %1329 = vmatpush.bf16.msrb.mxu1 %v6569_v63  ;;  %v6553_v12 = vor.u32 %v8868_v4, %v6552_v3  ;;  %v6408_v14 = vld [vmem:[#allocation2 + $0x480] sm:$0xf]  ;;  %v8832_v15 = vld [vmem:[#allocation2 + $0x48c] sm:$0xf0]  ;;  %v5850_v60 = vld [vmem:[#allocation2 + $0x30] sm:$0xf0]  ;;  %v5997_v61 = vor.u32 %v8726_v48, %v5994_v49 }
  0x34   :  { %v6536_v16 = vld [vmem:[#allocation2 + $0x580] sm:$0xf]  ;;  %v8864_v17 = vld [vmem:[#allocation2 + $0x58c] sm:$0xf0]  ;;  %v6409_v21 = vor.u32 %v8832_v15, %v6408_v14  ;;  %v8722_v63 = vld [vmem:[#allocation2 + $0x124] sm:$0xf] }
  0x35   :  { %1355 = vmatpush.bf16.msrb.mxu3 %v5933_v0  ;;  %v6537_v24 = vor.u32 %v8864_v17, %v6536_v16  ;;  %v6392_v26 = vld [vmem:[#allocation2 + $0x460] sm:$0xf]  ;;  %v8828_v27 = vld [vmem:[#allocation2 + $0x46c] sm:$0xf0]  ;;  %v5978_v0 = vld [vmem:[#allocation2 + $0x130] sm:$0xf0] }
  0x36   :  { %1367 = vmatpush.bf16.msra.mxu2 %v6077_v59  ;;  %1317 = vmatpush.bf16.msrb.mxu0 %v6425_v9  ;;  %v6520_v28 = vld [vmem:[#allocation2 + $0x560] sm:$0xf]  ;;  %v8860_v29 = vld [vmem:[#allocation2 + $0x56c] sm:$0xf0]  ;;  %v6393_v34 = vor.u32 %v8828_v27, %v6392_v26  ;;  %v8690_v59 = vld [vmem:[#allocation2 + $0x24] sm:$0xf]  ;;  %v5981_v14 = vor.u32 %v8722_v63, %v5978_v0 }
  0x37   :  { %1330 = vmatpush.bf16.msrb.mxu1 %v6553_v12  ;;  %v65_v32 = vld [vmem:[%s10063_s0 + $0x30] sm:$0xff]  ;;  %v6521_v37 = vor.u32 %v8860_v29, %v6520_v28  ;;  %v6376_v39 = vld [vmem:[#allocation2 + $0x440] sm:$0xf]  ;;  %v5853_v3 = vor.u32 %v8690_v59, %v5850_v60  ;;  %v8778_v10 = vld [vmem:[#allocation2 + $0x2e4] sm:$0xf] }
  0x38   :  { %v8824_v40 = vld [vmem:[#allocation2 + $0x44c] sm:$0xf0]  ;;  %v6504_v41 = vld [vmem:[#allocation2 + $0x540] sm:$0xf]  ;;  %v9533_v45 = vpack.c.bf16 %v65_v32, %v65_v32  ;;  %v5834_v9 = vld [vmem:[#allocation2 + $0x10] sm:$0xf0] }
  0x39   :  { %1356 = vmatpush.bf16.msrb.mxu3 %v5917_v13  ;;  %v8856_v42 = vld [vmem:[#allocation2 + $0x54c] sm:$0xf0]  ;;  %v6377_v47 = vor.u32 %v8824_v40, %v6376_v39  ;;  %v6360_v53 = vld [vmem:[#allocation2 + $0x420] sm:$0xf]  ;;  %v6202_v11 = vld [vmem:[#allocation2 + $0x2f0] sm:$0xf0] }
  0x3a   :  { %1368 = vmatpush.bf16.msra.mxu2 %v6061_v8  ;;  %1318 = vmatpush.bf16.msrb.mxu0 %v6409_v21  ;;  %v6505_v50 = vor.u32 %v8856_v42, %v6504_v41  ;;  %v8820_v54 = vld [vmem:[#allocation2 + $0x42c] sm:$0xf0]  ;;  %v6488_v56 = vld [vmem:[#allocation2 + $0x520] sm:$0xf]  ;;  %v8686_v8 = vld [vmem:[#allocation2 + $0x4] sm:$0xf] }
  0x3b   :  { %1331 = vmatpush.bf16.msrb.mxu1 %v6537_v24  ;;  %v8852_v58 = vld [vmem:[#allocation2 + $0x52c] sm:$0xf0]  ;;  %v6361_v62 = vor.u32 %v8820_v54, %v6360_v53  ;;  %v6344_v1 = vld [vmem:[#allocation2 + $0x400] sm:$0xf]  ;;  %v8810_v12 = vld [vmem:[#allocation2 + $0x3e4] sm:$0xf]  ;;  %v6205_v24 = vor.u32 %v8778_v10, %v6202_v11 }
  0x3c   :  { %v6489_v2 = vor.u32 %v8852_v58, %v6488_v56  ;;  %v8816_v4 = vld [vmem:[#allocation2 + $0x40c] sm:$0xf0]  ;;  %v6472_v5 = vld [vmem:[#allocation2 + $0x500] sm:$0xf]  ;;  %v6330_v13 = vld [vmem:[#allocation2 + $0x3f0] sm:$0xf0] }
  0x3d   :  { %1357 = vmatpush.bf16.msrb.mxu3 %v5901_v25  ;;  %v8848_v6 = vld [vmem:[#allocation2 + $0x50c] sm:$0xf0]  ;;  %v6345_v15 = vor.u32 %v8816_v4, %v6344_v1  ;;  %v8842_v16 = vld [vmem:[#allocation2 + $0x4e4] sm:$0xf]  ;;  %v6458_v17 = vld [vmem:[#allocation2 + $0x4f0] sm:$0xf0]  ;;  %v6333_v25 = vor.u32 %v8810_v12, %v6330_v13 }
  0x3e   :  { %1369 = vmatpush.bf16.msra.mxu2 %v6045_v20  ;;  %1319 = vmatpush.bf16.msrb.mxu0 %v6393_v34  ;;  %v63_v18 = vld [vmem:[%s10063_s0 + $0x20] sm:$0xff]  ;;  %v6473_v19 = vor.u32 %v8848_v6, %v6472_v5  ;;  %v5837_v20 = vor.u32 %v8686_v8, %v5834_v9  ;;  %v5962_v22 = vld [vmem:[#allocation2 + $0x110] sm:$0xf0]  ;;  %v64_v23 = vld [vmem:[%s10063_s0 + $0x28] sm:$0xff]  ;;  %v6461_v29 = vor.u32 %v8842_v16, %v6458_v17 }
  0x3f   :  { %1332 = vmatpush.bf16.msrb.mxu1 %v6521_v37  ;;  %v8718_v21 = vld [vmem:[#allocation2 + $0x104] sm:$0xf]  ;;  %v6586_v27 = vld [vmem:[#allocation2 + $0x5f0] sm:$0xf0]  ;;  %v9543_v30 = vpack.c.bf16 %v63_v18, %v63_v18  ;;  %v9545_v35 = vpack.c.bf16 %v64_v23, %v64_v23 }
  0x40   :  { %6614 = vmatmul.msk.bf16.vlgmr.msrb.gmra.mxu2 %vm1259_vm0, %v9533_v45  ;;  %v8874_v26 = vld [vmem:[#allocation2 + $0x5e4] sm:$0xf]  ;;  %v6186_v31 = vld [vmem:[#allocation2 + $0x2d0] sm:$0xf0]  ;;  %v5965_v34 = vor.u32 %v8718_v21, %v5962_v22 }
  0x41   :  { %1358 = vmatpush.bf16.msrb.mxu3 %v5885_v38  ;;  %v8774_v28 = vld [vmem:[#allocation2 + $0x2c4] sm:$0xf]  ;;  %v6442_v37 = vld [vmem:[#allocation2 + $0x4d0] sm:$0xf0]  ;;  %v6589_v38 = vor.u32 %v8874_v26, %v6586_v27 }
  0x42   :  { %1370 = vmatpush.bf16.msra.mxu2 %v6029_v33  ;;  %1320 = vmatpush.bf16.msrb.mxu0 %v6377_v47  ;;  %v8806_v32 = vld [vmem:[#allocation2 + $0x3c4] sm:$0xf]  ;;  %v6314_v33 = vld [vmem:[#allocation2 + $0x3d0] sm:$0xf0]  ;;  %v6189_v39 = vor.u32 %v8774_v28, %v6186_v31 }
  0x43   :  { %1333 = vmatpush.bf16.msrb.mxu1 %v6505_v50  ;;  %v8838_v36 = vld [vmem:[#allocation2 + $0x4c4] sm:$0xf]  ;;  %v6317_v40 = vor.u32 %v8806_v32, %v6314_v33  ;;  %v6570_v42 = vld [vmem:[#allocation2 + $0x5d0] sm:$0xf0] }
  0x44   :  { %v8870_v41 = vld [vmem:[#allocation2 + $0x5c4] sm:$0xf]  ;;  %v6445_v44 = vor.u32 %v8838_v36, %v6442_v37  ;;  %v6298_v48 = vld [vmem:[#allocation2 + $0x3b0] sm:$0xf0] }
  0x45   :  { %1359 = vmatpush.bf16.msrb.mxu3 %v5869_v52  ;;  %v8770_v43 = vld [vmem:[#allocation2 + $0x2a4] sm:$0xf]  ;;  %v6426_v50 = vld [vmem:[#allocation2 + $0x4b0] sm:$0xf0]  ;;  %v6573_v52 = vor.u32 %v8870_v41, %v6570_v42 }
  0x46   :  { %1371 = vmatpush.bf16.msra.mxu2 %v6013_v46  ;;  %1321 = vmatpush.bf16.msrb.mxu0 %v6361_v62  ;;  %v6170_v46 = vld [vmem:[#allocation2 + $0x2b0] sm:$0xf0]  ;;  %v8802_v47 = vld [vmem:[#allocation2 + $0x3a4] sm:$0xf] }
  0x47   :  { %1334 = vmatpush.bf16.msrb.mxu1 %v6489_v2  ;;  %v8834_v49 = vld [vmem:[#allocation2 + $0x4a4] sm:$0xf]  ;;  %v6173_v53 = vor.u32 %v8770_v43, %v6170_v46  ;;  %v6301_v54 = vor.u32 %v8802_v47, %v6298_v48  ;;  %v6554_v58 = vld [vmem:[#allocation2 + $0x5b0] sm:$0xf0] }
  0x48   :  { %v8866_v56 = vld [vmem:[#allocation2 + $0x5a4] sm:$0xf]  ;;  %v6429_v60 = vor.u32 %v8834_v49, %v6426_v50  ;;  %v6282_v63 = vld [vmem:[#allocation2 + $0x390] sm:$0xf0] }
  0x49   :  { %1360 = vmatpush.bf16.msrb.mxu3 %v5853_v3  ;;  %v8766_v59 = vld [vmem:[#allocation2 + $0x284] sm:$0xf]  ;;  %v6410_v1 = vld [vmem:[#allocation2 + $0x490] sm:$0xf0]  ;;  %v6557_v2 = vor.u32 %v8866_v56, %v6554_v58  ;;  %v5952_v56 = vld [vmem:[#allocation2 + $0xe8] sm:$0xf] }
  0x4a   :  { %1372 = vmatpush.bf16.msra.mxu2 %v5997_v61  ;;  %1322 = vmatpush.bf16.msrb.mxu0 %v6345_v15  ;;  %v6154_v61 = vld [vmem:[#allocation2 + $0x290] sm:$0xf0]  ;;  %v8798_v62 = vld [vmem:[#allocation2 + $0x384] sm:$0xf]  ;;  %v8717_v58 = vld [vmem:[#allocation2 + $0xf4] sm:$0xf0] }
  0x4b   :  { %1335 = vmatpush.bf16.msrb.mxu1 %v6473_v19  ;;  %v8830_v0 = vld [vmem:[#allocation2 + $0x484] sm:$0xf]  ;;  %v6157_v3 = vor.u32 %v8766_v59, %v6154_v61  ;;  %v6285_v4 = vor.u32 %v8798_v62, %v6282_v63  ;;  %v6538_v6 = vld [vmem:[#allocation2 + $0x590] sm:$0xf0]  ;;  %v6208_v62 = vld [vmem:[#allocation2 + $0x2e8] sm:$0xf] }
  0x4c   :  { %v8862_v5 = vld [vmem:[#allocation2 + $0x584] sm:$0xf]  ;;  %v6413_v9 = vor.u32 %v8830_v0, %v6410_v1  ;;  %v6138_v10 = vld [vmem:[#allocation2 + $0x270] sm:$0xf0]  ;;  %v8781_v63 = vld [vmem:[#allocation2 + $0x2f4] sm:$0xf0] }
  0x4d   :  { %1361 = vmatpush.bf16.msrb.mxu3 %v5837_v20  ;;  %1323 = vmatmul.bf16.vlgmr.msrb.gmra.mxu0 %v9543_v30  ;;  %v8762_v8 = vld [vmem:[#allocation2 + $0x264] sm:$0xf]  ;;  %v6266_v12 = vld [vmem:[#allocation2 + $0x370] sm:$0xf0]  ;;  %v6541_v15 = vor.u32 %v8862_v5, %v6538_v6  ;;  %v5953_v5 = vor.u32 %v8717_v58, %v5952_v56  ;;  %v6336_v6 = vld [vmem:[#allocation2 + $0x3e8] sm:$0xf] }
  0x4e   :  { %1373 = vmatpush.bf16.msra.mxu2 %v5981_v14  ;;  %1380 = vmatpush.bf16.msra.mxu0 %v6205_v24  ;;  %v8794_v11 = vld [vmem:[#allocation2 + $0x364] sm:$0xf]  ;;  %v6394_v14 = vld [vmem:[#allocation2 + $0x470] sm:$0xf0]  ;;  %v6141_v16 = vor.u32 %v8762_v8, %v6138_v10  ;;  %v8813_v8 = vld [vmem:[#allocation2 + $0x3f4] sm:$0xf0] }
  0x4f   :  { %1393 = vmatpush.bf16.msra.mxu1 %v6333_v25  ;;  %v8826_v13 = vld [vmem:[#allocation2 + $0x464] sm:$0xf]  ;;  %v6269_v17 = vor.u32 %v8794_v11, %v6266_v12  ;;  %v6522_v19 = vld [vmem:[#allocation2 + $0x570] sm:$0xf0]  ;;  %v6080_v10 = vld [vmem:[#allocation2 + $0x1e8] sm:$0xf]  ;;  %v6209_v12 = vor.u32 %v8781_v63, %v6208_v62 }
  0x50   :  { %1336 = vmatmul.bf16.vlgmr.msrb.gmra.mxu1 %v9545_v35  ;;  %1362 = vmatmul.bf16.vlgmr.msrb.gmra.mxu3 %v9517_v55  ;;  %v8858_v18 = vld [vmem:[#allocation2 + $0x564] sm:$0xf]  ;;  %v6397_v21 = vor.u32 %v8826_v13, %v6394_v14  ;;  %v6122_v22 = vld [vmem:[#allocation2 + $0x250] sm:$0xf0]  ;;  %v8749_v11 = vld [vmem:[#allocation2 + $0x1f4] sm:$0xf0] }
  0x51   :  { %1406 = vmatpush.bf16.msra.mxu3 %v6461_v29  ;;  %v8758_v20 = vld [vmem:[#allocation2 + $0x244] sm:$0xf]  ;;  %v6250_v24 = vld [vmem:[#allocation2 + $0x350] sm:$0xf0]  ;;  %v6525_v27 = vor.u32 %v8858_v18, %v6522_v19  ;;  %v5936_v14 = vld [vmem:[#allocation2 + $0xc8] sm:$0xf]  ;;  %v6081_v19 = vor.u32 %v8749_v11, %v6080_v10 }
  0x52   :  { %1374 = vmatpush.bf16.msra.mxu2 %v5965_v34  ;;  %1381 = vmatpush.bf16.msra.mxu0 %v6189_v39  ;;  %v8790_v23 = vld [vmem:[#allocation2 + $0x344] sm:$0xf]  ;;  %v6378_v26 = vld [vmem:[#allocation2 + $0x450] sm:$0xf0]  ;;  %v6125_v28 = vor.u32 %v8758_v20, %v6122_v22  ;;  %v8777_v18 = vld [vmem:[#allocation2 + $0x2d4] sm:$0xf0] }
  0x53   :  { %1394 = vmatpush.bf16.msra.mxu1 %v6317_v40  ;;  %v8822_v25 = vld [vmem:[#allocation2 + $0x444] sm:$0xf]  ;;  %v6253_v29 = vor.u32 %v8790_v23, %v6250_v24  ;;  %v6506_v32 = vld [vmem:[#allocation2 + $0x550] sm:$0xf0]  ;;  %v6320_v20 = vld [vmem:[#allocation2 + $0x3c8] sm:$0xf] }
  0x54   :  { %v8854_v31 = vld [vmem:[#allocation2 + $0x544] sm:$0xf]  ;;  %v6381_v34 = vor.u32 %v8822_v25, %v6378_v26  ;;  %v6106_v36 = vld [vmem:[#allocation2 + $0x230] sm:$0xf0]  ;;  %v6064_v23 = vld [vmem:[#allocation2 + $0x1c8] sm:$0xf] }
  0x55   :  { %1407 = vmatpush.bf16.msra.mxu3 %v6445_v44  ;;  %1375 = vmatmul.bf16.vlgmr.msra.gmra.mxu2 %v9526_v7  ;;  %v8754_v33 = vld [vmem:[#allocation2 + $0x224] sm:$0xf]  ;;  %v6362_v40 = vld [vmem:[#allocation2 + $0x430] sm:$0xf0]  ;;  %v6509_v42 = vor.u32 %v8854_v31, %v6506_v32  ;;  %v8745_v24 = vld [vmem:[#allocation2 + $0x1d4] sm:$0xf0] }
  0x56   :  { %1419 = vmatpush.bf16.msrb.mxu2 %v6589_v38  ;;  %1382 = vmatpush.bf16.msra.mxu0 %v6173_v53  ;;  %v8786_v37 = vld [vmem:[#allocation2 + $0x324] sm:$0xf]  ;;  %v6234_v38 = vld [vmem:[#allocation2 + $0x330] sm:$0xf0]  ;;  %v6109_v47 = vor.u32 %v8754_v33, %v6106_v36  ;;  %v5920_v26 = vld [vmem:[#allocation2 + $0xa8] sm:$0xf]  ;;  %v6065_v32 = vor.u32 %v8745_v24, %v6064_v23 }
  0x57   :  { %1395 = vmatpush.bf16.msra.mxu1 %v6301_v54  ;;  %v8818_v39 = vld [vmem:[#allocation2 + $0x424] sm:$0xf]  ;;  %v6490_v43 = vld [vmem:[#allocation2 + $0x530] sm:$0xf0]  ;;  %v6237_v48 = vor.u32 %v8786_v37, %v6234_v38  ;;  %v8773_v31 = vld [vmem:[#allocation2 + $0x2b4] sm:$0xf0] }
  0x58   :  { %v8850_v41 = vld [vmem:[#allocation2 + $0x524] sm:$0xf]  ;;  %v6090_v46 = vld [vmem:[#allocation2 + $0x210] sm:$0xf0]  ;;  %v6365_v53 = vor.u32 %v8818_v39, %v6362_v40  ;;  %v6304_v33 = vld [vmem:[#allocation2 + $0x3a8] sm:$0xf] }
  0x59   :  { %1408 = vmatpush.bf16.msra.mxu3 %v6429_v60  ;;  %v8750_v44 = vld [vmem:[#allocation2 + $0x204] sm:$0xf]  ;;  %v6218_v50 = vld [vmem:[#allocation2 + $0x310] sm:$0xf0]  ;;  %v6493_v60 = vor.u32 %v8850_v41, %v6490_v43  ;;  %v6048_v37 = vld [vmem:[#allocation2 + $0x1a8] sm:$0xf] }
  0x5a   :  { %1420 = vmatpush.bf16.msrb.mxu2 %v6573_v52  ;;  %1383 = vmatpush.bf16.msra.mxu0 %v6157_v3  ;;  %v8782_v49 = vld [vmem:[#allocation2 + $0x304] sm:$0xf]  ;;  %v6346_v54 = vld [vmem:[#allocation2 + $0x410] sm:$0xf0]  ;;  %v6093_v0 = vor.u32 %v8750_v44, %v6090_v46  ;;  %v8741_v38 = vld [vmem:[#allocation2 + $0x1b4] sm:$0xf0] }
  0x5b   :  { %1396 = vmatpush.bf16.msra.mxu1 %v6285_v4  ;;  %v8814_v52 = vld [vmem:[#allocation2 + $0x404] sm:$0xf]  ;;  %v6602_v61 = vld [vmem:[#allocation2 + $0x610] sm:$0xf0]  ;;  %v6221_v1 = vor.u32 %v8782_v49, %v6218_v50  ;;  %v5904_v40 = vld [vmem:[#allocation2 + $0x88] sm:$0xf]  ;;  %v6049_v46 = vor.u32 %v8741_v38, %v6048_v37 }
  0x5c   :  { %v8878_v59 = vld [vmem:[#allocation2 + $0x604] sm:$0xf]  ;;  %v6474_v3 = vld [vmem:[#allocation2 + $0x510] sm:$0xf0]  ;;  %v6349_v4 = vor.u32 %v8814_v52, %v6346_v54  ;;  %v8705_v41 = vld [vmem:[#allocation2 + $0x94] sm:$0xf0] }
  0x5d   :  { %1409 = vmatpush.bf16.msra.mxu3 %v6413_v9  ;;  %v6605_v9 = vor.u32 %v8878_v59, %v6602_v61  ;;  %v6160_v43 = vld [vmem:[#allocation2 + $0x288] sm:$0xf]  ;;  %v8769_v44 = vld [vmem:[#allocation2 + $0x294] sm:$0xf0]  ;;  %v5905_v49 = vor.u32 %v8705_v41, %v5904_v40 }
  0x5e   :  { %1421 = vmatpush.bf16.msrb.mxu2 %v6557_v2  ;;  %1384 = vmatpush.bf16.msra.mxu0 %v6141_v16  ;;  %v8846_v2 = vld [vmem:[#allocation2 + $0x504] sm:$0xf]  ;;  %v6337_v16 = vor.u32 %v8813_v8, %v6336_v6  ;;  %v6032_v50 = vld [vmem:[#allocation2 + $0x188] sm:$0xf]  ;;  %v8737_v52 = vld [vmem:[#allocation2 + $0x194] sm:$0xf0] }
  0x5f   :  { %1397 = vmatpush.bf16.msra.mxu1 %v6269_v17  ;;  %v6477_v13 = vor.u32 %v8846_v2, %v6474_v3  ;;  %v6192_v17 = vld [vmem:[#allocation2 + $0x2c8] sm:$0xf]  ;;  %v8701_v56 = vld [vmem:[#allocation2 + $0x74] sm:$0xf0]  ;;  %v6033_v61 = vor.u32 %v8737_v52, %v6032_v50 }
  0x60   :  { %v6193_v25 = vor.u32 %v8777_v18, %v6192_v17  ;;  %v5888_v54 = vld [vmem:[#allocation2 + $0x68] sm:$0xf]  ;;  %v8797_v63 = vld [vmem:[#allocation2 + $0x374] sm:$0xf0] }
  0x61   :  { %1410 = vmatpush.bf16.msra.mxu3 %v6397_v21  ;;  %v8809_v21 = vld [vmem:[#allocation2 + $0x3d4] sm:$0xf0]  ;;  %v6144_v59 = vld [vmem:[#allocation2 + $0x268] sm:$0xf] }
  0x62   :  { %1422 = vmatpush.bf16.msrb.mxu2 %v6541_v15  ;;  %1385 = vmatpush.bf16.msra.mxu0 %v6125_v28  ;;  %v8713_v15 = vld [vmem:[#allocation2 + $0xd4] sm:$0xf0]  ;;  %v6321_v28 = vor.u32 %v8809_v21, %v6320_v20  ;;  %v6272_v62 = vld [vmem:[#allocation2 + $0x368] sm:$0xf] }
  0x63   :  { %1398 = vmatpush.bf16.msra.mxu1 %v6253_v29  ;;  %v5937_v22 = vor.u32 %v8713_v15, %v5936_v14  ;;  %v6176_v29 = vld [vmem:[#allocation2 + $0x2a8] sm:$0xf]  ;;  %v8733_v2 = vld [vmem:[#allocation2 + $0x174] sm:$0xf0]  ;;  %v6273_v6 = vor.u32 %v8797_v63, %v6272_v62 }
  0x64   :  { %v6177_v39 = vor.u32 %v8773_v31, %v6176_v29  ;;  %v6128_v8 = vld [vmem:[#allocation2 + $0x248] sm:$0xf]  ;;  %v8729_v15 = vld [vmem:[#allocation2 + $0x154] sm:$0xf0] }
  0x65   :  { %1411 = vmatpush.bf16.msra.mxu3 %v6381_v34  ;;  %v8805_v34 = vld [vmem:[#allocation2 + $0x3b4] sm:$0xf0]  ;;  %v6256_v11 = vld [vmem:[#allocation2 + $0x348] sm:$0xf] }
  0x66   :  { %1423 = vmatpush.bf16.msrb.mxu2 %v6525_v27  ;;  %1386 = vmatpush.bf16.msra.mxu0 %v6109_v47  ;;  %v8709_v27 = vld [vmem:[#allocation2 + $0xb4] sm:$0xf0]  ;;  %v6288_v47 = vld [vmem:[#allocation2 + $0x388] sm:$0xf] }
  0x67   :  { %1399 = vmatpush.bf16.msra.mxu1 %v6237_v48  ;;  %v5921_v36 = vor.u32 %v8709_v27, %v5920_v26  ;;  %v8801_v48 = vld [vmem:[#allocation2 + $0x394] sm:$0xf0]  ;;  %v6000_v14 = vld [vmem:[#allocation2 + $0x148] sm:$0xf] }
  0x68   :  { %v6289_v58 = vor.u32 %v8801_v48, %v6288_v47  ;;  %v5856_v17 = vld [vmem:[#allocation2 + $0x28] sm:$0xf]  ;;  %v8693_v18 = vld [vmem:[#allocation2 + $0x34] sm:$0xf0]  ;;  %v8715_v47 = vld [vmem:[#allocation2 + $0xec] sm:$0xf] }
  0x69   :  { %1412 = vmatpush.bf16.msra.mxu3 %v6365_v53  ;;  %v6161_v53 = vor.u32 %v8769_v44, %v6160_v43  ;;  %v6112_v20 = vld [vmem:[#allocation2 + $0x228] sm:$0xf]  ;;  %v8757_v21 = vld [vmem:[#allocation2 + $0x234] sm:$0xf0]  ;;  %v5954_v48 = vld [vmem:[#allocation2 + $0xf8] sm:$0xf0] }
  0x6a   :  { %1424 = vmatpush.bf16.msrb.mxu2 %v6509_v42  ;;  %1387 = vmatpush.bf16.msra.mxu0 %v6093_v0  ;;  %v6305_v42 = vor.u32 %v8805_v34, %v6304_v33  ;;  %v5889_v0 = vor.u32 %v8701_v56, %v5888_v54  ;;  %v6240_v23 = vld [vmem:[#allocation2 + $0x328] sm:$0xf]  ;;  %v8789_v24 = vld [vmem:[#allocation2 + $0x334] sm:$0xf0]  ;;  %v6113_v29 = vor.u32 %v8757_v21, %v6112_v20 }
  0x6b   :  { %1400 = vmatpush.bf16.msra.mxu1 %v6221_v1  ;;  %v6016_v1 = vld [vmem:[#allocation2 + $0x168] sm:$0xf]  ;;  %v8725_v27 = vld [vmem:[#allocation2 + $0x134] sm:$0xf0]  ;;  %v6241_v34 = vor.u32 %v8789_v24, %v6240_v23  ;;  %v5957_v63 = vor.u32 %v8715_v47, %v5954_v48  ;;  %v6050_v23 = vld [vmem:[#allocation2 + $0x1b8] sm:$0xf0] }
  0x6c   :  { %v6017_v10 = vor.u32 %v8733_v2, %v6016_v1  ;;  %v5984_v26 = vld [vmem:[#allocation2 + $0x128] sm:$0xf]  ;;  %v8689_v31 = vld [vmem:[#allocation2 + $0x14] sm:$0xf0]  ;;  %v8711_v1 = vld [vmem:[#allocation2 + $0xcc] sm:$0xf] }
  0x6d   :  { %1413 = vmatpush.bf16.msra.mxu3 %v6349_v4  ;;  %1388 = vmatmul.bf16.vlgmr.msra.gmra.mxu0 %v9515_v51  ;;  %v5872_v4 = vld [vmem:[#allocation2 + $0x48] sm:$0xf]  ;;  %v8845_v33 = vld [vmem:[#allocation2 + $0x4f4] sm:$0xf0]  ;;  %v5985_v40 = vor.u32 %v8725_v27, %v5984_v26  ;;  %v5938_v2 = vld [vmem:[#allocation2 + $0xd8] sm:$0xf0] }
  0x6e   :  { %1425 = vmatpush.bf16.msrb.mxu2 %v6493_v60  ;;  %1471 = vmatpush.bf16.msrb.mxu0 %v6209_v12  ;;  %v8765_v60 = vld [vmem:[#allocation2 + $0x274] sm:$0xf0]  ;;  %v6096_v37 = vld [vmem:[#allocation2 + $0x208] sm:$0xf]  ;;  %v8703_v26 = vld [vmem:[#allocation2 + $0x8c] sm:$0xf] }
  0x6f   :  { %1445 = vmatpush.bf16.msrb.mxu1 %v5953_v5  ;;  %v6145_v3 = vor.u32 %v8765_v60, %v6144_v59  ;;  %v8697_v5 = vld [vmem:[#allocation2 + $0x54] sm:$0xf0]  ;;  %v6592_v52 = vld [vmem:[#allocation2 + $0x5e8] sm:$0xf]  ;;  %v8747_v60 = vld [vmem:[#allocation2 + $0x1ec] sm:$0xf] }
  0x70   :  { %1414 = vmatmul.bf16.vlgmr.msra.gmra.mxu3 %v9543_v30  ;;  %1401 = vmatmul.bf16.vlgmr.msra.gmra.mxu1 %v9519_v57  ;;  %v8793_v12 = vld [vmem:[#allocation2 + $0x354] sm:$0xf0]  ;;  %v6448_v54 = vld [vmem:[#allocation2 + $0x4c8] sm:$0xf]  ;;  %v5906_v27 = vld [vmem:[#allocation2 + $0x98] sm:$0xf0] }
  0x71   :  { %1439 = vmatpush.bf16.msrb.mxu3 %v6605_v9  ;;  %v8761_v9 = vld [vmem:[#allocation2 + $0x254] sm:$0xf0]  ;;  %v6416_v20 = vld [vmem:[#allocation2 + $0x488] sm:$0xf] }
  0x72   :  { %1426 = vmatpush.bf16.msrb.mxu2 %v6477_v13  ;;  %1472 = vmatpush.bf16.msrb.mxu0 %v6193_v25  ;;  %v5873_v13 = vor.u32 %v8697_v5, %v5872_v4  ;;  %v5857_v25 = vor.u32 %v8693_v18, %v5856_v17  ;;  %v8753_v38 = vld [vmem:[#allocation2 + $0x214] sm:$0xf0]  ;;  %v6576_v5 = vld [vmem:[#allocation2 + $0x5c8] sm:$0xf] }
  0x73   :  { %1446 = vmatpush.bf16.msrb.mxu1 %v5937_v22  ;;  %v6001_v22 = vor.u32 %v8729_v15, %v6000_v14  ;;  %v8785_v41 = vld [vmem:[#allocation2 + $0x314] sm:$0xf0]  ;;  %v6097_v50 = vor.u32 %v8753_v38, %v6096_v37  ;;  %v8707_v14 = vld [vmem:[#allocation2 + $0xac] sm:$0xf]  ;;  %v5922_v15 = vld [vmem:[#allocation2 + $0xb8] sm:$0xf0]  ;;  %v5909_v38 = vor.u32 %v8703_v26, %v5906_v27 }
  0x74   :  { %v8881_v43 = vld [vmem:[#allocation2 + $0x614] sm:$0xf0]  ;;  %v6560_v18 = vld [vmem:[#allocation2 + $0x5a8] sm:$0xf]  ;;  %v5925_v24 = vor.u32 %v8707_v14, %v5922_v15  ;;  %v6034_v37 = vld [vmem:[#allocation2 + $0x198] sm:$0xf0] }
  0x75   :  { %1458 = vmatpush.bf16.msra.mxu3 %v6081_v19  ;;  %1427 = vmatmul.bf16.vlgmr.msrb.gmra.mxu2 %v9545_v35  ;;  %v6257_v19 = vor.u32 %v8793_v12, %v6256_v11  ;;  %v6066_v11 = vld [vmem:[#allocation2 + $0x1d8] sm:$0xf0]  ;;  %v5941_v12 = vor.u32 %v8711_v1, %v5938_v2  ;;  %v8833_v21 = vld [vmem:[#allocation2 + $0x494] sm:$0xf0]  ;;  %v6384_v47 = vld [vmem:[#allocation2 + $0x448] sm:$0xf] }
  0x76   :  { %1484 = vmatpush.bf16.msra.mxu2 %v6337_v16  ;;  %1473 = vmatpush.bf16.msrb.mxu0 %v6177_v39  ;;  %v6129_v16 = vor.u32 %v8761_v9, %v6128_v8  ;;  %v6224_v39 = vld [vmem:[#allocation2 + $0x308] sm:$0xf]  ;;  %v8837_v9 = vld [vmem:[#allocation2 + $0x4b4] sm:$0xf0]  ;;  %v6002_v1 = vld [vmem:[#allocation2 + $0x158] sm:$0xf0] }
  0x77   :  { %1447 = vmatpush.bf16.msrb.mxu1 %v5921_v36  ;;  %v5968_v36 = vld [vmem:[#allocation2 + $0x108] sm:$0xf]  ;;  %v6225_v56 = vor.u32 %v8785_v41, %v6224_v39  ;;  %v5890_v41 = vld [vmem:[#allocation2 + $0x78] sm:$0xf0]  ;;  %v8825_v48 = vld [vmem:[#allocation2 + $0x454] sm:$0xf0] }
  0x78   :  { %v6432_v8 = vld [vmem:[#allocation2 + $0x4a8] sm:$0xf]  ;;  %v5986_v14 = vld [vmem:[#allocation2 + $0x138] sm:$0xf0] }
  0x79   :  { %1459 = vmatpush.bf16.msra.mxu3 %v6065_v32  ;;  %v6464_v32 = vld [vmem:[#allocation2 + $0x4e8] sm:$0xf]  ;;  %v6338_v26 = vld [vmem:[#allocation2 + $0x3f8] sm:$0xf0] }
  0x7a   :  { %1485 = vmatpush.bf16.msra.mxu2 %v6321_v28  ;;  %1474 = vmatpush.bf16.msrb.mxu0 %v6161_v53  ;;  %v5840_v28 = vld [vmem:[#allocation2 + $0x8] sm:$0xf]  ;;  %v8877_v53 = vld [vmem:[#allocation2 + $0x5f4] sm:$0xf0] }
  0x7b   :  { %1448 = vmatpush.bf16.msrb.mxu1 %v5905_v49  ;;  %v5841_v44 = vor.u32 %v8689_v31, %v5840_v28  ;;  %v6465_v49 = vor.u32 %v8845_v33, %v6464_v32  ;;  %v6417_v28 = vor.u32 %v8833_v21, %v6416_v20  ;;  %v6544_v31 = vld [vmem:[#allocation2 + $0x588] sm:$0xf]  ;;  %v8865_v32 = vld [vmem:[#allocation2 + $0x594] sm:$0xf0]  ;;  %v8687_v20 = vld [vmem:[#allocation2 + $0xc] sm:$0xf] }
  0x7c   :  { %v6400_v33 = vld [vmem:[#allocation2 + $0x468] sm:$0xf]  ;;  %v6545_v39 = vor.u32 %v8865_v32, %v6544_v31  ;;  %v5842_v21 = vld [vmem:[#allocation2 + $0x18] sm:$0xf0]  ;;  %v8775_v31 = vld [vmem:[#allocation2 + $0x2cc] sm:$0xf] }
  0x7d   :  { %1460 = vmatpush.bf16.msra.mxu3 %v6049_v46  ;;  %v8721_v46 = vld [vmem:[#allocation2 + $0x114] sm:$0xf0]  ;;  %v5845_v32 = vor.u32 %v8687_v20, %v5842_v21  ;;  %v8795_v20 = vld [vmem:[#allocation2 + $0x36c] sm:$0xf] }
  0x7e   :  { %1486 = vmatpush.bf16.msra.mxu2 %v6305_v42  ;;  %1475 = vmatpush.bf16.msrb.mxu0 %v6145_v3  ;;  %v6608_v42 = vld [vmem:[#allocation2 + $0x608] sm:$0xf]  ;;  %v5969_v62 = vor.u32 %v8721_v46, %v5968_v36  ;;  %v8735_v36 = vld [vmem:[#allocation2 + $0x18c] sm:$0xf]  ;;  %v8861_v46 = vld [vmem:[#allocation2 + $0x574] sm:$0xf0] }
  0x7f   :  { %1449 = vmatpush.bf16.msrb.mxu1 %v5889_v0  ;;  %v6609_v59 = vor.u32 %v8881_v43, %v6608_v42  ;;  %v6593_v0 = vor.u32 %v8877_v53, %v6592_v52  ;;  %v6037_v43 = vor.u32 %v8735_v36, %v6034_v37  ;;  %v5970_v36 = vld [vmem:[#allocation2 + $0x118] sm:$0xf0] }
  0x80   :  { %6615 = vmatmul.msk.bf16.vlgmr.msrb.gmra.mxu3 %vm1259_vm0, %v9533_v45 }
  0x81   :  { %1461 = vmatpush.bf16.msra.mxu3 %v6033_v61  ;;  %v6082_v61 = vld [vmem:[#allocation2 + $0x1f8] sm:$0xf0] }
  0x82   :  { %1487 = vmatpush.bf16.msra.mxu2 %v6289_v58  ;;  %1476 = vmatpush.bf16.msrb.mxu0 %v6129_v16  ;;  %v8841_v58 = vld [vmem:[#allocation2 + $0x4d4] sm:$0xf0]  ;;  %v6085_v4 = vor.u32 %v8747_v60, %v6082_v61  ;;  %v6433_v16 = vor.u32 %v8837_v9, %v6432_v8  ;;  %v6512_v60 = vld [vmem:[#allocation2 + $0x548] sm:$0xf] }
  0x83   :  { %1450 = vmatpush.bf16.msrb.mxu1 %v5873_v13  ;;  %v6449_v3 = vor.u32 %v8841_v58, %v6448_v54  ;;  %v8695_v54 = vld [vmem:[#allocation2 + $0x4c] sm:$0xf]  ;;  %v6385_v58 = vor.u32 %v8825_v48, %v6384_v47  ;;  %v8857_v61 = vld [vmem:[#allocation2 + $0x554] sm:$0xf0]  ;;  %v6496_v9 = vld [vmem:[#allocation2 + $0x528] sm:$0xf] }
  0x84   :  { %v8839_v47 = vld [vmem:[#allocation2 + $0x4cc] sm:$0xf]  ;;  %v6450_v48 = vld [vmem:[#allocation2 + $0x4d8] sm:$0xf0] }
  0x85   :  { %1462 = vmatpush.bf16.msra.mxu3 %v6017_v10  ;;  %v8743_v10 = vld [vmem:[#allocation2 + $0x1cc] sm:$0xf] }
  0x86   :  { %1488 = vmatpush.bf16.msra.mxu2 %v6273_v6  ;;  %1477 = vmatpush.bf16.msrb.mxu0 %v6113_v29  ;;  %v8873_v6 = vld [vmem:[#allocation2 + $0x5d4] sm:$0xf0]  ;;  %v6069_v17 = vor.u32 %v8743_v10, %v6066_v11  ;;  %v6352_v11 = vld [vmem:[#allocation2 + $0x408] sm:$0xf] }
  0x87   :  { %1451 = vmatpush.bf16.msrb.mxu1 %v5857_v25  ;;  %v6577_v13 = vor.u32 %v8873_v6, %v6576_v5  ;;  %v5858_v5 = vld [vmem:[#allocation2 + $0x38] sm:$0xf0]  ;;  %v8853_v10 = vld [vmem:[#allocation2 + $0x534] sm:$0xf0] }
  0x89   :  { %1463 = vmatpush.bf16.msra.mxu3 %v6001_v22  ;;  %v8739_v22 = vld [vmem:[#allocation2 + $0x1ac] sm:$0xf] }
  0x8a   :  { %1489 = vmatpush.bf16.msra.mxu2 %v6257_v19  ;;  %1478 = vmatpush.bf16.msrb.mxu0 %v6097_v50  ;;  %v8869_v19 = vld [vmem:[#allocation2 + $0x5b4] sm:$0xf0]  ;;  %v6053_v29 = vor.u32 %v8739_v22, %v6050_v23  ;;  %v6018_v50 = vld [vmem:[#allocation2 + $0x178] sm:$0xf0] }
  0x8b   :  { %1452 = vmatpush.bf16.msrb.mxu1 %v5841_v44  ;;  %v6561_v25 = vor.u32 %v8869_v19, %v6560_v18  ;;  %v6528_v44 = vld [vmem:[#allocation2 + $0x568] sm:$0xf]  ;;  %v6497_v18 = vor.u32 %v8853_v10, %v6496_v9  ;;  %v6290_v10 = vld [vmem:[#allocation2 + $0x398] sm:$0xf0] }
  0x8c   :  { %v6529_v53 = vor.u32 %v8861_v46, %v6528_v44  ;;  %v6480_v19 = vld [vmem:[#allocation2 + $0x508] sm:$0xf]  ;;  %v6322_v46 = vld [vmem:[#allocation2 + $0x3d8] sm:$0xf0] }
  0x8d   :  { %1464 = vmatpush.bf16.msra.mxu3 %v5985_v40  ;;  %1479 = vmatmul.bf16.vlgmr.msrb.gmra.mxu0 %v9515_v51  ;;  %v8699_v40 = vld [vmem:[#allocation2 + $0x6c] sm:$0xf] }
  0x8e   :  { %1490 = vmatpush.bf16.msra.mxu2 %v6241_v34  ;;  %1530 = vmatpush.bf16.msra.mxu0 %v6609_v59  ;;  %v8829_v34 = vld [vmem:[#allocation2 + $0x474] sm:$0xf0]  ;;  %v5893_v52 = vor.u32 %v8699_v40, %v5890_v41 }
  0x8f   :  { %1497 = vmatpush.bf16.msra.mxu1 %v6465_v49  ;;  %v6401_v42 = vor.u32 %v8829_v34, %v6400_v33  ;;  %v8731_v49 = vld [vmem:[#allocation2 + $0x16c] sm:$0xf]  ;;  %v6194_v33 = vld [vmem:[#allocation2 + $0x2d8] sm:$0xf0] }
  0x90   :  { %1453 = vmatmul.bf16.vlgmr.msrb.gmra.mxu1 %v9517_v55  ;;  %v6021_v59 = vor.u32 %v8731_v49, %v6018_v50  ;;  %v8719_v34 = vld [vmem:[#allocation2 + $0x10c] sm:$0xf] }
  0x91   :  { %1465 = vmatpush.bf16.msra.mxu3 %v5969_v62  ;;  %v6368_v62 = vld [vmem:[#allocation2 + $0x428] sm:$0xf]  ;;  %v5973_v44 = vor.u32 %v8719_v34, %v5970_v36  ;;  %v8771_v50 = vld [vmem:[#allocation2 + $0x2ac] sm:$0xf] }
  0x92   :  { %1491 = vmatpush.bf16.msra.mxu2 %v6225_v56  ;;  %1549 = vmatpush.bf16.msrb.mxu0 %v6085_v4  ;;  %v5874_v56 = vld [vmem:[#allocation2 + $0x58] sm:$0xf0]  ;;  %v8691_v4 = vld [vmem:[#allocation2 + $0x2c] sm:$0xf] }
  0x93   :  { %1498 = vmatpush.bf16.msra.mxu1 %v6449_v3  ;;  %v5877_v2 = vor.u32 %v8695_v54, %v5874_v56  ;;  %v6513_v3 = vor.u32 %v8857_v61, %v6512_v60  ;;  %v5861_v15 = vor.u32 %v8691_v4, %v5858_v5  ;;  %v6578_v54 = vld [vmem:[#allocation2 + $0x5d8] sm:$0xf0]  ;;  %v8791_v34 = vld [vmem:[#allocation2 + $0x34c] sm:$0xf] }
  0x94   :  { %1466 = vmatmul.bf16.vlgmr.msra.gmra.mxu3 %v9526_v7  ;;  %v6306_v61 = vld [vmem:[#allocation2 + $0x3b8] sm:$0xf0] }
  0x95   :  { %1510 = vmatpush.bf16.msrb.mxu3 %v6593_v0  ;;  %1492 = vmatmul.bf16.vlgmr.msra.gmra.mxu2 %v9519_v57  ;;  %v8727_v0 = vld [vmem:[#allocation2 + $0x14c] sm:$0xf]  ;;  %v6562_v4 = vld [vmem:[#allocation2 + $0x5b8] sm:$0xf0] }
  0x96   :  { %1536 = vmatpush.bf16.msrb.mxu2 %v5957_v63  ;;  %1550 = vmatpush.bf16.msrb.mxu0 %v6069_v17  ;;  %v8821_v63 = vld [vmem:[#allocation2 + $0x434] sm:$0xf0]  ;;  %v6005_v8 = vor.u32 %v8727_v0, %v6002_v1  ;;  %v6210_v17 = vld [vmem:[#allocation2 + $0x2f8] sm:$0xf0]  ;;  %v8767_v1 = vld [vmem:[#allocation2 + $0x28c] sm:$0xf] }
  0x97   :  { %1499 = vmatpush.bf16.msra.mxu1 %v6433_v16  ;;  %v6369_v6 = vor.u32 %v8821_v63, %v6368_v62  ;;  %v8779_v16 = vld [vmem:[#allocation2 + $0x2ec] sm:$0xf]  ;;  %v6434_v63 = vld [vmem:[#allocation2 + $0x4b8] sm:$0xf0] }
  0x98   :  { %v6213_v27 = vor.u32 %v8779_v16, %v6210_v17  ;;  %v8835_v62 = vld [vmem:[#allocation2 + $0x4ac] sm:$0xf]  ;;  %v6546_v17 = vld [vmem:[#allocation2 + $0x598] sm:$0xf0] }
  0x99   :  { %1511 = vmatpush.bf16.msrb.mxu3 %v6577_v13  ;;  %v8723_v13 = vld [vmem:[#allocation2 + $0x12c] sm:$0xf] }
  0x9a   :  { %1537 = vmatpush.bf16.msrb.mxu2 %v5941_v12  ;;  %1551 = vmatpush.bf16.msrb.mxu0 %v6053_v29  ;;  %v8817_v12 = vld [vmem:[#allocation2 + $0x414] sm:$0xf0]  ;;  %v5989_v23 = vor.u32 %v8723_v13, %v5986_v14  ;;  %v6466_v29 = vld [vmem:[#allocation2 + $0x4f8] sm:$0xf0]  ;;  %v8763_v14 = vld [vmem:[#allocation2 + $0x26c] sm:$0xf] }
  0x9b   :  { %1500 = vmatpush.bf16.msra.mxu1 %v6417_v28  ;;  %v6353_v22 = vor.u32 %v8817_v12, %v6352_v11  ;;  %v8843_v28 = vld [vmem:[#allocation2 + $0x4ec] sm:$0xf]  ;;  %v6418_v12 = vld [vmem:[#allocation2 + $0x498] sm:$0xf0] }
  0x9c   :  { %v6469_v41 = vor.u32 %v8843_v28, %v6466_v29  ;;  %v8831_v11 = vld [vmem:[#allocation2 + $0x48c] sm:$0xf]  ;;  %v6530_v29 = vld [vmem:[#allocation2 + $0x578] sm:$0xf0] }
  0x9d   :  { %1512 = vmatpush.bf16.msrb.mxu3 %v6561_v25  ;;  %6616 = vmatmul.msk.bf16.vlgmr.msra.gmra.mxu0 %vm1259_vm0, %v9533_v45  ;;  %v8811_v25 = vld [vmem:[#allocation2 + $0x3ec] sm:$0xf] }
  0x9e   :  { %1538 = vmatpush.bf16.msrb.mxu2 %v5925_v24  ;;  %1552 = vmatpush.bf16.msrb.mxu0 %v6037_v43  ;;  %v8849_v24 = vld [vmem:[#allocation2 + $0x514] sm:$0xf0]  ;;  %v6341_v40 = vor.u32 %v8811_v25, %v6338_v26  ;;  %v6197_v43 = vor.u32 %v8775_v31, %v6194_v33  ;;  %v8759_v26 = vld [vmem:[#allocation2 + $0x24c] sm:$0xf] }
  0x9f   :  { %1501 = vmatpush.bf16.msra.mxu1 %v6401_v42  ;;  %v6481_v37 = vor.u32 %v8849_v24, %v6480_v19  ;;  %v8807_v42 = vld [vmem:[#allocation2 + $0x3cc] sm:$0xf]  ;;  %v6421_v19 = vor.u32 %v8831_v11, %v6418_v12  ;;  %v6402_v24 = vld [vmem:[#allocation2 + $0x478] sm:$0xf0] }
  0xa0   :  { %v6325_v56 = vor.u32 %v8807_v42, %v6322_v46  ;;  %v8859_v28 = vld [vmem:[#allocation2 + $0x56c] sm:$0xf]  ;;  %v6354_v11 = vld [vmem:[#allocation2 + $0x418] sm:$0xf0] }
  0xa1   :  { %1513 = vmatpush.bf16.msrb.mxu3 %v6545_v39  ;;  %v6594_v39 = vld [vmem:[#allocation2 + $0x5f8] sm:$0xf0]  ;;  %v8755_v42 = vld [vmem:[#allocation2 + $0x22c] sm:$0xf] }
  0xa2   :  { %1539 = vmatpush.bf16.msrb.mxu2 %v5909_v38  ;;  %1553 = vmatpush.bf16.msrb.mxu0 %v6021_v59  ;;  %v8875_v38 = vld [vmem:[#allocation2 + $0x5ec] sm:$0xf] }
  0xa3   :  { %1502 = vmatpush.bf16.msra.mxu1 %v6385_v58  ;;  %v6597_v49 = vor.u32 %v8875_v38, %v6594_v39  ;;  %v6453_v58 = vor.u32 %v8839_v47, %v6450_v48  ;;  %v8803_v59 = vld [vmem:[#allocation2 + $0x3ac] sm:$0xf]  ;;  %v6258_v38 = vld [vmem:[#allocation2 + $0x358] sm:$0xf0] }
  0xa4   :  { %v6309_v5 = vor.u32 %v8803_v59, %v6306_v61  ;;  %v8823_v39 = vld [vmem:[#allocation2 + $0x44c] sm:$0xf]  ;;  %v6514_v47 = vld [vmem:[#allocation2 + $0x558] sm:$0xf0]  ;;  %v6261_v48 = vor.u32 %v8791_v34, %v6258_v38  ;;  %v6700_v38 = vld [vmem:[#allocation4 + $0xa0] sm:$0xf] }
  0xa5   :  { %1514 = vmatpush.bf16.msrb.mxu3 %v6529_v53  ;;  %v8871_v53 = vld [vmem:[#allocation2 + $0x5cc] sm:$0xf] }
  0xa6   :  { %1540 = vmatpush.bf16.msrb.mxu2 %v5893_v52  ;;  %1554 = vmatpush.bf16.msrb.mxu0 %v6005_v8  ;;  %v6178_v52 = vld [vmem:[#allocation2 + $0x2b8] sm:$0xf0]  ;;  %v6581_v0 = vor.u32 %v8871_v53, %v6578_v54  ;;  %v8799_v8 = vld [vmem:[#allocation2 + $0x38c] sm:$0xf] }
  0xa7   :  { %1503 = vmatpush.bf16.msra.mxu1 %v6369_v6  ;;  %v6181_v60 = vor.u32 %v8771_v50, %v6178_v52  ;;  %v6437_v6 = vor.u32 %v8835_v62, %v6434_v63  ;;  %v8855_v46 = vld [vmem:[#allocation2 + $0x54c] sm:$0xf]  ;;  %v6242_v53 = vld [vmem:[#allocation2 + $0x338] sm:$0xf0] }
  0xa8   :  { %v8787_v50 = vld [vmem:[#allocation2 + $0x32c] sm:$0xf]  ;;  %v6498_v63 = vld [vmem:[#allocation2 + $0x538] sm:$0xf0] }
  0xa9   :  { %1515 = vmatpush.bf16.msrb.mxu3 %v6513_v3  ;;  %v8867_v3 = vld [vmem:[#allocation2 + $0x5ac] sm:$0xf] }
  0xaa   :  { %1541 = vmatpush.bf16.msrb.mxu2 %v5877_v2  ;;  %1555 = vmatpush.bf16.msrb.mxu0 %v5989_v23  ;;  %v6162_v2 = vld [vmem:[#allocation2 + $0x298] sm:$0xf0]  ;;  %v6565_v13 = vor.u32 %v8867_v3, %v6562_v4  ;;  %v8827_v23 = vld [vmem:[#allocation2 + $0x46c] sm:$0xf]  ;;  %v6245_v4 = vor.u32 %v8787_v50, %v6242_v53 }
  0xab   :  { %1504 = vmatpush.bf16.msra.mxu1 %v6353_v22  ;;  %v6165_v9 = vor.u32 %v8767_v1, %v6162_v2  ;;  %v6274_v22 = vld [vmem:[#allocation2 + $0x378] sm:$0xf0]  ;;  %v9569_v25 = vpop.f32.mrf.mxu1  ;;  %v6405_v33 = vor.u32 %v8827_v23, %v6402_v24  ;;  %v8819_v54 = vld [vmem:[#allocation2 + $0x42c] sm:$0xf]  ;;  %v9578_v2 = vld [vmem:[%s10065_s2] sm:$0xf] }
  0xac   :  { %v8751_v59 = vld [vmem:[#allocation2 + $0x20c] sm:$0xf]  ;;  %v6610_v1 = vld [vmem:[#allocation2 + $0x618] sm:$0xf0] }
  0xad   :  { %1516 = vmatpush.bf16.msrb.mxu3 %v6497_v18  ;;  %v6293_v18 = vor.u32 %v8799_v8, %v6290_v10  ;;  %v8851_v61 = vld [vmem:[#allocation2 + $0x52c] sm:$0xf] }
  0xae   :  { %1542 = vmatpush.bf16.msrb.mxu2 %v5861_v15  ;;  %1505 = vmatmul.bf16.vlgmr.msra.gmra.mxu1 %v9543_v30  ;;  %v6146_v15 = vld [vmem:[#allocation2 + $0x278] sm:$0xf0]  ;;  %v9567_v16 = vpop.f32.mrf.mxu0  ;;  %v8815_v10 = vld [vmem:[#allocation2 + $0x40c] sm:$0xf] }
  0xaf   :  { %1562 = vmatpush.bf16.msrb.mxu1 %v6213_v27  ;;  %1556 = vmatpush.bf16.msrb.mxu0 %v5973_v44  ;;  %v6149_v21 = vor.u32 %v8763_v14, %v6146_v15  ;;  %v6130_v27 = vld [vmem:[#allocation2 + $0x258] sm:$0xf0]  ;;  %v6732_v14 = vld [vmem:[#allocation4 + $0xe0] sm:$0xf]  ;;  %v8912_v15 = vld [vmem:[#allocation4 + $0xec] sm:$0xf0]  ;;  %v6357_v23 = vor.u32 %v8815_v10, %v6354_v11 }
  0xb0   :  { %v6133_v36 = vor.u32 %v8759_v26, %v6130_v27  ;;  %v6733_v24 = vor.u32 %v8912_v15, %v6732_v14  ;;  %v6716_v26 = vld [vmem:[#allocation4 + $0xc0] sm:$0xf]  ;;  %v8908_v27 = vld [vmem:[#allocation4 + $0xcc] sm:$0xf0] }
  0xb1   :  { %1517 = vmatpush.bf16.msrb.mxu3 %v6481_v37  ;;  %v6764_v11 = vld [vmem:[#allocation4 + $0x120] sm:$0xf]  ;;  %v8884_v15 = vld [vmem:[#allocation4 + $0xc] sm:$0xf0] }
  0xb2   :  { %1543 = vmatpush.bf16.msrb.mxu2 %v5845_v32  ;;  %1557 = vmatmul.bf16.vlgmr.msrb.gmra.mxu0 %v9526_v7  ;;  %v6277_v32 = vor.u32 %v8795_v20, %v6274_v22  ;;  %v8944_v20 = vld [vmem:[#allocation4 + $0x1ec] sm:$0xf0]  ;;  %v6620_v14 = vld [vmem:[#allocation4] sm:$0xf] }
  0xb3   :  { %1563 = vmatpush.bf16.msrb.mxu1 %v6197_v43  ;;  %1601 = vmatpush.bf16.msra.mxu0 %v6597_v49  ;;  %v9571_v31 = vpop.f32.mrf.mxu2  ;;  %v9573_v37 = vpop.f32.mrf.mxu3  ;;  %v6114_v43 = vld [vmem:[#allocation2 + $0x238] sm:$0xf0] }
  0xb4   :  { %1518 = vmatmul.bf16.vlgmr.msrb.gmra.mxu3 %v9545_v35  ;;  %v6117_v52 = vor.u32 %v8755_v42, %v6114_v43  ;;  %v1287_v62 = vpop.f32.mrf.mxu1  ;;  %v8936_v42 = vld [vmem:[#allocation4 + $0x1ac] sm:$0xf0] }
  0xb5   :  { %1575 = vmatpush.bf16.msra.mxu3 %v6341_v40  ;;  %1544 = vmatmul.bf16.vlgmr.msrb.gmra.mxu2 %v9517_v55  ;;  %v8863_v55 = vld [vmem:[#allocation2 + $0x58c] sm:$0xf]  ;;  %v6386_v40 = vld [vmem:[#allocation2 + $0x458] sm:$0xf0]  ;;  %v8892_v62 = vld [vmem:[#allocation4 + $0x4c] sm:$0xf0] }
  0xb6   :  { %1588 = vmatpush.bf16.msra.mxu2 %v6469_v41  ;;  %v6549_v7 = vor.u32 %v8863_v55, %v6546_v17  ;;  %v6533_v41 = vor.u32 %v8859_v28, %v6530_v29  ;;  %v1274_v44 = vpop.f32.mrf.mxu0  ;;  %v6389_v49 = vor.u32 %v8823_v39, %v6386_v40  ;;  %v8847_v55 = vld [vmem:[#allocation2 + $0x50c] sm:$0xf]  ;;  %v6844_v29 = vld [vmem:[#allocation4 + $0x1c0] sm:$0xf]  ;;  %v8904_v39 = vld [vmem:[#allocation4 + $0xac] sm:$0xf0] }
  0xb7   :  { %1564 = vmatpush.bf16.msrb.mxu1 %v6181_v60  ;;  %1602 = vmatpush.bf16.msra.mxu0 %v6581_v0  ;;  %v6098_v60 = vld [vmem:[#allocation2 + $0x218] sm:$0xf0]  ;;  %v8879_v0 = vld [vmem:[#allocation2 + $0x60c] sm:$0xf]  ;;  %v8900_v44 = vld [vmem:[#allocation4 + $0x8c] sm:$0xf0] }
  0xb8   :  { %v6101_v8 = vor.u32 %v8751_v59, %v6098_v60  ;;  %v6613_v17 = vor.u32 %v8879_v0, %v6610_v1  ;;  %v6780_v0 = vld [vmem:[#allocation4 + $0x140] sm:$0xf]  ;;  %v8924_v1 = vld [vmem:[#allocation4 + $0x14c] sm:$0xf0] }
  0xb9   :  { %1576 = vmatpush.bf16.msra.mxu3 %v6325_v56  ;;  %v6370_v56 = vld [vmem:[#allocation2 + $0x438] sm:$0xf0]  ;;  %v6781_v10 = vor.u32 %v8924_v1, %v6780_v0  ;;  %v8960_v0 = vld [vmem:[#allocation4 + $0x26c] sm:$0xf0]  ;;  %v272_v1 = vperm.slane %v9578_v2, 1 }
  0xba   :  { %1589 = vmatpush.bf16.msra.mxu2 %v6453_v58  ;;  %v6517_v58 = vor.u32 %v8855_v46, %v6514_v47 }
  0xbb   :  { %1565 = vmatpush.bf16.msrb.mxu1 %v6165_v9  ;;  %1603 = vmatpush.bf16.msra.mxu0 %v6565_v13  ;;  %v1300_v3 = vpop.f32.mrf.mxu2  ;;  %v6226_v9 = vld [vmem:[#allocation2 + $0x318] sm:$0xf0]  ;;  %v1313_v12 = vpop.f32.mrf.mxu3  ;;  %v6501_v13 = vor.u32 %v8851_v61, %v6498_v63  ;;  %v6652_v61 = vld [vmem:[#allocation4 + $0x40] sm:$0xf] }
  0xbc   :  { %v8920_v12 = vld [vmem:[#allocation4 + $0x12c] sm:$0xf0] }
  0xbd   :  { %1577 = vmatpush.bf16.msra.mxu3 %v6309_v5  ;;  %v6373_v5 = vor.u32 %v8819_v54, %v6370_v56  ;;  %v8896_v54 = vld [vmem:[#allocation4 + $0x6c] sm:$0xf0]  ;;  %v6796_v56 = vld [vmem:[#allocation4 + $0x160] sm:$0xf] }
  0xbe   :  { %1590 = vmatpush.bf16.msra.mxu2 %v6437_v6  ;;  %v8783_v6 = vld [vmem:[#allocation2 + $0x30c] sm:$0xf] }
  0xbf   :  { %1566 = vmatpush.bf16.msrb.mxu1 %v6149_v21  ;;  %1604 = vmatpush.bf16.msra.mxu0 %v6549_v7  ;;  %v271_v21 = vperm.slane %v9578_v2, 0  ;;  %v6229_v22 = vor.u32 %v8783_v6, %v6226_v9  ;;  %v8888_v9 = vld [vmem:[#allocation4 + $0x2c] sm:$0xf0] }
  0xc1   :  { %1578 = vmatpush.bf16.msra.mxu3 %v6293_v18  ;;  %v6482_v18 = vld [vmem:[#allocation2 + $0x518] sm:$0xf0] }
  0xc2   :  { %1591 = vmatpush.bf16.msra.mxu2 %v6421_v19  ;;  %v6860_v19 = vld [vmem:[#allocation4 + $0x1e0] sm:$0xf]  ;;  %v6485_v7 = vor.u32 %v8847_v55, %v6482_v18 }
  0xc3   :  { %1567 = vmatpush.bf16.msrb.mxu1 %v6133_v36  ;;  %1605 = vmatpush.bf16.msra.mxu0 %v6533_v41  ;;  %v6861_v28 = vor.u32 %v8944_v20, %v6860_v19  ;;  %v9583_v34 = vpop.f32.mrf.mxu2  ;;  %v6717_v36 = vor.u32 %v8908_v27, %v6716_v26  ;;  %v6828_v41 = vld [vmem:[#allocation4 + $0x1a0] sm:$0xf]  ;;  %v8976_v19 = vld [vmem:[#allocation4 + $0x2ec] sm:$0xf0]  ;;  %v6862_v26 = vld [vmem:[#allocation4 + $0x1f0] sm:$0xf0]  ;;  %v6621_v27 = vor.u32 %v8884_v15, %v6620_v14 }
  0xc4   :  { %v6829_v46 = vor.u32 %v8936_v42, %v6828_v41  ;;  %v6988_v18 = vld [vmem:[#allocation4 + $0x2e0] sm:$0xf]  ;;  %v8938_v42 = vld [vmem:[#allocation4 + $0x1c4] sm:$0xf] }
  0xc5   :  { %1579 = vmatpush.bf16.msra.mxu3 %v6277_v32  ;;  %v8940_v32 = vld [vmem:[#allocation4 + $0x1cc] sm:$0xf0]  ;;  %v8890_v15 = vld [vmem:[#allocation4 + $0x44] sm:$0xf] }
  0xc6   :  { %1592 = vmatpush.bf16.msra.mxu2 %v6405_v33  ;;  %v1273_v33 = vadd.f32 %v9567_v16, %v271_v21  ;;  %v6845_v40 = vor.u32 %v8940_v32, %v6844_v29  ;;  %v6684_v16 = vld [vmem:[#allocation4 + $0x80] sm:$0xf]  ;;  %v6734_v21 = vld [vmem:[#allocation4 + $0xf0] sm:$0xf0] }
  0xc7   :  { %1568 = vmatpush.bf16.msrb.mxu1 %v6117_v52  ;;  %1606 = vmatpush.bf16.msra.mxu0 %v6517_v58  ;;  %v6685_v53 = vor.u32 %v8900_v44, %v6684_v16  ;;  %v6956_v44 = vld [vmem:[#allocation4 + $0x2a0] sm:$0xf] }
  0xc8   :  { %v1286_v43 = vadd.f32 %v9569_v25, %v1273_v33  ;;  %v6668_v25 = vld [vmem:[#allocation4 + $0x60] sm:$0xf] }
  0xc9   :  { %1580 = vmatpush.bf16.msra.mxu3 %v6261_v48  ;;  %v6812_v48 = vld [vmem:[#allocation4 + $0x180] sm:$0xf]  ;;  %v6669_v59 = vor.u32 %v8896_v54, %v6668_v25  ;;  %v8964_v54 = vld [vmem:[#allocation4 + $0x28c] sm:$0xf0] }
  0xca   :  { %1593 = vmatpush.bf16.msra.mxu2 %v6389_v49  ;;  %v1324_v47 = vpop.f32.mrf.mxu0  ;;  %v8932_v49 = vld [vmem:[#allocation4 + $0x18c] sm:$0xf0]  ;;  %v1299_v50 = vadd.f32 %v9571_v31, %v1286_v43  ;;  %v6846_v43 = vld [vmem:[#allocation4 + $0x1d0] sm:$0xf0]  ;;  %v6940_v25 = vld [vmem:[#allocation4 + $0x280] sm:$0xf] }
  0xcb   :  { %1569 = vmatpush.bf16.msrb.mxu1 %v6101_v8  ;;  %1607 = vmatpush.bf16.msra.mxu0 %v6501_v13  ;;  %v1352_v52 = vpop.f32.mrf.mxu2  ;;  %v6636_v8 = vld [vmem:[#allocation4 + $0x20] sm:$0xf] }
  0xcc   :  { %v1312_v58 = vadd.f32 %v9573_v37, %v1299_v50  ;;  %v6637_v13 = vor.u32 %v8888_v9, %v6636_v8  ;;  %v6830_v52 = vld [vmem:[#allocation4 + $0x1b0] sm:$0xf0]  ;;  %v8926_v9 = vld [vmem:[#allocation4 + $0x164] sm:$0xf] }
  0xcd   :  { %1581 = vmatpush.bf16.msra.mxu3 %v6245_v4 }
  0xce   :  { %1594 = vmatpush.bf16.msra.mxu2 %v6373_v5  ;;  %1570 = vmatmul.bf16.vlgmr.msrb.gmra.mxu1 %v9515_v51  ;;  %v6701_v51 = vor.u32 %v8904_v39, %v6700_v38  ;;  %v1325_v60 = vadd.f32 %v1324_v47, %v1312_v58  ;;  %v6653_v5 = vor.u32 %v8892_v62, %v6652_v61  ;;  %v8906_v38 = vld [vmem:[#allocation4 + $0xc4] sm:$0xf]  ;;  %v6718_v39 = vld [vmem:[#allocation4 + $0xd0] sm:$0xf0] }
  0xcf   :  { %1621 = vmatpush.bf16.msra.mxu1 %v6613_v17  ;;  %1608 = vmatpush.bf16.msra.mxu0 %v6485_v7  ;;  %v6765_v17 = vor.u32 %v8920_v12, %v6764_v11  ;;  %v8942_v7 = vld [vmem:[#allocation4 + $0x1e4] sm:$0xf]  ;;  %v6721_v16 = vor.u32 %v8906_v38, %v6718_v39  ;;  %v6941_v58 = vor.u32 %v8964_v54, %v6940_v25  ;;  %v6908_v12 = vld [vmem:[#allocation4 + $0x240] sm:$0xf] }
  0xd0   :  { %v8902_v47 = vld [vmem:[#allocation4 + $0xa4] sm:$0xf] }
  0xd1   :  { %1582 = vmatpush.bf16.msra.mxu3 %v6229_v22  ;;  %v6748_v22 = vld [vmem:[#allocation4 + $0x100] sm:$0xf]  ;;  %v8882_v38 = vld [vmem:[#allocation4 + $0x4] sm:$0xf] }
  0xd2   :  { %1595 = vmatpush.bf16.msra.mxu2 %v6357_v23  ;;  %1609 = vmatmul.bf16.vlgmr.msra.gmra.mxu0 %v9545_v35  ;;  %v8928_v35 = vld [vmem:[#allocation4 + $0x16c] sm:$0xf0]  ;;  %v1326_v3 = vpop.f32.mrf.mxu0 }
  0xd3   :  { %2426 = vmatpush.bf16.msrb.mxu1 %v6861_v28  ;;  %v6797_v63 = vor.u32 %v8928_v35, %v6796_v56  ;;  %v9591_v31 = vpop.f32.mrf.mxu3  ;;  %v8916_v23 = vld [vmem:[#allocation4 + $0x10c] sm:$0xf0]  ;;  %v6686_v56 = vld [vmem:[#allocation4 + $0x90] sm:$0xf0] }
  0xd4   :  { %1583 = vmatmul.bf16.vlgmr.msra.gmra.mxu3 %v9519_v57  ;;  %v1337_v57 = vpop.f32.mrf.mxu1  ;;  %v6749_v33 = vor.u32 %v8916_v23, %v6748_v22  ;;  %v1364_v14 = vadd.f32 %v9591_v31, %v272_v1 }
  0xd5   :  { %2413 = vmatpush.bf16.msrb.mxu3 %v6733_v24  ;;  %1596 = vmatmul.bf16.vlgmr.msra.gmra.mxu2 %v9543_v30  ;;  %v6813_v30 = vor.u32 %v8932_v49, %v6812_v48  ;;  %v1338_v37 = vadd.f32 %v1337_v57, %v1325_v60  ;;  %v6989_v24 = vor.u32 %v8976_v19, %v6988_v18  ;;  %v6702_v48 = vld [vmem:[#allocation4 + $0xb0] sm:$0xf0]  ;;  %v8934_v57 = vld [vmem:[#allocation4 + $0x1a4] sm:$0xf] }
  0xd6   :  { %v6849_v49 = vor.u32 %v8938_v42, %v6846_v43  ;;  %v6833_v35 = vor.u32 %v8934_v57, %v6830_v52  ;;  %v6814_v60 = vld [vmem:[#allocation4 + $0x190] sm:$0xf0]  ;;  %v8922_v19 = vld [vmem:[#allocation4 + $0x144] sm:$0xf]  ;;  %v8948_v42 = vld [vmem:[#allocation4 + $0x20c] sm:$0xf0] }
  0xd7   :  { %2427 = vmatpush.bf16.msrb.mxu1 %v6845_v40  ;;  %v1351_v55 = vadd.f32 %v9583_v34, %v1338_v37  ;;  %2439 = vmatpush.bf16.msrb.mxu2 %v6989_v24  ;;  %v6972_v34 = vld [vmem:[#allocation4 + $0x2c0] sm:$0xf]  ;;  %v6865_v40 = vor.u32 %v8942_v7, %v6862_v26  ;;  %v8952_v7 = vld [vmem:[#allocation4 + $0x22c] sm:$0xf0]  ;;  %v6740_v43 = vld [vmem:[#allocation4 + $0xe8] sm:$0xf] }
  0xd8   :  { %v9595_v6 = vpop.f32.mrf.mxu2  ;;  %v6892_v24 = vld [vmem:[#allocation4 + $0x220] sm:$0xf] }
  0xd9   :  { %2414 = vmatpush.bf16.msrb.mxu3 %v6717_v36  ;;  %v1627_v29 = vmax.f32 %v1351_v55, 0.0  ;;  %v8972_v36 = vld [vmem:[#allocation4 + $0x2cc] sm:$0xf0]  ;;  %v6654_v55 = vld [vmem:[#allocation4 + $0x50] sm:$0xf0]  ;;  %v1377_v26 = vadd.f32 %v9595_v6, %v1364_v14 }
  0xda   :  { %v6973_v41 = vor.u32 %v8972_v36, %v6972_v34  ;;  %v6657_v23 = vor.u32 %v8890_v15, %v6654_v55  ;;  %v6766_v34 = vld [vmem:[#allocation4 + $0x130] sm:$0xf0]  ;;  %v6868_v14 = vld [vmem:[#allocation4 + $0x1e8] sm:$0xf]  ;;  %v8945_v15 = vld [vmem:[#allocation4 + $0x1f4] sm:$0xf0] }
  0xdb   :  { %2428 = vmatpush.bf16.msrb.mxu1 %v6829_v46  ;;  %v1365_v20 = vpop.f32.mrf.mxu3  ;;  %v8968_v46 = vld [vmem:[#allocation4 + $0x2ac] sm:$0xf0] }
  0xdc   :  { %v1339_v4 = vpop.f32.mrf.mxu1  ;;  %2440 = vmatpush.bf16.msrb.mxu2 %v6973_v41  ;;  %v6957_v50 = vor.u32 %v8968_v46, %v6956_v44  ;;  %v6782_v20 = vld [vmem:[#allocation4 + $0x150] sm:$0xf0]  ;;  %v6876_v41 = vld [vmem:[#allocation4 + $0x200] sm:$0xf]  ;;  %v8974_v44 = vld [vmem:[#allocation4 + $0x2e4] sm:$0xf] }
  0xdd   :  { %2415 = vmatpush.bf16.msrb.mxu3 %v6701_v51  ;;  %v9598_v51 = vpack.c.bf16 %v1627_v29, %v1627_v29  ;;  %v8894_v4 = vld [vmem:[#allocation4 + $0x64] sm:$0xf]  ;;  %v6785_v31 = vor.u32 %v8922_v19, %v6782_v20  ;;  %v6877_v6 = vor.u32 %v8948_v42, %v6876_v41  ;;  %v6990_v46 = vld [vmem:[#allocation4 + $0x2f0] sm:$0xf0]  ;;  %v8901_v19 = vld [vmem:[#allocation4 + $0x94] sm:$0xf0] }
  0xde   :  { %6617 = vmatmul.msk.bf16.vlgmr.msra.gmra.mxu1 %vm1259_vm0, %v9533_v45  ;;  %v8910_v45 = vld [vmem:[#allocation4 + $0xe4] sm:$0xf]  ;;  %v6993_v57 = vor.u32 %v8974_v44, %v6990_v46  ;;  %v7068_v42 = vld [vmem:[#allocation4 + $0x380] sm:$0xf] }
  0xdf   :  { %2429 = vmatpush.bf16.msrb.mxu1 %v6813_v30  ;;  %v6737_v32 = vor.u32 %v8910_v45, %v6734_v21  ;;  %v8898_v30 = vld [vmem:[#allocation4 + $0x84] sm:$0xf] }
  0xe0   :  { %v1378_v28 = vpop.f32.mrf.mxu2  ;;  %2441 = vmatpush.bf16.msrb.mxu2 %v6957_v50  ;;  %v6689_v62 = vor.u32 %v8898_v30, %v6686_v56  ;;  %v6750_v50 = vld [vmem:[#allocation4 + $0x110] sm:$0xf0]  ;;  %v6724_v56 = vld [vmem:[#allocation4 + $0xc8] sm:$0xf]  ;;  %v8962_v20 = vld [vmem:[#allocation4 + $0x284] sm:$0xf] }
  0xe1   :  { %2416 = vmatpush.bf16.msrb.mxu3 %v6685_v53  ;;  %v6705_v53 = vor.u32 %v8902_v47, %v6702_v48  ;;  %v6638_v28 = vld [vmem:[#allocation4 + $0x30] sm:$0xf0]  ;;  %v8913_v48 = vld [vmem:[#allocation4 + $0xf4] sm:$0xf0] }
  0xe2   :  { %v6741_v30 = vor.u32 %v8913_v48, %v6740_v43  ;;  %v8996_v43 = vld [vmem:[#allocation4 + $0x38c] sm:$0xf0]  ;;  %v6660_v48 = vld [vmem:[#allocation4 + $0x48] sm:$0xf] }
  0xe3   :  { %2430 = vmatpush.bf16.msrb.mxu1 %v6797_v63  ;;  %v6924_v63 = vld [vmem:[#allocation4 + $0x260] sm:$0xf]  ;;  %v7069_v44 = vor.u32 %v8996_v43, %v7068_v42  ;;  %v9006_v42 = vld [vmem:[#allocation4 + $0x3e4] sm:$0xf]  ;;  %v7118_v43 = vld [vmem:[#allocation4 + $0x3f0] sm:$0xf0] }
  0xe4   :  { %2442 = vmatpush.bf16.msrb.mxu2 %v6941_v58  ;;  %v6925_v8 = vor.u32 %v8960_v0, %v6924_v63  ;;  %v8970_v58 = vld [vmem:[#allocation4 + $0x2c4] sm:$0xf]  ;;  %v9008_v63 = vld [vmem:[#allocation4 + $0x3ec] sm:$0xf0] }
  0xe5   :  { %2417 = vmatpush.bf16.msrb.mxu3 %v6669_v59  ;;  %v8930_v59 = vld [vmem:[#allocation4 + $0x184] sm:$0xf] }
  0xe6   :  { %v6817_v37 = vor.u32 %v8930_v59, %v6814_v60  ;;  %v6974_v59 = vld [vmem:[#allocation4 + $0x2d0] sm:$0xf0]  ;;  %v8909_v60 = vld [vmem:[#allocation4 + $0xd4] sm:$0xf0] }
  0xe7   :  { %2431 = vmatpush.bf16.msrb.mxu1 %v6781_v10  ;;  %v6798_v10 = vld [vmem:[#allocation4 + $0x170] sm:$0xf0] }
  0xe8   :  { %2443 = vmatpush.bf16.msrb.mxu2 %v6925_v8  ;;  %v6801_v45 = vor.u32 %v8926_v9, %v6798_v10  ;;  %v8905_v9 = vld [vmem:[#allocation4 + $0xb4] sm:$0xf0] }
  0xe9   :  { %2418 = vmatpush.bf16.msrb.mxu3 %v6653_v5  ;;  %v6670_v5 = vld [vmem:[#allocation4 + $0x70] sm:$0xf0] }
  0xea   :  { %v1389_v61 = vpop.f32.mrf.mxu0  ;;  %v6673_v11 = vor.u32 %v8894_v4, %v6670_v5  ;;  %v6708_v4 = vld [vmem:[#allocation4 + $0xa8] sm:$0xf]  ;;  %v8966_v5 = vld [vmem:[#allocation4 + $0x2a4] sm:$0xf] }
  0xeb   :  { %2432 = vmatpush.bf16.msrb.mxu1 %v6765_v17  ;;  %v1390_v36 = vadd.f32 %v1389_v61, %v1377_v26  ;;  %v6977_v61 = vor.u32 %v8970_v58, %v6974_v59  ;;  %v6852_v26 = vld [vmem:[#allocation4 + $0x1c8] sm:$0xf] }
  0xec   :  { %v6644_v59 = vld [vmem:[#allocation4 + $0x28] sm:$0xf] }
  0xed   :  { %2419 = vmatpush.bf16.msrb.mxu3 %v6637_v13  ;;  %v1402_v3 = vpop.f32.mrf.mxu1  ;;  %v8956_v13 = vld [vmem:[#allocation4 + $0x24c] sm:$0xf0] }
  0xee   :  { %v6909_v17 = vor.u32 %v8956_v13, %v6908_v12  ;;  %v1403_v52 = vadd.f32 %v1402_v3, %v1390_v36  ;;  %v6725_v3 = vor.u32 %v8909_v60, %v6724_v56  ;;  %v9004_v12 = vld [vmem:[#allocation4 + $0x3cc] sm:$0xf0]  ;;  %v8933_v56 = vld [vmem:[#allocation4 + $0x194] sm:$0xf0]  ;;  %v8950_v60 = vld [vmem:[#allocation4 + $0x224] sm:$0xf] }
  0xef   :  { %2433 = vmatpush.bf16.msrb.mxu1 %v6749_v33  ;;  %v8918_v33 = vld [vmem:[#allocation4 + $0x124] sm:$0xf] }
  0xf0   :  { %2444 = vmatpush.bf16.msrb.mxu2 %v6909_v17 }
  0xf1   :  { %2420 = vmatpush.bf16.msrb.mxu3 %v6621_v27  ;;  %v8886_v27 = vld [vmem:[#allocation4 + $0x24] sm:$0xf] }
  0xf2   :  { %v1391_v21 = vpop.f32.mrf.mxu0  ;;  %v6641_v39 = vor.u32 %v8886_v27, %v6638_v28  ;;  %v8941_v27 = vld [vmem:[#allocation4 + $0x1d4] sm:$0xf0] }
  0xf3   :  { %2478 = vmatpush.bf16.msra.mxu1 %v6865_v40  ;;  %v1415_v18 = vpop.f32.mrf.mxu3  ;;  %v6622_v40 = vld [vmem:[#allocation4 + $0x10] sm:$0xf0]  ;;  %v6869_v21 = vor.u32 %v8945_v15, %v6868_v14  ;;  %v8885_v14 = vld [vmem:[#allocation4 + $0x14] sm:$0xf0]  ;;  %v8946_v15 = vld [vmem:[#allocation4 + $0x204] sm:$0xf] }
  0xf4   :  { %2421 = vmatmul.bf16.vlgmr.msrb.gmra.mxu3 %v9598_v51  ;;  %v1416_v54 = vadd.f32 %v1415_v18, %v1403_v52  ;;  %v6709_v18 = vor.u32 %v8905_v9, %v6708_v4  ;;  %v8893_v52 = vld [vmem:[#allocation4 + $0x54] sm:$0xf0]  ;;  %v7036_v4 = vld [vmem:[#allocation4 + $0x340] sm:$0xf] }
  0xf5   :  { %2465 = vmatpush.bf16.msra.mxu3 %v6737_v32  ;;  %v1404_v29 = vpop.f32.mrf.mxu1  ;;  %v6893_v32 = vor.u32 %v8952_v7, %v6892_v24  ;;  %v9000_v24 = vld [vmem:[#allocation4 + $0x3ac] sm:$0xf0]  ;;  %v6661_v58 = vor.u32 %v8893_v52, %v6660_v48  ;;  %v6710_v52 = vld [vmem:[#allocation4 + $0xb8] sm:$0xf0] }
  0xf7   :  { %2479 = vmatpush.bf16.msra.mxu1 %v6849_v49  ;;  %2445 = vmatpush.bf16.msrb.mxu2 %v6893_v32  ;;  %v8914_v49 = vld [vmem:[#allocation4 + $0x104] sm:$0xf]  ;;  %v6676_v32 = vld [vmem:[#allocation4 + $0x68] sm:$0xf] }
  0xf8   :  { %v1428_v22 = vpop.f32.mrf.mxu2 }
  0xf9   :  { %2466 = vmatpush.bf16.msra.mxu3 %v6721_v16  ;;  %v6769_v16 = vor.u32 %v8918_v33, %v6766_v34  ;;  %v1429_v1 = vadd.f32 %v1428_v22, %v1416_v54  ;;  %v6942_v22 = vld [vmem:[#allocation4 + $0x290] sm:$0xf0]  ;;  %v8958_v33 = vld [vmem:[#allocation4 + $0x264] sm:$0xf]  ;;  %v8992_v54 = vld [vmem:[#allocation4 + $0x36c] sm:$0xf0] }
  0xfa   :  { %v6945_v28 = vor.u32 %v8962_v20, %v6942_v22  ;;  %v6926_v34 = vld [vmem:[#allocation4 + $0x270] sm:$0xf0]  ;;  %v8984_v20 = vld [vmem:[#allocation4 + $0x32c] sm:$0xf0]  ;;  %v8911_v22 = vld [vmem:[#allocation4 + $0xec] sm:$0xf] }
  0xfb   :  { %2480 = vmatpush.bf16.msra.mxu1 %v6833_v35  ;;  %v1417_v47 = vpop.f32.mrf.mxu3  ;;  %2446 = vmatpush.bf16.msrb.mxu2 %v6877_v6  ;;  %v6753_v35 = vor.u32 %v8914_v49, %v6750_v50  ;;  %v6929_v41 = vor.u32 %v8958_v33, %v6926_v34  ;;  %v8937_v6 = vld [vmem:[#allocation4 + $0x1b4] sm:$0xf0]  ;;  %v8954_v49 = vld [vmem:[#allocation4 + $0x244] sm:$0xf]  ;;  %v6910_v50 = vld [vmem:[#allocation4 + $0x250] sm:$0xf0] }
  0xfd   :  { %2467 = vmatpush.bf16.msra.mxu3 %v6705_v53  ;;  %v6625_v53 = vor.u32 %v8882_v38, %v6622_v40  ;;  %v8897_v40 = vld [vmem:[#allocation4 + $0x74] sm:$0xf0] }
  0xfe   :  { %v6677_v47 = vor.u32 %v8897_v40, %v6676_v32  ;;  %v8907_v32 = vld [vmem:[#allocation4 + $0xcc] sm:$0xf]  ;;  %v6726_v40 = vld [vmem:[#allocation4 + $0xd8] sm:$0xf0] }
  0xff   :  { %2481 = vmatpush.bf16.msra.mxu1 %v6817_v37  ;;  %2491 = vmatpush.bf16.msra.mxu2 %v6993_v57  ;;  %v6958_v37 = vld [vmem:[#allocation4 + $0x2b0] sm:$0xf0]  ;;  %v6729_v48 = vor.u32 %v8907_v32, %v6726_v40  ;;  %v6646_v40 = vld [vmem:[#allocation4 + $0x38] sm:$0xf0] }
 0x100   :  { %v1430_v25 = vpop.f32.mrf.mxu2  ;;  %v6961_v10 = vor.u32 %v8966_v5, %v6958_v37  ;;  %v8988_v5 = vld [vmem:[#allocation4 + $0x34c] sm:$0xf0]  ;;  %v6804_v37 = vld [vmem:[#allocation4 + $0x168] sm:$0xf] }
 0x101   :  { %2468 = vmatpush.bf16.msra.mxu3 %v6689_v62  ;;  %v7116_v62 = vld [vmem:[#allocation4 + $0x3e0] sm:$0xf]  ;;  %v7037_v9 = vor.u32 %v8988_v5, %v7036_v4  ;;  %v8939_v5 = vld [vmem:[#allocation4 + $0x1cc] sm:$0xf] }
 0x102   :  { %v7117_v0 = vor.u32 %v9008_v63, %v7116_v62  ;;  %v7052_v25 = vld [vmem:[#allocation4 + $0x360] sm:$0xf] }
 0x103   :  { %2482 = vmatpush.bf16.msra.mxu1 %v6801_v45  ;;  %2492 = vmatpush.bf16.msra.mxu2 %v6977_v61  ;;  %v1441_v8 = vpop.f32.mrf.mxu3  ;;  %v6692_v45 = vld [vmem:[#allocation4 + $0x88] sm:$0xf]  ;;  %v6894_v61 = vld [vmem:[#allocation4 + $0x230] sm:$0xf0] }
 0x104   :  { %2452 = vmatpush.bf16.msrb.mxu0 %v7117_v0  ;;  %v1442_v13 = vadd.f32 %v1441_v8, %v1429_v1  ;;  %v6693_v29 = vor.u32 %v8901_v19, %v6692_v45  ;;  %v8889_v1 = vld [vmem:[#allocation4 + $0x34] sm:$0xf0]  ;;  %v7020_v19 = vld [vmem:[#allocation4 + $0x320] sm:$0xf] }
 0x105   :  { %2469 = vmatpush.bf16.msra.mxu3 %v6673_v11  ;;  %v7100_v11 = vld [vmem:[#allocation4 + $0x3c0] sm:$0xf]  ;;  %v8929_v8 = vld [vmem:[#allocation4 + $0x174] sm:$0xf0] }
 0x106   :  { %v7101_v55 = vor.u32 %v9004_v12, %v7100_v11  ;;  %v1628_v17 = vmax.f32 %v1442_v13, 0.0  ;;  %v6628_v11 = vld [vmem:[#allocation4 + $0x8] sm:$0xf]  ;;  %v6645_v13 = vor.u32 %v8889_v1, %v6644_v59  ;;  %v6805_v45 = vor.u32 %v8929_v8, %v6804_v37  ;;  %v8998_v1 = vld [vmem:[#allocation4 + $0x3a4] sm:$0xf] }
 0x107   :  { %2483 = vmatpush.bf16.msra.mxu1 %v6785_v31  ;;  %2493 = vmatpush.bf16.msra.mxu2 %v6961_v10 }
 0x108   :  { %2453 = vmatpush.bf16.msrb.mxu0 %v7101_v55  ;;  %v9605_v7 = vpack.c.bf16 %v1628_v17, %v1628_v17  ;;  %v6878_v55 = vld [vmem:[#allocation4 + $0x210] sm:$0xf0]  ;;  %v6788_v17 = vld [vmem:[#allocation4 + $0x148] sm:$0xf] }
 0x109   :  { %2470 = vmatpush.bf16.msra.mxu3 %v6657_v23  ;;  %v7084_v23 = vld [vmem:[#allocation4 + $0x3a0] sm:$0xf] }
 0x10a   :  { %v7085_v31 = vor.u32 %v9000_v24, %v7084_v23  ;;  %2434 = vmatmul.bf16.vlgmr.msrb.gmra.mxu1 %v9605_v7  ;;  %v9608_v38 = vpop.f32.mrf.mxu0  ;;  %v6742_v23 = vld [vmem:[#allocation4 + $0xf8] sm:$0xf0]  ;;  %v7021_v24 = vor.u32 %v8984_v20, %v7020_v19  ;;  %v8891_v19 = vld [vmem:[#allocation4 + $0x4c] sm:$0xf] }
 0x10b   :  { %2484 = vmatpush.bf16.msra.mxu1 %v6769_v16  ;;  %v1443_v36 = vpop.f32.mrf.mxu3  ;;  %2494 = vmatpush.bf16.msra.mxu2 %v6945_v28  ;;  %v6836_v16 = vld [vmem:[#allocation4 + $0x1a8] sm:$0xf]  ;;  %v8921_v28 = vld [vmem:[#allocation4 + $0x134] sm:$0xf0] }
 0x10c   :  { %2454 = vmatpush.bf16.msrb.mxu0 %v7085_v31  ;;  %v6837_v57 = vor.u32 %v8937_v6, %v6836_v16  ;;  %v7004_v36 = vld [vmem:[#allocation4 + $0x300] sm:$0xf]  ;;  %v273_v16 = vperm.slane %v9578_v2, 2 }
 0x10d   :  { %2471 = vmatpush.bf16.msra.mxu3 %v6641_v39  ;;  %v6853_v39 = vor.u32 %v8941_v27, %v6852_v26  ;;  %v9610_v46 = vpop.f32.mrf.mxu1  ;;  %v6629_v26 = vor.u32 %v8885_v14, %v6628_v11  ;;  %v6772_v27 = vld [vmem:[#allocation4 + $0x128] sm:$0xf]  ;;  %v8895_v11 = vld [vmem:[#allocation4 + $0x6c] sm:$0xf]  ;;  %v8994_v14 = vld [vmem:[#allocation4 + $0x384] sm:$0xf] }
 0x10f   :  { %2485 = vmatpush.bf16.msra.mxu1 %v6753_v35  ;;  %2495 = vmatpush.bf16.msra.mxu2 %v6929_v41  ;;  %v7053_v35 = vor.u32 %v8992_v54, %v7052_v25  ;;  %v7102_v25 = vld [vmem:[#allocation4 + $0x3d0] sm:$0xf0]  ;;  %v1455_v54 = vadd.f32 %v9610_v46, %v273_v16  ;;  %v6854_v46 = vld [vmem:[#allocation4 + $0x1d8] sm:$0xf0]  ;;  %v8927_v16 = vld [vmem:[#allocation4 + $0x16c] sm:$0xf] }
 0x110   :  { %2455 = vmatpush.bf16.msrb.mxu0 %v7069_v44  ;;  %v7121_v44 = vor.u32 %v9006_v42, %v7118_v43  ;;  %v7038_v42 = vld [vmem:[#allocation4 + $0x350] sm:$0xf0] }
 0x111   :  { %2472 = vmatpush.bf16.msra.mxu3 %v6625_v53  ;;  %v6913_v53 = vor.u32 %v8954_v49, %v6910_v50  ;;  %v6756_v49 = vld [vmem:[#allocation4 + $0x108] sm:$0xf]  ;;  %v8917_v50 = vld [vmem:[#allocation4 + $0x114] sm:$0xf0] }
 0x112   :  { %v1482_v63 = vpop.f32.mrf.mxu0 }
 0x113   :  { %2530 = vmatpush.bf16.msrb.mxu1 %v6869_v21  ;;  %2496 = vmatpush.bf16.msra.mxu2 %v6913_v53  ;;  %v8925_v21 = vld [vmem:[#allocation4 + $0x154] sm:$0xf0]  ;;  %v9002_v53 = vld [vmem:[#allocation4 + $0x3c4] sm:$0xf] }
 0x114   :  { %2473 = vmatmul.bf16.vlgmr.msra.gmra.mxu3 %v9598_v51  ;;  %2456 = vmatpush.bf16.msrb.mxu0 %v7053_v35  ;;  %v6789_v31 = vor.u32 %v8925_v21, %v6788_v17  ;;  %v7105_v35 = vor.u32 %v9002_v53, %v7102_v25  ;;  %v6838_v17 = vld [vmem:[#allocation4 + $0x1b8] sm:$0xf0]  ;;  %v8982_v25 = vld [vmem:[#allocation4 + $0x324] sm:$0xf] }
 0x115   :  { %2517 = vmatpush.bf16.msrb.mxu3 %v6741_v30  ;;  %v6820_v30 = vld [vmem:[#allocation4 + $0x188] sm:$0xf]  ;;  %v1456_v12 = vpop.f32.mrf.mxu1  ;;  %v6662_v21 = vld [vmem:[#allocation4 + $0x58] sm:$0xf0] }
 0x116   :  { %v6821_v0 = vor.u32 %v8933_v56, %v6820_v30  ;;  %v8943_v30 = vld [vmem:[#allocation4 + $0x1ec] sm:$0xf]  ;;  %v6870_v56 = vld [vmem:[#allocation4 + $0x1f8] sm:$0xf0]  ;;  %v6857_v12 = vor.u32 %v8939_v5, %v6854_v46  ;;  %v7006_v5 = vld [vmem:[#allocation4 + $0x310] sm:$0xf0] }
 0x117   :  { %2531 = vmatpush.bf16.msrb.mxu1 %v6853_v39  ;;  %v9612_v62 = vpop.f32.mrf.mxu3  ;;  %v8980_v39 = vld [vmem:[#allocation4 + $0x30c] sm:$0xf0]  ;;  %v6873_v63 = vor.u32 %v8943_v30, %v6870_v56  ;;  %v6630_v53 = vld [vmem:[#allocation4 + $0x18] sm:$0xf0]  ;;  %v8923_v56 = vld [vmem:[#allocation4 + $0x14c] sm:$0xf] }
 0x118   :  { %v9614_v10 = vpop.f32.mrf.mxu2  ;;  %2457 = vmatpush.bf16.msrb.mxu0 %v7037_v9  ;;  %v7005_v41 = vor.u32 %v8980_v39, %v7004_v36  ;;  %v1468_v4 = vadd.f32 %v9612_v62, %v1455_v54  ;;  %v7022_v54 = vld [vmem:[#allocation4 + $0x330] sm:$0xf0]  ;;  %v8919_v46 = vld [vmem:[#allocation4 + $0x12c] sm:$0xf] }
 0x119   :  { %2518 = vmatpush.bf16.msrb.mxu3 %v6725_v3  ;;  %v6897_v3 = vor.u32 %v8950_v60, %v6894_v61  ;;  %v8899_v60 = vld [vmem:[#allocation4 + $0x8c] sm:$0xf] }
 0x11a   :  { %2486 = vmatmul.bf16.vlgmr.msra.gmra.mxu1 %v9605_v7  ;;  %v9617_v34 = vpop.f32.mrf.mxu0 }
 0x11b   :  { %2532 = vmatpush.bf16.msrb.mxu1 %v6837_v57  ;;  %2497 = vmatpush.bf16.msra.mxu2 %v6897_v3  ;;  %v8903_v57 = vld [vmem:[#allocation4 + $0xac] sm:$0xf]  ;;  %v7086_v3 = vld [vmem:[#allocation4 + $0x3b0] sm:$0xf0] }
 0x11c   :  { %2458 = vmatpush.bf16.msrb.mxu0 %v7021_v24  ;;  %v6713_v59 = vor.u32 %v8903_v57, %v6710_v52  ;;  %v7089_v37 = vor.u32 %v8998_v1, %v7086_v3  ;;  %v8883_v57 = vld [vmem:[#allocation4 + $0xc] sm:$0xf] }
 0x11d   :  { %2519 = vmatpush.bf16.msrb.mxu3 %v6709_v18  ;;  %v6881_v18 = vor.u32 %v8946_v15, %v6878_v55  ;;  %v7070_v15 = vld [vmem:[#allocation4 + $0x390] sm:$0xf0]  ;;  %v1481_v55 = vadd.f32 %v9608_v38, %v1468_v4  ;;  %v8978_v4 = vld [vmem:[#allocation4 + $0x304] sm:$0xf] }
 0x11e   :  { %v7073_v62 = vor.u32 %v8994_v14, %v7070_v15  ;;  %v8915_v15 = vld [vmem:[#allocation4 + $0x10c] sm:$0xf] }
 0x11f   :  { %2533 = vmatpush.bf16.msrb.mxu1 %v6821_v0  ;;  %v1469_v33 = vpop.f32.mrf.mxu3  ;;  %2498 = vmatpush.bf16.msra.mxu2 %v6881_v18  ;;  %v6694_v0 = vld [vmem:[#allocation4 + $0x98] sm:$0xf0]  ;;  %v1494_v24 = vadd.f32 %v9614_v10, %v1481_v55 }
 0x120   :  { %v1495_v6 = vpop.f32.mrf.mxu2  ;;  %2459 = vmatpush.bf16.msrb.mxu0 %v7005_v41  ;;  %v6697_v9 = vor.u32 %v8899_v60, %v6694_v0  ;;  %v8887_v33 = vld [vmem:[#allocation4 + $0x2c] sm:$0xf]  ;;  %v8986_v41 = vld [vmem:[#allocation4 + $0x344] sm:$0xf]  ;;  %v6806_v10 = vld [vmem:[#allocation4 + $0x178] sm:$0xf0] }
 0x121   :  { %2520 = vmatpush.bf16.msrb.mxu3 %v6693_v29  ;;  %v6745_v29 = vor.u32 %v8911_v22, %v6742_v23  ;;  %v8990_v22 = vld [vmem:[#allocation4 + $0x364] sm:$0xf]  ;;  %v7054_v23 = vld [vmem:[#allocation4 + $0x370] sm:$0xf0]  ;;  %v6809_v52 = vor.u32 %v8927_v16, %v6806_v10  ;;  %v8973_v0 = vld [vmem:[#allocation4 + $0x2d4] sm:$0xf0] }
 0x122   :  { %v1534_v61 = vpop.f32.mrf.mxu0  ;;  %v7057_v38 = vor.u32 %v8990_v22, %v7054_v23  ;;  %v6758_v55 = vld [vmem:[#allocation4 + $0x118] sm:$0xf0]  ;;  %v8961_v22 = vld [vmem:[#allocation4 + $0x274] sm:$0xf0]  ;;  %v8975_v10 = vld [vmem:[#allocation4 + $0x2ec] sm:$0xf] }
 0x123   :  { %2534 = vmatpush.bf16.msrb.mxu1 %v6805_v45  ;;  %v8935_v45 = vld [vmem:[#allocation4 + $0x1ac] sm:$0xf] }
 0x124   :  { %2504 = vmatpush.bf16.msra.mxu0 %v7121_v44  ;;  %v6841_v20 = vor.u32 %v8935_v45, %v6838_v17  ;;  %v7041_v44 = vor.u32 %v8986_v41, %v7038_v42  ;;  %v6948_v17 = vld [vmem:[#allocation4 + $0x288] sm:$0xf] }
 0x125   :  { %2521 = vmatpush.bf16.msrb.mxu3 %v6677_v47  ;;  %v6773_v47 = vor.u32 %v8921_v28, %v6772_v27  ;;  %v6822_v27 = vld [vmem:[#allocation4 + $0x198] sm:$0xf0] }
 0x127   :  { %2535 = vmatpush.bf16.msrb.mxu1 %v6789_v31 }
 0x128   :  { %2505 = vmatpush.bf16.msra.mxu0 %v7105_v35  ;;  %v6790_v35 = vld [vmem:[#allocation4 + $0x158] sm:$0xf0] }
 0x129   :  { %2522 = vmatpush.bf16.msrb.mxu3 %v6661_v58  ;;  %v6757_v58 = vor.u32 %v8917_v50, %v6756_v49  ;;  %v6996_v49 = vld [vmem:[#allocation4 + $0x2e8] sm:$0xf]  ;;  %v8977_v50 = vld [vmem:[#allocation4 + $0x2f4] sm:$0xf0]  ;;  %v6793_v1 = vor.u32 %v8923_v56, %v6790_v35 }
 0x12a   :  { %v6997_v60 = vor.u32 %v8977_v50, %v6996_v49  ;;  %v8971_v50 = vld [vmem:[#allocation4 + $0x2cc] sm:$0xf] }
 0x12b   :  { %2536 = vmatpush.bf16.msrb.mxu1 %v6773_v47  ;;  %v1506_v8 = vpop.f32.mrf.mxu1 }
 0x12c   :  { %2506 = vmatpush.bf16.msra.mxu0 %v7089_v37  ;;  %v1507_v31 = vadd.f32 %v1506_v8, %v1494_v24  ;;  %v6774_v37 = vld [vmem:[#allocation4 + $0x138] sm:$0xf0] }
 0x12d   :  { %2523 = vmatpush.bf16.msrb.mxu3 %v6645_v13  ;;  %v6678_v13 = vld [vmem:[#allocation4 + $0x78] sm:$0xf0]  ;;  %v6777_v14 = vor.u32 %v8919_v46, %v6774_v37  ;;  %v7092_v37 = vld [vmem:[#allocation4 + $0x3a8] sm:$0xf] }
 0x12e   :  { %v6681_v18 = vor.u32 %v8895_v11, %v6678_v13  ;;  %v8969_v13 = vld [vmem:[#allocation4 + $0x2b4] sm:$0xf0]  ;;  %v6950_v46 = vld [vmem:[#allocation4 + $0x298] sm:$0xf0] }
 0x12f   :  { %2537 = vmatpush.bf16.msrb.mxu1 %v6757_v58  ;;  %v9626_v28 = vpop.f32.mrf.mxu0 }
 0x130   :  { %2507 = vmatpush.bf16.msra.mxu0 %v7073_v62  ;;  %v8965_v62 = vld [vmem:[#allocation4 + $0x294] sm:$0xf0] }
 0x131   :  { %2524 = vmatpush.bf16.msrb.mxu3 %v6629_v26  ;;  %v8931_v26 = vld [vmem:[#allocation4 + $0x18c] sm:$0xf] }
 0x132   :  { %2538 = vmatmul.bf16.vlgmr.msrb.gmra.mxu1 %v9605_v7  ;;  %v6825_v39 = vor.u32 %v8931_v26, %v6822_v27  ;;  %v6916_v27 = vld [vmem:[#allocation4 + $0x248] sm:$0xf] }
 0x133   :  { %2582 = vmatpush.bf16.msra.mxu1 %v6873_v63  ;;  %v1508_v32 = vpop.f32.mrf.mxu1  ;;  %v6980_v63 = vld [vmem:[#allocation4 + $0x2c8] sm:$0xf] }
 0x134   :  { %2525 = vmatmul.bf16.vlgmr.msrb.gmra.mxu3 %v9598_v51  ;;  %2508 = vmatpush.bf16.msra.mxu0 %v7057_v38  ;;  %v6981_v11 = vor.u32 %v8973_v0, %v6980_v63  ;;  %v8953_v32 = vld [vmem:[#allocation4 + $0x234] sm:$0xf0]  ;;  %v7108_v63 = vld [vmem:[#allocation4 + $0x3c8] sm:$0xf] }
 0x135   :  { %2569 = vmatpush.bf16.msra.mxu3 %v6745_v29  ;;  %v6665_v29 = vor.u32 %v8891_v19, %v6662_v21  ;;  %v6761_v19 = vor.u32 %v8915_v15, %v6758_v55  ;;  %v6932_v21 = vld [vmem:[#allocation4 + $0x268] sm:$0xf]  ;;  %v9005_v0 = vld [vmem:[#allocation4 + $0x3d4] sm:$0xf0] }
 0x136   :  { %v6933_v26 = vor.u32 %v8961_v22, %v6932_v21  ;;  %v8997_v15 = vld [vmem:[#allocation4 + $0x394] sm:$0xf0]  ;;  %v8951_v22 = vld [vmem:[#allocation4 + $0x22c] sm:$0xf] }
 0x137   :  { %2583 = vmatpush.bf16.msra.mxu1 %v6857_v12  ;;  %v1519_v36 = vpop.f32.mrf.mxu3  ;;  %v1560_v58 = vpop.f32.mrf.mxu0  ;;  %v6964_v12 = vld [vmem:[#allocation4 + $0x2a8] sm:$0xf] }
 0x138   :  { %v1520_v43 = vadd.f32 %v1519_v36, %v1507_v31  ;;  %v1545_v6 = vpop.f32.mrf.mxu2  ;;  %2509 = vmatpush.bf16.msra.mxu0 %v7041_v44  ;;  %v6965_v45 = vor.u32 %v8969_v13, %v6964_v12  ;;  %v8959_v12 = vld [vmem:[#allocation4 + $0x26c] sm:$0xf]  ;;  %v6934_v13 = vld [vmem:[#allocation4 + $0x278] sm:$0xf0] }
 0x139   :  { %2570 = vmatpush.bf16.msra.mxu3 %v6729_v48  ;;  %v6649_v48 = vor.u32 %v8887_v33, %v6646_v40  ;;  %v6937_v55 = vor.u32 %v8959_v12, %v6934_v13  ;;  %v9015_v13 = vld [vmem:[%s10068_s5 + $0x28] sm:$0xff] }
 0x13a   :  { %v1533_v47 = vadd.f32 %v9617_v34, %v1520_v43  ;;  %v6633_v34 = vor.u32 %v8883_v57, %v6630_v53  ;;  %v6884_v43 = vld [vmem:[#allocation4 + $0x208] sm:$0xf]  ;;  %v6982_v57 = vld [vmem:[#allocation4 + $0x2d8] sm:$0xf0] }
 0x13b   :  { %2584 = vmatpush.bf16.msra.mxu1 %v6841_v20  ;;  %v6949_v20 = vor.u32 %v8965_v62, %v6948_v17  ;;  %v6985_v35 = vor.u32 %v8971_v50, %v6982_v57  ;;  %v8955_v17 = vld [vmem:[#allocation4 + $0x24c] sm:$0xf]  ;;  %v6918_v62 = vld [vmem:[#allocation4 + $0x258] sm:$0xf0]  ;;  %v9647_v57 = vld [vmem:[%s10067_s4] sm:$0xf] }
 0x13c   :  { %v1629_v30 = vmax.f32 %v1533_v47, 0.0  ;;  %v7078_v50 = vld [vmem:[#allocation4 + $0x398] sm:$0xf0]  ;;  %v1766_v12 = vperm.slane %v9647_v57, 1 }
 0x13d   :  { %2571 = vmatpush.bf16.msra.mxu3 %v6713_v59  ;;  %v7025_v59 = vor.u32 %v8982_v25, %v7022_v54  ;;  %v7124_v25 = vld [vmem:[#allocation4 + $0x3e8] sm:$0xf]  ;;  %v9009_v54 = vld [vmem:[#allocation4 + $0x3f4] sm:$0xf0] }
 0x13e   :  { %v9629_v61 = vpack.c.bf16 %v1629_v30, %v1629_v30  ;;  %v7125_v58 = vor.u32 %v9009_v54, %v7124_v25  ;;  %v7062_v25 = vld [vmem:[#allocation4 + $0x378] sm:$0xf0] }
 0x13f   :  { %2585 = vmatpush.bf16.msra.mxu1 %v6825_v39  ;;  %v1521_v3 = vpop.f32.mrf.mxu3  ;;  %2510 = vmatpush.bf16.msra.mxu0 %v7025_v59  ;;  %v8967_v59 = vld [vmem:[#allocation4 + $0x2ac] sm:$0xf] }
 0x140   :  { %2447 = vmatmul.bf16.vlgmr.msrb.gmra.mxu2 %v9629_v61  ;;  %v1547_v8 = vpop.f32.mrf.mxu2 }
 0x141   :  { %2572 = vmatpush.bf16.msra.mxu3 %v6697_v9  ;;  %v7009_v9 = vor.u32 %v8978_v4, %v7006_v5  ;;  %2543 = vmatpush.bf16.msrb.mxu2 %v6997_v60  ;;  %v6966_v60 = vld [vmem:[#allocation4 + $0x2b8] sm:$0xf0]  ;;  %v7109_v4 = vor.u32 %v9005_v0, %v7108_v63  ;;  %v8963_v5 = vld [vmem:[#allocation4 + $0x28c] sm:$0xf]  ;;  %v9001_v8 = vld [vmem:[#allocation4 + $0x3b4] sm:$0xf0] }
 0x142   :  { %v8983_v0 = vld [vmem:[#allocation4 + $0x32c] sm:$0xf] }
 0x143   :  { %2586 = vmatpush.bf16.msra.mxu1 %v6809_v52  ;;  %2511 = vmatpush.bf16.msra.mxu0 %v7009_v9  ;;  %v6953_v9 = vor.u32 %v8963_v5, %v6950_v46  ;;  %v8979_v5 = vld [vmem:[#allocation4 + $0x30c] sm:$0xf]  ;;  %v7014_v46 = vld [vmem:[#allocation4 + $0x318] sm:$0xf0] }
 0x145   :  { %2573 = vmatpush.bf16.msra.mxu3 %v6681_v18  ;;  %2544 = vmatpush.bf16.msrb.mxu2 %v6981_v11  ;;  %v274_v18 = vperm.slane %v9578_v2, 3  ;;  %v7093_v11 = vor.u32 %v9001_v8, %v7092_v37 }
 0x147   :  { %2587 = vmatpush.bf16.msra.mxu1 %v6793_v1  ;;  %v1546_v23 = vadd.f32 %v1545_v6, %v274_v18  ;;  %v6998_v6 = vld [vmem:[#allocation4 + $0x2f8] sm:$0xf0]  ;;  %v6969_v1 = vor.u32 %v8967_v59, %v6966_v60  ;;  %v7060_v18 = vld [vmem:[#allocation4 + $0x368] sm:$0xf] }
 0x149   :  { %2574 = vmatpush.bf16.msra.mxu3 %v6665_v29  ;;  %2545 = vmatpush.bf16.msrb.mxu2 %v6965_v45  ;;  %v1559_v38 = vadd.f32 %v9626_v28, %v1546_v23  ;;  %v6900_v29 = vld [vmem:[#allocation4 + $0x228] sm:$0xf]  ;;  %v6902_v23 = vld [vmem:[#allocation4 + $0x238] sm:$0xf0] }
 0x14a   :  { %v6901_v42 = vor.u32 %v8953_v32, %v6900_v29  ;;  %v7028_v29 = vld [vmem:[#allocation4 + $0x328] sm:$0xf]  ;;  %v8985_v32 = vld [vmem:[#allocation4 + $0x334] sm:$0xf0] }
 0x14b   :  { %2588 = vmatpush.bf16.msra.mxu1 %v6777_v14  ;;  %v1571_v24 = vpop.f32.mrf.mxu1  ;;  %v7076_v14 = vld [vmem:[#allocation4 + $0x388] sm:$0xf] }
 0x14c   :  { %v1572_v33 = vadd.f32 %v1571_v24, %v1559_v38  ;;  %v7077_v45 = vor.u32 %v8997_v15, %v7076_v14  ;;  %v7044_v24 = vld [vmem:[#allocation4 + $0x348] sm:$0xf]  ;;  %v9014_v15 = vld [vmem:[%s10068_s5 + $0x20] sm:$0xff] }
 0x14d   :  { %2575 = vmatpush.bf16.msra.mxu3 %v6649_v48  ;;  %2546 = vmatpush.bf16.msrb.mxu2 %v6949_v20  ;;  %v7001_v48 = vor.u32 %v8975_v10, %v6998_v6  ;;  %v6921_v20 = vor.u32 %v8955_v17, %v6918_v62  ;;  %v9003_v10 = vld [vmem:[#allocation4 + $0x3cc] sm:$0xf]  ;;  %v7110_v6 = vld [vmem:[#allocation4 + $0x3d8] sm:$0xf0] }
 0x14e   :  { %v9013_v17 = vld [vmem:[%s10068_s5 + $0x18] sm:$0xff] }
 0x14f   :  { %2589 = vmatpush.bf16.msra.mxu1 %v6761_v19  ;;  %v1610_v2 = vpop.f32.mrf.mxu0  ;;  %v8993_v19 = vld [vmem:[#allocation4 + $0x374] sm:$0xf0] }
 0x150   :  { %2499 = vmatmul.bf16.vlgmr.msra.gmra.mxu2 %v9629_v61  ;;  %v7061_v21 = vor.u32 %v8993_v19, %v7060_v18  ;;  %v9012_v18 = vld [vmem:[%s10068_s5 + $0x10] sm:$0xff]  ;;  %v1767_v19 = vperm.slane %v9647_v57, 2 }
 0x151   :  { %2576 = vmatpush.bf16.msra.mxu3 %v6633_v34  ;;  %2547 = vmatpush.bf16.msrb.mxu2 %v6933_v26  ;;  %v8989_v26 = vld [vmem:[#allocation4 + $0x354] sm:$0xf0] }
 0x152   :  { %2590 = vmatmul.bf16.vlgmr.msra.gmra.mxu1 %v9605_v7  ;;  %v8949_v7 = vld [vmem:[#allocation4 + $0x214] sm:$0xf0]  ;;  %v7045_v38 = vor.u32 %v8989_v26, %v7044_v24  ;;  %v9010_v24 = vld [vmem:[%s10068_s5] sm:$0xff] }
 0x153   :  { %v1573_v36 = vpop.f32.mrf.mxu1  ;;  %v6885_v47 = vor.u32 %v8949_v7, %v6884_v43  ;;  %v7126_v43 = vld [vmem:[#allocation4 + $0x3f8] sm:$0xf0] }
 0x154   :  { %2577 = vmatmul.bf16.vlgmr.msra.gmra.mxu3 %v9598_v51  ;;  %v8957_v51 = vld [vmem:[#allocation4 + $0x254] sm:$0xf0]  ;;  %v7029_v36 = vor.u32 %v8985_v32, %v7028_v29  ;;  %v7356_v29 = vld [vmem:[#allocation2 + $0xc0] sm:$0xf]  ;;  %v9068_v32 = vld [vmem:[#allocation2 + $0xcc] sm:$0xf0] }
 0x155   :  { %v6917_v31 = vor.u32 %v8957_v51, %v6916_v27  ;;  %v6905_v51 = vor.u32 %v8951_v22, %v6902_v23  ;;  %v9025_v26 = vld [vmem:[%s10068_s5 + $0x78] sm:$0xff] }
 0x156   :  { %2902 = vmatpush.bf16.msrb.mxu1 %v9025_v26  ;;  %v7468_v26 = vld [vmem:[#allocation2 + $0x1a0] sm:$0xf] }
 0x157   :  { %v1584_v39 = vpop.f32.mrf.mxu3  ;;  %2548 = vmatpush.bf16.msrb.mxu2 %v6917_v31  ;;  %v1612_v28 = vpop.f32.mrf.mxu0  ;;  %v6886_v31 = vld [vmem:[#allocation4 + $0x218] sm:$0xf0] }
 0x158   :  { %v1585_v40 = vadd.f32 %v1584_v39, %v1572_v33  ;;  %v1597_v41 = vpop.f32.mrf.mxu2  ;;  %v7012_v39 = vld [vmem:[#allocation4 + $0x308] sm:$0xf]  ;;  %v7113_v28 = vor.u32 %v9003_v10, %v7110_v6  ;;  %v7324_v10 = vld [vmem:[#allocation2 + $0x80] sm:$0xf]  ;;  %v9060_v6 = vld [vmem:[#allocation2 + $0x8c] sm:$0xf0] }
 0x15a   :  { %v1598_v16 = vadd.f32 %v1597_v41, %v1585_v40  ;;  %v8981_v40 = vld [vmem:[#allocation4 + $0x314] sm:$0xf0] }
 0x15b   :  { %2549 = vmatpush.bf16.msrb.mxu2 %v6901_v42  ;;  %v1623_v49 = vpop.f32.mrf.mxu1  ;;  %v9007_v42 = vld [vmem:[#allocation4 + $0x3ec] sm:$0xf]  ;;  %v7013_v7 = vor.u32 %v8981_v40, %v7012_v39  ;;  %v7340_v39 = vld [vmem:[#allocation2 + $0xa0] sm:$0xf] }
 0x15c   :  { %v1611_v44 = vadd.f32 %v1610_v2, %v1598_v16  ;;  %v8947_v2 = vld [vmem:[#allocation4 + $0x20c] sm:$0xf]  ;;  %v7129_v16 = vor.u32 %v9007_v42, %v7126_v43 }
 0x15d   :  { %v6889_v33 = vor.u32 %v8947_v2, %v6886_v31  ;;  %v9024_v31 = vld [vmem:[%s10068_s5 + $0x70] sm:$0xff]  ;;  %v9023_v40 = vld [vmem:[%s10068_s5 + $0x68] sm:$0xff] }
 0x15e   :  { %v1624_v52 = vadd.f32 %v1623_v49, %v1611_v44  ;;  %v8999_v44 = vld [vmem:[#allocation4 + $0x3ac] sm:$0xf]  ;;  %2903 = vmatpush.bf16.msrb.mxu1 %v9024_v31  ;;  %v9136_v31 = vld [vmem:[#allocation2 + $0x2ec] sm:$0xf0] }
 0x15f   :  { %v1586_v53 = vpop.f32.mrf.mxu3  ;;  %2550 = vmatpush.bf16.msrb.mxu2 %v6885_v47  ;;  %v7094_v47 = vld [vmem:[#allocation4 + $0x3b8] sm:$0xf0]  ;;  %v8995_v49 = vld [vmem:[#allocation4 + $0x38c] sm:$0xf] }
 0x160   :  { %v1599_v30 = vpop.f32.mrf.mxu2  ;;  %v1630_v56 = vmax.f32 %v1624_v52, 0.0  ;;  %v1765_v52 = vperm.slane %v9647_v57, 0  ;;  %v8991_v53 = vld [vmem:[#allocation4 + $0x36c] sm:$0xf] }
 0x161   :  { %v7065_v54 = vor.u32 %v8991_v53, %v7062_v25  ;;  %v7292_v53 = vld [vmem:[#allocation2 + $0x40] sm:$0xf]  ;;  %v9052_v25 = vld [vmem:[#allocation2 + $0x4c] sm:$0xf0] }
 0x162   :  { %v9637_v34 = vpack.c.bf16 %v1630_v56, %v1630_v56  ;;  %2551 = vmatmul.bf16.vlgmr.msrb.gmra.mxu2 %v9629_v61  ;;  %v8987_v56 = vld [vmem:[#allocation4 + $0x34c] sm:$0xf]  ;;  %2904 = vmatpush.bf16.msrb.mxu1 %v9023_v40  ;;  %v7612_v40 = vld [vmem:[#allocation2 + $0x2c0] sm:$0xf] }
 0x163   :  { %2595 = vmatpush.bf16.msra.mxu2 %v7001_v48  ;;  %v1625_v3 = vpop.f32.mrf.mxu1  ;;  %v7097_v48 = vor.u32 %v8999_v44, %v7094_v47  ;;  %v9021_v44 = vld [vmem:[%s10068_s5 + $0x58] sm:$0xff]  ;;  %v7308_v47 = vld [vmem:[#allocation2 + $0x60] sm:$0xf] }
 0x164   :  { %2460 = vmatmul.bf16.vlgmr.msrb.gmra.mxu0 %v9637_v34  ;;  %v9017_v3 = vld [vmem:[%s10068_s5 + $0x38] sm:$0xff] }
 0x165   :  { %2556 = vmatpush.bf16.msrb.mxu0 %v7125_v58  ;;  %2889 = vmatpush.bf16.msrb.mxu3 %v9017_v3 }
 0x167   :  { %2596 = vmatpush.bf16.msra.mxu2 %v6985_v35  ;;  %v7046_v35 = vld [vmem:[#allocation4 + $0x358] sm:$0xf0] }
 0x168   :  { %v7049_v63 = vor.u32 %v8987_v56, %v7046_v35  ;;  %v1768_v56 = vperm.slane %v9647_v57, 3  ;;  %v9019_v35 = vld [vmem:[%s10068_s5 + $0x48] sm:$0xff] }
 0x169   :  { %2557 = vmatpush.bf16.msrb.mxu0 %v7109_v4 }
 0x16b   :  { %2597 = vmatpush.bf16.msra.mxu2 %v6969_v1  ;;  %v7030_v1 = vld [vmem:[#allocation4 + $0x338] sm:$0xf0] }
 0x16c   :  { %v7033_v4 = vor.u32 %v8983_v0, %v7030_v1  ;;  %v7276_v0 = vld [vmem:[#allocation2 + $0x20] sm:$0xf]  ;;  %v9048_v1 = vld [vmem:[#allocation2 + $0x2c] sm:$0xf0] }
 0x16d   :  { %2558 = vmatpush.bf16.msrb.mxu0 %v7093_v11  ;;  %v7017_v11 = vor.u32 %v8979_v5, %v7014_v46  ;;  %v7277_v57 = vor.u32 %v9048_v1, %v7276_v0  ;;  %v9018_v46 = vld [vmem:[%s10068_s5 + $0x40] sm:$0xff] }
 0x16e   :  { %v7868_v0 = vld [vmem:[#allocation2 + $0x4c0] sm:$0xf] }
 0x16f   :  { %2598 = vmatpush.bf16.msra.mxu2 %v6953_v9  ;;  %v9016_v9 = vld [vmem:[%s10068_s5 + $0x30] sm:$0xff] }
 0x170   :  { %2890 = vmatpush.bf16.msrb.mxu3 %v9016_v9 }
 0x171   :  { %2559 = vmatpush.bf16.msrb.mxu0 %v7077_v45 }
 0x173   :  { %2599 = vmatpush.bf16.msra.mxu2 %v6937_v55 }
 0x174   :  { %2512 = vmatmul.bf16.vlgmr.msra.gmra.mxu0 %v9637_v34  ;;  %2891 = vmatpush.bf16.msrb.mxu3 %v9015_v13  ;;  %v7500_v13 = vld [vmem:[#allocation2 + $0x1e0] sm:$0xf] }
 0x175   :  { %2560 = vmatpush.bf16.msrb.mxu0 %v7061_v21  ;;  %v9011_v21 = vld [vmem:[%s10068_s5 + $0x8] sm:$0xff] }
 0x177   :  { %v2422_v27 = vpop.f32.mrf.mxu3  ;;  %2600 = vmatpush.bf16.msra.mxu2 %v6921_v20 }
 0x178   :  { %v2423_v30 = vadd.f32 %v2422_v27, %v1765_v52  ;;  %2892 = vmatpush.bf16.msrb.mxu3 %v9014_v15  ;;  %v7372_v27 = vld [vmem:[#allocation2 + $0xe0] sm:$0xf]  ;;  %v9020_v52 = vld [vmem:[%s10068_s5 + $0x50] sm:$0xff] }
 0x179   :  { %2561 = vmatpush.bf16.msrb.mxu0 %v7045_v38  ;;  %v9104_v15 = vld [vmem:[#allocation2 + $0x1ec] sm:$0xf0] }
 0x17b   :  { %2601 = vmatpush.bf16.msra.mxu2 %v6905_v51  ;;  %v9072_v51 = vld [vmem:[#allocation2 + $0xec] sm:$0xf0] }
 0x17c   :  { %2893 = vmatpush.bf16.msrb.mxu3 %v9013_v17  ;;  %v7373_v38 = vor.u32 %v9072_v51, %v7372_v27  ;;  %v9039_v17 = vld [vmem:[%s10068_s5 + $0xe8] sm:$0xff]  ;;  %v9096_v27 = vld [vmem:[#allocation2 + $0x1ac] sm:$0xf0]  ;;  %v9026_v51 = vld [vmem:[%s10068_s5 + $0x80] sm:$0xff] }
 0x17d   :  { %2562 = vmatpush.bf16.msrb.mxu0 %v7029_v36  ;;  %v9033_v36 = vld [vmem:[%s10068_s5 + $0xb8] sm:$0xff] }
 0x17f   :  { %v2424_v41 = vpop.f32.mrf.mxu3  ;;  %2602 = vmatpush.bf16.msra.mxu2 %v6889_v33  ;;  %v7357_v33 = vor.u32 %v9068_v32, %v7356_v29  ;;  %v9037_v32 = vld [vmem:[%s10068_s5 + $0xd8] sm:$0xff] }
 0x180   :  { %2894 = vmatpush.bf16.msrb.mxu3 %v9012_v18  ;;  %v9064_v41 = vld [vmem:[#allocation2 + $0xac] sm:$0xf0] }
 0x181   :  { %2563 = vmatpush.bf16.msrb.mxu0 %v7013_v7  ;;  %v7341_v43 = vor.u32 %v9064_v41, %v7340_v39  ;;  %v9022_v7 = vld [vmem:[%s10068_s5 + $0x60] sm:$0xff]  ;;  %v9100_v18 = vld [vmem:[#allocation2 + $0x1cc] sm:$0xf0] }
 0x182   :  { %2603 = vmatmul.bf16.vlgmr.msra.gmra.mxu2 %v9629_v61  ;;  %v7081_v61 = vor.u32 %v8995_v49, %v7078_v50  ;;  %2905 = vmatpush.bf16.msrb.mxu1 %v9022_v7  ;;  %v9031_v49 = vld [vmem:[%s10068_s5 + $0xa8] sm:$0xff]  ;;  %v9132_v41 = vld [vmem:[#allocation2 + $0x2cc] sm:$0xf0]  ;;  %v7436_v7 = vld [vmem:[#allocation2 + $0x160] sm:$0xf] }
 0x183   :  { %2915 = vmatpush.bf16.msrb.mxu2 %v9033_v36  ;;  %v9092_v36 = vld [vmem:[#allocation2 + $0x18c] sm:$0xf0] }
 0x184   :  { %2564 = vmatmul.bf16.vlgmr.msrb.gmra.mxu0 %v9637_v34  ;;  %2895 = vmatpush.bf16.msrb.mxu3 %v9011_v21 }
 0x185   :  { %2608 = vmatpush.bf16.msra.mxu0 %v7129_v16  ;;  %v9032_v16 = vld [vmem:[%s10068_s5 + $0xb0] sm:$0xff] }
 0x186   :  { %2906 = vmatpush.bf16.msrb.mxu1 %v9021_v44 }
 0x187   :  { %v2435_v58 = vpop.f32.mrf.mxu1  ;;  %2916 = vmatpush.bf16.msrb.mxu2 %v9032_v16  ;;  %v9088_v16 = vld [vmem:[#allocation2 + $0x16c] sm:$0xf0] }
 0x188   :  { %v9650_v60 = vadd.f32 %v2435_v58, %v2423_v30  ;;  %2896 = vmatpush.bf16.msrb.mxu3 %v9010_v24  ;;  %v7293_v30 = vor.u32 %v9052_v25, %v7292_v53  ;;  %v9041_v58 = vld [vmem:[%s10068_s5 + $0xf8] sm:$0xff]  ;;  %v9038_v24 = vld [vmem:[%s10068_s5 + $0xe0] sm:$0xff]  ;;  %v9084_v25 = vld [vmem:[#allocation2 + $0x14c] sm:$0xf0] }
 0x189   :  { %2609 = vmatpush.bf16.msra.mxu0 %v7113_v28  ;;  %v7325_v28 = vor.u32 %v9060_v6, %v7324_v10  ;;  %v7596_v10 = vld [vmem:[#allocation2 + $0x2a0] sm:$0xf]  ;;  %v9128_v6 = vld [vmem:[#allocation2 + $0x2ac] sm:$0xf0] }
 0x18a   :  { %2907 = vmatpush.bf16.msrb.mxu1 %v9020_v52  ;;  %v7597_v44 = vor.u32 %v9128_v6, %v7596_v10  ;;  %v9035_v52 = vld [vmem:[%s10068_s5 + $0xc8] sm:$0xff]  ;;  %v7420_v53 = vld [vmem:[#allocation2 + $0x140] sm:$0xf] }
 0x18b   :  { %2917 = vmatpush.bf16.msrb.mxu2 %v9031_v49  ;;  %v7884_v49 = vld [vmem:[#allocation2 + $0x4e0] sm:$0xf] }
 0x18c   :  { %4145 = vmatpush.bf16.msra.mxu3 %v7373_v38  ;;  %v7469_v38 = vor.u32 %v9096_v27, %v7468_v26  ;;  %v9116_v26 = vld [vmem:[#allocation2 + $0x24c] sm:$0xf0] }
 0x18d   :  { %2610 = vmatpush.bf16.msra.mxu0 %v7097_v48  ;;  %v9056_v48 = vld [vmem:[#allocation2 + $0x6c] sm:$0xf0] }
 0x18e   :  { %v7309_v50 = vor.u32 %v9056_v48, %v7308_v47  ;;  %2908 = vmatpush.bf16.msrb.mxu1 %v9019_v35  ;;  %v7437_v47 = vor.u32 %v9088_v16, %v7436_v7  ;;  %v7580_v35 = vld [vmem:[#allocation2 + $0x280] sm:$0xf]  ;;  %v9156_v7 = vld [vmem:[#allocation2 + $0x38c] sm:$0xf0] }
 0x18f   :  { %v2437_v37 = vpop.f32.mrf.mxu1  ;;  %v7516_v16 = vld [vmem:[#allocation2 + $0x200] sm:$0xf] }
 0x190   :  { %4146 = vmatpush.bf16.msra.mxu3 %v7357_v33  ;;  %v9040_v37 = vld [vmem:[%s10068_s5 + $0xf0] sm:$0xff]  ;;  %v7452_v33 = vld [vmem:[#allocation2 + $0x180] sm:$0xf] }
 0x191   :  { %2611 = vmatpush.bf16.msra.mxu0 %v7081_v61  ;;  %v7453_v39 = vor.u32 %v9092_v36, %v7452_v33  ;;  %v9188_v33 = vld [vmem:[#allocation2 + $0x48c] sm:$0xf0] }
 0x192   :  { %2909 = vmatpush.bf16.msrb.mxu1 %v9018_v46 }
 0x194   :  { %4147 = vmatpush.bf16.msra.mxu3 %v7341_v43  ;;  %v9036_v43 = vld [vmem:[%s10068_s5 + $0xd0] sm:$0xff] }
 0x195   :  { %2612 = vmatpush.bf16.msra.mxu0 %v7065_v54  ;;  %v9030_v54 = vld [vmem:[%s10068_s5 + $0xa0] sm:$0xff] }
 0x196   :  { %2918 = vmatpush.bf16.msrb.mxu2 %v9030_v54 }
 0x197   :  { %v2474_v59 = vpop.f32.mrf.mxu3  ;;  %v2487_v55 = vpop.f32.mrf.mxu1 }
 0x198   :  { %v2475_v14 = vadd.f32 %v2474_v59, %v1766_v12  ;;  %4148 = vmatpush.bf16.msra.mxu3 %v7325_v28  ;;  %v9029_v59 = vld [vmem:[%s10068_s5 + $0x98] sm:$0xff]  ;;  %v9044_v12 = vld [vmem:[#allocation2 + $0xc] sm:$0xf0] }
 0x199   :  { %2613 = vmatpush.bf16.msra.mxu0 %v7049_v63 }
 0x19a   :  { %v9665_v45 = vadd.f32 %v2487_v55, %v2475_v14  ;;  %2919 = vmatpush.bf16.msrb.mxu2 %v9029_v59  ;;  %v7501_v55 = vor.u32 %v9104_v15, %v7500_v13  ;;  %v9120_v13 = vld [vmem:[#allocation2 + $0x26c] sm:$0xf0] }
 0x19b   :  { %v9192_v15 = vld [vmem:[#allocation2 + $0x4ac] sm:$0xf0] }
 0x19c   :  { %4149 = vmatpush.bf16.msra.mxu3 %v7309_v50  ;;  %4158 = vmatpush.bf16.msra.mxu1 %v7501_v55 }
 0x19d   :  { %2614 = vmatpush.bf16.msra.mxu0 %v7033_v4 }
 0x19f   :  { %v2476_v8 = vpop.f32.mrf.mxu3  ;;  %v2489_v62 = vpop.f32.mrf.mxu1 }
 0x1a0   :  { %4150 = vmatpush.bf16.msra.mxu3 %v7293_v30  ;;  %v9028_v8 = vld [vmem:[%s10068_s5 + $0x90] sm:$0xff]  ;;  %v7484_v62 = vld [vmem:[#allocation2 + $0x1c0] sm:$0xf] }
 0x1a1   :  { %2615 = vmatpush.bf16.msra.mxu0 %v7017_v11  ;;  %v7260_v11 = vld [vmem:[#allocation2] sm:$0xf]  ;;  %2920 = vmatpush.bf16.msrb.mxu2 %v9028_v8  ;;  %v7485_v21 = vor.u32 %v9100_v18, %v7484_v62  ;;  %v9200_v30 = vld [vmem:[#allocation2 + $0x4ec] sm:$0xf0] }
 0x1a2   :  { %v7261_v14 = vor.u32 %v9044_v12, %v7260_v11  ;;  %v7885_v1 = vor.u32 %v9200_v30, %v7884_v49  ;;  %v9168_v8 = vld [vmem:[#allocation2 + $0x3ec] sm:$0xf0]  ;;  %v7564_v11 = vld [vmem:[#allocation2 + $0x260] sm:$0xf] }
 0x1a3   :  { %4159 = vmatpush.bf16.msra.mxu1 %v7485_v21  ;;  %v7565_v55 = vor.u32 %v9120_v13, %v7564_v11  ;;  %v7388_v18 = vld [vmem:[#allocation2 + $0x100] sm:$0xf] }
 0x1a4   :  { %2616 = vmatmul.bf16.vlgmr.msra.gmra.mxu0 %v9637_v34  ;;  %4151 = vmatpush.bf16.msra.mxu3 %v7277_v57  ;;  %v7404_v57 = vld [vmem:[#allocation2 + $0x120] sm:$0xf] }
 0x1a5   :  { %2928 = vmatpush.bf16.msrb.mxu0 %v9041_v58  ;;  %v9124_v58 = vld [vmem:[#allocation2 + $0x28c] sm:$0xf0]  ;;  %v7980_v11 = vld [vmem:[#allocation2 + $0x5a0] sm:$0xf] }
 0x1a6   :  { %v7581_v59 = vor.u32 %v9124_v58, %v7580_v35  ;;  %v7804_v35 = vld [vmem:[#allocation2 + $0x440] sm:$0xf] }
 0x1a7   :  { %4160 = vmatpush.bf16.msra.mxu1 %v7469_v38 }
 0x1a8   :  { %4152 = vmatpush.bf16.msra.mxu3 %v7261_v14  ;;  %v7852_v14 = vld [vmem:[#allocation2 + $0x4a0] sm:$0xf] }
 0x1a9   :  { %2929 = vmatpush.bf16.msrb.mxu0 %v9040_v37  ;;  %v7756_v37 = vld [vmem:[#allocation2 + $0x3e0] sm:$0xf] }
 0x1aa   :  { %v7757_v12 = vor.u32 %v9168_v8, %v7756_v37  ;;  %v9148_v37 = vld [vmem:[#allocation2 + $0x34c] sm:$0xf0] }
 0x1ab   :  { %4161 = vmatpush.bf16.msra.mxu1 %v7453_v39  ;;  %v7532_v39 = vld [vmem:[#allocation2 + $0x220] sm:$0xf]  ;;  %v9176_v8 = vld [vmem:[#allocation2 + $0x42c] sm:$0xf0] }
 0x1ad   :  { %2930 = vmatpush.bf16.msrb.mxu0 %v9039_v17 }
 0x1af   :  { %v2539_v22 = vpop.f32.mrf.mxu1  ;;  %4162 = vmatpush.bf16.msra.mxu1 %v7437_v47 }
 0x1b1   :  { %2931 = vmatpush.bf16.msrb.mxu0 %v9038_v24  ;;  %v7548_v24 = vld [vmem:[#allocation2 + $0x240] sm:$0xf] }
 0x1b5   :  { %2932 = vmatpush.bf16.msrb.mxu0 %v9037_v32  ;;  %v9160_v32 = vld [vmem:[#allocation2 + $0x3ac] sm:$0xf0] }
 0x1b7   :  { %v2526_v20 = vpop.f32.mrf.mxu3  ;;  %v2541_v42 = vpop.f32.mrf.mxu1 }
 0x1b8   :  { %v2527_v34 = vadd.f32 %v2526_v20, %v1767_v19  ;;  %v9027_v20 = vld [vmem:[%s10068_s5 + $0x88] sm:$0xff]  ;;  %v7613_v42 = vor.u32 %v9132_v41, %v7612_v40  ;;  %v9112_v40 = vld [vmem:[#allocation2 + $0x22c] sm:$0xf0] }
 0x1b9   :  { %2921 = vmatpush.bf16.msrb.mxu2 %v9027_v20  ;;  %2933 = vmatpush.bf16.msrb.mxu0 %v9036_v43  ;;  %v7740_v20 = vld [vmem:[#allocation2 + $0x3c0] sm:$0xf]  ;;  %v7533_v41 = vor.u32 %v9112_v40, %v7532_v39  ;;  %v9236_v40 = vld [vmem:[#allocation2 + $0x60c] sm:$0xf0] }
 0x1ba   :  { %v9678_v23 = vadd.f32 %v2539_v22, %v2527_v34  ;;  %v7708_v43 = vld [vmem:[#allocation2 + $0x380] sm:$0xf] }
 0x1bb   :  { %v7709_v47 = vor.u32 %v9156_v7, %v7708_v43  ;;  %v7614_v43 = vld [vmem:[#allocation2 + $0x2d0] sm:$0xf0]  ;;  %v2943_v7 = vld [vmem:[%s10063_s0 + $0x40] sm:$0xff] }
 0x1bd   :  { %2922 = vmatpush.bf16.msrb.mxu2 %v9026_v51  ;;  %2934 = vmatpush.bf16.msrb.mxu0 %v9035_v52  ;;  %v7549_v51 = vor.u32 %v9116_v26, %v7548_v24  ;;  %v8012_v52 = vld [vmem:[#allocation2 + $0x5e0] sm:$0xf]  ;;  %v7630_v24 = vld [vmem:[#allocation2 + $0x2f0] sm:$0xf0] }
 0x1bf   :  { %v2528_v2 = vpop.f32.mrf.mxu3 }
 0x1c0   :  { %v7628_v2 = vld [vmem:[#allocation2 + $0x2e0] sm:$0xf] }
 0x1c1   :  { %v7629_v29 = vor.u32 %v9136_v31, %v7628_v2  ;;  %v7853_v2 = vor.u32 %v9192_v15, %v7852_v14  ;;  %v7836_v31 = vld [vmem:[#allocation2 + $0x480] sm:$0xf] }
 0x1c2   :  { %v7837_v6 = vor.u32 %v9188_v33, %v7836_v31  ;;  %v7772_v15 = vld [vmem:[#allocation2 + $0x400] sm:$0xf]  ;;  %v2946_v31 = vld [vmem:[%s10063_s0 + $0x58] sm:$0xff] }
 0x1c3   :  { %v9707_v61 = vpop.f32.mrf.mxu2  ;;  %4171 = vmatpush.bf16.msra.mxu2 %v7629_v29  ;;  %v7724_v29 = vld [vmem:[#allocation2 + $0x3a0] sm:$0xf] }
 0x1c4   :  { %v2449_v48 = vadd.f32 %v9707_v61, %v9650_v60  ;;  %v9196_v60 = vld [vmem:[#allocation2 + $0x4cc] sm:$0xf0]  ;;  %v7725_v36 = vor.u32 %v9160_v32, %v7724_v29  ;;  %v7644_v29 = vld [vmem:[#allocation2 + $0x300] sm:$0xf] }
 0x1c5   :  { %v7869_v62 = vor.u32 %v9196_v60, %v7868_v0  ;;  %v7996_v0 = vld [vmem:[#allocation2 + $0x5c0] sm:$0xf]  ;;  %v9228_v60 = vld [vmem:[#allocation2 + $0x5cc] sm:$0xf0] }
 0x1c6   :  { %v9140_v32 = vld [vmem:[#allocation2 + $0x30c] sm:$0xf0] }
 0x1c7   :  { %4172 = vmatpush.bf16.msra.mxu2 %v7613_v42 }
 0x1cb   :  { %v2450_v5 = vpop.f32.mrf.mxu2  ;;  %4173 = vmatpush.bf16.msra.mxu2 %v7597_v44  ;;  %v2942_v44 = vld [vmem:[%s10063_s0 + $0x38] sm:$0xff] }
 0x1cc   :  { %v9771_v30 = vpack.c.bf16 %v2942_v44, %v2942_v44 }
 0x1cf   :  { %v2591_v4 = vpop.f32.mrf.mxu1  ;;  %4174 = vmatpush.bf16.msra.mxu2 %v7581_v59 }
 0x1d3   :  { %v9742_v22 = vpop.f32.mrf.mxu2  ;;  %4175 = vmatpush.bf16.msra.mxu2 %v7565_v55 }
 0x1d4   :  { %v2501_v42 = vadd.f32 %v9742_v22, %v9665_v45  ;;  %v7692_v22 = vld [vmem:[#allocation2 + $0x360] sm:$0xf] }
 0x1d7   :  { %v2578_v63 = vpop.f32.mrf.mxu3  ;;  %v2593_v34 = vpop.f32.mrf.mxu1  ;;  %4176 = vmatpush.bf16.msra.mxu2 %v7549_v51 }
 0x1d8   :  { %v2579_v3 = vadd.f32 %v2578_v63, %v1768_v56  ;;  %v7421_v56 = vor.u32 %v9084_v25, %v7420_v53  ;;  %v9164_v34 = vld [vmem:[#allocation2 + $0x3cc] sm:$0xf0] }
 0x1d9   :  { %v7741_v27 = vor.u32 %v9164_v34, %v7740_v20  ;;  %v9232_v53 = vld [vmem:[#allocation2 + $0x5ec] sm:$0xf0]  ;;  %v9134_v34 = vld [vmem:[#allocation2 + $0x2e4] sm:$0xf] }
 0x1da   :  { %v9734_v9 = vadd.f32 %v2591_v4, %v2579_v3  ;;  %v9034_v3 = vld [vmem:[%s10068_s5 + $0xc0] sm:$0xff]  ;;  %v9080_v4 = vld [vmem:[#allocation2 + $0x12c] sm:$0xf0]  ;;  %4163 = vmatpush.bf16.msra.mxu1 %v7421_v56  ;;  %v8013_v58 = vor.u32 %v9232_v53, %v8012_v52  ;;  %v7633_v39 = vor.u32 %v9134_v34, %v7630_v24  ;;  %v7598_v53 = vld [vmem:[#allocation2 + $0x2b0] sm:$0xf0] }
 0x1db   :  { %v2502_v28 = vpop.f32.mrf.mxu2  ;;  %v7405_v46 = vor.u32 %v9080_v4, %v7404_v57  ;;  %2935 = vmatpush.bf16.msrb.mxu0 %v9034_v3  ;;  %4177 = vmatpush.bf16.msra.mxu2 %v7533_v41  ;;  %v9152_v25 = vld [vmem:[#allocation2 + $0x36c] sm:$0xf0]  ;;  %v7788_v4 = vld [vmem:[#allocation2 + $0x420] sm:$0xf]  ;;  %v9126_v52 = vld [vmem:[#allocation2 + $0x2a4] sm:$0xf] }
 0x1dc   :  { %v7820_v28 = vld [vmem:[#allocation2 + $0x460] sm:$0xf]  ;;  %v7789_v14 = vor.u32 %v9176_v8, %v7788_v4  ;;  %v9220_v20 = vld [vmem:[#allocation2 + $0x58c] sm:$0xf0]  ;;  %v9166_v4 = vld [vmem:[#allocation2 + $0x3e4] sm:$0xf] }
 0x1dd   :  { %v7948_v41 = vld [vmem:[#allocation2 + $0x560] sm:$0xf]  ;;  %v9102_v8 = vld [vmem:[#allocation2 + $0x1e4] sm:$0xf] }
 0x1de   :  { %4164 = vmatpush.bf16.msra.mxu1 %v7405_v46  ;;  %v7676_v46 = vld [vmem:[#allocation2 + $0x340] sm:$0xf]  ;;  %v9110_v34 = vld [vmem:[#allocation2 + $0x224] sm:$0xf] }
 0x1df   :  { %v2580_v19 = vpop.f32.mrf.mxu3  ;;  %4184 = vmatpush.bf16.msra.mxu0 %v7757_v12  ;;  %v9224_v12 = vld [vmem:[#allocation2 + $0x5ac] sm:$0xf0]  ;;  %v7677_v13 = vor.u32 %v9148_v37, %v7676_v46  ;;  %v2944_v46 = vld [vmem:[%s10063_s0 + $0x48] sm:$0xff] }
 0x1e0   :  { %v9076_v19 = vld [vmem:[#allocation2 + $0x10c] sm:$0xf0]  ;;  %v7981_v55 = vor.u32 %v9224_v12, %v7980_v11  ;;  %v7502_v11 = vld [vmem:[#allocation2 + $0x1f0] sm:$0xf0] }
 0x1e1   :  { %v2461_v50 = vpop.f32.mrf.mxu0  ;;  %v7389_v21 = vor.u32 %v9076_v19, %v7388_v18  ;;  %v9172_v18 = vld [vmem:[#allocation2 + $0x40c] sm:$0xf0]  ;;  %v7964_v19 = vld [vmem:[#allocation2 + $0x580] sm:$0xf] }
 0x1e2   :  { %v2462_v54 = vadd.f32 %v2461_v50, %v2449_v48  ;;  %v9108_v48 = vld [vmem:[#allocation2 + $0x20c] sm:$0xf0] }
 0x1e3   :  { %4185 = vmatpush.bf16.msra.mxu0 %v7741_v27  ;;  %4165 = vmatpush.bf16.msra.mxu1 %v7389_v21  ;;  %v9184_v50 = vld [vmem:[#allocation2 + $0x46c] sm:$0xf0]  ;;  %v7517_v45 = vor.u32 %v9108_v48, %v7516_v16  ;;  %v8028_v27 = vld [vmem:[#allocation2 + $0x600] sm:$0xf] }
 0x1e4   :  { %v2621_v63 = vmax.f32 %v2462_v54, 0.0  ;;  %v7821_v56 = vor.u32 %v9184_v50, %v7820_v28  ;;  %v7932_v48 = vld [vmem:[#allocation2 + $0x540] sm:$0xf]  ;;  %v9786_v50 = vpack.c.bf16 %v2943_v7, %v2943_v7 }
 0x1e5   :  { %v9761_v61 = vpop.f32.mrf.mxu2  ;;  %4178 = vmatpush.bf16.msra.mxu2 %v7517_v45 }
 0x1e6   :  { %v2625_v5 = vpack.c.bf16 %v2621_v63, %v2621_v63  ;;  %v9180_v63 = vld [vmem:[#allocation2 + $0x44c] sm:$0xf0]  ;;  %v2553_v26 = vadd.f32 %v9761_v61, %v9678_v23  ;;  %v7645_v23 = vor.u32 %v9140_v32, %v7644_v29  ;;  %v9130_v61 = vld [vmem:[#allocation2 + $0x2c4] sm:$0xf]  ;;  %v7470_v32 = vld [vmem:[#allocation2 + $0x1b0] sm:$0xf0] }
 0x1e7   :  { %4186 = vmatpush.bf16.msra.mxu0 %v7725_v36  ;;  %v7805_v57 = vor.u32 %v9180_v63, %v7804_v35  ;;  %v9208_v35 = vld [vmem:[#allocation2 + $0x52c] sm:$0xf0]  ;;  %v9094_v29 = vld [vmem:[#allocation2 + $0x1a4] sm:$0xf] }
 0x1e8   :  { %2897 = vmatmul.bf16.vlgmr.msrb.gmra.mxu3 %v2625_v5  ;;  %v7997_v5 = vor.u32 %v9228_v60, %v7996_v0  ;;  %v9118_v60 = vld [vmem:[#allocation2 + $0x264] sm:$0xf] }
 0x1e9   :  { %v2463_v17 = vpop.f32.mrf.mxu0  ;;  %4197 = vmatpush.bf16.msrb.mxu3 %v7885_v1  ;;  %v7693_v1 = vor.u32 %v9152_v25, %v7692_v22 }
 0x1ea   :  { %v7660_v17 = vld [vmem:[#allocation2 + $0x320] sm:$0xf] }
 0x1eb   :  { %4187 = vmatpush.bf16.msra.mxu0 %v7709_v47  ;;  %v7617_v47 = vor.u32 %v9130_v61, %v7614_v43  ;;  %v9234_v61 = vld [vmem:[#allocation2 + $0x604] sm:$0xf]  ;;  %v8030_v43 = vld [vmem:[#allocation2 + $0x610] sm:$0xf0] }
 0x1ed   :  { %v2554_v38 = vpop.f32.mrf.mxu2  ;;  %4198 = vmatpush.bf16.msrb.mxu3 %v7869_v62  ;;  %v9144_v62 = vld [vmem:[#allocation2 + $0x32c] sm:$0xf0] }
 0x1ee   :  { %v7661_v21 = vor.u32 %v9144_v62, %v7660_v17  ;;  %v7773_v38 = vor.u32 %v9172_v18, %v7772_v15  ;;  %v7550_v15 = vld [vmem:[#allocation2 + $0x250] sm:$0xf0]  ;;  %v9793_v62 = vpack.c.bf16 %v2944_v46, %v2944_v46  ;;  %v7505_v18 = vor.u32 %v9102_v8, %v7502_v11 }
 0x1ef   :  { %4188 = vmatpush.bf16.msra.mxu0 %v7693_v1  ;;  %v7900_v1 = vld [vmem:[#allocation2 + $0x500] sm:$0xf]  ;;  %v7742_v17 = vld [vmem:[#allocation2 + $0x3d0] sm:$0xf0] }
 0x1f0   :  { %v7678_v8 = vld [vmem:[#allocation2 + $0x350] sm:$0xf0] }
 0x1f1   :  { %v2513_v10 = vpop.f32.mrf.mxu0  ;;  %4199 = vmatpush.bf16.msrb.mxu3 %v7853_v2  ;;  %v7965_v2 = vor.u32 %v9220_v20, %v7964_v19  ;;  %v9098_v19 = vld [vmem:[#allocation2 + $0x1c4] sm:$0xf]  ;;  %v7486_v20 = vld [vmem:[#allocation2 + $0x1d0] sm:$0xf0] }
 0x1f2   :  { %v2514_v49 = vadd.f32 %v2513_v10, %v2501_v42  ;;  %v9216_v42 = vld [vmem:[#allocation2 + $0x56c] sm:$0xf0]  ;;  %v9784_v10 = vpack.c.bf16 %v2946_v31, %v2946_v31  ;;  %v7489_v31 = vor.u32 %v9098_v19, %v7486_v20  ;;  %v7476_v19 = vld [vmem:[#allocation2 + $0x1a8] sm:$0xf] }
 0x1f3   :  { %4189 = vmatpush.bf16.msra.mxu0 %v7677_v13  ;;  %v7949_v28 = vor.u32 %v9216_v42, %v7948_v41  ;;  %v9114_v13 = vld [vmem:[#allocation2 + $0x244] sm:$0xf]  ;;  %v7518_v41 = vld [vmem:[#allocation2 + $0x210] sm:$0xf0] }
 0x1f4   :  { %v2622_v54 = vmax.f32 %v2514_v49, 0.0  ;;  %v9212_v49 = vld [vmem:[#allocation2 + $0x54c] sm:$0xf0]  ;;  %v9154_v42 = vld [vmem:[#allocation2 + $0x384] sm:$0xf] }
 0x1f5   :  { %4200 = vmatpush.bf16.msrb.mxu3 %v7837_v6  ;;  %v8029_v6 = vor.u32 %v9236_v40, %v8028_v27  ;;  %v7933_v22 = vor.u32 %v9212_v49, %v7932_v48  ;;  %v7534_v27 = vld [vmem:[#allocation2 + $0x230] sm:$0xf0] }
 0x1f6   :  { %v2626_v59 = vpack.c.bf16 %v2622_v54, %v2622_v54  ;;  %v7601_v54 = vor.u32 %v9126_v52, %v7598_v53  ;;  %v9070_v52 = vld [vmem:[#allocation2 + $0xe4] sm:$0xf]  ;;  %v7374_v53 = vld [vmem:[#allocation2 + $0xf0] sm:$0xf0] }
 0x1f7   :  { %4190 = vmatpush.bf16.msra.mxu0 %v7661_v21  ;;  %v7553_v21 = vor.u32 %v9114_v13, %v7550_v15  ;;  %v7422_v15 = vld [vmem:[#allocation2 + $0x150] sm:$0xf0] }
 0x1f8   :  { %2910 = vmatmul.bf16.vlgmr.msrb.gmra.mxu1 %v2626_v59  ;;  %4153 = vmatmul.bf16.vlgmr.msra.gmra.mxu3 %v9771_v30  ;;  %v7582_v59 = vld [vmem:[#allocation2 + $0x290] sm:$0xf0] }
 0x1f9   :  { %v2515_v3 = vpop.f32.mrf.mxu0  ;;  %4201 = vmatpush.bf16.msrb.mxu3 %v7821_v56  ;;  %4210 = vmatpush.bf16.msrb.mxu1 %v8013_v58  ;;  %v7916_v56 = vld [vmem:[#allocation2 + $0x520] sm:$0xf]  ;;  %v9122_v58 = vld [vmem:[#allocation2 + $0x284] sm:$0xf] }
 0x1fa   :  { %v7917_v63 = vor.u32 %v9208_v35, %v7916_v56  ;;  %v7585_v0 = vor.u32 %v9122_v58, %v7582_v59  ;;  %v9204_v3 = vld [vmem:[#allocation2 + $0x50c] sm:$0xf0]  ;;  %v7694_v56 = vld [vmem:[#allocation2 + $0x370] sm:$0xf0]  ;;  %v7377_v58 = vor.u32 %v9070_v52, %v7374_v53  ;;  %v9086_v59 = vld [vmem:[#allocation2 + $0x164] sm:$0xf] }
 0x1fb   :  { %4191 = vmatpush.bf16.msra.mxu0 %v7645_v23  ;;  %v7901_v37 = vor.u32 %v9204_v3, %v7900_v1  ;;  %v7710_v23 = vld [vmem:[#allocation2 + $0x390] sm:$0xf0] }
 0x1fc   :  { %v7713_v48 = vor.u32 %v9154_v42, %v7710_v23  ;;  %v7358_v1 = vld [vmem:[#allocation2 + $0xd0] sm:$0xf0] }
 0x1fd   :  { %4202 = vmatpush.bf16.msrb.mxu3 %v7805_v57  ;;  %4211 = vmatpush.bf16.msrb.mxu1 %v7997_v5  ;;  %v7566_v57 = vld [vmem:[#allocation2 + $0x270] sm:$0xf0] }
 0x1fe   :  { %v7758_v5 = vld [vmem:[#allocation2 + $0x3f0] sm:$0xf0]  ;;  %v7569_v12 = vor.u32 %v9118_v60, %v7566_v57  ;;  %v9066_v60 = vld [vmem:[#allocation2 + $0xc4] sm:$0xf]  ;;  %v7492_v57 = vld [vmem:[#allocation2 + $0x1c8] sm:$0xf] }
 0x1ff   :  { %v7361_v13 = vor.u32 %v9066_v60, %v7358_v1  ;;  %v7646_v42 = vld [vmem:[#allocation2 + $0x310] sm:$0xf0] }
 0x200   :  { %v7998_v60 = vld [vmem:[#allocation2 + $0x5d0] sm:$0xf0] }
 0x201   :  { %v2565_v51 = vpop.f32.mrf.mxu0  ;;  %4203 = vmatpush.bf16.msrb.mxu3 %v7789_v14  ;;  %4212 = vmatpush.bf16.msrb.mxu1 %v7981_v55  ;;  %v7761_v14 = vor.u32 %v9166_v4, %v7758_v5  ;;  %v9162_v55 = vld [vmem:[#allocation2 + $0x3c4] sm:$0xf]  ;;  %v9101_v5 = vld [vmem:[#allocation2 + $0x1d4] sm:$0xf0] }
 0x202   :  { %v2566_v33 = vadd.f32 %v2565_v51, %v2553_v26  ;;  %v7745_v24 = vor.u32 %v9162_v55, %v7742_v17  ;;  %v2947_v26 = vld [vmem:[%s10063_s0 + $0x60] sm:$0xff]  ;;  %v7342_v17 = vld [vmem:[#allocation2 + $0xb0] sm:$0xf0] }
 0x203   :  { %v9158_v51 = vld [vmem:[#allocation2 + $0x3a4] sm:$0xf] }
 0x204   :  { %v2623_v16 = vmax.f32 %v2566_v33, 0.0  ;;  %v7537_v33 = vor.u32 %v9110_v34, %v7534_v27  ;;  %v9062_v55 = vld [vmem:[#allocation2 + $0xa4] sm:$0xf] }
 0x205   :  { %v9779_v36 = vpop.f32.mrf.mxu2  ;;  %4204 = vmatpush.bf16.msrb.mxu3 %v7773_v38  ;;  %4213 = vmatpush.bf16.msrb.mxu1 %v7965_v2  ;;  %v7726_v38 = vld [vmem:[#allocation2 + $0x3b0] sm:$0xf0]  ;;  %v9798_v2 = vpack.c.bf16 %v2947_v26, %v2947_v26  ;;  %v9142_v34 = vld [vmem:[#allocation2 + $0x324] sm:$0xf]  ;;  %v7345_v27 = vor.u32 %v9062_v55, %v7342_v17  ;;  %v7412_v17 = vld [vmem:[#allocation2 + $0x128] sm:$0xf] }
 0x206   :  { %v2627_v44 = vpack.c.bf16 %v2623_v16, %v2623_v16  ;;  %v7729_v40 = vor.u32 %v9158_v51, %v7726_v38  ;;  %v2605_v7 = vadd.f32 %v9779_v36, %v9734_v9  ;;  %v7473_v16 = vor.u32 %v9094_v29, %v7470_v32  ;;  %v2948_v36 = vld [vmem:[%s10063_s0 + $0x68] sm:$0xff]  ;;  %v9078_v51 = vld [vmem:[#allocation2 + $0x124] sm:$0xf]  ;;  %v7406_v38 = vld [vmem:[#allocation2 + $0x130] sm:$0xf0] }
 0x207   :  { %v9807_v46 = vpack.c.bf16 %v2948_v36, %v2948_v36  ;;  %v7326_v29 = vld [vmem:[#allocation2 + $0x90] sm:$0xf0]  ;;  %v7409_v23 = vor.u32 %v9078_v51, %v7406_v38  ;;  %v9198_v51 = vld [vmem:[#allocation2 + $0x4e4] sm:$0xf] }
 0x208   :  { %2923 = vmatmul.bf16.vlgmr.msrb.gmra.mxu2 %v2627_v44  ;;  %4205 = vmatmul.bf16.vlgmr.msrb.gmra.mxu3 %v9784_v10  ;;  %v7454_v44 = vld [vmem:[#allocation2 + $0x190] sm:$0xf0] }
 0x209   :  { %4262 = vmatpush.bf16.msra.mxu3 %v7633_v39  ;;  %v2567_v45 = vpop.f32.mrf.mxu0  ;;  %4230 = vmatpush.bf16.msrb.mxu2 %v8029_v6  ;;  %v9106_v39 = vld [vmem:[#allocation2 + $0x204] sm:$0xf]  ;;  %v7886_v38 = vld [vmem:[#allocation2 + $0x4f0] sm:$0xf0] }
 0x20a   :  { %4214 = vmatpush.bf16.msrb.mxu1 %v7949_v28  ;;  %v9090_v28 = vld [vmem:[#allocation2 + $0x184] sm:$0xf]  ;;  %v8033_v45 = vor.u32 %v9234_v61, %v8030_v43  ;;  %v2945_v61 = vld [vmem:[%s10063_s0 + $0x50] sm:$0xff]  ;;  %v7380_v43 = vld [vmem:[#allocation2 + $0xe8] sm:$0xf] }
 0x20b   :  { %4166 = vmatmul.bf16.vlgmr.msra.gmra.mxu1 %v9786_v50  ;;  %v7457_v9 = vor.u32 %v9090_v28, %v7454_v44  ;;  %v9074_v28 = vld [vmem:[#allocation2 + $0x104] sm:$0xf]  ;;  %v7390_v44 = vld [vmem:[#allocation2 + $0x110] sm:$0xf0] }
 0x20d   :  { %v2606_v25 = vpop.f32.mrf.mxu2  ;;  %4263 = vmatpush.bf16.msra.mxu3 %v7617_v47  ;;  %v7521_v47 = vor.u32 %v9106_v39, %v7518_v41  ;;  %v9138_v41 = vld [vmem:[#allocation2 + $0x304] sm:$0xf] }
 0x20e   :  { %4215 = vmatpush.bf16.msrb.mxu1 %v7933_v22  ;;  %v7508_v22 = vld [vmem:[#allocation2 + $0x1e8] sm:$0xf]  ;;  %v9105_v25 = vld [vmem:[#allocation2 + $0x1f4] sm:$0xf0]  ;;  %v7649_v53 = vor.u32 %v9138_v41, %v7646_v42 }
 0x20f   :  { %v7509_v3 = vor.u32 %v9105_v25, %v7508_v22  ;;  %v9089_v22 = vld [vmem:[#allocation2 + $0x174] sm:$0xf0] }
 0x210   :  { %v9233_v42 = vld [vmem:[#allocation2 + $0x5f4] sm:$0xf0] }
 0x211   :  { %4264 = vmatpush.bf16.msra.mxu3 %v7601_v54  ;;  %v9150_v54 = vld [vmem:[#allocation2 + $0x364] sm:$0xf] }
 0x212   :  { %4216 = vmatpush.bf16.msrb.mxu1 %v7917_v63  ;;  %v7438_v63 = vld [vmem:[#allocation2 + $0x170] sm:$0xf0]  ;;  %v7697_v4 = vor.u32 %v9150_v54, %v7694_v56  ;;  %v9815_v54 = vpack.c.bf16 %v2945_v61, %v2945_v61  ;;  %v7393_v56 = vor.u32 %v9074_v28, %v7390_v44  ;;  %v9057_v61 = vld [vmem:[#allocation2 + $0x74] sm:$0xf0] }
 0x213   :  { %v7441_v11 = vor.u32 %v9086_v59, %v7438_v63  ;;  %v9050_v59 = vld [vmem:[#allocation2 + $0x44] sm:$0xf]  ;;  %v7294_v63 = vld [vmem:[#allocation2 + $0x50] sm:$0xf0] }
 0x214   :  { %v7950_v28 = vld [vmem:[#allocation2 + $0x570] sm:$0xf0] }
 0x215   :  { %4265 = vmatpush.bf16.msra.mxu3 %v7585_v0 }
 0x216   :  { %4217 = vmatpush.bf16.msrb.mxu1 %v7901_v37  ;;  %v9146_v37 = vld [vmem:[#allocation2 + $0x344] sm:$0xf] }
 0x217   :  { %v7681_v20 = vor.u32 %v9146_v37, %v7678_v8  ;;  %v9065_v37 = vld [vmem:[#allocation2 + $0xb4] sm:$0xf0]  ;;  %v7297_v8 = vor.u32 %v9050_v59, %v7294_v63  ;;  %v7854_v59 = vld [vmem:[#allocation2 + $0x4b0] sm:$0xf0] }
 0x218   :  { %4179 = vmatmul.bf16.vlgmr.msra.gmra.mxu2 %v9793_v62 }
 0x219   :  { %4266 = vmatpush.bf16.msra.mxu3 %v7569_v12  ;;  %4249 = vmatpush.bf16.msra.mxu2 %v7505_v18  ;;  %v7493_v18 = vor.u32 %v9101_v5, %v7492_v57  ;;  %v9085_v57 = vld [vmem:[#allocation2 + $0x154] sm:$0xf0]  ;;  %v7348_v5 = vld [vmem:[#allocation2 + $0xa8] sm:$0xf] }
 0x21a   :  { %4275 = vmatpush.bf16.msra.mxu1 %v7761_v14  ;;  %v9082_v14 = vld [vmem:[#allocation2 + $0x144] sm:$0xf] }
 0x21b   :  { %4218 = vmatmul.bf16.vlgmr.msrb.gmra.mxu1 %v9798_v2  ;;  %v7425_v26 = vor.u32 %v9082_v14, %v7422_v15  ;;  %v9222_v14 = vld [vmem:[#allocation2 + $0x5a4] sm:$0xf]  ;;  %v7982_v15 = vld [vmem:[#allocation2 + $0x5b0] sm:$0xf0] }
 0x21d   :  { %4267 = vmatpush.bf16.msra.mxu3 %v7553_v21  ;;  %4250 = vmatpush.bf16.msra.mxu2 %v7489_v31  ;;  %v9097_v21 = vld [vmem:[#allocation2 + $0x1b4] sm:$0xf0]  ;;  %v9058_v31 = vld [vmem:[#allocation2 + $0x84] sm:$0xf] }
 0x21e   :  { %4276 = vmatpush.bf16.msra.mxu1 %v7745_v24  ;;  %v7662_v24 = vld [vmem:[#allocation2 + $0x330] sm:$0xf0]  ;;  %v7477_v32 = vor.u32 %v9097_v21, %v7476_v19  ;;  %v7349_v19 = vor.u32 %v9065_v37, %v7348_v5  ;;  %v9061_v21 = vld [vmem:[#allocation2 + $0x94] sm:$0xf0]  ;;  %v9206_v37 = vld [vmem:[#allocation2 + $0x524] sm:$0xf] }
 0x21f   :  { %v7665_v39 = vor.u32 %v9142_v34, %v7662_v24  ;;  %v7985_v24 = vor.u32 %v9222_v14, %v7982_v15  ;;  %v7972_v14 = vld [vmem:[#allocation2 + $0x588] sm:$0xf] }
 0x221   :  { %v2617_v6 = vpop.f32.mrf.mxu0  ;;  %4268 = vmatpush.bf16.msra.mxu3 %v7537_v33  ;;  %4251 = vmatpush.bf16.msra.mxu2 %v7473_v16  ;;  %v7460_v33 = vld [vmem:[#allocation2 + $0x188] sm:$0xf]  ;;  %v7329_v16 = vor.u32 %v9058_v31, %v7326_v29  ;;  %v9218_v31 = vld [vmem:[#allocation2 + $0x584] sm:$0xf]  ;;  %v7966_v29 = vld [vmem:[#allocation2 + $0x590] sm:$0xf0] }
 0x222   :  { %4277 = vmatpush.bf16.msra.mxu1 %v7729_v40  ;;  %v2618_v49 = vadd.f32 %v2617_v6, %v2605_v7  ;;  %v9093_v40 = vld [vmem:[#allocation2 + $0x194] sm:$0xf0]  ;;  %v9054_v6 = vld [vmem:[#allocation2 + $0x64] sm:$0xf] }
 0x223   :  { %v9073_v7 = vld [vmem:[#allocation2 + $0xf4] sm:$0xf0]  ;;  %v7461_v52 = vor.u32 %v9093_v40, %v7460_v33  ;;  %v7396_v33 = vld [vmem:[#allocation2 + $0x108] sm:$0xf] }
 0x224   :  { %v2624_v35 = vmax.f32 %v2618_v49, 0.0  ;;  %v8014_v49 = vld [vmem:[#allocation2 + $0x5f0] sm:$0xf0]  ;;  %v7381_v25 = vor.u32 %v9073_v7, %v7380_v43  ;;  %v8020_v40 = vld [vmem:[#allocation2 + $0x5e8] sm:$0xf]  ;;  %v7969_v7 = vor.u32 %v9218_v31, %v7966_v29 }
 0x225   :  { %4269 = vmatpush.bf16.msra.mxu3 %v7521_v47  ;;  %4252 = vmatpush.bf16.msra.mxu2 %v7457_v9  ;;  %v7310_v47 = vld [vmem:[#allocation2 + $0x70] sm:$0xf0]  ;;  %v9069_v9 = vld [vmem:[#allocation2 + $0xd4] sm:$0xf0] }
 0x226   :  { %4278 = vmatpush.bf16.msra.mxu1 %v7713_v48  ;;  %v2628_v0 = vpack.c.bf16 %v2624_v35, %v2624_v35  ;;  %v9230_v48 = vld [vmem:[#allocation2 + $0x5e4] sm:$0xf]  ;;  %v7364_v35 = vld [vmem:[#allocation2 + $0xc8] sm:$0xf]  ;;  %v7313_v36 = vor.u32 %v9054_v6, %v7310_v47  ;;  %v9169_v31 = vld [vmem:[#allocation2 + $0x3f4] sm:$0xf0] }
 0x227   :  { %v9214_v6 = vld [vmem:[#allocation2 + $0x564] sm:$0xf] }
 0x228   :  { %2936 = vmatmul.bf16.vlgmr.msrb.gmra.mxu0 %v2628_v0  ;;  %4270 = vmatmul.bf16.vlgmr.msra.gmra.mxu3 %v9793_v62  ;;  %v9226_v0 = vld [vmem:[#allocation2 + $0x5c4] sm:$0xf] }
 0x229   :  { %4321 = vmatpush.bf16.msrb.mxu3 %v8033_v45  ;;  %4236 = vmatpush.bf16.msrb.mxu0 %v7377_v58  ;;  %v2619_v12 = vpop.f32.mrf.mxu0  ;;  %v7444_v45 = vld [vmem:[#allocation2 + $0x168] sm:$0xf]  ;;  %v8017_v58 = vor.u32 %v9230_v48, %v8014_v49  ;;  %v9194_v47 = vld [vmem:[#allocation2 + $0x4c4] sm:$0xf]  ;;  %v7870_v48 = vld [vmem:[#allocation2 + $0x4d0] sm:$0xf0]  ;;  %v8021_v49 = vor.u32 %v9233_v42, %v8020_v40 }
 0x22a   :  { %4279 = vmatpush.bf16.msra.mxu1 %v7697_v4  ;;  %8042 = vmatmul.msk.bf16.vlgmr.msrb.gmra.mxu2 %vm1259_vm0, %v9807_v46  ;;  %v7445_v1 = vor.u32 %v9089_v22, %v7444_v45  ;;  %v7365_v4 = vor.u32 %v9069_v9, %v7364_v35  ;;  %v9046_v12 = vld [vmem:[#allocation2 + $0x24] sm:$0xf]  ;;  %v9229_v45 = vld [vmem:[#allocation2 + $0x5d4] sm:$0xf0]  ;;  %v7300_v22 = vld [vmem:[#allocation2 + $0x48] sm:$0xf]  ;;  %v7873_v35 = vor.u32 %v9194_v47, %v7870_v48 }
 0x22b   :  { %4253 = vmatpush.bf16.msra.mxu2 %v7441_v11  ;;  %v8001_v11 = vor.u32 %v9226_v0, %v7998_v60  ;;  %v9210_v9 = vld [vmem:[#allocation2 + $0x544] sm:$0xf]  ;;  %v7988_v0 = vld [vmem:[#allocation2 + $0x5a8] sm:$0xf]  ;;  %v9213_v48 = vld [vmem:[#allocation2 + $0x554] sm:$0xf0] }
 0x22c   :  { %v7876_v42 = vld [vmem:[#allocation2 + $0x4c8] sm:$0xf] }
 0x22d   :  { %4340 = vmatpush.bf16.msra.mxu3 %v7509_v3  ;;  %4237 = vmatpush.bf16.msrb.mxu0 %v7361_v13  ;;  %v7428_v3 = vld [vmem:[#allocation2 + $0x148] sm:$0xf]  ;;  %v7278_v13 = vld [vmem:[#allocation2 + $0x30] sm:$0xf0] }
 0x22e   :  { %4280 = vmatpush.bf16.msra.mxu1 %v7681_v20  ;;  %v7429_v55 = vor.u32 %v9085_v57, %v7428_v3  ;;  %v7332_v20 = vld [vmem:[#allocation2 + $0x88] sm:$0xf]  ;;  %v7281_v34 = vor.u32 %v9046_v12, %v7278_v13  ;;  %v9049_v57 = vld [vmem:[#allocation2 + $0x34] sm:$0xf0]  ;;  %v7838_v12 = vld [vmem:[#allocation2 + $0x490] sm:$0xf0] }
 0x22f   :  { %4254 = vmatpush.bf16.msra.mxu2 %v7425_v26  ;;  %v9042_v26 = vld [vmem:[#allocation2 + $0x4] sm:$0xf]  ;;  %v7333_v41 = vor.u32 %v9061_v21, %v7332_v20  ;;  %v7284_v3 = vld [vmem:[#allocation2 + $0x28] sm:$0xf]  ;;  %v9201_v21 = vld [vmem:[#allocation2 + $0x4f4] sm:$0xf0] }
 0x230   :  { %v7285_v15 = vor.u32 %v9049_v57, %v7284_v3  ;;  %v7892_v20 = vld [vmem:[#allocation2 + $0x4e8] sm:$0xf]  ;;  %v9170_v57 = vld [vmem:[#allocation2 + $0x404] sm:$0xf] }
 0x231   :  { %4341 = vmatpush.bf16.msra.mxu3 %v7493_v18  ;;  %4238 = vmatpush.bf16.msrb.mxu0 %v7345_v27  ;;  %v9081_v18 = vld [vmem:[#allocation2 + $0x134] sm:$0xf0]  ;;  %v7262_v27 = vld [vmem:[#allocation2 + $0x10] sm:$0xf0]  ;;  %v7893_v40 = vor.u32 %v9201_v21, %v7892_v20  ;;  %v7940_v47 = vld [vmem:[#allocation2 + $0x548] sm:$0xf] }
 0x232   :  { %4281 = vmatpush.bf16.msra.mxu1 %v7665_v39  ;;  %v9077_v39 = vld [vmem:[#allocation2 + $0x114] sm:$0xf0]  ;;  %v7265_v43 = vor.u32 %v9042_v26, %v7262_v27  ;;  %v9202_v26 = vld [vmem:[#allocation2 + $0x504] sm:$0xf]  ;;  %v7902_v27 = vld [vmem:[#allocation2 + $0x510] sm:$0xf0] }
 0x233   :  { %4255 = vmatpush.bf16.msra.mxu2 %v7409_v23  ;;  %v7316_v23 = vld [vmem:[#allocation2 + $0x68] sm:$0xf]  ;;  %v7397_v44 = vor.u32 %v9077_v39, %v7396_v33  ;;  %v9217_v39 = vld [vmem:[#allocation2 + $0x574] sm:$0xf0] }
 0x234   :  { %v7956_v33 = vld [vmem:[#allocation2 + $0x568] sm:$0xf] }
 0x235   :  { %4342 = vmatpush.bf16.msra.mxu3 %v7477_v32  ;;  %4239 = vmatpush.bf16.msrb.mxu0 %v7329_v16  ;;  %v7413_v32 = vor.u32 %v9081_v18, %v7412_v17  ;;  %v7889_v16 = vor.u32 %v9198_v51, %v7886_v38  ;;  %v7268_v17 = vld [vmem:[#allocation2 + $0x8] sm:$0xf]  ;;  %v9045_v18 = vld [vmem:[#allocation2 + $0x14] sm:$0xf0]  ;;  %v7822_v51 = vld [vmem:[#allocation2 + $0x470] sm:$0xf0] }
 0x236   :  { %4282 = vmatpush.bf16.msra.mxu1 %v7649_v53  ;;  %v7317_v53 = vor.u32 %v9057_v61, %v7316_v23  ;;  %v7764_v38 = vld [vmem:[#allocation2 + $0x3e8] sm:$0xf]  ;;  %v9197_v23 = vld [vmem:[#allocation2 + $0x4d4] sm:$0xf0] }
 0x237   :  { %4256 = vmatpush.bf16.msra.mxu2 %v7393_v56  ;;  %v7953_v56 = vor.u32 %v9214_v6, %v7950_v28  ;;  %v7748_v6 = vld [vmem:[#allocation2 + $0x3c8] sm:$0xf]  ;;  %v9165_v28 = vld [vmem:[#allocation2 + $0x3d4] sm:$0xf0] }
 0x238   :  { %4192 = vmatmul.bf16.vlgmr.msra.gmra.mxu0 %v9815_v54  ;;  %8043 = vmatmul.msk.bf16.vlgmr.msrb.gmra.mxu3 %vm1259_vm0, %v9807_v46 }
 0x239   :  { %4343 = vmatpush.bf16.msra.mxu3 %v7461_v52  ;;  %4240 = vmatpush.bf16.msrb.mxu0 %v7313_v36  ;;  %v8004_v52 = vld [vmem:[#allocation2 + $0x5c8] sm:$0xf]  ;;  %v7934_v36 = vld [vmem:[#allocation2 + $0x550] sm:$0xf0] }
 0x23a   :  { %4327 = vmatpush.bf16.msrb.mxu1 %v7381_v25  ;;  %4257 = vmatmul.bf16.vlgmr.msra.gmra.mxu2 %v9786_v50  ;;  %v9053_v25 = vld [vmem:[#allocation2 + $0x54] sm:$0xf0]  ;;  %v8005_v63 = vor.u32 %v9229_v45, %v8004_v52  ;;  %v7860_v52 = vld [vmem:[#allocation2 + $0x4a8] sm:$0xf] }
 0x23b   :  { %4301 = vmatpush.bf16.msrb.mxu2 %v8017_v58  ;;  %4283 = vmatmul.bf16.vlgmr.msra.gmra.mxu1 %v9815_v54  ;;  %v9190_v58 = vld [vmem:[#allocation2 + $0x4a4] sm:$0xf]  ;;  %v7301_v60 = vor.u32 %v9053_v25, %v7300_v22  ;;  %v7749_v22 = vor.u32 %v9165_v28, %v7748_v6  ;;  %v9159_v6 = vld [vmem:[#allocation2 + $0x3ac] sm:$0xf] }
 0x23c   :  { %v7857_v5 = vor.u32 %v9190_v58, %v7854_v59  ;;  %v9174_v25 = vld [vmem:[#allocation2 + $0x424] sm:$0xf]  ;;  %v7924_v58 = vld [vmem:[#allocation2 + $0x528] sm:$0xf]  ;;  %v9209_v59 = vld [vmem:[#allocation2 + $0x534] sm:$0xf0] }
 0x23d   :  { %4344 = vmatpush.bf16.msra.mxu3 %v7445_v1  ;;  %4241 = vmatpush.bf16.msrb.mxu0 %v7297_v8  ;;  %v9225_v1 = vld [vmem:[#allocation2 + $0x5b4] sm:$0xf0]  ;;  %v7918_v8 = vld [vmem:[#allocation2 + $0x530] sm:$0xf0] }
 0x23e   :  { %4328 = vmatpush.bf16.msrb.mxu1 %v7365_v4  ;;  %v7937_v4 = vor.u32 %v9210_v9, %v7934_v36  ;;  %v7989_v13 = vor.u32 %v9225_v1, %v7988_v0  ;;  %v9161_v9 = vld [vmem:[#allocation2 + $0x3b4] sm:$0xf0]  ;;  %v7941_v36 = vor.u32 %v9213_v48, %v7940_v47  ;;  %v7844_v0 = vld [vmem:[#allocation2 + $0x488] sm:$0xf] }
 0x23f   :  { %4302 = vmatpush.bf16.msrb.mxu2 %v8001_v11  ;;  %v9186_v11 = vld [vmem:[#allocation2 + $0x484] sm:$0xf]  ;;  %v7796_v47 = vld [vmem:[#allocation2 + $0x428] sm:$0xf]  ;;  %v9177_v48 = vld [vmem:[#allocation2 + $0x434] sm:$0xf0] }
 0x241   :  { %4345 = vmatpush.bf16.msra.mxu3 %v7429_v55  ;;  %4242 = vmatpush.bf16.msrb.mxu0 %v7281_v34  ;;  %v9221_v55 = vld [vmem:[#allocation2 + $0x594] sm:$0xf0]  ;;  %v7841_v34 = vor.u32 %v9186_v11, %v7838_v12  ;;  %v7925_v12 = vor.u32 %v9209_v59, %v7924_v58  ;;  %v7780_v58 = vld [vmem:[#allocation2 + $0x408] sm:$0xf] }
 0x242   :  { %4329 = vmatpush.bf16.msrb.mxu1 %v7349_v19  ;;  %v7921_v19 = vor.u32 %v9206_v37, %v7918_v8  ;;  %v7973_v29 = vor.u32 %v9221_v55, %v7972_v14  ;;  %v9137_v37 = vld [vmem:[#allocation2 + $0x2f4] sm:$0xf0]  ;;  %v7716_v8 = vld [vmem:[#allocation2 + $0x388] sm:$0xf] }
 0x243   :  { %4303 = vmatpush.bf16.msrb.mxu2 %v7985_v24  ;;  %v9182_v24 = vld [vmem:[#allocation2 + $0x464] sm:$0xf]  ;;  %v9157_v11 = vld [vmem:[#allocation2 + $0x394] sm:$0xf0] }
 0x244   :  { %v7825_v61 = vor.u32 %v9182_v24, %v7822_v51  ;;  %v9205_v14 = vld [vmem:[#allocation2 + $0x514] sm:$0xf0]  ;;  %v7717_v21 = vor.u32 %v9157_v11, %v7716_v8  ;;  %v7700_v24 = vld [vmem:[#allocation2 + $0x368] sm:$0xf]  ;;  %v7382_v8 = vld [vmem:[#allocation2 + $0xf8] sm:$0xf0] }
 0x245   :  { %4346 = vmatpush.bf16.msra.mxu3 %v7413_v32  ;;  %4243 = vmatpush.bf16.msrb.mxu0 %v7265_v43  ;;  %v7269_v32 = vor.u32 %v9045_v18, %v7268_v17  ;;  %v7765_v43 = vor.u32 %v9169_v31, %v7764_v38  ;;  %v7766_v17 = vld [vmem:[#allocation2 + $0x3f8] sm:$0xf0]  ;;  %v7828_v18 = vld [vmem:[#allocation2 + $0x468] sm:$0xf]  ;;  %v9133_v38 = vld [vmem:[#allocation2 + $0x2d4] sm:$0xf0] }
 0x246   :  { %4330 = vmatpush.bf16.msrb.mxu1 %v7333_v41  ;;  %v7905_v41 = vor.u32 %v9202_v26, %v7902_v27  ;;  %v9153_v26 = vld [vmem:[#allocation2 + $0x374] sm:$0xf0]  ;;  %v7620_v51 = vld [vmem:[#allocation2 + $0x2c8] sm:$0xf] }
 0x247   :  { %4304 = vmatpush.bf16.msrb.mxu2 %v7969_v7  ;;  %v9178_v7 = vld [vmem:[#allocation2 + $0x444] sm:$0xf]  ;;  %v9173_v59 = vld [vmem:[#allocation2 + $0x414] sm:$0xf0] }
 0x248   :  { %4244 = vmatmul.bf16.vlgmr.msrb.gmra.mxu0 %v9771_v30 }
 0x249   :  { %4288 = vmatpush.bf16.msra.mxu0 %v7889_v16  ;;  %4347 = vmatpush.bf16.msra.mxu3 %v7397_v44  ;;  %v7806_v16 = vld [vmem:[#allocation2 + $0x450] sm:$0xf0]  ;;  %v7957_v44 = vor.u32 %v9217_v39, %v7956_v33  ;;  %v7750_v33 = vld [vmem:[#allocation2 + $0x3d8] sm:$0xf0]  ;;  %v7812_v39 = vld [vmem:[#allocation2 + $0x448] sm:$0xf] }
 0x24a   :  { %4331 = vmatpush.bf16.msrb.mxu1 %v7317_v53  ;;  %v9193_v53 = vld [vmem:[#allocation2 + $0x4b4] sm:$0xf0]  ;;  %v7809_v45 = vor.u32 %v9178_v7, %v7806_v16 }
 0x24b   :  { %4305 = vmatpush.bf16.msrb.mxu2 %v7953_v56  ;;  %v7790_v56 = vld [vmem:[#allocation2 + $0x430] sm:$0xf0]  ;;  %v9129_v7 = vld [vmem:[#allocation2 + $0x2b4] sm:$0xf0] }
 0x24c   :  { %4348 = vmatmul.bf16.vlgmr.msra.gmra.mxu3 %v9786_v50  ;;  %v7793_v1 = vor.u32 %v9174_v25, %v7790_v56  ;;  %v9125_v25 = vld [vmem:[#allocation2 + $0x294] sm:$0xf0] }
 0x24d   :  { %4392 = vmatpush.bf16.msrb.mxu3 %v8021_v49  ;;  %4289 = vmatpush.bf16.msra.mxu0 %v7873_v35  ;;  %v7877_v49 = vor.u32 %v9197_v23, %v7876_v42  ;;  %v7732_v35 = vld [vmem:[#allocation2 + $0x3a8] sm:$0xf]  ;;  %v7621_v42 = vor.u32 %v9133_v38, %v7620_v51  ;;  %v9147_v38 = vld [vmem:[#allocation2 + $0x34c] sm:$0xf] }
 0x24e   :  { %4332 = vmatpush.bf16.msrb.mxu1 %v7301_v60  ;;  %v9189_v60 = vld [vmem:[#allocation2 + $0x494] sm:$0xf0]  ;;  %v7733_v3 = vor.u32 %v9161_v9, %v7732_v35  ;;  %v7684_v23 = vld [vmem:[#allocation2 + $0x348] sm:$0xf]  ;;  %v9155_v35 = vld [vmem:[#allocation2 + $0x38c] sm:$0xf]  ;;  %v7797_v9 = vor.u32 %v9177_v48, %v7796_v47 }
 0x24f   :  { %4306 = vmatpush.bf16.msrb.mxu2 %v7937_v4  ;;  %v7774_v4 = vld [vmem:[#allocation2 + $0x410] sm:$0xf0]  ;;  %v7845_v55 = vor.u32 %v9189_v60, %v7844_v0  ;;  %v9135_v0 = vld [vmem:[#allocation2 + $0x2ec] sm:$0xf]  ;;  %v7638_v60 = vld [vmem:[#allocation2 + $0x2f8] sm:$0xf0] }
 0x250   :  { %v7777_v20 = vor.u32 %v9170_v57, %v7774_v4  ;;  %v7652_v57 = vld [vmem:[#allocation2 + $0x308] sm:$0xf]  ;;  %v9141_v4 = vld [vmem:[#allocation2 + $0x314] sm:$0xf0]  ;;  %v7590_v47 = vld [vmem:[#allocation2 + $0x298] sm:$0xf0] }
 0x251   :  { %4393 = vmatpush.bf16.msrb.mxu3 %v8005_v63  ;;  %4290 = vmatpush.bf16.msra.mxu0 %v7857_v5  ;;  %v7861_v63 = vor.u32 %v9193_v53, %v7860_v52  ;;  %v7636_v5 = vld [vmem:[#allocation2 + $0x2e8] sm:$0xf] }
 0x252   :  { %4333 = vmatpush.bf16.msrb.mxu1 %v7285_v15  ;;  %v9167_v15 = vld [vmem:[#allocation2 + $0x3ec] sm:$0xf]  ;;  %v7668_v53 = vld [vmem:[#allocation2 + $0x328] sm:$0xf] }
 0x253   :  { %4307 = vmatpush.bf16.msrb.mxu2 %v7921_v19  ;;  %v9185_v19 = vld [vmem:[#allocation2 + $0x474] sm:$0xf0]  ;;  %v7769_v31 = vor.u32 %v9167_v15, %v7766_v17  ;;  %v7641_v15 = vor.u32 %v9135_v0, %v7638_v60  ;;  %v7653_v17 = vor.u32 %v9141_v4, %v7652_v57  ;;  %v9268_v0 = vld [vmem:[#allocation4 + $0xec] sm:$0xf0]  ;;  %v9119_v60 = vld [vmem:[#allocation2 + $0x26c] sm:$0xf] }
 0x254   :  { %v9103_v4 = vld [vmem:[#allocation2 + $0x1ec] sm:$0xf] }
 0x255   :  { %4394 = vmatpush.bf16.msrb.mxu3 %v7989_v13  ;;  %4291 = vmatpush.bf16.msra.mxu0 %v7841_v34  ;;  %v7908_v13 = vld [vmem:[#allocation2 + $0x508] sm:$0xf]  ;;  %v7637_v34 = vor.u32 %v9137_v37, %v7636_v5  ;;  %v9121_v5 = vld [vmem:[#allocation2 + $0x274] sm:$0xf0]  ;;  %v9071_v37 = vld [vmem:[#allocation2 + $0xec] sm:$0xf] }
 0x256   :  { %4334 = vmatpush.bf16.msrb.mxu1 %v7269_v32  ;;  %v7909_v27 = vor.u32 %v9205_v14, %v7908_v13  ;;  %v7829_v32 = vor.u32 %v9185_v19, %v7828_v18  ;;  %v9151_v13 = vld [vmem:[#allocation2 + $0x36c] sm:$0xf]  ;;  %v7702_v14 = vld [vmem:[#allocation2 + $0x378] sm:$0xf0] }
 0x257   :  { %4308 = vmatpush.bf16.msrb.mxu2 %v7905_v41  ;;  %v7701_v41 = vor.u32 %v9153_v26, %v7700_v24  ;;  %v9131_v18 = vld [vmem:[#allocation2 + $0x2cc] sm:$0xf]  ;;  %v7622_v19 = vld [vmem:[#allocation2 + $0x2d8] sm:$0xf0]  ;;  %v9117_v24 = vld [vmem:[#allocation2 + $0x254] sm:$0xf0]  ;;  %v7705_v51 = vor.u32 %v9151_v13, %v7702_v14 }
 0x258   :  { %v9067_v26 = vld [vmem:[#allocation2 + $0xcc] sm:$0xf]  ;;  %v8144_v14 = vld [vmem:[#allocation4 + $0xc0] sm:$0xf] }
 0x259   :  { %4395 = vmatpush.bf16.msrb.mxu3 %v7973_v29  ;;  %4292 = vmatpush.bf16.msra.mxu0 %v7825_v61  ;;  %v9163_v29 = vld [vmem:[#allocation2 + $0x3cc] sm:$0xf]  ;;  %v9149_v61 = vld [vmem:[#allocation2 + $0x354] sm:$0xf0] }
 0x25a   :  { %4379 = vmatpush.bf16.msra.mxu1 %v7893_v40  ;;  %4309 = vmatmul.bf16.vlgmr.msrb.gmra.mxu2 %v9798_v2  ;;  %v9181_v40 = vld [vmem:[#allocation2 + $0x454] sm:$0xf0]  ;;  %v7753_v16 = vor.u32 %v9163_v29, %v7750_v33  ;;  %v7625_v29 = vor.u32 %v9131_v18, %v7622_v19  ;;  %v7606_v33 = vld [vmem:[#allocation2 + $0x2b8] sm:$0xf0]  ;;  %v9115_v18 = vld [vmem:[#allocation2 + $0x24c] sm:$0xf] }
 0x25b   :  { %4366 = vmatpush.bf16.msra.mxu2 %v7765_v43  ;;  %4335 = vmatmul.bf16.vlgmr.msrb.gmra.mxu1 %v9771_v30  ;;  %v7604_v43 = vld [vmem:[#allocation2 + $0x2a8] sm:$0xf]  ;;  %v7813_v28 = vor.u32 %v9181_v40, %v7812_v39  ;;  %v7558_v19 = vld [vmem:[#allocation2 + $0x258] sm:$0xf0] }
 0x25c   :  { %v7605_v52 = vor.u32 %v9129_v7, %v7604_v43  ;;  %v9143_v7 = vld [vmem:[#allocation2 + $0x32c] sm:$0xf] }
 0x25d   :  { %4396 = vmatpush.bf16.msrb.mxu3 %v7957_v44  ;;  %4293 = vmatpush.bf16.msra.mxu0 %v7809_v45  ;;  %v7734_v44 = vld [vmem:[#allocation2 + $0x3b8] sm:$0xf0]  ;;  %v9145_v45 = vld [vmem:[#allocation2 + $0x334] sm:$0xf0] }
 0x25e   :  { %4380 = vmatpush.bf16.msra.mxu1 %v7877_v49  ;;  %v7685_v49 = vor.u32 %v9149_v61, %v7684_v23  ;;  %v7737_v56 = vor.u32 %v9159_v6, %v7734_v44  ;;  %v9063_v23 = vld [vmem:[#allocation2 + $0xac] sm:$0xf]  ;;  %v7350_v61 = vld [vmem:[#allocation2 + $0xb8] sm:$0xf0] }
 0x25f   :  { %4367 = vmatpush.bf16.msra.mxu2 %v7749_v22  ;;  %v7588_v22 = vld [vmem:[#allocation2 + $0x288] sm:$0xf]  ;;  %v9123_v44 = vld [vmem:[#allocation2 + $0x28c] sm:$0xf] }
 0x261   :  { %4397 = vmatpush.bf16.msrb.mxu3 %v7941_v36  ;;  %4294 = vmatpush.bf16.msra.mxu0 %v7793_v1  ;;  %v7718_v36 = vld [vmem:[#allocation2 + $0x398] sm:$0xf0]  ;;  %v7589_v1 = vor.u32 %v9125_v25, %v7588_v22 }
 0x262   :  { %4381 = vmatpush.bf16.msra.mxu1 %v7861_v63  ;;  %v7669_v63 = vor.u32 %v9145_v45, %v7668_v53  ;;  %v7721_v11 = vor.u32 %v9155_v35, %v7718_v36  ;;  %v9109_v53 = vld [vmem:[#allocation2 + $0x214] sm:$0xf0]  ;;  %v9059_v45 = vld [vmem:[#allocation2 + $0x8c] sm:$0xf]  ;;  %v7334_v25 = vld [vmem:[#allocation2 + $0x98] sm:$0xf0] }
 0x263   :  { %4368 = vmatpush.bf16.msra.mxu2 %v7733_v3  ;;  %v7572_v3 = vld [vmem:[#allocation2 + $0x268] sm:$0xf]  ;;  %v9237_v35 = vld [vmem:[#allocation2 + $0x614] sm:$0xf0]  ;;  %v9139_v36 = vld [vmem:[#allocation2 + $0x30c] sm:$0xf]  ;;  %v7337_v57 = vor.u32 %v9059_v45, %v7334_v25 }
 0x264   :  { %v7462_v45 = vld [vmem:[#allocation2 + $0x198] sm:$0xf0]  ;;  %v9043_v25 = vld [vmem:[#allocation2 + $0xc] sm:$0xf] }
 0x265   :  { %4398 = vmatpush.bf16.msrb.mxu3 %v7925_v12  ;;  %4295 = vmatpush.bf16.msra.mxu0 %v7777_v20  ;;  %v7781_v12 = vor.u32 %v9173_v59, %v7780_v58  ;;  %v7573_v20 = vor.u32 %v9121_v5, %v7572_v3  ;;  %v7654_v58 = vld [vmem:[#allocation2 + $0x318] sm:$0xf0]  ;;  %v8160_v59 = vld [vmem:[#allocation4 + $0xe0] sm:$0xf] }
 0x266   :  { %4382 = vmatpush.bf16.msra.mxu1 %v7845_v55  ;;  %v8161_v13 = vor.u32 %v9268_v0, %v8160_v59  ;;  %v8096_v59 = vld [vmem:[#allocation4 + $0x60] sm:$0xf] }
 0x267   :  { %4369 = vmatpush.bf16.msra.mxu2 %v7717_v21  ;;  %v7385_v21 = vor.u32 %v9071_v37, %v7382_v8  ;;  %v7510_v37 = vld [vmem:[#allocation2 + $0x1f8] sm:$0xf0]  ;;  %v9055_v8 = vld [vmem:[#allocation2 + $0x6c] sm:$0xf] }
 0x268   :  { %4296 = vmatmul.bf16.vlgmr.msra.gmra.mxu0 %v9784_v10 }
 0x269   :  { %4353 = vmatpush.bf16.msrb.mxu0 %v7637_v34  ;;  %4399 = vmatpush.bf16.msrb.mxu3 %v7909_v27  ;;  %v7556_v34 = vld [vmem:[#allocation2 + $0x248] sm:$0xf]  ;;  %v7366_v27 = vld [vmem:[#allocation2 + $0xd8] sm:$0xf0] }
 0x26a   :  { %4383 = vmatpush.bf16.msra.mxu1 %v7829_v32  ;;  %v9127_v32 = vld [vmem:[#allocation2 + $0x2ac] sm:$0xf]  ;;  %v7557_v39 = vor.u32 %v9117_v24, %v7556_v34  ;;  %v7369_v40 = vor.u32 %v9067_v26, %v7366_v27  ;;  %v7494_v26 = vld [vmem:[#allocation2 + $0x1d8] sm:$0xf0] }
 0x26b   :  { %4370 = vmatpush.bf16.msra.mxu2 %v7701_v41  ;;  %v9828_v55 = vpop.f32.mrf.mxu3  ;;  %v7540_v41 = vld [vmem:[#allocation2 + $0x228] sm:$0xf]  ;;  %v7609_v6 = vor.u32 %v9127_v32, %v7606_v33  ;;  %v9099_v34 = vld [vmem:[#allocation2 + $0x1cc] sm:$0xf]  ;;  %v7561_v32 = vor.u32 %v9115_v18, %v7558_v19  ;;  %v9260_v33 = vld [vmem:[#allocation4 + $0xac] sm:$0xf0] }
 0x26c   :  { %4400 = vmatmul.bf16.vlgmr.msrb.gmra.mxu3 %v9798_v2  ;;  %v9051_v27 = vld [vmem:[#allocation2 + $0x4c] sm:$0xf]  ;;  %v8038_v18 = vld [vmem:[#allocation2 + $0x618] sm:$0xf0] }
 0x26d   :  { %4457 = vmatpush.bf16.msra.mxu3 %v7769_v31  ;;  %4354 = vmatpush.bf16.msrb.mxu0 %v7621_v42  ;;  %v7686_v31 = vld [vmem:[#allocation2 + $0x358] sm:$0xf0]  ;;  %v9113_v42 = vld [vmem:[#allocation2 + $0x234] sm:$0xf0] }
 0x26e   :  { %4384 = vmatpush.bf16.msra.mxu1 %v7813_v28  ;;  %v7689_v43 = vor.u32 %v9147_v38, %v7686_v31  ;;  %v7541_v48 = vor.u32 %v9113_v42, %v7540_v41  ;;  %v7497_v41 = vor.u32 %v9099_v34, %v7494_v26  ;;  %v8288_v34 = vld [vmem:[#allocation4 + $0x1e0] sm:$0xf]  ;;  %v9191_v26 = vld [vmem:[#allocation2 + $0x4ac] sm:$0xf] }
 0x26f   :  { %4371 = vmatpush.bf16.msra.mxu2 %v7685_v49  ;;  %v7353_v49 = vor.u32 %v9063_v23, %v7350_v61  ;;  %v9095_v23 = vld [vmem:[#allocation2 + $0x1ac] sm:$0xf]  ;;  %v7478_v61 = vld [vmem:[#allocation2 + $0x1b8] sm:$0xf0] }
 0x271   :  { %4458 = vmatpush.bf16.msra.mxu3 %v7753_v16  ;;  %4355 = vmatpush.bf16.msrb.mxu0 %v7605_v52  ;;  %v7670_v16 = vld [vmem:[#allocation2 + $0x338] sm:$0xf0]  ;;  %v7524_v52 = vld [vmem:[#allocation2 + $0x208] sm:$0xf] }
 0x272   :  { %4385 = vmatpush.bf16.msra.mxu1 %v7797_v9  ;;  %v7673_v9 = vor.u32 %v9143_v7, %v7670_v16  ;;  %v7525_v3 = vor.u32 %v9109_v53, %v7524_v52  ;;  %v7286_v7 = vld [vmem:[#allocation2 + $0x38] sm:$0xf0]  ;;  %v9091_v53 = vld [vmem:[#allocation2 + $0x18c] sm:$0xf] }
 0x273   :  { %4372 = vmatpush.bf16.msra.mxu2 %v7669_v63  ;;  %v2900_v28 = vpop.f32.mrf.mxu3  ;;  %v7593_v63 = vor.u32 %v9123_v44, %v7590_v47  ;;  %v9256_v44 = vld [vmem:[#allocation4 + $0x8c] sm:$0xf0]  ;;  %v9107_v47 = vld [vmem:[#allocation2 + $0x20c] sm:$0xf] }
 0x275   :  { %4459 = vmatpush.bf16.msra.mxu3 %v7737_v56  ;;  %4356 = vmatpush.bf16.msrb.mxu0 %v7589_v1  ;;  %v9832_v22 = vpop.f32.mrf.mxu1  ;;  %v8036_v56 = vld [vmem:[#allocation2 + $0x608] sm:$0xf]  ;;  %v7574_v1 = vld [vmem:[#allocation2 + $0x278] sm:$0xf0] }
 0x276   :  { %4386 = vmatpush.bf16.msra.mxu1 %v7781_v12  ;;  %v8037_v5 = vor.u32 %v9237_v35, %v8036_v56  ;;  %v7657_v12 = vor.u32 %v9139_v36, %v7654_v58  ;;  %v7270_v56 = vld [vmem:[#allocation2 + $0x18] sm:$0xf0] }
 0x277   :  { %4373 = vmatpush.bf16.msra.mxu2 %v7653_v17  ;;  %v9264_v17 = vld [vmem:[#allocation4 + $0xcc] sm:$0xf0]  ;;  %v7894_v36 = vld [vmem:[#allocation2 + $0x4f8] sm:$0xf0] }
 0x278   :  { %v8145_v31 = vor.u32 %v9264_v17, %v8144_v14  ;;  %v9235_v17 = vld [vmem:[#allocation2 + $0x60c] sm:$0xf] }
 0x279   :  { %4460 = vmatpush.bf16.msra.mxu3 %v7721_v11  ;;  %4357 = vmatpush.bf16.msrb.mxu0 %v7573_v20  ;;  %v7318_v11 = vld [vmem:[#allocation2 + $0x78] sm:$0xf0]  ;;  %v7513_v20 = vor.u32 %v9103_v4, %v7510_v37 }
 0x27a   :  { %4444 = vmatpush.bf16.msrb.mxu1 %v7641_v15  ;;  %4374 = vmatmul.bf16.vlgmr.msra.gmra.mxu2 %v9815_v54  ;;  %v7577_v15 = vor.u32 %v9119_v60, %v7574_v1  ;;  %v7465_v60 = vor.u32 %v9091_v53, %v7462_v45  ;;  %v7273_v1 = vor.u32 %v9043_v25, %v7270_v56  ;;  %v7446_v4 = vld [vmem:[#allocation2 + $0x178] sm:$0xf0]  ;;  %v8162_v53 = vld [vmem:[#allocation4 + $0xf0] sm:$0xf0]  ;;  %v9231_v25 = vld [vmem:[#allocation2 + $0x5ec] sm:$0xf] }
 0x27b   :  { %4418 = vmatpush.bf16.msrb.mxu2 %v7385_v21  ;;  %4387 = vmatmul.bf16.vlgmr.msra.gmra.mxu1 %v9784_v10  ;;  %v7321_v21 = vor.u32 %v9055_v8, %v7318_v11  ;;  %v9834_v38 = vpop.f32.mrf.mxu3  ;;  %v7878_v37 = vld [vmem:[#allocation2 + $0x4d8] sm:$0xf0]  ;;  %v8256_v56 = vld [vmem:[#allocation4 + $0x1a0] sm:$0xf] }
 0x27d   :  { %4461 = vmatpush.bf16.msra.mxu3 %v7705_v51  ;;  %4358 = vmatpush.bf16.msrb.mxu0 %v7557_v39  ;;  %v2913_v24 = vpop.f32.mrf.mxu1  ;;  %v7302_v51 = vld [vmem:[#allocation2 + $0x58] sm:$0xf0]  ;;  %v9111_v39 = vld [vmem:[#allocation2 + $0x22c] sm:$0xf] }
 0x27e   :  { %4445 = vmatpush.bf16.msrb.mxu1 %v7625_v29  ;;  %v8128_v29 = vld [vmem:[#allocation4 + $0xa0] sm:$0xf]  ;;  %v7305_v42 = vor.u32 %v9051_v27, %v7302_v51  ;;  %v9300_v24 = vld [vmem:[#allocation4 + $0x1ec] sm:$0xf0]  ;;  %v7862_v27 = vld [vmem:[#allocation2 + $0x4b8] sm:$0xf0] }
 0x27f   :  { %4419 = vmatpush.bf16.msrb.mxu2 %v7369_v40  ;;  %v7542_v40 = vld [vmem:[#allocation2 + $0x238] sm:$0xf0]  ;;  %v8129_v16 = vor.u32 %v9260_v33, %v8128_v29  ;;  %v8064_v29 = vld [vmem:[#allocation4 + $0x20] sm:$0xf] }
 0x280   :  { %v7545_v28 = vor.u32 %v9111_v39, %v7542_v40  ;;  %v9079_v40 = vld [vmem:[#allocation2 + $0x12c] sm:$0xf] }
 0x281   :  { %4462 = vmatpush.bf16.msra.mxu3 %v7689_v43  ;;  %4359 = vmatpush.bf16.msrb.mxu0 %v7541_v48  ;;  %v9047_v43 = vld [vmem:[#allocation2 + $0x2c] sm:$0xf]  ;;  %v7526_v48 = vld [vmem:[#allocation2 + $0x218] sm:$0xf0] }
 0x282   :  { %4446 = vmatpush.bf16.msrb.mxu1 %v7609_v6  ;;  %v8112_v6 = vld [vmem:[#allocation4 + $0x80] sm:$0xf]  ;;  %v7289_v52 = vor.u32 %v9047_v43, %v7286_v7  ;;  %v7529_v58 = vor.u32 %v9107_v47, %v7526_v48  ;;  %v7846_v43 = vld [vmem:[#allocation2 + $0x498] sm:$0xf0] }
 0x283   :  { %4420 = vmatpush.bf16.msrb.mxu2 %v7353_v49  ;;  %v7481_v49 = vor.u32 %v9095_v23, %v7478_v61  ;;  %v4156_v35 = vpop.f32.mrf.mxu3  ;;  %v9296_v23 = vld [vmem:[#allocation4 + $0x1cc] sm:$0xf0]  ;;  %v9187_v61 = vld [vmem:[#allocation2 + $0x48c] sm:$0xf] }
 0x284   :  { %v7849_v45 = vor.u32 %v9187_v61, %v7846_v43  ;;  %v9292_v35 = vld [vmem:[#allocation4 + $0x1ac] sm:$0xf0] }
 0x285   :  { %4463 = vmatpush.bf16.msra.mxu3 %v7673_v9  ;;  %4360 = vmatpush.bf16.msrb.mxu0 %v7525_v3  ;;  %v9199_v9 = vld [vmem:[#allocation2 + $0x4ec] sm:$0xf] }
 0x286   :  { %4447 = vmatpush.bf16.msrb.mxu1 %v7593_v63  ;;  %v9252_v63 = vld [vmem:[#allocation4 + $0x6c] sm:$0xf0]  ;;  %v7897_v3 = vor.u32 %v9199_v9, %v7894_v36  ;;  %v8022_v9 = vld [vmem:[#allocation2 + $0x5f8] sm:$0xf0]  ;;  %v9183_v36 = vld [vmem:[#allocation2 + $0x46c] sm:$0xf] }
 0x287   :  { %4421 = vmatpush.bf16.msrb.mxu2 %v7337_v57  ;;  %v9087_v57 = vld [vmem:[#allocation2 + $0x16c] sm:$0xf]  ;;  %v8097_v8 = vor.u32 %v9252_v63, %v8096_v59  ;;  %v8257_v59 = vor.u32 %v9292_v35, %v8256_v56 }
 0x288   :  { %4361 = vmatmul.bf16.vlgmr.msrb.gmra.mxu0 %v9793_v62  ;;  %v9838_v0 = vpop.f32.mrf.mxu1  ;;  %v7449_v14 = vor.u32 %v9087_v57, %v7446_v4  ;;  %v8146_v57 = vld [vmem:[#allocation4 + $0xd0] sm:$0xf0] }
 0x289   :  { %4412 = vmatpush.bf16.msra.mxu0 %v8037_v5  ;;  %4464 = vmatpush.bf16.msra.mxu3 %v7657_v12  ;;  %v9195_v5 = vld [vmem:[#allocation2 + $0x4cc] sm:$0xf]  ;;  %v8080_v12 = vld [vmem:[#allocation4 + $0x40] sm:$0xf] }
 0x28a   :  { %4448 = vmatpush.bf16.msrb.mxu1 %v7577_v15  ;;  %v9083_v15 = vld [vmem:[#allocation2 + $0x14c] sm:$0xf]  ;;  %v7881_v19 = vor.u32 %v9195_v5, %v7878_v37  ;;  %v8025_v5 = vor.u32 %v9231_v25, %v8022_v9  ;;  %v8098_v25 = vld [vmem:[#allocation4 + $0x70] sm:$0xf0] }
 0x28b   :  { %4422 = vmatpush.bf16.msrb.mxu2 %v7321_v21  ;;  %v9840_v11 = vpop.f32.mrf.mxu2  ;;  %v8041_v21 = vor.u32 %v9235_v17, %v8038_v18  ;;  %v9846_v47 = vpop.f32.mrf.mxu3  ;;  %v7814_v17 = vld [vmem:[#allocation2 + $0x458] sm:$0xf0] }
 0x28c   :  { %4465 = vmatmul.bf16.vlgmr.msra.gmra.mxu3 %v9815_v54  ;;  %v8113_v54 = vor.u32 %v9256_v44, %v8112_v6  ;;  %v9240_v44 = vld [vmem:[#allocation4 + $0xc] sm:$0xf0] }
 0x28d   :  { %5295 = vmatpush.bf16.msrb.mxu3 %v8161_v13  ;;  %4431 = vmatpush.bf16.msrb.mxu0 %v7513_v20  ;;  %v9248_v13 = vld [vmem:[#allocation4 + $0x4c] sm:$0xf0]  ;;  %v7430_v20 = vld [vmem:[#allocation2 + $0x158] sm:$0xf0] }
 0x28e   :  { %4449 = vmatpush.bf16.msrb.mxu1 %v7561_v32  ;;  %v8081_v51 = vor.u32 %v9248_v13, %v8080_v12  ;;  %v9244_v32 = vld [vmem:[#allocation4 + $0x2c] sm:$0xf0]  ;;  %v7433_v39 = vor.u32 %v9083_v15, %v7430_v20  ;;  %v8240_v12 = vld [vmem:[#allocation4 + $0x180] sm:$0xf]  ;;  %v9179_v15 = vld [vmem:[#allocation2 + $0x44c] sm:$0xf] }
 0x28f   :  { %4423 = vmatpush.bf16.msrb.mxu2 %v7305_v42  ;;  %v8272_v42 = vld [vmem:[#allocation4 + $0x1c0] sm:$0xf]  ;;  %v8065_v7 = vor.u32 %v9244_v32, %v8064_v29  ;;  %v9288_v13 = vld [vmem:[#allocation4 + $0x18c] sm:$0xf0] }
 0x290   :  { %v4169_v33 = vpop.f32.mrf.mxu1  ;;  %v8224_v29 = vld [vmem:[#allocation4 + $0x160] sm:$0xf]  ;;  %v9284_v32 = vld [vmem:[#allocation4 + $0x16c] sm:$0xf0] }
 0x291   :  { %5296 = vmatpush.bf16.msrb.mxu3 %v8145_v31  ;;  %4432 = vmatpush.bf16.msrb.mxu0 %v7497_v41  ;;  %v8289_v31 = vor.u32 %v9300_v24, %v8288_v34  ;;  %v7414_v41 = vld [vmem:[#allocation2 + $0x138] sm:$0xf0]  ;;  %v8130_v34 = vld [vmem:[#allocation4 + $0xb0] sm:$0xf0]  ;;  %v8241_v24 = vor.u32 %v9288_v13, %v8240_v12  ;;  %v8225_v61 = vor.u32 %v9284_v32, %v8224_v29  ;;  %v9272_v12 = vld [vmem:[#allocation4 + $0x10c] sm:$0xf0] }
 0x292   :  { %4450 = vmatpush.bf16.msrb.mxu1 %v7545_v28  ;;  %v8048_v28 = vld [vmem:[#allocation4] sm:$0xf]  ;;  %v7417_v48 = vor.u32 %v9079_v40, %v7414_v41  ;;  %v7990_v33 = vld [vmem:[#allocation2 + $0x5b8] sm:$0xf0]  ;;  %v9294_v29 = vld [vmem:[#allocation4 + $0x1c4] sm:$0xf] }
 0x293   :  { %4424 = vmatpush.bf16.msrb.mxu2 %v7289_v52  ;;  %v2926_v6 = vpop.f32.mrf.mxu2  ;;  %v9266_v52 = vld [vmem:[#allocation4 + $0xe4] sm:$0xf]  ;;  %v4208_v20 = vpop.f32.mrf.mxu3  ;;  %v7798_v40 = vld [vmem:[#allocation2 + $0x438] sm:$0xf0]  ;;  %v8274_v32 = vld [vmem:[#allocation4 + $0x1d0] sm:$0xf0] }
 0x294   :  { %v8165_v63 = vor.u32 %v9266_v52, %v8162_v53  ;;  %v9280_v6 = vld [vmem:[#allocation4 + $0x14c] sm:$0xf0] }
 0x295   :  { %5297 = vmatpush.bf16.msrb.mxu3 %v8129_v16  ;;  %4433 = vmatpush.bf16.msrb.mxu0 %v7481_v49  ;;  %v8273_v16 = vor.u32 %v9296_v23, %v8272_v42  ;;  %v7398_v49 = vld [vmem:[#allocation2 + $0x118] sm:$0xf0]  ;;  %v9254_v42 = vld [vmem:[#allocation4 + $0x84] sm:$0xf]  ;;  %v8114_v23 = vld [vmem:[#allocation4 + $0x90] sm:$0xf0] }
 0x296   :  { %4451 = vmatpush.bf16.msrb.mxu1 %v7529_v58  ;;  %v8049_v58 = vor.u32 %v9240_v44, %v8048_v28  ;;  %v7974_v28 = vld [vmem:[#allocation2 + $0x598] sm:$0xf0]  ;;  %v9171_v44 = vld [vmem:[#allocation2 + $0x40c] sm:$0xf]  ;;  %v8117_v53 = vor.u32 %v9254_v42, %v8114_v23 }
 0x297   :  { %4425 = vmatpush.bf16.msrb.mxu2 %v7273_v1  ;;  %v9203_v42 = vld [vmem:[#allocation2 + $0x50c] sm:$0xf] }
 0x298   :  { %8044 = vmatmul.msk.bf16.vlgmr.msra.gmra.mxu0 %vm1259_vm0, %v9807_v46  ;;  %v9851_v4 = vpop.f32.mrf.mxu1 }
 0x299   :  { %5298 = vmatpush.bf16.msrb.mxu3 %v8113_v54  ;;  %4434 = vmatpush.bf16.msrb.mxu0 %v7465_v60  ;;  %v7830_v54 = vld [vmem:[#allocation2 + $0x478] sm:$0xf0]  ;;  %v9402_v60 = vld [vmem:[%s10069_s6] ss:$0 sm:$0xff] }
 0x29a   :  { %4452 = vmatmul.bf16.vlgmr.msrb.gmra.mxu1 %v9793_v62  ;;  %4426 = vmatmul.bf16.vlgmr.msrb.gmra.mxu2 %v9771_v30  ;;  %v7865_v62 = vor.u32 %v9191_v26, %v7862_v27  ;;  %v9075_v30 = vld [vmem:[#allocation2 + $0x10c] sm:$0xf]  ;;  %v7833_v37 = vor.u32 %v9183_v36, %v7830_v54  ;;  %v2899_v26 = vadd.f32 %v9402_v60, %v9828_v55  ;;  %v9863_v55 = vld [vmem:[%s10065_s2] sm:$0xf]  ;;  %v9276_v54 = vld [vmem:[#allocation4 + $0x12c] sm:$0xf0] }
 0x29b   :  { %4470 = vmatpush.bf16.msra.mxu2 %v7897_v3  ;;  %4503 = vmatpush.bf16.msra.mxu1 %v8041_v21  ;;  %v7401_v1 = vor.u32 %v9075_v30, %v7398_v49  ;;  %v9262_v3 = vld [vmem:[#allocation4 + $0xc4] sm:$0xf]  ;;  %v9853_v18 = vpop.f32.mrf.mxu2  ;;  %v8192_v36 = vld [vmem:[#allocation4 + $0x120] sm:$0xf] }
 0x29c   :  { %v9258_v21 = vld [vmem:[#allocation4 + $0xa4] sm:$0xf] }
 0x29d   :  { %5299 = vmatpush.bf16.msrb.mxu3 %v8097_v8  ;;  %4435 = vmatpush.bf16.msrb.mxu0 %v7449_v14  ;;  %v9227_v8 = vld [vmem:[#allocation2 + $0x5cc] sm:$0xf]  ;;  %v8006_v14 = vld [vmem:[#allocation2 + $0x5d8] sm:$0xf0]  ;;  %v8133_v41 = vor.u32 %v9258_v21, %v8130_v34  ;;  %v9246_v60 = vld [vmem:[#allocation4 + $0x44] sm:$0xf] }
 0x29e   :  { %v8009_v27 = vor.u32 %v9227_v8, %v8006_v14  ;;  %v8176_v8 = vld [vmem:[#allocation4 + $0x100] sm:$0xf]  ;;  %v7942_v14 = vld [vmem:[#allocation2 + $0x558] sm:$0xf0]  ;;  %v9242_v21 = vld [vmem:[#allocation4 + $0x24] sm:$0xf] }
 0x29f   :  { %4471 = vmatpush.bf16.msra.mxu2 %v7881_v19  ;;  %5308 = vmatpush.bf16.msrb.mxu1 %v8289_v31  ;;  %v8149_v19 = vor.u32 %v9262_v3, %v8146_v57  ;;  %v9223_v31 = vld [vmem:[#allocation2 + $0x5ac] sm:$0xf]  ;;  %v8193_v3 = vor.u32 %v9276_v54, %v8192_v36  ;;  %v8066_v34 = vld [vmem:[#allocation4 + $0x30] sm:$0xf0]  ;;  %v9282_v36 = vld [vmem:[#allocation4 + $0x164] sm:$0xf] }
 0x2a0   :  { %v4221_v43 = vpop.f32.mrf.mxu1 }
 0x2a1   :  { %5300 = vmatpush.bf16.msrb.mxu3 %v8081_v51  ;;  %4436 = vmatpush.bf16.msrb.mxu0 %v7433_v39  ;;  %v7817_v51 = vor.u32 %v9179_v15, %v7814_v17  ;;  %v9175_v39 = vld [vmem:[#allocation2 + $0x42c] sm:$0xf]  ;;  %v9298_v15 = vld [vmem:[#allocation4 + $0x1e4] sm:$0xf]  ;;  %v8290_v17 = vld [vmem:[#allocation4 + $0x1f0] sm:$0xf0] }
 0x2a2   :  { %v9290_v43 = vld [vmem:[#allocation4 + $0x1a4] sm:$0xf] }
 0x2a3   :  { %4472 = vmatpush.bf16.msra.mxu2 %v7865_v62  ;;  %5309 = vmatpush.bf16.msrb.mxu1 %v8273_v16  ;;  %v2912_v62 = vadd.f32 %v9832_v22, %v2899_v26  ;;  %v7801_v22 = vor.u32 %v9175_v39, %v7798_v40  ;;  %v9219_v16 = vld [vmem:[#allocation2 + $0x58c] sm:$0xf]  ;;  %v4182_v52 = vpop.f32.mrf.mxu2  ;;  %v9238_v39 = vld [vmem:[#allocation4 + $0x4] sm:$0xf]  ;;  %v8050_v40 = vld [vmem:[#allocation4 + $0x10] sm:$0xf0] }
 0x2a4   :  { %v7977_v35 = vor.u32 %v9219_v16, %v7974_v28  ;;  %v8416_v28 = vld [vmem:[#allocation4 + $0x2e0] sm:$0xf]  ;;  %v8242_v52 = vld [vmem:[#allocation4 + $0x190] sm:$0xf0] }
 0x2a5   :  { %5301 = vmatpush.bf16.msrb.mxu3 %v8065_v7  ;;  %4437 = vmatpush.bf16.msrb.mxu0 %v7417_v48  ;;  %v2925_v7 = vadd.f32 %v9840_v11, %v2912_v62  ;;  %v2937_v30 = vpop.f32.mrf.mxu0  ;;  %v7782_v48 = vld [vmem:[#allocation2 + $0x418] sm:$0xf0]  ;;  %v3154_v11 = vperm.slane %v9863_v55, 0 }
 0x2a6   :  { %v7785_v9 = vor.u32 %v9171_v44, %v7782_v48  ;;  %v9286_v44 = vld [vmem:[#allocation4 + $0x184] sm:$0xf] }
 0x2a7   :  { %4473 = vmatpush.bf16.msra.mxu2 %v7849_v45  ;;  %5310 = vmatpush.bf16.msrb.mxu1 %v8257_v59  ;;  %v2938_v49 = vadd.f32 %v2937_v30, %v2925_v7  ;;  %v9250_v45 = vld [vmem:[#allocation4 + $0x64] sm:$0xf]  ;;  %v7958_v59 = vld [vmem:[#allocation2 + $0x578] sm:$0xf0]  ;;  %v4155_v57 = vadd.f32 %v9834_v38, %v3154_v11  ;;  %v8258_v7 = vld [vmem:[#allocation4 + $0x1b0] sm:$0xf0]  ;;  %v8245_v11 = vor.u32 %v9286_v44, %v8242_v52 }
 0x2a8   :  { %v8261_v30 = vor.u32 %v9290_v43, %v8258_v7  ;;  %v9253_v43 = vld [vmem:[#allocation4 + $0x74] sm:$0xf0] }
 0x2a9   :  { %5302 = vmatpush.bf16.msrb.mxu3 %v8049_v58  ;;  %4438 = vmatpush.bf16.msrb.mxu0 %v7401_v1  ;;  %2941 = vst [vmem:[%s10070_s7] sm:$0xff] %v2938_v49  ;;  %v9215_v58 = vld [vmem:[#allocation2 + $0x56c] sm:$0xf]  ;;  %v8082_v1 = vld [vmem:[#allocation4 + $0x50] sm:$0xf0]  ;;  %v4168_v38 = vadd.f32 %v9838_v0, %v4155_v57  ;;  %v8277_v0 = vor.u32 %v9294_v29, %v8274_v32  ;;  %v9265_v57 = vld [vmem:[#allocation4 + $0xd4] sm:$0xf0] }
 0x2aa   :  { %8045 = vmatmul.msk.bf16.vlgmr.msra.gmra.mxu1 %vm1259_vm0, %v9807_v46  ;;  %v7993_v46 = vor.u32 %v9223_v31, %v7990_v33  ;;  %v7926_v31 = vld [vmem:[#allocation2 + $0x538] sm:$0xf0]  ;;  %v8069_v33 = vor.u32 %v9242_v21, %v8066_v34  ;;  %v8368_v34 = vld [vmem:[#allocation4 + $0x280] sm:$0xf]  ;;  %v8120_v32 = vld [vmem:[#allocation4 + $0x88] sm:$0xf] }
 0x2ab   :  { %4474 = vmatpush.bf16.msra.mxu2 %v7833_v37  ;;  %5311 = vmatpush.bf16.msrb.mxu1 %v8241_v24  ;;  %v9211_v37 = vld [vmem:[#allocation2 + $0x54c] sm:$0xf]  ;;  %v8177_v24 = vor.u32 %v9272_v12, %v8176_v8  ;;  %v9873_v62 = vpop.f32.mrf.mxu3  ;;  %v9324_v8 = vld [vmem:[#allocation4 + $0x2ac] sm:$0xf0]  ;;  %v9278_v12 = vld [vmem:[#allocation4 + $0x144] sm:$0xf] }
 0x2ac   :  { %4439 = vmatmul.bf16.vlgmr.msrb.gmra.mxu0 %v9786_v50  ;;  %v8208_v50 = vld [vmem:[#allocation4 + $0x140] sm:$0xf]  ;;  %v7945_v26 = vor.u32 %v9211_v37, %v7942_v14  ;;  %v8210_v14 = vld [vmem:[#allocation4 + $0x150] sm:$0xf0]  ;;  %v9249_v44 = vld [vmem:[#allocation4 + $0x54] sm:$0xf0] }
 0x2ad   :  { %5347 = vmatpush.bf16.msra.mxu3 %v8165_v63  ;;  %4483 = vmatpush.bf16.msra.mxu0 %v8025_v5  ;;  %v8209_v56 = vor.u32 %v9280_v6, %v8208_v50  ;;  %v8101_v63 = vor.u32 %v9250_v45, %v8098_v25  ;;  %v7961_v5 = vor.u32 %v9215_v58, %v7958_v59  ;;  %v2939_v13 = vpop.f32.mrf.mxu0  ;;  %v4232_v20 = vpop.f32.mrf.mxu2  ;;  %v8168_v25 = vld [vmem:[#allocation4 + $0xe8] sm:$0xf]  ;;  %v8226_v59 = vld [vmem:[#allocation4 + $0x170] sm:$0xf0]  ;;  %v8384_v37 = vld [vmem:[#allocation4 + $0x2a0] sm:$0xf] }
 0x2ae   :  { %v8385_v13 = vor.u32 %v9324_v8, %v8384_v37  ;;  %v9267_v37 = vld [vmem:[#allocation4 + $0xec] sm:$0xf]  ;;  %v8170_v8 = vld [vmem:[#allocation4 + $0xf8] sm:$0xf0] }
 0x2af   :  { %4475 = vmatpush.bf16.msra.mxu2 %v7817_v51  ;;  %5312 = vmatpush.bf16.msrb.mxu1 %v8225_v61  ;;  %v8293_v51 = vor.u32 %v9298_v15, %v8290_v17  ;;  %v7910_v61 = vld [vmem:[#allocation2 + $0x518] sm:$0xf0]  ;;  %v8136_v15 = vld [vmem:[#allocation4 + $0xa8] sm:$0xf]  ;;  %v9261_v17 = vld [vmem:[#allocation4 + $0xb4] sm:$0xf0] }
 0x2b0   :  { %v7913_v6 = vor.u32 %v9203_v42, %v7910_v61  ;;  %v8104_v61 = vld [vmem:[#allocation4 + $0x68] sm:$0xf] }
 0x2b1   :  { %5348 = vmatpush.bf16.msra.mxu3 %v8149_v19  ;;  %4484 = vmatpush.bf16.msra.mxu0 %v8009_v27  ;;  %v8085_v19 = vor.u32 %v9246_v60, %v8082_v1  ;;  %v9207_v27 = vld [vmem:[#allocation2 + $0x52c] sm:$0xf] }
 0x2b3   :  { %4476 = vmatpush.bf16.msra.mxu2 %v7801_v22  ;;  %5313 = vmatpush.bf16.msrb.mxu1 %v8209_v56  ;;  %v8053_v22 = vor.u32 %v9238_v39, %v8050_v40  ;;  %v9269_v56 = vld [vmem:[#allocation4 + $0xf4] sm:$0xf0]  ;;  %v8352_v40 = vld [vmem:[#allocation4 + $0x260] sm:$0xf] }
 0x2b5   :  { %5349 = vmatpush.bf16.msra.mxu3 %v8133_v41  ;;  %4485 = vmatpush.bf16.msra.mxu0 %v7993_v46  ;;  %v7929_v41 = vor.u32 %v9207_v27, %v7926_v31  ;;  %v4193_v23 = vpop.f32.mrf.mxu0  ;;  %v4234_v16 = vpop.f32.mrf.mxu2  ;;  %v8194_v27 = vld [vmem:[#allocation4 + $0x130] sm:$0xf0] }
 0x2b6   :  { %v8336_v16 = vld [vmem:[#allocation4 + $0x240] sm:$0xf] }
 0x2b7   :  { %4477 = vmatpush.bf16.msra.mxu2 %v7785_v9  ;;  %5314 = vmatpush.bf16.msrb.mxu1 %v8193_v3  ;;  %v9328_v9 = vld [vmem:[#allocation4 + $0x2cc] sm:$0xf0]  ;;  %v8152_v3 = vld [vmem:[#allocation4 + $0xc8] sm:$0xf] }
 0x2b8   :  { %v9881_v60 = vpop.f32.mrf.mxu1 }
 0x2b9   :  { %5350 = vmatpush.bf16.msra.mxu3 %v8117_v53  ;;  %4486 = vmatpush.bf16.msra.mxu0 %v7977_v35  ;;  %v4273_v53 = vpop.f32.mrf.mxu3  ;;  %v8400_v35 = vld [vmem:[#allocation4 + $0x2c0] sm:$0xf] }
 0x2ba   :  { %4478 = vmatmul.bf16.vlgmr.msra.gmra.mxu2 %v9784_v10  ;;  %v4181_v10 = vadd.f32 %v9853_v18, %v4168_v38  ;;  %v9332_v18 = vld [vmem:[#allocation4 + $0x2ec] sm:$0xf0]  ;;  %v8401_v58 = vor.u32 %v9328_v9, %v8400_v35  ;;  %v9274_v38 = vld [vmem:[#allocation4 + $0x124] sm:$0xf]  ;;  %v8304_v35 = vld [vmem:[#allocation4 + $0x200] sm:$0xf] }
 0x2bb   :  { %5315 = vmatpush.bf16.msrb.mxu1 %v8177_v24  ;;  %v8417_v49 = vor.u32 %v9332_v18, %v8416_v28  ;;  %v9320_v24 = vld [vmem:[#allocation4 + $0x28c] sm:$0xf0]  ;;  %v8197_v39 = vor.u32 %v9274_v38, %v8194_v27  ;;  %v8088_v18 = vld [vmem:[#allocation4 + $0x48] sm:$0xf]  ;;  %v8386_v27 = vld [vmem:[#allocation4 + $0x2b0] sm:$0xf0] }
 0x2bc   :  { %v4194_v46 = vadd.f32 %v4193_v23, %v4181_v10  ;;  %v9316_v10 = vld [vmem:[#allocation4 + $0x26c] sm:$0xf0]  ;;  %v8089_v53 = vor.u32 %v9249_v44, %v8088_v18  ;;  %v8544_v44 = vld [vmem:[#allocation4 + $0x3e0] sm:$0xf] }
 0x2bd   :  { %5351 = vmatpush.bf16.msra.mxu3 %v8101_v63  ;;  %4487 = vmatpush.bf16.msra.mxu0 %v7961_v5  ;;  %v9879_v63 = vpop.f32.mrf.mxu2  ;;  %v8229_v5 = vor.u32 %v9282_v36, %v8226_v59  ;;  %v8353_v42 = vor.u32 %v9316_v10, %v8352_v40  ;;  %v9304_v9 = vld [vmem:[#allocation4 + $0x20c] sm:$0xf0]  ;;  %v9330_v59 = vld [vmem:[#allocation4 + $0x2e4] sm:$0xf]  ;;  %v8370_v10 = vld [vmem:[#allocation4 + $0x290] sm:$0xf0] }
 0x2be   :  { %v4207_v50 = vadd.f32 %v9846_v47, %v4194_v46  ;;  %v4195_v47 = vpop.f32.mrf.mxu0  ;;  %5321 = vmatpush.bf16.msrb.mxu2 %v8417_v49  ;;  %v9308_v49 = vld [vmem:[#allocation4 + $0x22c] sm:$0xf0]  ;;  %v9318_v40 = vld [vmem:[#allocation4 + $0x284] sm:$0xf] }
 0x2bf   :  { %5360 = vmatpush.bf16.msra.mxu1 %v8293_v51  ;;  %v8137_v51 = vor.u32 %v9261_v17, %v8136_v15  ;;  %v8402_v15 = vld [vmem:[#allocation4 + $0x2d0] sm:$0xf0] }
 0x2c0   :  { %v4220_v48 = vadd.f32 %v9851_v4, %v4207_v50  ;;  %v8169_v4 = vor.u32 %v9269_v56, %v8168_v25  ;;  %v4286_v29 = vpop.f32.mrf.mxu1  ;;  %v9312_v50 = vld [vmem:[#allocation4 + $0x24c] sm:$0xf0]  ;;  %v8072_v25 = vld [vmem:[#allocation4 + $0x28] sm:$0xf]  ;;  %v9245_v56 = vld [vmem:[#allocation4 + $0x34] sm:$0xf0] }
 0x2c1   :  { %5352 = vmatpush.bf16.msra.mxu3 %v8085_v19  ;;  %4488 = vmatpush.bf16.msra.mxu0 %v7945_v26  ;;  %v8213_v19 = vor.u32 %v9278_v12, %v8210_v14  ;;  %v9886_v21 = vpop.f32.mrf.mxu3  ;;  %v8369_v26 = vor.u32 %v9320_v24, %v8368_v34  ;;  %v8337_v28 = vor.u32 %v9312_v50, %v8336_v16  ;;  %v8154_v34 = vld [vmem:[#allocation4 + $0xd8] sm:$0xf0]  ;;  %v9251_v50 = vld [vmem:[#allocation4 + $0x6c] sm:$0xf] }
 0x2c2   :  { %v4233_v45 = vadd.f32 %v4232_v20, %v4220_v48  ;;  %5322 = vmatpush.bf16.msrb.mxu2 %v8401_v58  ;;  %v8320_v48 = vld [vmem:[#allocation4 + $0x220] sm:$0xf]  ;;  %v8305_v58 = vor.u32 %v9304_v9, %v8304_v35  ;;  %v8138_v29 = vld [vmem:[#allocation4 + $0xb8] sm:$0xf0]  ;;  %v8338_v35 = vld [vmem:[#allocation4 + $0x250] sm:$0xf0] }
 0x2c3   :  { %5361 = vmatpush.bf16.msra.mxu1 %v8277_v0  ;;  %v8178_v0 = vld [vmem:[#allocation4 + $0x110] sm:$0xf0] }
 0x2c4   :  { %v4509_v54 = vmax.f32 %v4233_v45, 0.0  ;;  %v8321_v45 = vor.u32 %v9308_v49, %v8320_v48  ;;  %v9364_v48 = vld [vmem:[#allocation4 + $0x3ec] sm:$0xf0] }
 0x2c5   :  { %5353 = vmatpush.bf16.msra.mxu3 %v8069_v33  ;;  %4489 = vmatpush.bf16.msra.mxu0 %v7929_v41  ;;  %v4260_v31 = vpop.f32.mrf.mxu2  ;;  %v9257_v33 = vld [vmem:[#allocation4 + $0x94] sm:$0xf0]  ;;  %v9270_v41 = vld [vmem:[#allocation4 + $0x104] sm:$0xf] }
 0x2c6   :  { %v9883_v1 = vpack.c.bf16 %v4509_v54, %v4509_v54  ;;  %v4245_v20 = vpop.f32.mrf.mxu0  ;;  %5323 = vmatpush.bf16.msrb.mxu2 %v8385_v13  ;;  %v8121_v23 = vor.u32 %v9257_v33, %v8120_v32  ;;  %v8181_v7 = vor.u32 %v9270_v41, %v8178_v0  ;;  %v8073_v54 = vor.u32 %v9245_v56, %v8072_v25  ;;  %v9259_v31 = vld [vmem:[#allocation4 + $0xac] sm:$0xf]  ;;  %v9310_v56 = vld [vmem:[#allocation4 + $0x244] sm:$0xf] }
 0x2c7   :  { %5362 = vmatpush.bf16.msra.mxu1 %v8261_v30  ;;  %v8105_v30 = vor.u32 %v9253_v43, %v8104_v61  ;;  %v8141_v41 = vor.u32 %v9259_v31, %v8138_v29  ;;  %v8296_v61 = vld [vmem:[#allocation4 + $0x1e8] sm:$0xf]  ;;  %v9239_v31 = vld [vmem:[#allocation4 + $0xc] sm:$0xf] }
 0x2c8   :  { %5303 = vmatmul.bf16.vlgmr.msrb.gmra.mxu3 %v9883_v1 }
 0x2c9   :  { %5354 = vmatpush.bf16.msra.mxu3 %v8053_v22  ;;  %4490 = vmatpush.bf16.msra.mxu0 %v7913_v6  ;;  %v4325_v22 = vpop.f32.mrf.mxu3  ;;  %v3155_v6 = vperm.slane %v9863_v55, 1 }
 0x2ca   :  { %5324 = vmatpush.bf16.msrb.mxu2 %v8369_v26  ;;  %v9322_v26 = vld [vmem:[#allocation4 + $0x2a4] sm:$0xf]  ;;  %v8354_v22 = vld [vmem:[#allocation4 + $0x270] sm:$0xf0] }
 0x2cb   :  { %5363 = vmatpush.bf16.msra.mxu1 %v8245_v11  ;;  %v4246_v52 = vadd.f32 %v4245_v20, %v3155_v6  ;;  %v9263_v20 = vld [vmem:[#allocation4 + $0xcc] sm:$0xf]  ;;  %v8106_v6 = vld [vmem:[#allocation4 + $0x78] sm:$0xf0] }
 0x2cc   :  { %4491 = vmatmul.bf16.vlgmr.msra.gmra.mxu0 %v9798_v2  ;;  %v8153_v2 = vor.u32 %v9265_v57, %v8152_v3  ;;  %v8056_v3 = vld [vmem:[#allocation4 + $0x8] sm:$0xf]  ;;  %v9241_v57 = vld [vmem:[#allocation4 + $0x14] sm:$0xf0]  ;;  %v8109_v9 = vor.u32 %v9251_v50, %v8106_v6 }
 0x2cd   :  { %5399 = vmatpush.bf16.msrb.mxu3 %v8169_v4  ;;  %v4259_v36 = vadd.f32 %v9879_v63, %v4246_v52  ;;  %v8418_v4 = vld [vmem:[#allocation4 + $0x2f0] sm:$0xf0]  ;;  %v8057_v13 = vor.u32 %v9241_v57, %v8056_v3  ;;  %v8173_v63 = vor.u32 %v9267_v37, %v8170_v8  ;;  %v8264_v57 = vld [vmem:[#allocation4 + $0x1a8] sm:$0xf]  ;;  %v9293_v37 = vld [vmem:[#allocation4 + $0x1b4] sm:$0xf0] }
 0x2ce   :  { %v4247_v46 = vpop.f32.mrf.mxu0  ;;  %5325 = vmatpush.bf16.msrb.mxu2 %v8353_v42  ;;  %v8373_v42 = vor.u32 %v9318_v40, %v8370_v10  ;;  %v9306_v8 = vld [vmem:[#allocation4 + $0x224] sm:$0xf]  ;;  %v3156_v40 = vperm.slane %v9863_v55, 2  ;;  %v8216_v50 = vld [vmem:[#allocation4 + $0x148] sm:$0xf] }
 0x2cf   :  { %5364 = vmatpush.bf16.msra.mxu1 %v8229_v5  ;;  %v8421_v5 = vor.u32 %v9330_v59, %v8418_v4  ;;  %v4272_v12 = vadd.f32 %v9873_v62, %v4259_v36  ;;  %v8389_v62 = vor.u32 %v9322_v26, %v8386_v27  ;;  %v9314_v46 = vld [vmem:[#allocation4 + $0x264] sm:$0xf]  ;;  %v9247_v36 = vld [vmem:[#allocation4 + $0x4c] sm:$0xf]  ;;  %v8528_v59 = vld [vmem:[#allocation4 + $0x3c0] sm:$0xf] }
 0x2d0   :  { %v9360_v4 = vld [vmem:[#allocation4 + $0x3cc] sm:$0xf0]  ;;  %v9289_v26 = vld [vmem:[#allocation4 + $0x194] sm:$0xf0]  ;;  %v9302_v27 = vld [vmem:[#allocation4 + $0x204] sm:$0xf] }
 0x2d1   :  { %5400 = vmatpush.bf16.msrb.mxu3 %v8153_v2  ;;  %v9892_v47 = vpop.f32.mrf.mxu3  ;;  %v9326_v2 = vld [vmem:[#allocation4 + $0x2c4] sm:$0xf]  ;;  %v4285_v38 = vadd.f32 %v9881_v60, %v4272_v12  ;;  %v9255_v60 = vld [vmem:[#allocation4 + $0x8c] sm:$0xf]  ;;  %v8322_v12 = vld [vmem:[#allocation4 + $0x230] sm:$0xf0] }
 0x2d2   :  { %5326 = vmatpush.bf16.msrb.mxu2 %v8337_v28  ;;  %v9281_v6 = vld [vmem:[#allocation4 + $0x154] sm:$0xf0] }
 0x2d3   :  { %5365 = vmatpush.bf16.msra.mxu1 %v8213_v19  ;;  %v8405_v19 = vor.u32 %v9326_v2, %v8402_v15  ;;  %v8325_v2 = vor.u32 %v9306_v8, %v8322_v12  ;;  %v8074_v15 = vld [vmem:[#allocation4 + $0x38] sm:$0xf0]  ;;  %v8546_v8 = vld [vmem:[#allocation4 + $0x3f0] sm:$0xf0] }
 0x2d5   :  { %5401 = vmatpush.bf16.msrb.mxu3 %v8137_v51  ;;  %v8157_v51 = vor.u32 %v9263_v20, %v8154_v34  ;;  %v8265_v34 = vor.u32 %v9293_v37, %v8264_v57  ;;  %v9362_v37 = vld [vmem:[#allocation4 + $0x3e4] sm:$0xf] }
 0x2d6   :  { %5327 = vmatpush.bf16.msrb.mxu2 %v8321_v45  ;;  %v8545_v45 = vor.u32 %v9364_v48, %v8544_v44  ;;  %v8217_v48 = vor.u32 %v9281_v6, %v8216_v50  ;;  %v8234_v50 = vld [vmem:[#allocation4 + $0x178] sm:$0xf0] }
 0x2d7   :  { %5366 = vmatpush.bf16.msra.mxu1 %v8197_v39 }
 0x2d8   :  { %5355 = vmatmul.bf16.vlgmr.msra.gmra.mxu3 %v9883_v1  ;;  %v9890_v11 = vpop.f32.mrf.mxu1  ;;  %5334 = vmatpush.bf16.msrb.mxu0 %v8545_v45 }
 0x2d9   :  { %5402 = vmatpush.bf16.msrb.mxu3 %v8121_v23  ;;  %v4351_v24 = vpop.f32.mrf.mxu3  ;;  %v8122_v23 = vld [vmem:[#allocation4 + $0x98] sm:$0xf0] }
 0x2da   :  { %5328 = vmatpush.bf16.msrb.mxu2 %v8305_v58  ;;  %v8125_v16 = vor.u32 %v9255_v60, %v8122_v23  ;;  %v8090_v58 = vld [vmem:[#allocation4 + $0x58] sm:$0xf0]  ;;  %v8248_v24 = vld [vmem:[#allocation4 + $0x188] sm:$0xf] }
 0x2db   :  { %5367 = vmatpush.bf16.msra.mxu1 %v8181_v7  ;;  %v9301_v7 = vld [vmem:[#allocation4 + $0x1f4] sm:$0xf0]  ;;  %v8249_v10 = vor.u32 %v9289_v26, %v8248_v24  ;;  %v8266_v26 = vld [vmem:[#allocation4 + $0x1b8] sm:$0xf0] }
 0x2dc   :  { %v8297_v49 = vor.u32 %v9301_v7, %v8296_v61  ;;  %v8480_v61 = vld [vmem:[#allocation4 + $0x360] sm:$0xf] }
 0x2dd   :  { %5403 = vmatpush.bf16.msrb.mxu3 %v8105_v30  ;;  %v4310_v14 = vpop.f32.mrf.mxu2  ;;  %v8357_v30 = vor.u32 %v9314_v46, %v8354_v22  ;;  %v4337_v46 = vadd.f32 %v9890_v11, %v3156_v40  ;;  %v8200_v11 = vld [vmem:[#allocation4 + $0x128] sm:$0xf] }
 0x2de   :  { %5373 = vmatpush.bf16.msra.mxu2 %v8421_v5  ;;  %v8529_v5 = vor.u32 %v9360_v4, %v8528_v59  ;;  %v9299_v59 = vld [vmem:[#allocation4 + $0x1ec] sm:$0xf]  ;;  %v8432_v4 = vld [vmem:[#allocation4 + $0x300] sm:$0xf] }
 0x2df   :  { %v4350_v44 = vadd.f32 %v9892_v47, %v4337_v46  ;;  %v8298_v47 = vld [vmem:[#allocation4 + $0x1f8] sm:$0xf0] }
 0x2e0   :  { %v4338_v17 = vpop.f32.mrf.mxu1  ;;  %5335 = vmatpush.bf16.msrb.mxu0 %v8529_v5 }
 0x2e1   :  { %5404 = vmatpush.bf16.msrb.mxu3 %v8089_v53  ;;  %v8280_v53 = vld [vmem:[#allocation4 + $0x1c8] sm:$0xf]  ;;  %v8512_v17 = vld [vmem:[#allocation4 + $0x3a0] sm:$0xf] }
 0x2e2   :  { %5374 = vmatpush.bf16.msra.mxu2 %v8405_v19  ;;  %v9356_v19 = vld [vmem:[#allocation4 + $0x3ac] sm:$0xf0] }
 0x2e5   :  { %5405 = vmatpush.bf16.msrb.mxu3 %v8073_v54  ;;  %v4297_v32 = vpop.f32.mrf.mxu0  ;;  %v4312_v39 = vpop.f32.mrf.mxu2  ;;  %v8341_v54 = vor.u32 %v9310_v56, %v8338_v35  ;;  %v9340_v56 = vld [vmem:[#allocation4 + $0x32c] sm:$0xf0] }
 0x2e6   :  { %5375 = vmatpush.bf16.msra.mxu2 %v8389_v62  ;;  %v4298_v33 = vadd.f32 %v4297_v32, %v4285_v38  ;;  %v8513_v38 = vor.u32 %v9356_v19, %v8512_v17  ;;  %v8058_v32 = vld [vmem:[#allocation4 + $0x18] sm:$0xf0]  ;;  %v9352_v39 = vld [vmem:[#allocation4 + $0x38c] sm:$0xf0]  ;;  %v9358_v19 = vld [vmem:[#allocation4 + $0x3c4] sm:$0xf] }
 0x2e7   :  { %v8061_v60 = vor.u32 %v9239_v31, %v8058_v32  ;;  %v8514_v31 = vld [vmem:[#allocation4 + $0x3b0] sm:$0xf0]  ;;  %v8424_v32 = vld [vmem:[#allocation4 + $0x2e8] sm:$0xf] }
 0x2e8   :  { %v4311_v0 = vadd.f32 %v4310_v14, %v4298_v33  ;;  %v9243_v14 = vld [vmem:[#allocation4 + $0x2c] sm:$0xf]  ;;  %5336 = vmatpush.bf16.msrb.mxu0 %v8513_v38  ;;  %v8496_v33 = vld [vmem:[#allocation4 + $0x380] sm:$0xf] }
 0x2e9   :  { %5406 = vmatpush.bf16.msrb.mxu3 %v8057_v13  ;;  %v8093_v13 = vor.u32 %v9247_v36, %v8090_v58  ;;  %v8077_v62 = vor.u32 %v9243_v14, %v8074_v15  ;;  %v9273_v58 = vld [vmem:[#allocation4 + $0x114] sm:$0xf0]  ;;  %v8549_v14 = vor.u32 %v9362_v37, %v8546_v8  ;;  %v8282_v15 = vld [vmem:[#allocation4 + $0x1d8] sm:$0xf0]  ;;  %v9291_v38 = vld [vmem:[#allocation4 + $0x1ac] sm:$0xf] }
 0x2ea   :  { %5376 = vmatpush.bf16.msra.mxu2 %v8373_v42  ;;  %v4324_v43 = vadd.f32 %v9886_v21, %v4311_v0  ;;  %v9297_v21 = vld [vmem:[#allocation4 + $0x1d4] sm:$0xf0]  ;;  %v8232_v42 = vld [vmem:[#allocation4 + $0x168] sm:$0xf]  ;;  %v9338_v37 = vld [vmem:[#allocation4 + $0x324] sm:$0xf] }
 0x2eb   :  { %v8281_v3 = vor.u32 %v9297_v21, %v8280_v53  ;;  %v9285_v0 = vld [vmem:[#allocation4 + $0x174] sm:$0xf0]  ;;  %v8448_v21 = vld [vmem:[#allocation4 + $0x320] sm:$0xf]  ;;  %v8450_v8 = vld [vmem:[#allocation4 + $0x330] sm:$0xf0] }
 0x2ec   :  { %5407 = vmatmul.bf16.vlgmr.msrb.gmra.mxu3 %v9883_v1  ;;  %v4510_v28 = vmax.f32 %v4324_v43, 0.0  ;;  %v9348_v43 = vld [vmem:[#allocation4 + $0x36c] sm:$0xf0]  ;;  %v8233_v22 = vor.u32 %v9285_v0, %v8232_v42  ;;  %v9277_v53 = vld [vmem:[#allocation4 + $0x134] sm:$0xf0]  ;;  %v8449_v36 = vor.u32 %v9340_v56, %v8448_v21 }
 0x2ed   :  { %5451 = vmatpush.bf16.msra.mxu3 %v8173_v63  ;;  %v4299_v52 = vpop.f32.mrf.mxu0  ;;  %v8250_v42 = vld [vmem:[#allocation4 + $0x198] sm:$0xf0]  ;;  %v9325_v21 = vld [vmem:[#allocation4 + $0x2b4] sm:$0xf0]  ;;  %v9279_v56 = vld [vmem:[#allocation4 + $0x14c] sm:$0xf] }
 0x2ee   :  { %5377 = vmatpush.bf16.msra.mxu2 %v8357_v30  ;;  %v9901_v25 = vpack.c.bf16 %v4510_v28, %v4510_v28  ;;  %v8464_v30 = vld [vmem:[#allocation4 + $0x340] sm:$0xf]  ;;  %v9344_v28 = vld [vmem:[#allocation4 + $0x34c] sm:$0xf0] }
 0x2ef   :  { %v9899_v18 = vpop.f32.mrf.mxu3 }
 0x2f0   :  { %5316 = vmatmul.bf16.vlgmr.msrb.gmra.mxu1 %v9901_v25 }
 0x2f1   :  { %5452 = vmatpush.bf16.msra.mxu3 %v8157_v51  ;;  %5412 = vmatpush.bf16.msrb.mxu1 %v8297_v49  ;;  %v8306_v51 = vld [vmem:[#allocation4 + $0x210] sm:$0xf0]  ;;  %v8465_v49 = vor.u32 %v9344_v28, %v8464_v30  ;;  %v9346_v28 = vld [vmem:[#allocation4 + $0x364] sm:$0xf] }
 0x2f2   :  { %5378 = vmatpush.bf16.msra.mxu2 %v8341_v54  ;;  %v8309_v29 = vor.u32 %v9302_v27, %v8306_v51  ;;  %v8184_v54 = vld [vmem:[#allocation4 + $0x108] sm:$0xf] }
 0x2f5   :  { %5453 = vmatpush.bf16.msra.mxu3 %v8141_v41  ;;  %5413 = vmatpush.bf16.msrb.mxu1 %v8281_v3  ;;  %v8497_v41 = vor.u32 %v9352_v39, %v8496_v33  ;;  %v9336_v3 = vld [vmem:[#allocation4 + $0x30c] sm:$0xf0] }
 0x2f6   :  { %5379 = vmatpush.bf16.msra.mxu2 %v8325_v2  ;;  %v8433_v5 = vor.u32 %v9336_v3, %v8432_v4  ;;  %v9295_v2 = vld [vmem:[#allocation4 + $0x1cc] sm:$0xf]  ;;  %v9321_v4 = vld [vmem:[#allocation4 + $0x294] sm:$0xf0] }
 0x2f7   :  { %v4403_v20 = vpop.f32.mrf.mxu3  ;;  %5337 = vmatpush.bf16.msrb.mxu0 %v8497_v41  ;;  %v9287_v41 = vld [vmem:[#allocation4 + $0x18c] sm:$0xf] }
 0x2f8   :  { %v9904_v63 = vpop.f32.mrf.mxu1  ;;  %v8530_v20 = vld [vmem:[#allocation4 + $0x3d0] sm:$0xf0]  ;;  %v9275_v3 = vld [vmem:[#allocation4 + $0x12c] sm:$0xf] }
 0x2f9   :  { %5454 = vmatpush.bf16.msra.mxu3 %v8125_v16  ;;  %5414 = vmatpush.bf16.msrb.mxu1 %v8265_v34  ;;  %v8481_v16 = vor.u32 %v9348_v43, %v8480_v61  ;;  %v8285_v34 = vor.u32 %v9295_v2, %v8282_v15  ;;  %v8533_v24 = vor.u32 %v9358_v19, %v8530_v20  ;;  %v8408_v43 = vld [vmem:[#allocation4 + $0x2c8] sm:$0xf]  ;;  %v9271_v19 = vld [vmem:[#allocation4 + $0x10c] sm:$0xf]  ;;  %v8186_v20 = vld [vmem:[#allocation4 + $0x118] sm:$0xf0] }
 0x2fa   :  { %5380 = vmatpush.bf16.msra.mxu2 %v8309_v29  ;;  %v8360_v2 = vld [vmem:[#allocation4 + $0x268] sm:$0xf]  ;;  %v8453_v15 = vor.u32 %v9338_v37, %v8450_v8 }
 0x2fb   :  { %5338 = vmatpush.bf16.msrb.mxu0 %v8481_v16  ;;  %v9283_v16 = vld [vmem:[#allocation4 + $0x16c] sm:$0xf] }
 0x2fd   :  { %5455 = vmatpush.bf16.msra.mxu3 %v8109_v9  ;;  %v4375_v23 = vpop.f32.mrf.mxu2  ;;  %5415 = vmatpush.bf16.msrb.mxu1 %v8249_v10  ;;  %v8201_v9 = vor.u32 %v9277_v53, %v8200_v11  ;;  %v9333_v10 = vld [vmem:[#allocation4 + $0x2f4] sm:$0xf0]  ;;  %v8392_v11 = vld [vmem:[#allocation4 + $0x2a8] sm:$0xf] }
 0x2fe   :  { %v8425_v61 = vor.u32 %v9333_v10, %v8424_v32  ;;  %v9309_v10 = vld [vmem:[#allocation4 + $0x234] sm:$0xf0] }
 0x2ff   :  { %5339 = vmatpush.bf16.msrb.mxu0 %v8465_v49  ;;  %v8237_v49 = vor.u32 %v9283_v16, %v8234_v50 }
 0x300   :  { %v4390_v7 = vpop.f32.mrf.mxu1  ;;  %5368 = vmatmul.bf16.vlgmr.msra.gmra.mxu1 %v9901_v25 }
 0x301   :  { %5456 = vmatpush.bf16.msra.mxu3 %v8093_v13  ;;  %5416 = vmatpush.bf16.msrb.mxu1 %v8233_v22  ;;  %v8301_v13 = vor.u32 %v9299_v59, %v8298_v47  ;;  %v9329_v22 = vld [vmem:[#allocation4 + $0x2d4] sm:$0xf0]  ;;  %v8376_v59 = vld [vmem:[#allocation4 + $0x288] sm:$0xf] }
 0x303   :  { %5340 = vmatpush.bf16.msrb.mxu0 %v8449_v36  ;;  %v8466_v36 = vld [vmem:[#allocation4 + $0x350] sm:$0xf0] }
 0x305   :  { %5457 = vmatpush.bf16.msra.mxu3 %v8077_v62  ;;  %v4362_v52 = vpop.f32.mrf.mxu0  ;;  %v4377_v45 = vpop.f32.mrf.mxu2  ;;  %5417 = vmatpush.bf16.msrb.mxu1 %v8217_v48  ;;  %v9354_v62 = vld [vmem:[#allocation4 + $0x3a4] sm:$0xf]  ;;  %v8409_v48 = vor.u32 %v9329_v22, %v8408_v43  ;;  %v8410_v22 = vld [vmem:[#allocation4 + $0x2d8] sm:$0xf0] }
 0x306   :  { %v4363_v35 = vadd.f32 %v4362_v52, %v4350_v44  ;;  %v8517_v39 = vor.u32 %v9354_v62, %v8514_v31  ;;  %v8482_v44 = vld [vmem:[#allocation4 + $0x370] sm:$0xf0]  ;;  %v8344_v62 = vld [vmem:[#allocation4 + $0x248] sm:$0xf]  ;;  %v9313_v31 = vld [vmem:[#allocation4 + $0x254] sm:$0xf0] }
 0x307   :  { %5341 = vmatpush.bf16.msrb.mxu0 %v8433_v5  ;;  %v8485_v45 = vor.u32 %v9346_v28, %v8482_v44  ;;  %v8345_v32 = vor.u32 %v9313_v31, %v8344_v62  ;;  %v8488_v62 = vld [vmem:[#allocation4 + $0x368] sm:$0xf]  ;;  %v9349_v31 = vld [vmem:[#allocation4 + $0x374] sm:$0xf0] }
 0x308   :  { %v4376_v57 = vadd.f32 %v4375_v23, %v4363_v35  ;;  %v8498_v23 = vld [vmem:[#allocation4 + $0x390] sm:$0xf0]  ;;  %v8218_v35 = vld [vmem:[#allocation4 + $0x158] sm:$0xf0] }
 0x309   :  { %5458 = vmatpush.bf16.msra.mxu3 %v8061_v60  ;;  %5418 = vmatpush.bf16.msrb.mxu1 %v8201_v9  ;;  %v9350_v60 = vld [vmem:[#allocation4 + $0x384] sm:$0xf] }
 0x30a   :  { %v4389_v17 = vadd.f32 %v9904_v63, %v4376_v57  ;;  %v8269_v63 = vor.u32 %v9291_v38, %v8266_v26  ;;  %v8501_v7 = vor.u32 %v9350_v60, %v8498_v23  ;;  %v9342_v9 = vld [vmem:[#allocation4 + $0x344] sm:$0xf]  ;;  %v8202_v57 = vld [vmem:[#allocation4 + $0x138] sm:$0xf0]  ;;  %v8189_v26 = vor.u32 %v9271_v19, %v8186_v20  ;;  %v9305_v60 = vld [vmem:[#allocation4 + $0x214] sm:$0xf0] }
 0x30b   :  { %5386 = vmatpush.bf16.msra.mxu0 %v8549_v14  ;;  %v8469_v47 = vor.u32 %v9342_v9, %v8466_v36  ;;  %v9331_v23 = vld [vmem:[#allocation4 + $0x2ec] sm:$0xf]  ;;  %v8552_v9 = vld [vmem:[#allocation4 + $0x3e8] sm:$0xf]  ;;  %v9365_v36 = vld [vmem:[#allocation4 + $0x3f4] sm:$0xf0] }
 0x30c   :  { %5459 = vmatmul.bf16.vlgmr.msra.gmra.mxu3 %v9883_v1  ;;  %v8185_v1 = vor.u32 %v9273_v58, %v8184_v54  ;;  %v4402_v51 = vadd.f32 %v9899_v18, %v4389_v17  ;;  %v8253_v18 = vor.u32 %v9287_v41, %v8250_v42  ;;  %v8393_v54 = vor.u32 %v9325_v21, %v8392_v11  ;;  %v9317_v17 = vld [vmem:[#allocation4 + $0x274] sm:$0xf0]  ;;  %v8314_v19 = vld [vmem:[#allocation4 + $0x218] sm:$0xf0] }
 0x30d   :  { %v4364_v12 = vpop.f32.mrf.mxu0  ;;  %v8221_v58 = vor.u32 %v9279_v56, %v8218_v35  ;;  %v8361_v38 = vor.u32 %v9317_v17, %v8360_v2  ;;  %v8362_v56 = vld [vmem:[#allocation4 + $0x278] sm:$0xf0]  ;;  %v9357_v2 = vld [vmem:[#allocation4 + $0x3b4] sm:$0xf0]  ;;  %v9303_v17 = vld [vmem:[#allocation4 + $0x20c] sm:$0xf] }
 0x30e   :  { %5419 = vmatpush.bf16.msrb.mxu1 %v8185_v1  ;;  %v8377_v12 = vor.u32 %v9321_v4, %v8376_v59  ;;  %v8346_v59 = vld [vmem:[#allocation4 + $0x258] sm:$0xf0] }
 0x30f   :  { %5387 = vmatpush.bf16.msra.mxu0 %v8533_v24  ;;  %v9916_v33 = vpop.f32.mrf.mxu3  ;;  %v8434_v24 = vld [vmem:[#allocation4 + $0x310] sm:$0xf0] }
 0x311   :  { %5420 = vmatmul.bf16.vlgmr.msrb.gmra.mxu1 %v9901_v25 }
 0x312   :  { %5464 = vmatpush.bf16.msra.mxu1 %v8301_v13  ;;  %v8205_v13 = vor.u32 %v9275_v3, %v8202_v57  ;;  %v8536_v3 = vld [vmem:[#allocation4 + $0x3c8] sm:$0xf]  ;;  %v9361_v57 = vld [vmem:[#allocation4 + $0x3d4] sm:$0xf0] }
 0x313   :  { %5388 = vmatpush.bf16.msra.mxu0 %v8517_v39 }
 0x315   :  { %v4414_v29 = vpop.f32.mrf.mxu0 }
 0x316   :  { %5465 = vmatpush.bf16.msra.mxu1 %v8285_v34  ;;  %v4415_v40 = vadd.f32 %v4414_v29, %v4402_v51  ;;  %v9334_v34 = vld [vmem:[#allocation4 + $0x304] sm:$0xf] }
 0x317   :  { %v9913_v27 = vpop.f32.mrf.mxu1  ;;  %5389 = vmatpush.bf16.msra.mxu0 %v8501_v7  ;;  %v4468_v53 = vpop.f32.mrf.mxu3  ;;  %v8437_v51 = vor.u32 %v9334_v34, %v8434_v24  ;;  %v9327_v7 = vld [vmem:[#allocation4 + $0x2cc] sm:$0xf]  ;;  %v8504_v34 = vld [vmem:[#allocation4 + $0x388] sm:$0xf]  ;;  %v9353_v24 = vld [vmem:[#allocation4 + $0x394] sm:$0xf0] }
 0x318   :  { %v4511_v0 = vmax.f32 %v4415_v40, 0.0  ;;  %v8328_v40 = vld [vmem:[#allocation4 + $0x228] sm:$0xf] }
 0x319   :  { %v8329_v42 = vor.u32 %v9309_v10, %v8328_v40  ;;  %v8456_v10 = vld [vmem:[#allocation4 + $0x328] sm:$0xf] }
 0x31a   :  { %5466 = vmatpush.bf16.msra.mxu1 %v8269_v63  ;;  %v9918_v46 = vpack.c.bf16 %v4511_v0, %v4511_v0  ;;  %v3157_v63 = vperm.slane %v9863_v55, 3  ;;  %v8312_v0 = vld [vmem:[#allocation4 + $0x208] sm:$0xf] }
 0x31b   :  { %5390 = vmatpush.bf16.msra.mxu0 %v8485_v45  ;;  %v8313_v43 = vor.u32 %v9305_v60, %v8312_v0  ;;  %v8440_v0 = vld [vmem:[#allocation4 + $0x308] sm:$0xf]  ;;  %v9337_v60 = vld [vmem:[#allocation4 + $0x314] sm:$0xf0] }
 0x31c   :  { %5329 = vmatmul.bf16.vlgmr.msrb.gmra.mxu2 %v9918_v46 }
 0x31d   :  { %v9920_v6 = vpop.f32.mrf.mxu2  ;;  %5425 = vmatpush.bf16.msrb.mxu2 %v8425_v61  ;;  %v4416_v52 = vpop.f32.mrf.mxu0  ;;  %v8426_v61 = vld [vmem:[#allocation4 + $0x2f8] sm:$0xf0] }
 0x31e   :  { %5467 = vmatpush.bf16.msra.mxu1 %v8253_v18  ;;  %v4428_v41 = vadd.f32 %v9920_v6, %v3157_v63  ;;  %v8429_v55 = vor.u32 %v9331_v23, %v8426_v61  ;;  %v8394_v6 = vld [vmem:[#allocation4 + $0x2b8] sm:$0xf0]  ;;  %v8472_v63 = vld [vmem:[#allocation4 + $0x348] sm:$0xf]  ;;  %v9363_v23 = vld [vmem:[#allocation4 + $0x3ec] sm:$0xf] }
 0x31f   :  { %v4455_v30 = vpop.f32.mrf.mxu1  ;;  %5391 = vmatpush.bf16.msra.mxu0 %v8469_v47  ;;  %v8553_v47 = vor.u32 %v9365_v36, %v8552_v9  ;;  %v8554_v61 = vld [vmem:[#allocation4 + $0x3f8] sm:$0xf0] }
 0x320   :  { %v9323_v30 = vld [vmem:[#allocation4 + $0x2ac] sm:$0xf]  ;;  %v8474_v9 = vld [vmem:[#allocation4 + $0x358] sm:$0xf0] }
 0x321   :  { %5426 = vmatpush.bf16.msrb.mxu2 %v8409_v48  ;;  %v8397_v44 = vor.u32 %v9323_v30, %v8394_v6  ;;  %v9319_v48 = vld [vmem:[#allocation4 + $0x28c] sm:$0xf] }
 0x322   :  { %5468 = vmatpush.bf16.msra.mxu1 %v8237_v49  ;;  %v8378_v49 = vld [vmem:[#allocation4 + $0x298] sm:$0xf0] }
 0x323   :  { %5392 = vmatpush.bf16.msra.mxu0 %v8453_v15  ;;  %v8381_v45 = vor.u32 %v9319_v48, %v8378_v49  ;;  %v8506_v48 = vld [vmem:[#allocation4 + $0x398] sm:$0xf0] }
 0x325   :  { %v4429_v1 = vpop.f32.mrf.mxu2  ;;  %5427 = vmatpush.bf16.msrb.mxu2 %v8393_v54 }
 0x326   :  { %5469 = vmatpush.bf16.msra.mxu1 %v8221_v58 }
 0x327   :  { %v9923_v5 = vpop.f32.mrf.mxu1  ;;  %5393 = vmatpush.bf16.msra.mxu0 %v8437_v51  ;;  %v8505_v51 = vor.u32 %v9353_v24, %v8504_v34  ;;  %v9372_v34 = vld [vmem:[%s10068_s5 + $0x30] sm:$0xff] }
 0x329   :  { %v4440_v14 = vpop.f32.mrf.mxu0  ;;  %5428 = vmatpush.bf16.msrb.mxu2 %v8377_v12  ;;  %v9307_v12 = vld [vmem:[#allocation4 + $0x22c] sm:$0xf] }
 0x32a   :  { %5470 = vmatpush.bf16.msra.mxu1 %v8205_v13  ;;  %v4441_v18 = vadd.f32 %v4440_v14, %v4428_v41  ;;  %v8537_v13 = vor.u32 %v9361_v57, %v8536_v3  ;;  %v8520_v14 = vld [vmem:[#allocation4 + $0x3a8] sm:$0xf]  ;;  %v9341_v41 = vld [vmem:[#allocation4 + $0x334] sm:$0xf0]  ;;  %v9335_v3 = vld [vmem:[#allocation4 + $0x30c] sm:$0xf] }
 0x32b   :  { %v8521_v20 = vor.u32 %v9357_v2, %v8520_v14  ;;  %v8442_v57 = vld [vmem:[#allocation4 + $0x318] sm:$0xf0] }
 0x32c   :  { %5381 = vmatmul.bf16.vlgmr.msra.gmra.mxu2 %v9918_v46  ;;  %v4454_v50 = vadd.f32 %v9913_v27, %v4441_v18  ;;  %v9315_v27 = vld [vmem:[#allocation4 + $0x26c] sm:$0xf] }
 0x32d   :  { %5429 = vmatpush.bf16.msrb.mxu2 %v8361_v38  ;;  %v8365_v54 = vor.u32 %v9315_v27, %v8362_v56  ;;  %v8317_v38 = vor.u32 %v9303_v17, %v8314_v19 }
 0x32e   :  { %5471 = vmatpush.bf16.msra.mxu1 %v8189_v26  ;;  %v4467_v28 = vadd.f32 %v9916_v33, %v4454_v50  ;;  %v9311_v33 = vld [vmem:[#allocation4 + $0x24c] sm:$0xf] }
 0x32f   :  { %v4507_v29 = vpop.f32.mrf.mxu1  ;;  %v8349_v37 = vor.u32 %v9311_v33, %v8346_v59  ;;  %v9355_v50 = vld [vmem:[#allocation4 + $0x3ac] sm:$0xf]  ;;  %v8458_v33 = vld [vmem:[#allocation4 + $0x338] sm:$0xf0] }
 0x330   :  { %v8489_v29 = vor.u32 %v9349_v31, %v8488_v62  ;;  %v9381_v62 = vld [vmem:[%s10068_s5 + $0x78] sm:$0xff]  ;;  %v9368_v31 = vld [vmem:[%s10068_s5 + $0x10] sm:$0xff] }
 0x331   :  { %v4442_v39 = vpop.f32.mrf.mxu0  ;;  %5472 = vmatmul.bf16.vlgmr.msra.gmra.mxu1 %v9901_v25  ;;  %5430 = vmatpush.bf16.msrb.mxu2 %v8345_v32  ;;  %v8413_v25 = vor.u32 %v9327_v7, %v8410_v22  ;;  %v9345_v32 = vld [vmem:[#allocation4 + $0x354] sm:$0xf0]  ;;  %v8538_v7 = vld [vmem:[#allocation4 + $0x3d8] sm:$0xf0]  ;;  %v9941_v22 = vld [vmem:[%s10067_s4] sm:$0xf] }
 0x332   :  { %v8473_v40 = vor.u32 %v9345_v32, %v8472_v63  ;;  %v4647_v30 = vperm.slane %v9941_v22, 0  ;;  %v4648_v59 = vperm.slane %v9941_v22, 1  ;;  %v4649_v14 = vperm.slane %v9941_v22, 2  ;;  %5784 = vmatpush.bf16.msrb.mxu1 %v9381_v62  ;;  %v9367_v32 = vld [vmem:[%s10068_s5 + $0x8] sm:$0xff] }
 0x335   :  { %5431 = vmatpush.bf16.msrb.mxu2 %v8329_v42  ;;  %v8457_v42 = vor.u32 %v9341_v41, %v8456_v10  ;;  %v9366_v10 = vld [vmem:[%s10068_s5] sm:$0xff] }
 0x336   :  { %v9378_v41 = vld [vmem:[%s10068_s5 + $0x60] sm:$0xff] }
 0x339   :  { %5432 = vmatpush.bf16.msrb.mxu2 %v8313_v43  ;;  %v8441_v43 = vor.u32 %v9337_v60, %v8440_v0 }
 0x33c   :  { %5433 = vmatmul.bf16.vlgmr.msrb.gmra.mxu2 %v9918_v46 }
 0x33d   :  { %v4479_v16 = vpop.f32.mrf.mxu2  ;;  %5477 = vmatpush.bf16.msra.mxu2 %v8429_v55  ;;  %v8557_v55 = vor.u32 %v9363_v23, %v8554_v61  ;;  %v9377_v61 = vld [vmem:[%s10068_s5 + $0x58] sm:$0xff] }
 0x33e   :  { %v4480_v11 = vadd.f32 %v4479_v16, %v4467_v28 }
 0x341   :  { %5478 = vmatpush.bf16.msra.mxu2 %v8413_v25  ;;  %v8522_v25 = vld [vmem:[#allocation4 + $0x3b8] sm:$0xf0] }
 0x342   :  { %v8525_v28 = vor.u32 %v9355_v50, %v8522_v25  ;;  %v9374_v50 = vld [vmem:[%s10068_s5 + $0x40] sm:$0xff] }
 0x343   :  { %v9386_v25 = vld [vmem:[%s10068_s5 + $0xa0] sm:$0xff] }
 0x345   :  { %v4481_v52 = vpop.f32.mrf.mxu2  ;;  %5479 = vmatpush.bf16.msra.mxu2 %v8397_v44  ;;  %v9351_v44 = vld [vmem:[#allocation4 + $0x38c] sm:$0xf] }
 0x349   :  { %v4492_v53 = vpop.f32.mrf.mxu0  ;;  %5480 = vmatpush.bf16.msra.mxu2 %v8381_v45  ;;  %v9347_v45 = vld [vmem:[#allocation4 + $0x36c] sm:$0xf] }
 0x34a   :  { %v4493_v21 = vadd.f32 %v4492_v53, %v4480_v11  ;;  %v8509_v53 = vor.u32 %v9351_v44, %v8506_v48 }
 0x34b   :  { %v5304_v8 = vpop.f32.mrf.mxu3 }
 0x34c   :  { %v4506_v35 = vadd.f32 %v9923_v5, %v4493_v21  ;;  %v8330_v5 = vld [vmem:[#allocation4 + $0x238] sm:$0xf0]  ;;  %v5305_v49 = vadd.f32 %v5304_v8, %v4647_v30 }
 0x34d   :  { %5481 = vmatpush.bf16.msra.mxu2 %v8365_v54  ;;  %v8333_v15 = vor.u32 %v9307_v12, %v8330_v5  ;;  %v8490_v21 = vld [vmem:[#allocation4 + $0x378] sm:$0xf0]  ;;  %v8445_v12 = vor.u32 %v9335_v3, %v8442_v57 }
 0x34e   :  { %v4512_v58 = vmax.f32 %v4506_v35, 0.0  ;;  %v8493_v56 = vor.u32 %v9347_v45, %v8490_v21  ;;  %v9343_v35 = vld [vmem:[#allocation4 + $0x34c] sm:$0xf]  ;;  %v9382_v21 = vld [vmem:[%s10068_s5 + $0x80] sm:$0xff] }
 0x34f   :  { %v8477_v54 = vor.u32 %v9343_v35, %v8474_v9  ;;  %v9395_v9 = vld [vmem:[%s10068_s5 + $0xe8] sm:$0xff] }
 0x350   :  { %v9933_v4 = vpack.c.bf16 %v4512_v58, %v4512_v58  ;;  %v9339_v58 = vld [vmem:[#allocation4 + $0x32c] sm:$0xf] }
 0x351   :  { %v4494_v1 = vpop.f32.mrf.mxu0  ;;  %5482 = vmatpush.bf16.msra.mxu2 %v8349_v37 }
 0x352   :  { %5342 = vmatmul.bf16.vlgmr.msrb.gmra.mxu0 %v9933_v4 }
 0x353   :  { %5438 = vmatpush.bf16.msrb.mxu0 %v8553_v47  ;;  %v5306_v26 = vpop.f32.mrf.mxu3  ;;  %v8461_v47 = vor.u32 %v9339_v58, %v8458_v33 }
 0x355   :  { %5483 = vmatpush.bf16.msra.mxu2 %v8333_v15  ;;  %v9373_v15 = vld [vmem:[%s10068_s5 + $0x38] sm:$0xff] }
 0x356   :  { %5771 = vmatpush.bf16.msrb.mxu3 %v9373_v15 }
 0x357   :  { %5439 = vmatpush.bf16.msrb.mxu0 %v8537_v13 }
 0x359   :  { %5484 = vmatpush.bf16.msra.mxu2 %v8317_v38  ;;  %v9370_v38 = vld [vmem:[%s10068_s5 + $0x20] sm:$0xff] }
 0x35a   :  { %5772 = vmatpush.bf16.msrb.mxu3 %v9372_v34 }
 0x35b   :  { %5440 = vmatpush.bf16.msrb.mxu0 %v8521_v20  ;;  %v5356_v39 = vpop.f32.mrf.mxu3 }
 0x35c   :  { %5485 = vmatmul.bf16.vlgmr.msra.gmra.mxu2 %v9918_v46  ;;  %v9359_v46 = vld [vmem:[#allocation4 + $0x3cc] sm:$0xf]  ;;  %v5357_v1 = vadd.f32 %v5356_v39, %v4648_v59  ;;  %v9393_v59 = vld [vmem:[%s10068_s5 + $0xd8] sm:$0xff] }
 0x35d   :  { %v8541_v16 = vor.u32 %v9359_v46, %v8538_v7  ;;  %v9379_v39 = vld [vmem:[%s10068_s5 + $0x68] sm:$0xff] }
 0x35f   :  { %5441 = vmatpush.bf16.msrb.mxu0 %v8505_v51  ;;  %v9369_v51 = vld [vmem:[%s10068_s5 + $0x18] sm:$0xff] }
 0x362   :  { %5394 = vmatmul.bf16.vlgmr.msra.gmra.mxu0 %v9933_v4 }
 0x363   :  { %5442 = vmatpush.bf16.msrb.mxu0 %v8489_v29  ;;  %v5358_v18 = vpop.f32.mrf.mxu3  ;;  %v9380_v29 = vld [vmem:[%s10068_s5 + $0x70] sm:$0xff] }
 0x364   :  { %5785 = vmatpush.bf16.msrb.mxu1 %v9380_v29  ;;  %v9389_v18 = vld [vmem:[%s10068_s5 + $0xb8] sm:$0xff] }
 0x365   :  { %5797 = vmatpush.bf16.msrb.mxu2 %v9389_v18 }
 0x367   :  { %5443 = vmatpush.bf16.msrb.mxu0 %v8473_v40  ;;  %v4650_v40 = vperm.slane %v9941_v22, 3  ;;  %v9375_v22 = vld [vmem:[%s10068_s5 + $0x48] sm:$0xff] }
 0x368   :  { %5786 = vmatpush.bf16.msrb.mxu1 %v9379_v39  ;;  %v9403_v39 = vld [vmem:[%s10069_s6] ss:$0 sm:$0xff] }
 0x36b   :  { %5444 = vmatpush.bf16.msrb.mxu0 %v8457_v42 }
 0x36c   :  { %5787 = vmatpush.bf16.msrb.mxu1 %v9378_v41 }
 0x36d   :  { %v5317_v52 = vpop.f32.mrf.mxu1 }
 0x36e   :  { %v9945_v11 = vadd.f32 %v5317_v52, %v5305_v49  ;;  %v9383_v49 = vld [vmem:[%s10068_s5 + $0x88] sm:$0xff] }
 0x36f   :  { %5445 = vmatpush.bf16.msrb.mxu0 %v8441_v43  ;;  %v5408_v6 = vpop.f32.mrf.mxu3  ;;  %v9376_v43 = vld [vmem:[%s10068_s5 + $0x50] sm:$0xff] }
 0x370   :  { %v5409_v2 = vadd.f32 %v5408_v6, %v4649_v14  ;;  %5788 = vmatpush.bf16.msrb.mxu1 %v9377_v61  ;;  %v9385_v6 = vld [vmem:[%s10068_s5 + $0x98] sm:$0xff] }
 0x372   :  { %5446 = vmatmul.bf16.vlgmr.msrb.gmra.mxu0 %v9933_v4 }
 0x373   :  { %5490 = vmatpush.bf16.msra.mxu0 %v8557_v55  ;;  %v9388_v55 = vld [vmem:[%s10068_s5 + $0xb0] sm:$0xff] }
 0x374   :  { %5789 = vmatpush.bf16.msrb.mxu1 %v9376_v43  ;;  %5798 = vmatpush.bf16.msrb.mxu2 %v9388_v55 }
 0x375   :  { %v5319_v36 = vpop.f32.mrf.mxu1 }
 0x376   :  { %v9394_v36 = vld [vmem:[%s10068_s5 + $0xe0] sm:$0xff] }
 0x377   :  { %5491 = vmatpush.bf16.msra.mxu0 %v8541_v16  ;;  %v5410_v27 = vpop.f32.mrf.mxu3  ;;  %v9387_v16 = vld [vmem:[%s10068_s5 + $0xa8] sm:$0xff] }
 0x378   :  { %5790 = vmatpush.bf16.msrb.mxu1 %v9375_v22  ;;  %5799 = vmatpush.bf16.msrb.mxu2 %v9387_v16  ;;  %v9397_v27 = vld [vmem:[%s10068_s5 + $0xf8] sm:$0xff] }
 0x37b   :  { %5492 = vmatpush.bf16.msra.mxu0 %v8525_v28  ;;  %v9384_v28 = vld [vmem:[%s10068_s5 + $0x90] sm:$0xff] }
 0x37c   :  { %5791 = vmatpush.bf16.msrb.mxu1 %v9374_v50  ;;  %5800 = vmatpush.bf16.msrb.mxu2 %v9386_v25 }
 0x37d   :  { %v5369_v37 = vpop.f32.mrf.mxu1 }
 0x37e   :  { %v9948_v8 = vadd.f32 %v5369_v37, %v5357_v1  ;;  %v9392_v1 = vld [vmem:[%s10068_s5 + $0xd0] sm:$0xff] }
 0x37f   :  { %5493 = vmatpush.bf16.msra.mxu0 %v8509_v53 }
 0x380   :  { %5801 = vmatpush.bf16.msrb.mxu2 %v9385_v6 }
 0x383   :  { %5494 = vmatpush.bf16.msra.mxu0 %v8493_v56 }
 0x384   :  { %5802 = vmatpush.bf16.msrb.mxu2 %v9384_v28 }
 0x385   :  { %v5371_v5 = vpop.f32.mrf.mxu1 }
 0x387   :  { %5495 = vmatpush.bf16.msra.mxu0 %v8477_v54 }
 0x388   :  { %5803 = vmatpush.bf16.msrb.mxu2 %v9383_v49 }
 0x38b   :  { %5496 = vmatpush.bf16.msra.mxu0 %v8461_v47 }
 0x38c   :  { %5804 = vmatpush.bf16.msrb.mxu2 %v9382_v21 }
 0x38e   :  { %v5421_v17 = vpop.f32.mrf.mxu1 }
 0x38f   :  { %5497 = vmatpush.bf16.msra.mxu0 %v8445_v12  ;;  %v5460_v13 = vpop.f32.mrf.mxu3  ;;  %v9955_v20 = vadd.f32 %v5421_v17, %v5409_v2 }
 0x390   :  { %v5461_v42 = vadd.f32 %v5460_v13, %v4650_v40  ;;  %v9390_v13 = vld [vmem:[%s10068_s5 + $0xc0] sm:$0xff] }
 0x392   :  { %5498 = vmatmul.bf16.vlgmr.msra.gmra.mxu0 %v9933_v4  ;;  %v9371_v4 = vld [vmem:[%s10068_s5 + $0x28] sm:$0xff] }
 0x393   :  { %5773 = vmatpush.bf16.msrb.mxu3 %v9371_v4  ;;  %5810 = vmatpush.bf16.msrb.mxu0 %v9397_v27 }
 0x396   :  { %v5423_v24 = vpop.f32.mrf.mxu1 }
 0x397   :  { %v5462_v19 = vpop.f32.mrf.mxu3  ;;  %5774 = vmatpush.bf16.msrb.mxu3 %v9370_v38 }
 0x39b   :  { %5775 = vmatpush.bf16.msrb.mxu3 %v9369_v51 }
 0x39f   :  { %v5330_v26 = vpop.f32.mrf.mxu2  ;;  %5776 = vmatpush.bf16.msrb.mxu3 %v9368_v31 }
 0x3a0   :  { %v5331_v44 = vadd.f32 %v5330_v26, %v9945_v11  ;;  %v9396_v11 = vld [vmem:[%s10068_s5 + $0xf0] sm:$0xff] }
 0x3a1   :  { %5811 = vmatpush.bf16.msrb.mxu0 %v9396_v11 }
 0x3a3   :  { %5777 = vmatpush.bf16.msrb.mxu3 %v9367_v32 }
 0x3a5   :  { %5812 = vmatpush.bf16.msrb.mxu0 %v9395_v9 }
 0x3a7   :  { %v5332_v63 = vpop.f32.mrf.mxu2  ;;  %5778 = vmatpush.bf16.msrb.mxu3 %v9366_v10 }
 0x3a9   :  { %5813 = vmatpush.bf16.msrb.mxu0 %v9394_v36 }
 0x3ad   :  { %5814 = vmatpush.bf16.msrb.mxu0 %v9393_v59 }
 0x3ae   :  { %v5473_v0 = vpop.f32.mrf.mxu1 }
 0x3af   :  { %v9991_v60 = vadd.f32 %v5473_v0, %v5461_v42  ;;  %v5382_v23 = vpop.f32.mrf.mxu2 }
 0x3b0   :  { %v5383_v54 = vadd.f32 %v5382_v23, %v9948_v8  ;;  %v9391_v8 = vld [vmem:[%s10068_s5 + $0xc8] sm:$0xff] }
 0x3b1   :  { %5815 = vmatpush.bf16.msrb.mxu0 %v9392_v1 }
 0x3b5   :  { %5816 = vmatpush.bf16.msrb.mxu0 %v9391_v8 }
 0x3b6   :  { %v5475_v46 = vpop.f32.mrf.mxu1 }
 0x3b7   :  { %v5384_v7 = vpop.f32.mrf.mxu2 }
 0x3b9   :  { %5817 = vmatpush.bf16.msrb.mxu0 %v9390_v13 }
 0x3bf   :  { %v5434_v30 = vpop.f32.mrf.mxu2 }
 0x3c0   :  { %v5435_v5 = vadd.f32 %v5434_v30, %v9955_v20 }
 0x3c7   :  { %v5436_v48 = vpop.f32.mrf.mxu2 }
 0x3cf   :  { %v5343_v52 = vpop.f32.mrf.mxu0 }
 0x3d0   :  { %v5344_v53 = vadd.f32 %v5343_v52, %v5331_v44 }
 0x3d2   :  { %v5503_v45 = vmax.f32 %v5344_v53, 0.0 }
 0x3d4   :  { %v5507_v56 = vpack.c.bf16 %v5503_v45, %v5503_v45 }
 0x3d6   :  { %5779 = vmatmul.bf16.vlgmr.msrb.gmra.mxu3 %v5507_v56 }
 0x3d7   :  { %v5345_v35 = vpop.f32.mrf.mxu0 }
 0x3df   :  { %v5395_v58 = vpop.f32.mrf.mxu0  ;;  %v5486_v3 = vpop.f32.mrf.mxu2 }
 0x3e0   :  { %v5396_v33 = vadd.f32 %v5395_v58, %v5383_v54  ;;  %v5487_v34 = vadd.f32 %v5486_v3, %v9991_v60 }
 0x3e2   :  { %v5504_v47 = vmax.f32 %v5396_v33, 0.0 }
 0x3e4   :  { %v5508_v57 = vpack.c.bf16 %v5504_v47, %v5504_v47 }
 0x3e6   :  { %5792 = vmatmul.bf16.vlgmr.msrb.gmra.mxu1 %v5508_v57 }
 0x3e7   :  { %v5397_v37 = vpop.f32.mrf.mxu0  ;;  %v5488_v12 = vpop.f32.mrf.mxu2 }
 0x3ef   :  { %v5447_v14 = vpop.f32.mrf.mxu0 }
 0x3f0   :  { %v5448_v2 = vadd.f32 %v5447_v14, %v5435_v5 }
 0x3f2   :  { %v5505_v15 = vmax.f32 %v5448_v2, 0.0 }
 0x3f4   :  { %v5509_v17 = vpack.c.bf16 %v5505_v15, %v5505_v15 }
 0x3f6   :  { %5805 = vmatmul.bf16.vlgmr.msrb.gmra.mxu2 %v5509_v17 }
 0x3f7   :  { %v5449_v19 = vpop.f32.mrf.mxu0 }
 0x40f   :  { %v5499_v4 = vpop.f32.mrf.mxu0 }
 0x410   :  { %v5500_v24 = vadd.f32 %v5499_v4, %v5487_v34 }
 0x412   :  { %v5506_v38 = vmax.f32 %v5500_v24, 0.0 }
 0x414   :  { %v5510_v26 = vpack.c.bf16 %v5506_v38, %v5506_v38 }
 0x416   :  { %5818 = vmatmul.bf16.vlgmr.msrb.gmra.mxu0 %v5510_v26 }
 0x417   :  { %v5501_v51 = vpop.f32.mrf.mxu0 }
 0x459   :  { %v5780_v20 = vpop.f32.mrf.mxu3 }
 0x45a   :  { %v5781_v40 = vadd.f32 %v9403_v39, %v5780_v20 }
 0x461   :  { %v5782_v62 = vpop.f32.mrf.mxu3 }
 0x463   :  { %v5793_v31 = vpop.f32.mrf.mxu1 }
 0x464   :  { %v5794_v10 = vadd.f32 %v5793_v31, %v5781_v40 }
 0x46b   :  { %v5795_v29 = vpop.f32.mrf.mxu1 }
 0x479   :  { %v5806_v63 = vpop.f32.mrf.mxu2 }
 0x47a   :  { %v5807_v41 = vadd.f32 %v5806_v63, %v5794_v10 }
 0x481   :  { %v5808_v32 = vpop.f32.mrf.mxu2 }
 0x493   :  { %v5819_v42 = vpop.f32.mrf.mxu0 }
 0x494   :  { %v5820_v0 = vadd.f32 %v5819_v42, %v5807_v41 }
 0x496   :  { %5823 = vst [vmem:[%s10070_s7 + $0x8] sm:$0xff] %v5820_v0 }
 0x49b   :  { %v5821_v60 = vpop.f32.mrf.mxu0 }
 0x49c   :  { %5828 = vsyncpa [#allocation3], 1 }
 0x49d   :  { %5829 = vsyncpa [#allocation5], 1 }

// kernel: mlp_forward.1
= control target key start
LH: loop header
LB: loop body
LE: loop exit
PB: predicated region body
PF: predicated region fallthrough
CT: control target
= control target key end

     0   :  { %12 = vsyncpa [#allocation3], 0  ;;  %s10063_s0 = inlined_call_operand.vmem [shape: f32[16,784], index: 0, kind: input, shape index: {}]   ;;  %s10064_s1 = inlined_call_operand.hbm [shape: bf16[784,512], index: 1, kind: input, shape index: {}]   ;;  %s10065_s2 = inlined_call_operand.vmem [shape: f32[1,512], index: 2, kind: input, shape index: {}]   ;;  %s10066_s3 = inlined_call_operand.hbm [shape: bf16[512,512], index: 3, kind: input, shape index: {}]   ;;  %s10067_s4 = inlined_call_operand.vmem [shape: f32[1,512], index: 4, kind: input, shape index: {}]   ;;  %s10068_s5 = inlined_call_operand.vmem [shape: bf16[512,128], index: 5, kind: input, shape index: {}]   ;;  %s10069_s6 = inlined_call_operand.vmem [shape: f32[1,128], index: 6, kind: input, shape index: {}]   ;;  %s10070_s7 = inlined_call_operand.vmem [shape: f32[16,128], index: 7, kind: output, shape index: {}]  }
   0x1   :  { %s20_s26 = sshll.u32 %s10064_s1, 4  ;;  %s21_s26 = int_to_ptr.hbm [resolvable:$true] %s20_s26 }
   0x2   :  { %13 = vsyncpa [#allocation5], 0  ;;  %s9456_s27 = smov [#allocation2]   ;;  %s35_s8 = sshll.u32 %s10066_s3, 4  ;;  %s36_s8 = int_to_ptr.hbm [resolvable:$true] %s35_s8 }
   0x3   :  { %s22_s28 = sshll.u32 %s9456_s27, 4  ;;  %s9457_s9 = smov 256   ;;  %s23_s28 = int_to_ptr.vmem [resolvable:$true] %s22_s28 }
   0x4   :  { %s9458_s10 = smov 16   ;;  %s9459_s11 = smov [#allocation4]  }
   0x5   :  { %28 = dma.hbm_to_vmem [thread:$0]  %s21_s26, 25088, %s23_s28, [#allocation3], %s9457_s9, %s9457_s9, %s9458_s10  }
   0x6   :  { %s37_s12 = sshll.u32 %s9459_s11, 4  ;;  %s38_s12 = int_to_ptr.vmem [resolvable:$true] %s37_s12 }
   0x7   :  { %43 = dma.hbm_to_vmem [thread:$0]  %s36_s8, 16384, %s38_s12, [#allocation5], %s9457_s9, %s9457_s9, %s9458_s10  }
   0x8   :  { %9452 = dma.done.wait [#allocation3], 25088  }
   0x9   :  { %9453 = vsyncadd [#allocation3], 4294942208 }
   0xa   :  { %9454 = dma.done.wait [#allocation5], 16384  }
   0xb   :  { %9455 = vsyncadd [#allocation5], 4294950912  ;;  %v5944_v0 = vld [vmem:[#allocation2 + $0xe0] sm:$0xf]  ;;  %v8716_v1 = vld [vmem:[#allocation2 + $0xec] sm:$0xf0] }
   0xc   :  { %v6072_v2 = vld [vmem:[#allocation2 + $0x1e0] sm:$0xf]  ;;  %v5945_v3 = vor.u32 %v8716_v1, %v5944_v0  ;;  %v8748_v4 = vld [vmem:[#allocation2 + $0x1ec] sm:$0xf0]  ;;  %vm1259_vm0 = vcmask 130048  }
   0xd   :  { %v6200_v5 = vld [vmem:[#allocation2 + $0x2e0] sm:$0xf]  ;;  %v8780_v6 = vld [vmem:[#allocation2 + $0x2ec] sm:$0xf0]  ;;  %v6073_v7 = vor.u32 %v8748_v4, %v6072_v2 }
   0xe   :  { %v6201_v8 = vor.u32 %v8780_v6, %v6200_v5  ;;  %v6328_v9 = vld [vmem:[#allocation2 + $0x3e0] sm:$0xf]  ;;  %v8812_v10 = vld [vmem:[#allocation2 + $0x3ec] sm:$0xf0]  ;;  %1263 = vmatpush.bf16.msra.mxu0 %v5945_v3 }
   0xf   :  { %v5928_v11 = vld [vmem:[#allocation2 + $0xc0] sm:$0xf]  ;;  %v6329_v12 = vor.u32 %v8812_v10, %v6328_v9  ;;  %v8712_v13 = vld [vmem:[#allocation2 + $0xcc] sm:$0xf0]  ;;  %1276 = vmatpush.bf16.msra.mxu1 %v6073_v7 }
  0x10   :  { %v6056_v14 = vld [vmem:[#allocation2 + $0x1c0] sm:$0xf]  ;;  %v8744_v15 = vld [vmem:[#allocation2 + $0x1cc] sm:$0xf0]  ;;  %1289 = vmatpush.bf16.msra.mxu2 %v6201_v8  ;;  %v5929_v16 = vor.u32 %v8712_v13, %v5928_v11 }
  0x11   :  { %v6057_v17 = vor.u32 %v8744_v15, %v6056_v14  ;;  %v6184_v18 = vld [vmem:[#allocation2 + $0x2c0] sm:$0xf]  ;;  %v8776_v19 = vld [vmem:[#allocation2 + $0x2cc] sm:$0xf0]  ;;  %1302 = vmatpush.bf16.msra.mxu3 %v6329_v12 }
  0x12   :  { %v6312_v20 = vld [vmem:[#allocation2 + $0x3c0] sm:$0xf]  ;;  %v6185_v21 = vor.u32 %v8776_v19, %v6184_v18  ;;  %v8808_v22 = vld [vmem:[#allocation2 + $0x3cc] sm:$0xf0]  ;;  %1264 = vmatpush.bf16.msra.mxu0 %v5929_v16 }
  0x13   :  { %v5912_v23 = vld [vmem:[#allocation2 + $0xa0] sm:$0xf]  ;;  %v8708_v24 = vld [vmem:[#allocation2 + $0xac] sm:$0xf0]  ;;  %v6313_v25 = vor.u32 %v8808_v22, %v6312_v20  ;;  %1277 = vmatpush.bf16.msra.mxu1 %v6057_v17 }
  0x14   :  { %v6040_v26 = vld [vmem:[#allocation2 + $0x1a0] sm:$0xf]  ;;  %v8740_v27 = vld [vmem:[#allocation2 + $0x1ac] sm:$0xf0]  ;;  %v5913_v29 = vor.u32 %v8708_v24, %v5912_v23  ;;  %1290 = vmatpush.bf16.msra.mxu2 %v6185_v21 }
  0x15   :  { %v6168_v28 = vld [vmem:[#allocation2 + $0x2a0] sm:$0xf]  ;;  %v8772_v30 = vld [vmem:[#allocation2 + $0x2ac] sm:$0xf0]  ;;  %v6041_v33 = vor.u32 %v8740_v27, %v6040_v26  ;;  %1303 = vmatpush.bf16.msra.mxu3 %v6313_v25 }
  0x16   :  { %v6296_v31 = vld [vmem:[#allocation2 + $0x3a0] sm:$0xf]  ;;  %v8804_v32 = vld [vmem:[#allocation2 + $0x3ac] sm:$0xf0]  ;;  %v6169_v34 = vor.u32 %v8772_v30, %v6168_v28  ;;  %1265 = vmatpush.bf16.msra.mxu0 %v5913_v29 }
  0x17   :  { %v5896_v35 = vld [vmem:[#allocation2 + $0x80] sm:$0xf]  ;;  %v8704_v36 = vld [vmem:[#allocation2 + $0x8c] sm:$0xf0]  ;;  %v6297_v38 = vor.u32 %v8804_v32, %v6296_v31  ;;  %1278 = vmatpush.bf16.msra.mxu1 %v6041_v33  ;;  %v8714_v33 = vld [vmem:[#allocation2 + $0xe4] sm:$0xf] }
  0x18   :  { %v6024_v37 = vld [vmem:[#allocation2 + $0x180] sm:$0xf]  ;;  %v8736_v39 = vld [vmem:[#allocation2 + $0x18c] sm:$0xf0]  ;;  %v5897_v44 = vor.u32 %v8704_v36, %v5896_v35  ;;  %1291 = vmatpush.bf16.msra.mxu2 %v6169_v34  ;;  %v5946_v34 = vld [vmem:[#allocation2 + $0xf0] sm:$0xf0] }
  0x19   :  { %v6152_v40 = vld [vmem:[#allocation2 + $0x280] sm:$0xf]  ;;  %v8768_v41 = vld [vmem:[#allocation2 + $0x28c] sm:$0xf0]  ;;  %v6025_v45 = vor.u32 %v8736_v39, %v6024_v37  ;;  %1304 = vmatpush.bf16.msra.mxu3 %v6297_v38 }
  0x1a   :  { %v6280_v42 = vld [vmem:[#allocation2 + $0x380] sm:$0xf]  ;;  %v8800_v43 = vld [vmem:[#allocation2 + $0x38c] sm:$0xf0]  ;;  %v6153_v46 = vor.u32 %v8768_v41, %v6152_v40  ;;  %1266 = vmatpush.bf16.msra.mxu0 %v5897_v44  ;;  %v6074_v44 = vld [vmem:[#allocation2 + $0x1f0] sm:$0xf0] }
  0x1b   :  { %v5880_v47 = vld [vmem:[#allocation2 + $0x60] sm:$0xf]  ;;  %v8700_v48 = vld [vmem:[#allocation2 + $0x6c] sm:$0xf0]  ;;  %v6281_v50 = vor.u32 %v8800_v43, %v6280_v42  ;;  %1279 = vmatpush.bf16.msra.mxu1 %v6025_v45  ;;  %v8746_v43 = vld [vmem:[#allocation2 + $0x1e4] sm:$0xf] }
  0x1c   :  { %v6008_v49 = vld [vmem:[#allocation2 + $0x160] sm:$0xf]  ;;  %v8732_v51 = vld [vmem:[#allocation2 + $0x16c] sm:$0xf0]  ;;  %v5881_v56 = vor.u32 %v8700_v48, %v5880_v47  ;;  %1292 = vmatpush.bf16.msra.mxu2 %v6153_v46  ;;  %v62_v45 = vld [vmem:[%s10063_s0 + $0x18] sm:$0xff]  ;;  %v5949_v47 = vor.u32 %v8714_v33, %v5946_v34 }
  0x1d   :  { %v6136_v52 = vld [vmem:[#allocation2 + $0x260] sm:$0xf]  ;;  %v8764_v53 = vld [vmem:[#allocation2 + $0x26c] sm:$0xf0]  ;;  %v6009_v57 = vor.u32 %v8732_v51, %v6008_v49  ;;  %1305 = vmatpush.bf16.msra.mxu3 %v6281_v50 }
  0x1e   :  { %v6264_v54 = vld [vmem:[#allocation2 + $0x360] sm:$0xf]  ;;  %v8796_v55 = vld [vmem:[#allocation2 + $0x36c] sm:$0xf0]  ;;  %v6137_v58 = vor.u32 %v8764_v53, %v6136_v52  ;;  %1267 = vmatpush.bf16.msra.mxu0 %v5881_v56  ;;  %v8710_v53 = vld [vmem:[#allocation2 + $0xc4] sm:$0xf] }
  0x1f   :  { %v5864_v59 = vld [vmem:[#allocation2 + $0x40] sm:$0xf]  ;;  %v8696_v60 = vld [vmem:[#allocation2 + $0x4c] sm:$0xf0]  ;;  %v6265_v62 = vor.u32 %v8796_v55, %v6264_v54  ;;  %1280 = vmatpush.bf16.msra.mxu1 %v6009_v57  ;;  %v5930_v54 = vld [vmem:[#allocation2 + $0xd0] sm:$0xf0]  ;;  %v9519_v57 = vpack.c.bf16 %v62_v45, %v62_v45 }
  0x20   :  { %v5992_v61 = vld [vmem:[#allocation2 + $0x140] sm:$0xf]  ;;  %v8728_v63 = vld [vmem:[#allocation2 + $0x14c] sm:$0xf0]  ;;  %v5865_v4 = vor.u32 %v8696_v60, %v5864_v59  ;;  %1293 = vmatpush.bf16.msra.mxu2 %v6137_v58  ;;  %v60_v58 = vld [vmem:[%s10063_s0 + $0x8] sm:$0xff]  ;;  %v6077_v59 = vor.u32 %v8746_v43, %v6074_v44 }
  0x21   :  { %v6120_v0 = vld [vmem:[#allocation2 + $0x240] sm:$0xf]  ;;  %v8760_v1 = vld [vmem:[#allocation2 + $0x24c] sm:$0xf0]  ;;  %v5993_v5 = vor.u32 %v8728_v63, %v5992_v61  ;;  %1306 = vmatpush.bf16.msra.mxu3 %v6265_v62  ;;  %v8742_v61 = vld [vmem:[#allocation2 + $0x1c4] sm:$0xf] }
  0x22   :  { %v6248_v2 = vld [vmem:[#allocation2 + $0x340] sm:$0xf]  ;;  %v8792_v3 = vld [vmem:[#allocation2 + $0x34c] sm:$0xf0]  ;;  %v6121_v6 = vor.u32 %v8760_v1, %v6120_v0  ;;  %1268 = vmatpush.bf16.msra.mxu0 %v5865_v4  ;;  %v6058_v62 = vld [vmem:[#allocation2 + $0x1d0] sm:$0xf0]  ;;  %v5933_v0 = vor.u32 %v8710_v53, %v5930_v54 }
  0x23   :  { %v5848_v7 = vld [vmem:[#allocation2 + $0x20] sm:$0xf]  ;;  %v8692_v8 = vld [vmem:[#allocation2 + $0x2c] sm:$0xf0]  ;;  %v6249_v10 = vor.u32 %v8792_v3, %v6248_v2  ;;  %1281 = vmatpush.bf16.msra.mxu1 %v5993_v5  ;;  %v8706_v5 = vld [vmem:[#allocation2 + $0xa4] sm:$0xf] }
  0x24   :  { %v5976_v9 = vld [vmem:[#allocation2 + $0x120] sm:$0xf]  ;;  %v8724_v11 = vld [vmem:[#allocation2 + $0x12c] sm:$0xf0]  ;;  %v5849_v16 = vor.u32 %v8692_v8, %v5848_v7  ;;  %1294 = vmatpush.bf16.msra.mxu2 %v6121_v6  ;;  %v5914_v6 = vld [vmem:[#allocation2 + $0xb0] sm:$0xf0]  ;;  %v9526_v7 = vpack.c.bf16 %v60_v58, %v60_v58  ;;  %v6061_v8 = vor.u32 %v8742_v61, %v6058_v62 }
  0x25   :  { %v6104_v12 = vld [vmem:[#allocation2 + $0x220] sm:$0xf]  ;;  %v8756_v13 = vld [vmem:[#allocation2 + $0x22c] sm:$0xf0]  ;;  %v5977_v20 = vor.u32 %v8724_v11, %v5976_v9  ;;  %1307 = vmatpush.bf16.msra.mxu3 %v6249_v10  ;;  %v8738_v10 = vld [vmem:[#allocation2 + $0x1a4] sm:$0xf] }
  0x26   :  { %v6232_v14 = vld [vmem:[#allocation2 + $0x320] sm:$0xf]  ;;  %v8788_v15 = vld [vmem:[#allocation2 + $0x32c] sm:$0xf0]  ;;  %v6105_v21 = vor.u32 %v8756_v13, %v6104_v12  ;;  %1269 = vmatpush.bf16.msra.mxu0 %v5849_v16  ;;  %v6042_v11 = vld [vmem:[#allocation2 + $0x1b0] sm:$0xf0]  ;;  %v5917_v13 = vor.u32 %v8706_v5, %v5914_v6 }
  0x27   :  { %v5832_v17 = vld [vmem:[#allocation2] sm:$0xf]  ;;  %v8688_v18 = vld [vmem:[#allocation2 + $0xc] sm:$0xf0]  ;;  %v6233_v25 = vor.u32 %v8788_v15, %v6232_v14  ;;  %1282 = vmatpush.bf16.msra.mxu1 %v5977_v20  ;;  %v6045_v20 = vor.u32 %v8738_v10, %v6042_v11  ;;  %v8694_v43 = vld [vmem:[#allocation2 + $0x44] sm:$0xf] }
  0x28   :  { %v5960_v19 = vld [vmem:[#allocation2 + $0x100] sm:$0xf]  ;;  %v8720_v22 = vld [vmem:[#allocation2 + $0x10c] sm:$0xf0]  ;;  %v5833_v32 = vor.u32 %v8688_v18, %v5832_v17  ;;  %1295 = vmatpush.bf16.msra.mxu2 %v6105_v21  ;;  %v8702_v18 = vld [vmem:[#allocation2 + $0x84] sm:$0xf] }
  0x29   :  { %v6088_v23 = vld [vmem:[#allocation2 + $0x200] sm:$0xf]  ;;  %v8752_v24 = vld [vmem:[#allocation2 + $0x20c] sm:$0xf0]  ;;  %v5961_v36 = vor.u32 %v8720_v22, %v5960_v19  ;;  %1308 = vmatpush.bf16.msra.mxu3 %v6233_v25  ;;  %v5898_v19 = vld [vmem:[#allocation2 + $0x90] sm:$0xf0] }
  0x2a   :  { %v6216_v26 = vld [vmem:[#allocation2 + $0x300] sm:$0xf]  ;;  %v8784_v27 = vld [vmem:[#allocation2 + $0x30c] sm:$0xf0]  ;;  %v6089_v37 = vor.u32 %v8752_v24, %v6088_v23  ;;  %1270 = vmatpush.bf16.msra.mxu0 %v5833_v32  ;;  %v8734_v22 = vld [vmem:[#allocation2 + $0x184] sm:$0xf]  ;;  %v5901_v25 = vor.u32 %v8702_v18, %v5898_v19 }
  0x2b   :  { %v6456_v28 = vld [vmem:[#allocation2 + $0x4e0] sm:$0xf]  ;;  %v8844_v29 = vld [vmem:[#allocation2 + $0x4ec] sm:$0xf0]  ;;  %v6217_v41 = vor.u32 %v8784_v27, %v6216_v26  ;;  %1283 = vmatpush.bf16.msra.mxu1 %v5961_v36  ;;  %v6026_v23 = vld [vmem:[#allocation2 + $0x190] sm:$0xf0] }
  0x2c   :  { %v6584_v30 = vld [vmem:[#allocation2 + $0x5e0] sm:$0xf]  ;;  %v8876_v31 = vld [vmem:[#allocation2 + $0x5ec] sm:$0xf0]  ;;  %v6457_v42 = vor.u32 %v8844_v29, %v6456_v28  ;;  %1296 = vmatpush.bf16.msra.mxu2 %v6089_v37  ;;  %v6029_v33 = vor.u32 %v8734_v22, %v6026_v23  ;;  %v6010_v36 = vld [vmem:[#allocation2 + $0x170] sm:$0xf0] }
  0x2d   :  { %v61_v35 = vld [vmem:[%s10063_s0 + $0x10] sm:$0xff]  ;;  %v6600_v38 = vld [vmem:[#allocation2 + $0x600] sm:$0xf]  ;;  %v6585_v46 = vor.u32 %v8876_v31, %v6584_v30  ;;  %1309 = vmatpush.bf16.msra.mxu3 %v6217_v41  ;;  %v8698_v30 = vld [vmem:[#allocation2 + $0x64] sm:$0xf] }
  0x2e   :  { %v8880_v39 = vld [vmem:[#allocation2 + $0x60c] sm:$0xf0]  ;;  %v59_v40 = vld [vmem:[%s10063_s0] sm:$0xff]  ;;  %v9515_v51 = vpack.c.bf16 %v61_v35, %v61_v35  ;;  %1315 = vmatpush.bf16.msrb.mxu0 %v6457_v42  ;;  %1284 = vmatmul.bf16.vlgmr.msra.gmra.mxu1 %v9526_v7  ;;  %v5882_v31 = vld [vmem:[#allocation2 + $0x70] sm:$0xf0] }
  0x2f   :  { %v6440_v48 = vld [vmem:[#allocation2 + $0x4c0] sm:$0xf]  ;;  %v8840_v49 = vld [vmem:[#allocation2 + $0x4cc] sm:$0xf0]  ;;  %v9517_v55 = vpack.c.bf16 %v59_v40, %v59_v40  ;;  %v6601_v56 = vor.u32 %v8880_v39, %v6600_v38  ;;  %1328 = vmatpush.bf16.msrb.mxu1 %v6585_v46  ;;  %v8730_v35 = vld [vmem:[#allocation2 + $0x164] sm:$0xf]  ;;  %v5885_v38 = vor.u32 %v8698_v30, %v5882_v31 }
  0x30   :  { %v6568_v50 = vld [vmem:[#allocation2 + $0x5c0] sm:$0xf]  ;;  %v8872_v52 = vld [vmem:[#allocation2 + $0x5cc] sm:$0xf0]  ;;  %v6441_v60 = vor.u32 %v8840_v49, %v6440_v48  ;;  %1297 = vmatmul.bf16.vlgmr.msra.gmra.mxu2 %v9515_v51  ;;  %1310 = vmatmul.bf16.vlgmr.msra.gmra.mxu3 %v9519_v57  ;;  %v5866_v44 = vld [vmem:[#allocation2 + $0x50] sm:$0xf0]  ;;  %v6013_v46 = vor.u32 %v8730_v35, %v6010_v36 }
  0x31   :  { %1354 = vmatpush.bf16.msrb.mxu3 %v5949_v47  ;;  %v6569_v63 = vor.u32 %v8872_v52, %v6568_v50  ;;  %v6424_v1 = vld [vmem:[#allocation2 + $0x4a0] sm:$0xf]  ;;  %v8836_v2 = vld [vmem:[#allocation2 + $0x4ac] sm:$0xf0]  ;;  %1271 = vmatmul.bf16.vlgmr.msra.gmra.mxu0 %v9517_v55  ;;  %v8726_v48 = vld [vmem:[#allocation2 + $0x144] sm:$0xf]  ;;  %v5869_v52 = vor.u32 %v8694_v43, %v5866_v44 }
  0x32   :  { %v6552_v3 = vld [vmem:[#allocation2 + $0x5a0] sm:$0xf]  ;;  %v8868_v4 = vld [vmem:[#allocation2 + $0x5ac] sm:$0xf0]  ;;  %1348 = vmatpush.bf16.msrb.mxu2 %v6601_v56  ;;  %1316 = vmatpush.bf16.msrb.mxu0 %v6441_v60  ;;  %v6425_v9 = vor.u32 %v8836_v2, %v6424_v1  ;;  %v5994_v49 = vld [vmem:[#allocation2 + $0x150] sm:$0xf0] }
  0x33   :  { %1329 = vmatpush.bf16.msrb.mxu1 %v6569_v63  ;;  %v6553_v12 = vor.u32 %v8868_v4, %v6552_v3  ;;  %v6408_v14 = vld [vmem:[#allocation2 + $0x480] sm:$0xf]  ;;  %v8832_v15 = vld [vmem:[#allocation2 + $0x48c] sm:$0xf0]  ;;  %v5850_v60 = vld [vmem:[#allocation2 + $0x30] sm:$0xf0]  ;;  %v5997_v61 = vor.u32 %v8726_v48, %v5994_v49 }
  0x34   :  { %v6536_v16 = vld [vmem:[#allocation2 + $0x580] sm:$0xf]  ;;  %v8864_v17 = vld [vmem:[#allocation2 + $0x58c] sm:$0xf0]  ;;  %v6409_v21 = vor.u32 %v8832_v15, %v6408_v14  ;;  %v8722_v63 = vld [vmem:[#allocation2 + $0x124] sm:$0xf] }
  0x35   :  { %1355 = vmatpush.bf16.msrb.mxu3 %v5933_v0  ;;  %v6537_v24 = vor.u32 %v8864_v17, %v6536_v16  ;;  %v6392_v26 = vld [vmem:[#allocation2 + $0x460] sm:$0xf]  ;;  %v8828_v27 = vld [vmem:[#allocation2 + $0x46c] sm:$0xf0]  ;;  %v5978_v0 = vld [vmem:[#allocation2 + $0x130] sm:$0xf0] }
  0x36   :  { %1367 = vmatpush.bf16.msra.mxu2 %v6077_v59  ;;  %1317 = vmatpush.bf16.msrb.mxu0 %v6425_v9  ;;  %v6520_v28 = vld [vmem:[#allocation2 + $0x560] sm:$0xf]  ;;  %v8860_v29 = vld [vmem:[#allocation2 + $0x56c] sm:$0xf0]  ;;  %v6393_v34 = vor.u32 %v8828_v27, %v6392_v26  ;;  %v8690_v59 = vld [vmem:[#allocation2 + $0x24] sm:$0xf]  ;;  %v5981_v14 = vor.u32 %v8722_v63, %v5978_v0 }
  0x37   :  { %1330 = vmatpush.bf16.msrb.mxu1 %v6553_v12  ;;  %v65_v32 = vld [vmem:[%s10063_s0 + $0x30] sm:$0xff]  ;;  %v6521_v37 = vor.u32 %v8860_v29, %v6520_v28  ;;  %v6376_v39 = vld [vmem:[#allocation2 + $0x440] sm:$0xf]  ;;  %v5853_v3 = vor.u32 %v8690_v59, %v5850_v60  ;;  %v8778_v10 = vld [vmem:[#allocation2 + $0x2e4] sm:$0xf] }
  0x38   :  { %v8824_v40 = vld [vmem:[#allocation2 + $0x44c] sm:$0xf0]  ;;  %v6504_v41 = vld [vmem:[#allocation2 + $0x540] sm:$0xf]  ;;  %v9533_v45 = vpack.c.bf16 %v65_v32, %v65_v32  ;;  %v5834_v9 = vld [vmem:[#allocation2 + $0x10] sm:$0xf0] }
  0x39   :  { %1356 = vmatpush.bf16.msrb.mxu3 %v5917_v13  ;;  %v8856_v42 = vld [vmem:[#allocation2 + $0x54c] sm:$0xf0]  ;;  %v6377_v47 = vor.u32 %v8824_v40, %v6376_v39  ;;  %v6360_v53 = vld [vmem:[#allocation2 + $0x420] sm:$0xf]  ;;  %v6202_v11 = vld [vmem:[#allocation2 + $0x2f0] sm:$0xf0] }
  0x3a   :  { %1368 = vmatpush.bf16.msra.mxu2 %v6061_v8  ;;  %1318 = vmatpush.bf16.msrb.mxu0 %v6409_v21  ;;  %v6505_v50 = vor.u32 %v8856_v42, %v6504_v41  ;;  %v8820_v54 = vld [vmem:[#allocation2 + $0x42c] sm:$0xf0]  ;;  %v6488_v56 = vld [vmem:[#allocation2 + $0x520] sm:$0xf]  ;;  %v8686_v8 = vld [vmem:[#allocation2 + $0x4] sm:$0xf] }
  0x3b   :  { %1331 = vmatpush.bf16.msrb.mxu1 %v6537_v24  ;;  %v8852_v58 = vld [vmem:[#allocation2 + $0x52c] sm:$0xf0]  ;;  %v6361_v62 = vor.u32 %v8820_v54, %v6360_v53  ;;  %v6344_v1 = vld [vmem:[#allocation2 + $0x400] sm:$0xf]  ;;  %v8810_v12 = vld [vmem:[#allocation2 + $0x3e4] sm:$0xf]  ;;  %v6205_v24 = vor.u32 %v8778_v10, %v6202_v11 }
  0x3c   :  { %v6489_v2 = vor.u32 %v8852_v58, %v6488_v56  ;;  %v8816_v4 = vld [vmem:[#allocation2 + $0x40c] sm:$0xf0]  ;;  %v6472_v5 = vld [vmem:[#allocation2 + $0x500] sm:$0xf]  ;;  %v6330_v13 = vld [vmem:[#allocation2 + $0x3f0] sm:$0xf0] }
  0x3d   :  { %1357 = vmatpush.bf16.msrb.mxu3 %v5901_v25  ;;  %v8848_v6 = vld [vmem:[#allocation2 + $0x50c] sm:$0xf0]  ;;  %v6345_v15 = vor.u32 %v8816_v4, %v6344_v1  ;;  %v8842_v16 = vld [vmem:[#allocation2 + $0x4e4] sm:$0xf]  ;;  %v6458_v17 = vld [vmem:[#allocation2 + $0x4f0] sm:$0xf0]  ;;  %v6333_v25 = vor.u32 %v8810_v12, %v6330_v13 }
  0x3e   :  { %1369 = vmatpush.bf16.msra.mxu2 %v6045_v20  ;;  %1319 = vmatpush.bf16.msrb.mxu0 %v6393_v34  ;;  %v63_v18 = vld [vmem:[%s10063_s0 + $0x20] sm:$0xff]  ;;  %v6473_v19 = vor.u32 %v8848_v6, %v6472_v5  ;;  %v5837_v20 = vor.u32 %v8686_v8, %v5834_v9  ;;  %v5962_v22 = vld [vmem:[#allocation2 + $0x110] sm:$0xf0]  ;;  %v64_v23 = vld [vmem:[%s10063_s0 + $0x28] sm:$0xff]  ;;  %v6461_v29 = vor.u32 %v8842_v16, %v6458_v17 }
  0x3f   :  { %1332 = vmatpush.bf16.msrb.mxu1 %v6521_v37  ;;  %v8718_v21 = vld [vmem:[#allocation2 + $0x104] sm:$0xf]  ;;  %v6586_v27 = vld [vmem:[#allocation2 + $0x5f0] sm:$0xf0]  ;;  %v9543_v30 = vpack.c.bf16 %v63_v18, %v63_v18  ;;  %v9545_v35 = vpack.c.bf16 %v64_v23, %v64_v23 }
  0x40   :  { %6614 = vmatmul.msk.bf16.vlgmr.msrb.gmra.mxu2 %vm1259_vm0, %v9533_v45  ;;  %v8874_v26 = vld [vmem:[#allocation2 + $0x5e4] sm:$0xf]  ;;  %v6186_v31 = vld [vmem:[#allocation2 + $0x2d0] sm:$0xf0]  ;;  %v5965_v34 = vor.u32 %v8718_v21, %v5962_v22 }
  0x41   :  { %1358 = vmatpush.bf16.msrb.mxu3 %v5885_v38  ;;  %v8774_v28 = vld [vmem:[#allocation2 + $0x2c4] sm:$0xf]  ;;  %v6442_v37 = vld [vmem:[#allocation2 + $0x4d0] sm:$0xf0]  ;;  %v6589_v38 = vor.u32 %v8874_v26, %v6586_v27 }
  0x42   :  { %1370 = vmatpush.bf16.msra.mxu2 %v6029_v33  ;;  %1320 = vmatpush.bf16.msrb.mxu0 %v6377_v47  ;;  %v8806_v32 = vld [vmem:[#allocation2 + $0x3c4] sm:$0xf]  ;;  %v6314_v33 = vld [vmem:[#allocation2 + $0x3d0] sm:$0xf0]  ;;  %v6189_v39 = vor.u32 %v8774_v28, %v6186_v31 }
  0x43   :  { %1333 = vmatpush.bf16.msrb.mxu1 %v6505_v50  ;;  %v8838_v36 = vld [vmem:[#allocation2 + $0x4c4] sm:$0xf]  ;;  %v6317_v40 = vor.u32 %v8806_v32, %v6314_v33  ;;  %v6570_v42 = vld [vmem:[#allocation2 + $0x5d0] sm:$0xf0] }
  0x44   :  { %v8870_v41 = vld [vmem:[#allocation2 + $0x5c4] sm:$0xf]  ;;  %v6445_v44 = vor.u32 %v8838_v36, %v6442_v37  ;;  %v6298_v48 = vld [vmem:[#allocation2 + $0x3b0] sm:$0xf0] }
  0x45   :  { %1359 = vmatpush.bf16.msrb.mxu3 %v5869_v52  ;;  %v8770_v43 = vld [vmem:[#allocation2 + $0x2a4] sm:$0xf]  ;;  %v6426_v50 = vld [vmem:[#allocation2 + $0x4b0] sm:$0xf0]  ;;  %v6573_v52 = vor.u32 %v8870_v41, %v6570_v42 }
  0x46   :  { %1371 = vmatpush.bf16.msra.mxu2 %v6013_v46  ;;  %1321 = vmatpush.bf16.msrb.mxu0 %v6361_v62  ;;  %v6170_v46 = vld [vmem:[#allocation2 + $0x2b0] sm:$0xf0]  ;;  %v8802_v47 = vld [vmem:[#allocation2 + $0x3a4] sm:$0xf] }
  0x47   :  { %1334 = vmatpush.bf16.msrb.mxu1 %v6489_v2  ;;  %v8834_v49 = vld [vmem:[#allocation2 + $0x4a4] sm:$0xf]  ;;  %v6173_v53 = vor.u32 %v8770_v43, %v6170_v46  ;;  %v6301_v54 = vor.u32 %v8802_v47, %v6298_v48  ;;  %v6554_v58 = vld [vmem:[#allocation2 + $0x5b0] sm:$0xf0] }
  0x48   :  { %v8866_v56 = vld [vmem:[#allocation2 + $0x5a4] sm:$0xf]  ;;  %v6429_v60 = vor.u32 %v8834_v49, %v6426_v50  ;;  %v6282_v63 = vld [vmem:[#allocation2 + $0x390] sm:$0xf0] }
  0x49   :  { %1360 = vmatpush.bf16.msrb.mxu3 %v5853_v3  ;;  %v8766_v59 = vld [vmem:[#allocation2 + $0x284] sm:$0xf]  ;;  %v6410_v1 = vld [vmem:[#allocation2 + $0x490] sm:$0xf0]  ;;  %v6557_v2 = vor.u32 %v8866_v56, %v6554_v58  ;;  %v5952_v56 = vld [vmem:[#allocation2 + $0xe8] sm:$0xf] }
  0x4a   :  { %1372 = vmatpush.bf16.msra.mxu2 %v5997_v61  ;;  %1322 = vmatpush.bf16.msrb.mxu0 %v6345_v15  ;;  %v6154_v61 = vld [vmem:[#allocation2 + $0x290] sm:$0xf0]  ;;  %v8798_v62 = vld [vmem:[#allocation2 + $0x384] sm:$0xf]  ;;  %v8717_v58 = vld [vmem:[#allocation2 + $0xf4] sm:$0xf0] }
  0x4b   :  { %1335 = vmatpush.bf16.msrb.mxu1 %v6473_v19  ;;  %v8830_v0 = vld [vmem:[#allocation2 + $0x484] sm:$0xf]  ;;  %v6157_v3 = vor.u32 %v8766_v59, %v6154_v61  ;;  %v6285_v4 = vor.u32 %v8798_v62, %v6282_v63  ;;  %v6538_v6 = vld [vmem:[#allocation2 + $0x590] sm:$0xf0]  ;;  %v6208_v62 = vld [vmem:[#allocation2 + $0x2e8] sm:$0xf] }
  0x4c   :  { %v8862_v5 = vld [vmem:[#allocation2 + $0x584] sm:$0xf]  ;;  %v6413_v9 = vor.u32 %v8830_v0, %v6410_v1  ;;  %v6138_v10 = vld [vmem:[#allocation2 + $0x270] sm:$0xf0]  ;;  %v8781_v63 = vld [vmem:[#allocation2 + $0x2f4] sm:$0xf0] }
  0x4d   :  { %1361 = vmatpush.bf16.msrb.mxu3 %v5837_v20  ;;  %1323 = vmatmul.bf16.vlgmr.msrb.gmra.mxu0 %v9543_v30  ;;  %v8762_v8 = vld [vmem:[#allocation2 + $0x264] sm:$0xf]  ;;  %v6266_v12 = vld [vmem:[#allocation2 + $0x370] sm:$0xf0]  ;;  %v6541_v15 = vor.u32 %v8862_v5, %v6538_v6  ;;  %v5953_v5 = vor.u32 %v8717_v58, %v5952_v56  ;;  %v6336_v6 = vld [vmem:[#allocation2 + $0x3e8] sm:$0xf] }
  0x4e   :  { %1373 = vmatpush.bf16.msra.mxu2 %v5981_v14  ;;  %1380 = vmatpush.bf16.msra.mxu0 %v6205_v24  ;;  %v8794_v11 = vld [vmem:[#allocation2 + $0x364] sm:$0xf]  ;;  %v6394_v14 = vld [vmem:[#allocation2 + $0x470] sm:$0xf0]  ;;  %v6141_v16 = vor.u32 %v8762_v8, %v6138_v10  ;;  %v8813_v8 = vld [vmem:[#allocation2 + $0x3f4] sm:$0xf0] }
  0x4f   :  { %1393 = vmatpush.bf16.msra.mxu1 %v6333_v25  ;;  %v8826_v13 = vld [vmem:[#allocation2 + $0x464] sm:$0xf]  ;;  %v6269_v17 = vor.u32 %v8794_v11, %v6266_v12  ;;  %v6522_v19 = vld [vmem:[#allocation2 + $0x570] sm:$0xf0]  ;;  %v6080_v10 = vld [vmem:[#allocation2 + $0x1e8] sm:$0xf]  ;;  %v6209_v12 = vor.u32 %v8781_v63, %v6208_v62 }
  0x50   :  { %1336 = vmatmul.bf16.vlgmr.msrb.gmra.mxu1 %v9545_v35  ;;  %1362 = vmatmul.bf16.vlgmr.msrb.gmra.mxu3 %v9517_v55  ;;  %v8858_v18 = vld [vmem:[#allocation2 + $0x564] sm:$0xf]  ;;  %v6397_v21 = vor.u32 %v8826_v13, %v6394_v14  ;;  %v6122_v22 = vld [vmem:[#allocation2 + $0x250] sm:$0xf0]  ;;  %v8749_v11 = vld [vmem:[#allocation2 + $0x1f4] sm:$0xf0] }
  0x51   :  { %1406 = vmatpush.bf16.msra.mxu3 %v6461_v29  ;;  %v8758_v20 = vld [vmem:[#allocation2 + $0x244] sm:$0xf]  ;;  %v6250_v24 = vld [vmem:[#allocation2 + $0x350] sm:$0xf0]  ;;  %v6525_v27 = vor.u32 %v8858_v18, %v6522_v19  ;;  %v5936_v14 = vld [vmem:[#allocation2 + $0xc8] sm:$0xf]  ;;  %v6081_v19 = vor.u32 %v8749_v11, %v6080_v10 }
  0x52   :  { %1374 = vmatpush.bf16.msra.mxu2 %v5965_v34  ;;  %1381 = vmatpush.bf16.msra.mxu0 %v6189_v39  ;;  %v8790_v23 = vld [vmem:[#allocation2 + $0x344] sm:$0xf]  ;;  %v6378_v26 = vld [vmem:[#allocation2 + $0x450] sm:$0xf0]  ;;  %v6125_v28 = vor.u32 %v8758_v20, %v6122_v22  ;;  %v8777_v18 = vld [vmem:[#allocation2 + $0x2d4] sm:$0xf0] }
  0x53   :  { %1394 = vmatpush.bf16.msra.mxu1 %v6317_v40  ;;  %v8822_v25 = vld [vmem:[#allocation2 + $0x444] sm:$0xf]  ;;  %v6253_v29 = vor.u32 %v8790_v23, %v6250_v24  ;;  %v6506_v32 = vld [vmem:[#allocation2 + $0x550] sm:$0xf0]  ;;  %v6320_v20 = vld [vmem:[#allocation2 + $0x3c8] sm:$0xf] }
  0x54   :  { %v8854_v31 = vld [vmem:[#allocation2 + $0x544] sm:$0xf]  ;;  %v6381_v34 = vor.u32 %v8822_v25, %v6378_v26  ;;  %v6106_v36 = vld [vmem:[#allocation2 + $0x230] sm:$0xf0]  ;;  %v6064_v23 = vld [vmem:[#allocation2 + $0x1c8] sm:$0xf] }
  0x55   :  { %1407 = vmatpush.bf16.msra.mxu3 %v6445_v44  ;;  %1375 = vmatmul.bf16.vlgmr.msra.gmra.mxu2 %v9526_v7  ;;  %v8754_v33 = vld [vmem:[#allocation2 + $0x224] sm:$0xf]  ;;  %v6362_v40 = vld [vmem:[#allocation2 + $0x430] sm:$0xf0]  ;;  %v6509_v42 = vor.u32 %v8854_v31, %v6506_v32  ;;  %v8745_v24 = vld [vmem:[#allocation2 + $0x1d4] sm:$0xf0] }
  0x56   :  { %1419 = vmatpush.bf16.msrb.mxu2 %v6589_v38  ;;  %1382 = vmatpush.bf16.msra.mxu0 %v6173_v53  ;;  %v8786_v37 = vld [vmem:[#allocation2 + $0x324] sm:$0xf]  ;;  %v6234_v38 = vld [vmem:[#allocation2 + $0x330] sm:$0xf0]  ;;  %v6109_v47 = vor.u32 %v8754_v33, %v6106_v36  ;;  %v5920_v26 = vld [vmem:[#allocation2 + $0xa8] sm:$0xf]  ;;  %v6065_v32 = vor.u32 %v8745_v24, %v6064_v23 }
  0x57   :  { %1395 = vmatpush.bf16.msra.mxu1 %v6301_v54  ;;  %v8818_v39 = vld [vmem:[#allocation2 + $0x424] sm:$0xf]  ;;  %v6490_v43 = vld [vmem:[#allocation2 + $0x530] sm:$0xf0]  ;;  %v6237_v48 = vor.u32 %v8786_v37, %v6234_v38  ;;  %v8773_v31 = vld [vmem:[#allocation2 + $0x2b4] sm:$0xf0] }
  0x58   :  { %v8850_v41 = vld [vmem:[#allocation2 + $0x524] sm:$0xf]  ;;  %v6090_v46 = vld [vmem:[#allocation2 + $0x210] sm:$0xf0]  ;;  %v6365_v53 = vor.u32 %v8818_v39, %v6362_v40  ;;  %v6304_v33 = vld [vmem:[#allocation2 + $0x3a8] sm:$0xf] }
  0x59   :  { %1408 = vmatpush.bf16.msra.mxu3 %v6429_v60  ;;  %v8750_v44 = vld [vmem:[#allocation2 + $0x204] sm:$0xf]  ;;  %v6218_v50 = vld [vmem:[#allocation2 + $0x310] sm:$0xf0]  ;;  %v6493_v60 = vor.u32 %v8850_v41, %v6490_v43  ;;  %v6048_v37 = vld [vmem:[#allocation2 + $0x1a8] sm:$0xf] }
  0x5a   :  { %1420 = vmatpush.bf16.msrb.mxu2 %v6573_v52  ;;  %1383 = vmatpush.bf16.msra.mxu0 %v6157_v3  ;;  %v8782_v49 = vld [vmem:[#allocation2 + $0x304] sm:$0xf]  ;;  %v6346_v54 = vld [vmem:[#allocation2 + $0x410] sm:$0xf0]  ;;  %v6093_v0 = vor.u32 %v8750_v44, %v6090_v46  ;;  %v8741_v38 = vld [vmem:[#allocation2 + $0x1b4] sm:$0xf0] }
  0x5b   :  { %1396 = vmatpush.bf16.msra.mxu1 %v6285_v4  ;;  %v8814_v52 = vld [vmem:[#allocation2 + $0x404] sm:$0xf]  ;;  %v6602_v61 = vld [vmem:[#allocation2 + $0x610] sm:$0xf0]  ;;  %v6221_v1 = vor.u32 %v8782_v49, %v6218_v50  ;;  %v5904_v40 = vld [vmem:[#allocation2 + $0x88] sm:$0xf]  ;;  %v6049_v46 = vor.u32 %v8741_v38, %v6048_v37 }
  0x5c   :  { %v8878_v59 = vld [vmem:[#allocation2 + $0x604] sm:$0xf]  ;;  %v6474_v3 = vld [vmem:[#allocation2 + $0x510] sm:$0xf0]  ;;  %v6349_v4 = vor.u32 %v8814_v52, %v6346_v54  ;;  %v8705_v41 = vld [vmem:[#allocation2 + $0x94] sm:$0xf0] }
  0x5d   :  { %1409 = vmatpush.bf16.msra.mxu3 %v6413_v9  ;;  %v6605_v9 = vor.u32 %v8878_v59, %v6602_v61  ;;  %v6160_v43 = vld [vmem:[#allocation2 + $0x288] sm:$0xf]  ;;  %v8769_v44 = vld [vmem:[#allocation2 + $0x294] sm:$0xf0]  ;;  %v5905_v49 = vor.u32 %v8705_v41, %v5904_v40 }
  0x5e   :  { %1421 = vmatpush.bf16.msrb.mxu2 %v6557_v2  ;;  %1384 = vmatpush.bf16.msra.mxu0 %v6141_v16  ;;  %v8846_v2 = vld [vmem:[#allocation2 + $0x504] sm:$0xf]  ;;  %v6337_v16 = vor.u32 %v8813_v8, %v6336_v6  ;;  %v6032_v50 = vld [vmem:[#allocation2 + $0x188] sm:$0xf]  ;;  %v8737_v52 = vld [vmem:[#allocation2 + $0x194] sm:$0xf0] }
  0x5f   :  { %1397 = vmatpush.bf16.msra.mxu1 %v6269_v17  ;;  %v6477_v13 = vor.u32 %v8846_v2, %v6474_v3  ;;  %v6192_v17 = vld [vmem:[#allocation2 + $0x2c8] sm:$0xf]  ;;  %v8701_v56 = vld [vmem:[#allocation2 + $0x74] sm:$0xf0]  ;;  %v6033_v61 = vor.u32 %v8737_v52, %v6032_v50 }
  0x60   :  { %v6193_v25 = vor.u32 %v8777_v18, %v6192_v17  ;;  %v5888_v54 = vld [vmem:[#allocation2 + $0x68] sm:$0xf]  ;;  %v8797_v63 = vld [vmem:[#allocation2 + $0x374] sm:$0xf0] }
  0x61   :  { %1410 = vmatpush.bf16.msra.mxu3 %v6397_v21  ;;  %v8809_v21 = vld [vmem:[#allocation2 + $0x3d4] sm:$0xf0]  ;;  %v6144_v59 = vld [vmem:[#allocation2 + $0x268] sm:$0xf] }
  0x62   :  { %1422 = vmatpush.bf16.msrb.mxu2 %v6541_v15  ;;  %1385 = vmatpush.bf16.msra.mxu0 %v6125_v28  ;;  %v8713_v15 = vld [vmem:[#allocation2 + $0xd4] sm:$0xf0]  ;;  %v6321_v28 = vor.u32 %v8809_v21, %v6320_v20  ;;  %v6272_v62 = vld [vmem:[#allocation2 + $0x368] sm:$0xf] }
  0x63   :  { %1398 = vmatpush.bf16.msra.mxu1 %v6253_v29  ;;  %v5937_v22 = vor.u32 %v8713_v15, %v5936_v14  ;;  %v6176_v29 = vld [vmem:[#allocation2 + $0x2a8] sm:$0xf]  ;;  %v8733_v2 = vld [vmem:[#allocation2 + $0x174] sm:$0xf0]  ;;  %v6273_v6 = vor.u32 %v8797_v63, %v6272_v62 }
  0x64   :  { %v6177_v39 = vor.u32 %v8773_v31, %v6176_v29  ;;  %v6128_v8 = vld [vmem:[#allocation2 + $0x248] sm:$0xf]  ;;  %v8729_v15 = vld [vmem:[#allocation2 + $0x154] sm:$0xf0] }
  0x65   :  { %1411 = vmatpush.bf16.msra.mxu3 %v6381_v34  ;;  %v8805_v34 = vld [vmem:[#allocation2 + $0x3b4] sm:$0xf0]  ;;  %v6256_v11 = vld [vmem:[#allocation2 + $0x348] sm:$0xf] }
  0x66   :  { %1423 = vmatpush.bf16.msrb.mxu2 %v6525_v27  ;;  %1386 = vmatpush.bf16.msra.mxu0 %v6109_v47  ;;  %v8709_v27 = vld [vmem:[#allocation2 + $0xb4] sm:$0xf0]  ;;  %v6288_v47 = vld [vmem:[#allocation2 + $0x388] sm:$0xf] }
  0x67   :  { %1399 = vmatpush.bf16.msra.mxu1 %v6237_v48  ;;  %v5921_v36 = vor.u32 %v8709_v27, %v5920_v26  ;;  %v8801_v48 = vld [vmem:[#allocation2 + $0x394] sm:$0xf0]  ;;  %v6000_v14 = vld [vmem:[#allocation2 + $0x148] sm:$0xf] }
  0x68   :  { %v6289_v58 = vor.u32 %v8801_v48, %v6288_v47  ;;  %v5856_v17 = vld [vmem:[#allocation2 + $0x28] sm:$0xf]  ;;  %v8693_v18 = vld [vmem:[#allocation2 + $0x34] sm:$0xf0]  ;;  %v8715_v47 = vld [vmem:[#allocation2 + $0xec] sm:$0xf] }
  0x69   :  { %1412 = vmatpush.bf16.msra.mxu3 %v6365_v53  ;;  %v6161_v53 = vor.u32 %v8769_v44, %v6160_v43  ;;  %v6112_v20 = vld [vmem:[#allocation2 + $0x228] sm:$0xf]  ;;  %v8757_v21 = vld [vmem:[#allocation2 + $0x234] sm:$0xf0]  ;;  %v5954_v48 = vld [vmem:[#allocation2 + $0xf8] sm:$0xf0] }
  0x6a   :  { %1424 = vmatpush.bf16.msrb.mxu2 %v6509_v42  ;;  %1387 = vmatpush.bf16.msra.mxu0 %v6093_v0  ;;  %v6305_v42 = vor.u32 %v8805_v34, %v6304_v33  ;;  %v5889_v0 = vor.u32 %v8701_v56, %v5888_v54  ;;  %v6240_v23 = vld [vmem:[#allocation2 + $0x328] sm:$0xf]  ;;  %v8789_v24 = vld [vmem:[#allocation2 + $0x334] sm:$0xf0]  ;;  %v6113_v29 = vor.u32 %v8757_v21, %v6112_v20 }
  0x6b   :  { %1400 = vmatpush.bf16.msra.mxu1 %v6221_v1  ;;  %v6016_v1 = vld [vmem:[#allocation2 + $0x168] sm:$0xf]  ;;  %v8725_v27 = vld [vmem:[#allocation2 + $0x134] sm:$0xf0]  ;;  %v6241_v34 = vor.u32 %v8789_v24, %v6240_v23  ;;  %v5957_v63 = vor.u32 %v8715_v47, %v5954_v48  ;;  %v6050_v23 = vld [vmem:[#allocation2 + $0x1b8] sm:$0xf0] }
  0x6c   :  { %v6017_v10 = vor.u32 %v8733_v2, %v6016_v1  ;;  %v5984_v26 = vld [vmem:[#allocation2 + $0x128] sm:$0xf]  ;;  %v8689_v31 = vld [vmem:[#allocation2 + $0x14] sm:$0xf0]  ;;  %v8711_v1 = vld [vmem:[#allocation2 + $0xcc] sm:$0xf] }
  0x6d   :  { %1413 = vmatpush.bf16.msra.mxu3 %v6349_v4  ;;  %1388 = vmatmul.bf16.vlgmr.msra.gmra.mxu0 %v9515_v51  ;;  %v5872_v4 = vld [vmem:[#allocation2 + $0x48] sm:$0xf]  ;;  %v8845_v33 = vld [vmem:[#allocation2 + $0x4f4] sm:$0xf0]  ;;  %v5985_v40 = vor.u32 %v8725_v27, %v5984_v26  ;;  %v5938_v2 = vld [vmem:[#allocation2 + $0xd8] sm:$0xf0] }
  0x6e   :  { %1425 = vmatpush.bf16.msrb.mxu2 %v6493_v60  ;;  %1471 = vmatpush.bf16.msrb.mxu0 %v6209_v12  ;;  %v8765_v60 = vld [vmem:[#allocation2 + $0x274] sm:$0xf0]  ;;  %v6096_v37 = vld [vmem:[#allocation2 + $0x208] sm:$0xf]  ;;  %v8703_v26 = vld [vmem:[#allocation2 + $0x8c] sm:$0xf] }
  0x6f   :  { %1445 = vmatpush.bf16.msrb.mxu1 %v5953_v5  ;;  %v6145_v3 = vor.u32 %v8765_v60, %v6144_v59  ;;  %v8697_v5 = vld [vmem:[#allocation2 + $0x54] sm:$0xf0]  ;;  %v6592_v52 = vld [vmem:[#allocation2 + $0x5e8] sm:$0xf]  ;;  %v8747_v60 = vld [vmem:[#allocation2 + $0x1ec] sm:$0xf] }
  0x70   :  { %1414 = vmatmul.bf16.vlgmr.msra.gmra.mxu3 %v9543_v30  ;;  %1401 = vmatmul.bf16.vlgmr.msra.gmra.mxu1 %v9519_v57  ;;  %v8793_v12 = vld [vmem:[#allocation2 + $0x354] sm:$0xf0]  ;;  %v6448_v54 = vld [vmem:[#allocation2 + $0x4c8] sm:$0xf]  ;;  %v5906_v27 = vld [vmem:[#allocation2 + $0x98] sm:$0xf0] }
  0x71   :  { %1439 = vmatpush.bf16.msrb.mxu3 %v6605_v9  ;;  %v8761_v9 = vld [vmem:[#allocation2 + $0x254] sm:$0xf0]  ;;  %v6416_v20 = vld [vmem:[#allocation2 + $0x488] sm:$0xf] }
  0x72   :  { %1426 = vmatpush.bf16.msrb.mxu2 %v6477_v13  ;;  %1472 = vmatpush.bf16.msrb.mxu0 %v6193_v25  ;;  %v5873_v13 = vor.u32 %v8697_v5, %v5872_v4  ;;  %v5857_v25 = vor.u32 %v8693_v18, %v5856_v17  ;;  %v8753_v38 = vld [vmem:[#allocation2 + $0x214] sm:$0xf0]  ;;  %v6576_v5 = vld [vmem:[#allocation2 + $0x5c8] sm:$0xf] }
  0x73   :  { %1446 = vmatpush.bf16.msrb.mxu1 %v5937_v22  ;;  %v6001_v22 = vor.u32 %v8729_v15, %v6000_v14  ;;  %v8785_v41 = vld [vmem:[#allocation2 + $0x314] sm:$0xf0]  ;;  %v6097_v50 = vor.u32 %v8753_v38, %v6096_v37  ;;  %v8707_v14 = vld [vmem:[#allocation2 + $0xac] sm:$0xf]  ;;  %v5922_v15 = vld [vmem:[#allocation2 + $0xb8] sm:$0xf0]  ;;  %v5909_v38 = vor.u32 %v8703_v26, %v5906_v27 }
  0x74   :  { %v8881_v43 = vld [vmem:[#allocation2 + $0x614] sm:$0xf0]  ;;  %v6560_v18 = vld [vmem:[#allocation2 + $0x5a8] sm:$0xf]  ;;  %v5925_v24 = vor.u32 %v8707_v14, %v5922_v15  ;;  %v6034_v37 = vld [vmem:[#allocation2 + $0x198] sm:$0xf0] }
  0x75   :  { %1458 = vmatpush.bf16.msra.mxu3 %v6081_v19  ;;  %1427 = vmatmul.bf16.vlgmr.msrb.gmra.mxu2 %v9545_v35  ;;  %v6257_v19 = vor.u32 %v8793_v12, %v6256_v11  ;;  %v6066_v11 = vld [vmem:[#allocation2 + $0x1d8] sm:$0xf0]  ;;  %v5941_v12 = vor.u32 %v8711_v1, %v5938_v2  ;;  %v8833_v21 = vld [vmem:[#allocation2 + $0x494] sm:$0xf0]  ;;  %v6384_v47 = vld [vmem:[#allocation2 + $0x448] sm:$0xf] }
  0x76   :  { %1484 = vmatpush.bf16.msra.mxu2 %v6337_v16  ;;  %1473 = vmatpush.bf16.msrb.mxu0 %v6177_v39  ;;  %v6129_v16 = vor.u32 %v8761_v9, %v6128_v8  ;;  %v6224_v39 = vld [vmem:[#allocation2 + $0x308] sm:$0xf]  ;;  %v8837_v9 = vld [vmem:[#allocation2 + $0x4b4] sm:$0xf0]  ;;  %v6002_v1 = vld [vmem:[#allocation2 + $0x158] sm:$0xf0] }
  0x77   :  { %1447 = vmatpush.bf16.msrb.mxu1 %v5921_v36  ;;  %v5968_v36 = vld [vmem:[#allocation2 + $0x108] sm:$0xf]  ;;  %v6225_v56 = vor.u32 %v8785_v41, %v6224_v39  ;;  %v5890_v41 = vld [vmem:[#allocation2 + $0x78] sm:$0xf0]  ;;  %v8825_v48 = vld [vmem:[#allocation2 + $0x454] sm:$0xf0] }
  0x78   :  { %v6432_v8 = vld [vmem:[#allocation2 + $0x4a8] sm:$0xf]  ;;  %v5986_v14 = vld [vmem:[#allocation2 + $0x138] sm:$0xf0] }
  0x79   :  { %1459 = vmatpush.bf16.msra.mxu3 %v6065_v32  ;;  %v6464_v32 = vld [vmem:[#allocation2 + $0x4e8] sm:$0xf]  ;;  %v6338_v26 = vld [vmem:[#allocation2 + $0x3f8] sm:$0xf0] }
  0x7a   :  { %1485 = vmatpush.bf16.msra.mxu2 %v6321_v28  ;;  %1474 = vmatpush.bf16.msrb.mxu0 %v6161_v53  ;;  %v5840_v28 = vld [vmem:[#allocation2 + $0x8] sm:$0xf]  ;;  %v8877_v53 = vld [vmem:[#allocation2 + $0x5f4] sm:$0xf0] }
  0x7b   :  { %1448 = vmatpush.bf16.msrb.mxu1 %v5905_v49  ;;  %v5841_v44 = vor.u32 %v8689_v31, %v5840_v28  ;;  %v6465_v49 = vor.u32 %v8845_v33, %v6464_v32  ;;  %v6417_v28 = vor.u32 %v8833_v21, %v6416_v20  ;;  %v6544_v31 = vld [vmem:[#allocation2 + $0x588] sm:$0xf]  ;;  %v8865_v32 = vld [vmem:[#allocation2 + $0x594] sm:$0xf0]  ;;  %v8687_v20 = vld [vmem:[#allocation2 + $0xc] sm:$0xf] }
  0x7c   :  { %v6400_v33 = vld [vmem:[#allocation2 + $0x468] sm:$0xf]  ;;  %v6545_v39 = vor.u32 %v8865_v32, %v6544_v31  ;;  %v5842_v21 = vld [vmem:[#allocation2 + $0x18] sm:$0xf0]  ;;  %v8775_v31 = vld [vmem:[#allocation2 + $0x2cc] sm:$0xf] }
  0x7d   :  { %1460 = vmatpush.bf16.msra.mxu3 %v6049_v46  ;;  %v8721_v46 = vld [vmem:[#allocation2 + $0x114] sm:$0xf0]  ;;  %v5845_v32 = vor.u32 %v8687_v20, %v5842_v21  ;;  %v8795_v20 = vld [vmem:[#allocation2 + $0x36c] sm:$0xf] }
  0x7e   :  { %1486 = vmatpush.bf16.msra.mxu2 %v6305_v42  ;;  %1475 = vmatpush.bf16.msrb.mxu0 %v6145_v3  ;;  %v6608_v42 = vld [vmem:[#allocation2 + $0x608] sm:$0xf]  ;;  %v5969_v62 = vor.u32 %v8721_v46, %v5968_v36  ;;  %v8735_v36 = vld [vmem:[#allocation2 + $0x18c] sm:$0xf]  ;;  %v8861_v46 = vld [vmem:[#allocation2 + $0x574] sm:$0xf0] }
  0x7f   :  { %1449 = vmatpush.bf16.msrb.mxu1 %v5889_v0  ;;  %v6609_v59 = vor.u32 %v8881_v43, %v6608_v42  ;;  %v6593_v0 = vor.u32 %v8877_v53, %v6592_v52  ;;  %v6037_v43 = vor.u32 %v8735_v36, %v6034_v37  ;;  %v5970_v36 = vld [vmem:[#allocation2 + $0x118] sm:$0xf0] }
  0x80   :  { %6615 = vmatmul.msk.bf16.vlgmr.msrb.gmra.mxu3 %vm1259_vm0, %v9533_v45 }
  0x81   :  { %1461 = vmatpush.bf16.msra.mxu3 %v6033_v61  ;;  %v6082_v61 = vld [vmem:[#allocation2 + $0x1f8] sm:$0xf0] }
  0x82   :  { %1487 = vmatpush.bf16.msra.mxu2 %v6289_v58  ;;  %1476 = vmatpush.bf16.msrb.mxu0 %v6129_v16  ;;  %v8841_v58 = vld [vmem:[#allocation2 + $0x4d4] sm:$0xf0]  ;;  %v6085_v4 = vor.u32 %v8747_v60, %v6082_v61  ;;  %v6433_v16 = vor.u32 %v8837_v9, %v6432_v8  ;;  %v6512_v60 = vld [vmem:[#allocation2 + $0x548] sm:$0xf] }
  0x83   :  { %1450 = vmatpush.bf16.msrb.mxu1 %v5873_v13  ;;  %v6449_v3 = vor.u32 %v8841_v58, %v6448_v54  ;;  %v8695_v54 = vld [vmem:[#allocation2 + $0x4c] sm:$0xf]  ;;  %v6385_v58 = vor.u32 %v8825_v48, %v6384_v47  ;;  %v8857_v61 = vld [vmem:[#allocation2 + $0x554] sm:$0xf0]  ;;  %v6496_v9 = vld [vmem:[#allocation2 + $0x528] sm:$0xf] }
  0x84   :  { %v8839_v47 = vld [vmem:[#allocation2 + $0x4cc] sm:$0xf]  ;;  %v6450_v48 = vld [vmem:[#allocation2 + $0x4d8] sm:$0xf0] }
  0x85   :  { %1462 = vmatpush.bf16.msra.mxu3 %v6017_v10  ;;  %v8743_v10 = vld [vmem:[#allocation2 + $0x1cc] sm:$0xf] }
  0x86   :  { %1488 = vmatpush.bf16.msra.mxu2 %v6273_v6  ;;  %1477 = vmatpush.bf16.msrb.mxu0 %v6113_v29  ;;  %v8873_v6 = vld [vmem:[#allocation2 + $0x5d4] sm:$0xf0]  ;;  %v6069_v17 = vor.u32 %v8743_v10, %v6066_v11  ;;  %v6352_v11 = vld [vmem:[#allocation2 + $0x408] sm:$0xf] }
  0x87   :  { %1451 = vmatpush.bf16.msrb.mxu1 %v5857_v25  ;;  %v6577_v13 = vor.u32 %v8873_v6, %v6576_v5  ;;  %v5858_v5 = vld [vmem:[#allocation2 + $0x38] sm:$0xf0]  ;;  %v8853_v10 = vld [vmem:[#allocation2 + $0x534] sm:$0xf0] }
  0x89   :  { %1463 = vmatpush.bf16.msra.mxu3 %v6001_v22  ;;  %v8739_v22 = vld [vmem:[#allocation2 + $0x1ac] sm:$0xf] }
  0x8a   :  { %1489 = vmatpush.bf16.msra.mxu2 %v6257_v19  ;;  %1478 = vmatpush.bf16.msrb.mxu0 %v6097_v50  ;;  %v8869_v19 = vld [vmem:[#allocation2 + $0x5b4] sm:$0xf0]  ;;  %v6053_v29 = vor.u32 %v8739_v22, %v6050_v23  ;;  %v6018_v50 = vld [vmem:[#allocation2 + $0x178] sm:$0xf0] }
  0x8b   :  { %1452 = vmatpush.bf16.msrb.mxu1 %v5841_v44  ;;  %v6561_v25 = vor.u32 %v8869_v19, %v6560_v18  ;;  %v6528_v44 = vld [vmem:[#allocation2 + $0x568] sm:$0xf]  ;;  %v6497_v18 = vor.u32 %v8853_v10, %v6496_v9  ;;  %v6290_v10 = vld [vmem:[#allocation2 + $0x398] sm:$0xf0] }
  0x8c   :  { %v6529_v53 = vor.u32 %v8861_v46, %v6528_v44  ;;  %v6480_v19 = vld [vmem:[#allocation2 + $0x508] sm:$0xf]  ;;  %v6322_v46 = vld [vmem:[#allocation2 + $0x3d8] sm:$0xf0] }
  0x8d   :  { %1464 = vmatpush.bf16.msra.mxu3 %v5985_v40  ;;  %1479 = vmatmul.bf16.vlgmr.msrb.gmra.mxu0 %v9515_v51  ;;  %v8699_v40 = vld [vmem:[#allocation2 + $0x6c] sm:$0xf] }
  0x8e   :  { %1490 = vmatpush.bf16.msra.mxu2 %v6241_v34  ;;  %1530 = vmatpush.bf16.msra.mxu0 %v6609_v59  ;;  %v8829_v34 = vld [vmem:[#allocation2 + $0x474] sm:$0xf0]  ;;  %v5893_v52 = vor.u32 %v8699_v40, %v5890_v41 }
  0x8f   :  { %1497 = vmatpush.bf16.msra.mxu1 %v6465_v49  ;;  %v6401_v42 = vor.u32 %v8829_v34, %v6400_v33  ;;  %v8731_v49 = vld [vmem:[#allocation2 + $0x16c] sm:$0xf]  ;;  %v6194_v33 = vld [vmem:[#allocation2 + $0x2d8] sm:$0xf0] }
  0x90   :  { %1453 = vmatmul.bf16.vlgmr.msrb.gmra.mxu1 %v9517_v55  ;;  %v6021_v59 = vor.u32 %v8731_v49, %v6018_v50  ;;  %v8719_v34 = vld [vmem:[#allocation2 + $0x10c] sm:$0xf] }
  0x91   :  { %1465 = vmatpush.bf16.msra.mxu3 %v5969_v62  ;;  %v6368_v62 = vld [vmem:[#allocation2 + $0x428] sm:$0xf]  ;;  %v5973_v44 = vor.u32 %v8719_v34, %v5970_v36  ;;  %v8771_v50 = vld [vmem:[#allocation2 + $0x2ac] sm:$0xf] }
  0x92   :  { %1491 = vmatpush.bf16.msra.mxu2 %v6225_v56  ;;  %1549 = vmatpush.bf16.msrb.mxu0 %v6085_v4  ;;  %v5874_v56 = vld [vmem:[#allocation2 + $0x58] sm:$0xf0]  ;;  %v8691_v4 = vld [vmem:[#allocation2 + $0x2c] sm:$0xf] }
  0x93   :  { %1498 = vmatpush.bf16.msra.mxu1 %v6449_v3  ;;  %v5877_v2 = vor.u32 %v8695_v54, %v5874_v56  ;;  %v6513_v3 = vor.u32 %v8857_v61, %v6512_v60  ;;  %v5861_v15 = vor.u32 %v8691_v4, %v5858_v5  ;;  %v6578_v54 = vld [vmem:[#allocation2 + $0x5d8] sm:$0xf0]  ;;  %v8791_v34 = vld [vmem:[#allocation2 + $0x34c] sm:$0xf] }
  0x94   :  { %1466 = vmatmul.bf16.vlgmr.msra.gmra.mxu3 %v9526_v7  ;;  %v6306_v61 = vld [vmem:[#allocation2 + $0x3b8] sm:$0xf0] }
  0x95   :  { %1510 = vmatpush.bf16.msrb.mxu3 %v6593_v0  ;;  %1492 = vmatmul.bf16.vlgmr.msra.gmra.mxu2 %v9519_v57  ;;  %v8727_v0 = vld [vmem:[#allocation2 + $0x14c] sm:$0xf]  ;;  %v6562_v4 = vld [vmem:[#allocation2 + $0x5b8] sm:$0xf0] }
  0x96   :  { %1536 = vmatpush.bf16.msrb.mxu2 %v5957_v63  ;;  %1550 = vmatpush.bf16.msrb.mxu0 %v6069_v17  ;;  %v8821_v63 = vld [vmem:[#allocation2 + $0x434] sm:$0xf0]  ;;  %v6005_v8 = vor.u32 %v8727_v0, %v6002_v1  ;;  %v6210_v17 = vld [vmem:[#allocation2 + $0x2f8] sm:$0xf0]  ;;  %v8767_v1 = vld [vmem:[#allocation2 + $0x28c] sm:$0xf] }
  0x97   :  { %1499 = vmatpush.bf16.msra.mxu1 %v6433_v16  ;;  %v6369_v6 = vor.u32 %v8821_v63, %v6368_v62  ;;  %v8779_v16 = vld [vmem:[#allocation2 + $0x2ec] sm:$0xf]  ;;  %v6434_v63 = vld [vmem:[#allocation2 + $0x4b8] sm:$0xf0] }
  0x98   :  { %v6213_v27 = vor.u32 %v8779_v16, %v6210_v17  ;;  %v8835_v62 = vld [vmem:[#allocation2 + $0x4ac] sm:$0xf]  ;;  %v6546_v17 = vld [vmem:[#allocation2 + $0x598] sm:$0xf0] }
  0x99   :  { %1511 = vmatpush.bf16.msrb.mxu3 %v6577_v13  ;;  %v8723_v13 = vld [vmem:[#allocation2 + $0x12c] sm:$0xf] }
  0x9a   :  { %1537 = vmatpush.bf16.msrb.mxu2 %v5941_v12  ;;  %1551 = vmatpush.bf16.msrb.mxu0 %v6053_v29  ;;  %v8817_v12 = vld [vmem:[#allocation2 + $0x414] sm:$0xf0]  ;;  %v5989_v23 = vor.u32 %v8723_v13, %v5986_v14  ;;  %v6466_v29 = vld [vmem:[#allocation2 + $0x4f8] sm:$0xf0]  ;;  %v8763_v14 = vld [vmem:[#allocation2 + $0x26c] sm:$0xf] }
  0x9b   :  { %1500 = vmatpush.bf16.msra.mxu1 %v6417_v28  ;;  %v6353_v22 = vor.u32 %v8817_v12, %v6352_v11  ;;  %v8843_v28 = vld [vmem:[#allocation2 + $0x4ec] sm:$0xf]  ;;  %v6418_v12 = vld [vmem:[#allocation2 + $0x498] sm:$0xf0] }
  0x9c   :  { %v6469_v41 = vor.u32 %v8843_v28, %v6466_v29  ;;  %v8831_v11 = vld [vmem:[#allocation2 + $0x48c] sm:$0xf]  ;;  %v6530_v29 = vld [vmem:[#allocation2 + $0x578] sm:$0xf0] }
  0x9d   :  { %1512 = vmatpush.bf16.msrb.mxu3 %v6561_v25  ;;  %6616 = vmatmul.msk.bf16.vlgmr.msra.gmra.mxu0 %vm1259_vm0, %v9533_v45  ;;  %v8811_v25 = vld [vmem:[#allocation2 + $0x3ec] sm:$0xf] }
  0x9e   :  { %1538 = vmatpush.bf16.msrb.mxu2 %v5925_v24  ;;  %1552 = vmatpush.bf16.msrb.mxu0 %v6037_v43  ;;  %v8849_v24 = vld [vmem:[#allocation2 + $0x514] sm:$0xf0]  ;;  %v6341_v40 = vor.u32 %v8811_v25, %v6338_v26  ;;  %v6197_v43 = vor.u32 %v8775_v31, %v6194_v33  ;;  %v8759_v26 = vld [vmem:[#allocation2 + $0x24c] sm:$0xf] }
  0x9f   :  { %1501 = vmatpush.bf16.msra.mxu1 %v6401_v42  ;;  %v6481_v37 = vor.u32 %v8849_v24, %v6480_v19  ;;  %v8807_v42 = vld [vmem:[#allocation2 + $0x3cc] sm:$0xf]  ;;  %v6421_v19 = vor.u32 %v8831_v11, %v6418_v12  ;;  %v6402_v24 = vld [vmem:[#allocation2 + $0x478] sm:$0xf0] }
  0xa0   :  { %v6325_v56 = vor.u32 %v8807_v42, %v6322_v46  ;;  %v8859_v28 = vld [vmem:[#allocation2 + $0x56c] sm:$0xf]  ;;  %v6354_v11 = vld [vmem:[#allocation2 + $0x418] sm:$0xf0] }
  0xa1   :  { %1513 = vmatpush.bf16.msrb.mxu3 %v6545_v39  ;;  %v6594_v39 = vld [vmem:[#allocation2 + $0x5f8] sm:$0xf0]  ;;  %v8755_v42 = vld [vmem:[#allocation2 + $0x22c] sm:$0xf] }
  0xa2   :  { %1539 = vmatpush.bf16.msrb.mxu2 %v5909_v38  ;;  %1553 = vmatpush.bf16.msrb.mxu0 %v6021_v59  ;;  %v8875_v38 = vld [vmem:[#allocation2 + $0x5ec] sm:$0xf] }
  0xa3   :  { %1502 = vmatpush.bf16.msra.mxu1 %v6385_v58  ;;  %v6597_v49 = vor.u32 %v8875_v38, %v6594_v39  ;;  %v6453_v58 = vor.u32 %v8839_v47, %v6450_v48  ;;  %v8803_v59 = vld [vmem:[#allocation2 + $0x3ac] sm:$0xf]  ;;  %v6258_v38 = vld [vmem:[#allocation2 + $0x358] sm:$0xf0] }
  0xa4   :  { %v6309_v5 = vor.u32 %v8803_v59, %v6306_v61  ;;  %v8823_v39 = vld [vmem:[#allocation2 + $0x44c] sm:$0xf]  ;;  %v6514_v47 = vld [vmem:[#allocation2 + $0x558] sm:$0xf0]  ;;  %v6261_v48 = vor.u32 %v8791_v34, %v6258_v38  ;;  %v6700_v38 = vld [vmem:[#allocation4 + $0xa0] sm:$0xf] }
  0xa5   :  { %1514 = vmatpush.bf16.msrb.mxu3 %v6529_v53  ;;  %v8871_v53 = vld [vmem:[#allocation2 + $0x5cc] sm:$0xf] }
  0xa6   :  { %1540 = vmatpush.bf16.msrb.mxu2 %v5893_v52  ;;  %1554 = vmatpush.bf16.msrb.mxu0 %v6005_v8  ;;  %v6178_v52 = vld [vmem:[#allocation2 + $0x2b8] sm:$0xf0]  ;;  %v6581_v0 = vor.u32 %v8871_v53, %v6578_v54  ;;  %v8799_v8 = vld [vmem:[#allocation2 + $0x38c] sm:$0xf] }
  0xa7   :  { %1503 = vmatpush.bf16.msra.mxu1 %v6369_v6  ;;  %v6181_v60 = vor.u32 %v8771_v50, %v6178_v52  ;;  %v6437_v6 = vor.u32 %v8835_v62, %v6434_v63  ;;  %v8855_v46 = vld [vmem:[#allocation2 + $0x54c] sm:$0xf]  ;;  %v6242_v53 = vld [vmem:[#allocation2 + $0x338] sm:$0xf0] }
  0xa8   :  { %v8787_v50 = vld [vmem:[#allocation2 + $0x32c] sm:$0xf]  ;;  %v6498_v63 = vld [vmem:[#allocation2 + $0x538] sm:$0xf0] }
  0xa9   :  { %1515 = vmatpush.bf16.msrb.mxu3 %v6513_v3  ;;  %v8867_v3 = vld [vmem:[#allocation2 + $0x5ac] sm:$0xf] }
  0xaa   :  { %1541 = vmatpush.bf16.msrb.mxu2 %v5877_v2  ;;  %1555 = vmatpush.bf16.msrb.mxu0 %v5989_v23  ;;  %v6162_v2 = vld [vmem:[#allocation2 + $0x298] sm:$0xf0]  ;;  %v6565_v13 = vor.u32 %v8867_v3, %v6562_v4  ;;  %v8827_v23 = vld [vmem:[#allocation2 + $0x46c] sm:$0xf]  ;;  %v6245_v4 = vor.u32 %v8787_v50, %v6242_v53 }
  0xab   :  { %1504 = vmatpush.bf16.msra.mxu1 %v6353_v22  ;;  %v6165_v9 = vor.u32 %v8767_v1, %v6162_v2  ;;  %v6274_v22 = vld [vmem:[#allocation2 + $0x378] sm:$0xf0]  ;;  %v9569_v25 = vpop.f32.mrf.mxu1  ;;  %v6405_v33 = vor.u32 %v8827_v23, %v6402_v24  ;;  %v8819_v54 = vld [vmem:[#allocation2 + $0x42c] sm:$0xf]  ;;  %v9578_v2 = vld [vmem:[%s10065_s2] sm:$0xf] }
  0xac   :  { %v8751_v59 = vld [vmem:[#allocation2 + $0x20c] sm:$0xf]  ;;  %v6610_v1 = vld [vmem:[#allocation2 + $0x618] sm:$0xf0] }
  0xad   :  { %1516 = vmatpush.bf16.msrb.mxu3 %v6497_v18  ;;  %v6293_v18 = vor.u32 %v8799_v8, %v6290_v10  ;;  %v8851_v61 = vld [vmem:[#allocation2 + $0x52c] sm:$0xf] }
  0xae   :  { %1542 = vmatpush.bf16.msrb.mxu2 %v5861_v15  ;;  %1505 = vmatmul.bf16.vlgmr.msra.gmra.mxu1 %v9543_v30  ;;  %v6146_v15 = vld [vmem:[#allocation2 + $0x278] sm:$0xf0]  ;;  %v9567_v16 = vpop.f32.mrf.mxu0  ;;  %v8815_v10 = vld [vmem:[#allocation2 + $0x40c] sm:$0xf] }
  0xaf   :  { %1562 = vmatpush.bf16.msrb.mxu1 %v6213_v27  ;;  %1556 = vmatpush.bf16.msrb.mxu0 %v5973_v44  ;;  %v6149_v21 = vor.u32 %v8763_v14, %v6146_v15  ;;  %v6130_v27 = vld [vmem:[#allocation2 + $0x258] sm:$0xf0]  ;;  %v6732_v14 = vld [vmem:[#allocation4 + $0xe0] sm:$0xf]  ;;  %v8912_v15 = vld [vmem:[#allocation4 + $0xec] sm:$0xf0]  ;;  %v6357_v23 = vor.u32 %v8815_v10, %v6354_v11 }
  0xb0   :  { %v6133_v36 = vor.u32 %v8759_v26, %v6130_v27  ;;  %v6733_v24 = vor.u32 %v8912_v15, %v6732_v14  ;;  %v6716_v26 = vld [vmem:[#allocation4 + $0xc0] sm:$0xf]  ;;  %v8908_v27 = vld [vmem:[#allocation4 + $0xcc] sm:$0xf0] }
  0xb1   :  { %1517 = vmatpush.bf16.msrb.mxu3 %v6481_v37  ;;  %v6764_v11 = vld [vmem:[#allocation4 + $0x120] sm:$0xf]  ;;  %v8884_v15 = vld [vmem:[#allocation4 + $0xc] sm:$0xf0] }
  0xb2   :  { %1543 = vmatpush.bf16.msrb.mxu2 %v5845_v32  ;;  %1557 = vmatmul.bf16.vlgmr.msrb.gmra.mxu0 %v9526_v7  ;;  %v6277_v32 = vor.u32 %v8795_v20, %v6274_v22  ;;  %v8944_v20 = vld [vmem:[#allocation4 + $0x1ec] sm:$0xf0]  ;;  %v6620_v14 = vld [vmem:[#allocation4] sm:$0xf] }
  0xb3   :  { %1563 = vmatpush.bf16.msrb.mxu1 %v6197_v43  ;;  %1601 = vmatpush.bf16.msra.mxu0 %v6597_v49  ;;  %v9571_v31 = vpop.f32.mrf.mxu2  ;;  %v9573_v37 = vpop.f32.mrf.mxu3  ;;  %v6114_v43 = vld [vmem:[#allocation2 + $0x238] sm:$0xf0] }
  0xb4   :  { %1518 = vmatmul.bf16.vlgmr.msrb.gmra.mxu3 %v9545_v35  ;;  %v6117_v52 = vor.u32 %v8755_v42, %v6114_v43  ;;  %v1287_v62 = vpop.f32.mrf.mxu1  ;;  %v8936_v42 = vld [vmem:[#allocation4 + $0x1ac] sm:$0xf0] }
  0xb5   :  { %1575 = vmatpush.bf16.msra.mxu3 %v6341_v40  ;;  %1544 = vmatmul.bf16.vlgmr.msrb.gmra.mxu2 %v9517_v55  ;;  %v8863_v55 = vld [vmem:[#allocation2 + $0x58c] sm:$0xf]  ;;  %v6386_v40 = vld [vmem:[#allocation2 + $0x458] sm:$0xf0]  ;;  %v8892_v62 = vld [vmem:[#allocation4 + $0x4c] sm:$0xf0] }
  0xb6   :  { %1588 = vmatpush.bf16.msra.mxu2 %v6469_v41  ;;  %v6549_v7 = vor.u32 %v8863_v55, %v6546_v17  ;;  %v6533_v41 = vor.u32 %v8859_v28, %v6530_v29  ;;  %v1274_v44 = vpop.f32.mrf.mxu0  ;;  %v6389_v49 = vor.u32 %v8823_v39, %v6386_v40  ;;  %v8847_v55 = vld [vmem:[#allocation2 + $0x50c] sm:$0xf]  ;;  %v6844_v29 = vld [vmem:[#allocation4 + $0x1c0] sm:$0xf]  ;;  %v8904_v39 = vld [vmem:[#allocation4 + $0xac] sm:$0xf0] }
  0xb7   :  { %1564 = vmatpush.bf16.msrb.mxu1 %v6181_v60  ;;  %1602 = vmatpush.bf16.msra.mxu0 %v6581_v0  ;;  %v6098_v60 = vld [vmem:[#allocation2 + $0x218] sm:$0xf0]  ;;  %v8879_v0 = vld [vmem:[#allocation2 + $0x60c] sm:$0xf]  ;;  %v8900_v44 = vld [vmem:[#allocation4 + $0x8c] sm:$0xf0] }
  0xb8   :  { %v6101_v8 = vor.u32 %v8751_v59, %v6098_v60  ;;  %v6613_v17 = vor.u32 %v8879_v0, %v6610_v1  ;;  %v6780_v0 = vld [vmem:[#allocation4 + $0x140] sm:$0xf]  ;;  %v8924_v1 = vld [vmem:[#allocation4 + $0x14c] sm:$0xf0] }
  0xb9   :  { %1576 = vmatpush.bf16.msra.mxu3 %v6325_v56  ;;  %v6370_v56 = vld [vmem:[#allocation2 + $0x438] sm:$0xf0]  ;;  %v6781_v10 = vor.u32 %v8924_v1, %v6780_v0  ;;  %v8960_v0 = vld [vmem:[#allocation4 + $0x26c] sm:$0xf0]  ;;  %v272_v1 = vperm.slane %v9578_v2, 1 }
  0xba   :  { %1589 = vmatpush.bf16.msra.mxu2 %v6453_v58  ;;  %v6517_v58 = vor.u32 %v8855_v46, %v6514_v47 }
  0xbb   :  { %1565 = vmatpush.bf16.msrb.mxu1 %v6165_v9  ;;  %1603 = vmatpush.bf16.msra.mxu0 %v6565_v13  ;;  %v1300_v3 = vpop.f32.mrf.mxu2  ;;  %v6226_v9 = vld [vmem:[#allocation2 + $0x318] sm:$0xf0]  ;;  %v1313_v12 = vpop.f32.mrf.mxu3  ;;  %v6501_v13 = vor.u32 %v8851_v61, %v6498_v63  ;;  %v6652_v61 = vld [vmem:[#allocation4 + $0x40] sm:$0xf] }
  0xbc   :  { %v8920_v12 = vld [vmem:[#allocation4 + $0x12c] sm:$0xf0] }
  0xbd   :  { %1577 = vmatpush.bf16.msra.mxu3 %v6309_v5  ;;  %v6373_v5 = vor.u32 %v8819_v54, %v6370_v56  ;;  %v8896_v54 = vld [vmem:[#allocation4 + $0x6c] sm:$0xf0]  ;;  %v6796_v56 = vld [vmem:[#allocation4 + $0x160] sm:$0xf] }
  0xbe   :  { %1590 = vmatpush.bf16.msra.mxu2 %v6437_v6  ;;  %v8783_v6 = vld [vmem:[#allocation2 + $0x30c] sm:$0xf] }
  0xbf   :  { %1566 = vmatpush.bf16.msrb.mxu1 %v6149_v21  ;;  %1604 = vmatpush.bf16.msra.mxu0 %v6549_v7  ;;  %v271_v21 = vperm.slane %v9578_v2, 0  ;;  %v6229_v22 = vor.u32 %v8783_v6, %v6226_v9  ;;  %v8888_v9 = vld [vmem:[#allocation4 + $0x2c] sm:$0xf0] }
  0xc1   :  { %1578 = vmatpush.bf16.msra.mxu3 %v6293_v18  ;;  %v6482_v18 = vld [vmem:[#allocation2 + $0x518] sm:$0xf0] }
  0xc2   :  { %1591 = vmatpush.bf16.msra.mxu2 %v6421_v19  ;;  %v6860_v19 = vld [vmem:[#allocation4 + $0x1e0] sm:$0xf]  ;;  %v6485_v7 = vor.u32 %v8847_v55, %v6482_v18 }
  0xc3   :  { %1567 = vmatpush.bf16.msrb.mxu1 %v6133_v36  ;;  %1605 = vmatpush.bf16.msra.mxu0 %v6533_v41  ;;  %v6861_v28 = vor.u32 %v8944_v20, %v6860_v19  ;;  %v9583_v34 = vpop.f32.mrf.mxu2  ;;  %v6717_v36 = vor.u32 %v8908_v27, %v6716_v26  ;;  %v6828_v41 = vld [vmem:[#allocation4 + $0x1a0] sm:$0xf]  ;;  %v8976_v19 = vld [vmem:[#allocation4 + $0x2ec] sm:$0xf0]  ;;  %v6862_v26 = vld [vmem:[#allocation4 + $0x1f0] sm:$0xf0]  ;;  %v6621_v27 = vor.u32 %v8884_v15, %v6620_v14 }
  0xc4   :  { %v6829_v46 = vor.u32 %v8936_v42, %v6828_v41  ;;  %v6988_v18 = vld [vmem:[#allocation4 + $0x2e0] sm:$0xf]  ;;  %v8938_v42 = vld [vmem:[#allocation4 + $0x1c4] sm:$0xf] }
  0xc5   :  { %1579 = vmatpush.bf16.msra.mxu3 %v6277_v32  ;;  %v8940_v32 = vld [vmem:[#allocation4 + $0x1cc] sm:$0xf0]  ;;  %v8890_v15 = vld [vmem:[#allocation4 + $0x44] sm:$0xf] }
  0xc6   :  { %1592 = vmatpush.bf16.msra.mxu2 %v6405_v33  ;;  %v1273_v33 = vadd.f32 %v9567_v16, %v271_v21  ;;  %v6845_v40 = vor.u32 %v8940_v32, %v6844_v29  ;;  %v6684_v16 = vld [vmem:[#allocation4 + $0x80] sm:$0xf]  ;;  %v6734_v21 = vld [vmem:[#allocation4 + $0xf0] sm:$0xf0] }
  0xc7   :  { %1568 = vmatpush.bf16.msrb.mxu1 %v6117_v52  ;;  %1606 = vmatpush.bf16.msra.mxu0 %v6517_v58  ;;  %v6685_v53 = vor.u32 %v8900_v44, %v6684_v16  ;;  %v6956_v44 = vld [vmem:[#allocation4 + $0x2a0] sm:$0xf] }
  0xc8   :  { %v1286_v43 = vadd.f32 %v9569_v25, %v1273_v33  ;;  %v6668_v25 = vld [vmem:[#allocation4 + $0x60] sm:$0xf] }
  0xc9   :  { %1580 = vmatpush.bf16.msra.mxu3 %v6261_v48  ;;  %v6812_v48 = vld [vmem:[#allocation4 + $0x180] sm:$0xf]  ;;  %v6669_v59 = vor.u32 %v8896_v54, %v6668_v25  ;;  %v8964_v54 = vld [vmem:[#allocation4 + $0x28c] sm:$0xf0] }
  0xca   :  { %1593 = vmatpush.bf16.msra.mxu2 %v6389_v49  ;;  %v1324_v47 = vpop.f32.mrf.mxu0  ;;  %v8932_v49 = vld [vmem:[#allocation4 + $0x18c] sm:$0xf0]  ;;  %v1299_v50 = vadd.f32 %v9571_v31, %v1286_v43  ;;  %v6846_v43 = vld [vmem:[#allocation4 + $0x1d0] sm:$0xf0]  ;;  %v6940_v25 = vld [vmem:[#allocation4 + $0x280] sm:$0xf] }
  0xcb   :  { %1569 = vmatpush.bf16.msrb.mxu1 %v6101_v8  ;;  %1607 = vmatpush.bf16.msra.mxu0 %v6501_v13  ;;  %v1352_v52 = vpop.f32.mrf.mxu2  ;;  %v6636_v8 = vld [vmem:[#allocation4 + $0x20] sm:$0xf] }
  0xcc   :  { %v1312_v58 = vadd.f32 %v9573_v37, %v1299_v50  ;;  %v6637_v13 = vor.u32 %v8888_v9, %v6636_v8  ;;  %v6830_v52 = vld [vmem:[#allocation4 + $0x1b0] sm:$0xf0]  ;;  %v8926_v9 = vld [vmem:[#allocation4 + $0x164] sm:$0xf] }
  0xcd   :  { %1581 = vmatpush.bf16.msra.mxu3 %v6245_v4 }
  0xce   :  { %1594 = vmatpush.bf16.msra.mxu2 %v6373_v5  ;;  %1570 = vmatmul.bf16.vlgmr.msrb.gmra.mxu1 %v9515_v51  ;;  %v6701_v51 = vor.u32 %v8904_v39, %v6700_v38  ;;  %v1325_v60 = vadd.f32 %v1324_v47, %v1312_v58  ;;  %v6653_v5 = vor.u32 %v8892_v62, %v6652_v61  ;;  %v8906_v38 = vld [vmem:[#allocation4 + $0xc4] sm:$0xf]  ;;  %v6718_v39 = vld [vmem:[#allocation4 + $0xd0] sm:$0xf0] }
  0xcf   :  { %1621 = vmatpush.bf16.msra.mxu1 %v6613_v17  ;;  %1608 = vmatpush.bf16.msra.mxu0 %v6485_v7  ;;  %v6765_v17 = vor.u32 %v8920_v12, %v6764_v11  ;;  %v8942_v7 = vld [vmem:[#allocation4 + $0x1e4] sm:$0xf]  ;;  %v6721_v16 = vor.u32 %v8906_v38, %v6718_v39  ;;  %v6941_v58 = vor.u32 %v8964_v54, %v6940_v25  ;;  %v6908_v12 = vld [vmem:[#allocation4 + $0x240] sm:$0xf] }
  0xd0   :  { %v8902_v47 = vld [vmem:[#allocation4 + $0xa4] sm:$0xf] }
  0xd1   :  { %1582 = vmatpush.bf16.msra.mxu3 %v6229_v22  ;;  %v6748_v22 = vld [vmem:[#allocation4 + $0x100] sm:$0xf]  ;;  %v8882_v38 = vld [vmem:[#allocation4 + $0x4] sm:$0xf] }
  0xd2   :  { %1595 = vmatpush.bf16.msra.mxu2 %v6357_v23  ;;  %1609 = vmatmul.bf16.vlgmr.msra.gmra.mxu0 %v9545_v35  ;;  %v8928_v35 = vld [vmem:[#allocation4 + $0x16c] sm:$0xf0]  ;;  %v1326_v3 = vpop.f32.mrf.mxu0 }
  0xd3   :  { %2426 = vmatpush.bf16.msrb.mxu1 %v6861_v28  ;;  %v6797_v63 = vor.u32 %v8928_v35, %v6796_v56  ;;  %v9591_v31 = vpop.f32.mrf.mxu3  ;;  %v8916_v23 = vld [vmem:[#allocation4 + $0x10c] sm:$0xf0]  ;;  %v6686_v56 = vld [vmem:[#allocation4 + $0x90] sm:$0xf0] }
  0xd4   :  { %1583 = vmatmul.bf16.vlgmr.msra.gmra.mxu3 %v9519_v57  ;;  %v1337_v57 = vpop.f32.mrf.mxu1  ;;  %v6749_v33 = vor.u32 %v8916_v23, %v6748_v22  ;;  %v1364_v14 = vadd.f32 %v9591_v31, %v272_v1 }
  0xd5   :  { %2413 = vmatpush.bf16.msrb.mxu3 %v6733_v24  ;;  %1596 = vmatmul.bf16.vlgmr.msra.gmra.mxu2 %v9543_v30  ;;  %v6813_v30 = vor.u32 %v8932_v49, %v6812_v48  ;;  %v1338_v37 = vadd.f32 %v1337_v57, %v1325_v60  ;;  %v6989_v24 = vor.u32 %v8976_v19, %v6988_v18  ;;  %v6702_v48 = vld [vmem:[#allocation4 + $0xb0] sm:$0xf0]  ;;  %v8934_v57 = vld [vmem:[#allocation4 + $0x1a4] sm:$0xf] }
  0xd6   :  { %v6849_v49 = vor.u32 %v8938_v42, %v6846_v43  ;;  %v6833_v35 = vor.u32 %v8934_v57, %v6830_v52  ;;  %v6814_v60 = vld [vmem:[#allocation4 + $0x190] sm:$0xf0]  ;;  %v8922_v19 = vld [vmem:[#allocation4 + $0x144] sm:$0xf]  ;;  %v8948_v42 = vld [vmem:[#allocation4 + $0x20c] sm:$0xf0] }
  0xd7   :  { %2427 = vmatpush.bf16.msrb.mxu1 %v6845_v40  ;;  %v1351_v55 = vadd.f32 %v9583_v34, %v1338_v37  ;;  %2439 = vmatpush.bf16.msrb.mxu2 %v6989_v24  ;;  %v6972_v34 = vld [vmem:[#allocation4 + $0x2c0] sm:$0xf]  ;;  %v6865_v40 = vor.u32 %v8942_v7, %v6862_v26  ;;  %v8952_v7 = vld [vmem:[#allocation4 + $0x22c] sm:$0xf0]  ;;  %v6740_v43 = vld [vmem:[#allocation4 + $0xe8] sm:$0xf] }
  0xd8   :  { %v9595_v6 = vpop.f32.mrf.mxu2  ;;  %v6892_v24 = vld [vmem:[#allocation4 + $0x220] sm:$0xf] }
  0xd9   :  { %2414 = vmatpush.bf16.msrb.mxu3 %v6717_v36  ;;  %v1627_v29 = vmax.f32 %v1351_v55, 0.0  ;;  %v8972_v36 = vld [vmem:[#allocation4 + $0x2cc] sm:$0xf0]  ;;  %v6654_v55 = vld [vmem:[#allocation4 + $0x50] sm:$0xf0]  ;;  %v1377_v26 = vadd.f32 %v9595_v6, %v1364_v14 }
  0xda   :  { %v6973_v41 = vor.u32 %v8972_v36, %v6972_v34  ;;  %v6657_v23 = vor.u32 %v8890_v15, %v6654_v55  ;;  %v6766_v34 = vld [vmem:[#allocation4 + $0x130] sm:$0xf0]  ;;  %v6868_v14 = vld [vmem:[#allocation4 + $0x1e8] sm:$0xf]  ;;  %v8945_v15 = vld [vmem:[#allocation4 + $0x1f4] sm:$0xf0] }
  0xdb   :  { %2428 = vmatpush.bf16.msrb.mxu1 %v6829_v46  ;;  %v1365_v20 = vpop.f32.mrf.mxu3  ;;  %v8968_v46 = vld [vmem:[#allocation4 + $0x2ac] sm:$0xf0] }
  0xdc   :  { %v1339_v4 = vpop.f32.mrf.mxu1  ;;  %2440 = vmatpush.bf16.msrb.mxu2 %v6973_v41  ;;  %v6957_v50 = vor.u32 %v8968_v46, %v6956_v44  ;;  %v6782_v20 = vld [vmem:[#allocation4 + $0x150] sm:$0xf0]  ;;  %v6876_v41 = vld [vmem:[#allocation4 + $0x200] sm:$0xf]  ;;  %v8974_v44 = vld [vmem:[#allocation4 + $0x2e4] sm:$0xf] }
  0xdd   :  { %2415 = vmatpush.bf16.msrb.mxu3 %v6701_v51  ;;  %v9598_v51 = vpack.c.bf16 %v1627_v29, %v1627_v29  ;;  %v8894_v4 = vld [vmem:[#allocation4 + $0x64] sm:$0xf]  ;;  %v6785_v31 = vor.u32 %v8922_v19, %v6782_v20  ;;  %v6877_v6 = vor.u32 %v8948_v42, %v6876_v41  ;;  %v6990_v46 = vld [vmem:[#allocation4 + $0x2f0] sm:$0xf0]  ;;  %v8901_v19 = vld [vmem:[#allocation4 + $0x94] sm:$0xf0] }
  0xde   :  { %6617 = vmatmul.msk.bf16.vlgmr.msra.gmra.mxu1 %vm1259_vm0, %v9533_v45  ;;  %v8910_v45 = vld [vmem:[#allocation4 + $0xe4] sm:$0xf]  ;;  %v6993_v57 = vor.u32 %v8974_v44, %v6990_v46  ;;  %v7068_v42 = vld [vmem:[#allocation4 + $0x380] sm:$0xf] }
  0xdf   :  { %2429 = vmatpush.bf16.msrb.mxu1 %v6813_v30  ;;  %v6737_v32 = vor.u32 %v8910_v45, %v6734_v21  ;;  %v8898_v30 = vld [vmem:[#allocation4 + $0x84] sm:$0xf] }
  0xe0   :  { %v1378_v28 = vpop.f32.mrf.mxu2  ;;  %2441 = vmatpush.bf16.msrb.mxu2 %v6957_v50  ;;  %v6689_v62 = vor.u32 %v8898_v30, %v6686_v56  ;;  %v6750_v50 = vld [vmem:[#allocation4 + $0x110] sm:$0xf0]  ;;  %v6724_v56 = vld [vmem:[#allocation4 + $0xc8] sm:$0xf]  ;;  %v8962_v20 = vld [vmem:[#allocation4 + $0x284] sm:$0xf] }
  0xe1   :  { %2416 = vmatpush.bf16.msrb.mxu3 %v6685_v53  ;;  %v6705_v53 = vor.u32 %v8902_v47, %v6702_v48  ;;  %v6638_v28 = vld [vmem:[#allocation4 + $0x30] sm:$0xf0]  ;;  %v8913_v48 = vld [vmem:[#allocation4 + $0xf4] sm:$0xf0] }
  0xe2   :  { %v6741_v30 = vor.u32 %v8913_v48, %v6740_v43  ;;  %v8996_v43 = vld [vmem:[#allocation4 + $0x38c] sm:$0xf0]  ;;  %v6660_v48 = vld [vmem:[#allocation4 + $0x48] sm:$0xf] }
  0xe3   :  { %2430 = vmatpush.bf16.msrb.mxu1 %v6797_v63  ;;  %v6924_v63 = vld [vmem:[#allocation4 + $0x260] sm:$0xf]  ;;  %v7069_v44 = vor.u32 %v8996_v43, %v7068_v42  ;;  %v9006_v42 = vld [vmem:[#allocation4 + $0x3e4] sm:$0xf]  ;;  %v7118_v43 = vld [vmem:[#allocation4 + $0x3f0] sm:$0xf0] }
  0xe4   :  { %2442 = vmatpush.bf16.msrb.mxu2 %v6941_v58  ;;  %v6925_v8 = vor.u32 %v8960_v0, %v6924_v63  ;;  %v8970_v58 = vld [vmem:[#allocation4 + $0x2c4] sm:$0xf]  ;;  %v9008_v63 = vld [vmem:[#allocation4 + $0x3ec] sm:$0xf0] }
  0xe5   :  { %2417 = vmatpush.bf16.msrb.mxu3 %v6669_v59  ;;  %v8930_v59 = vld [vmem:[#allocation4 + $0x184] sm:$0xf] }
  0xe6   :  { %v6817_v37 = vor.u32 %v8930_v59, %v6814_v60  ;;  %v6974_v59 = vld [vmem:[#allocation4 + $0x2d0] sm:$0xf0]  ;;  %v8909_v60 = vld [vmem:[#allocation4 + $0xd4] sm:$0xf0] }
  0xe7   :  { %2431 = vmatpush.bf16.msrb.mxu1 %v6781_v10  ;;  %v6798_v10 = vld [vmem:[#allocation4 + $0x170] sm:$0xf0] }
  0xe8   :  { %2443 = vmatpush.bf16.msrb.mxu2 %v6925_v8  ;;  %v6801_v45 = vor.u32 %v8926_v9, %v6798_v10  ;;  %v8905_v9 = vld [vmem:[#allocation4 + $0xb4] sm:$0xf0] }
  0xe9   :  { %2418 = vmatpush.bf16.msrb.mxu3 %v6653_v5  ;;  %v6670_v5 = vld [vmem:[#allocation4 + $0x70] sm:$0xf0] }
  0xea   :  { %v1389_v61 = vpop.f32.mrf.mxu0  ;;  %v6673_v11 = vor.u32 %v8894_v4, %v6670_v5  ;;  %v6708_v4 = vld [vmem:[#allocation4 + $0xa8] sm:$0xf]  ;;  %v8966_v5 = vld [vmem:[#allocation4 + $0x2a4] sm:$0xf] }
  0xeb   :  { %2432 = vmatpush.bf16.msrb.mxu1 %v6765_v17  ;;  %v1390_v36 = vadd.f32 %v1389_v61, %v1377_v26  ;;  %v6977_v61 = vor.u32 %v8970_v58, %v6974_v59  ;;  %v6852_v26 = vld [vmem:[#allocation4 + $0x1c8] sm:$0xf] }
  0xec   :  { %v6644_v59 = vld [vmem:[#allocation4 + $0x28] sm:$0xf] }
  0xed   :  { %2419 = vmatpush.bf16.msrb.mxu3 %v6637_v13  ;;  %v1402_v3 = vpop.f32.mrf.mxu1  ;;  %v8956_v13 = vld [vmem:[#allocation4 + $0x24c] sm:$0xf0] }
  0xee   :  { %v6909_v17 = vor.u32 %v8956_v13, %v6908_v12  ;;  %v1403_v52 = vadd.f32 %v1402_v3, %v1390_v36  ;;  %v6725_v3 = vor.u32 %v8909_v60, %v6724_v56  ;;  %v9004_v12 = vld [vmem:[#allocation4 + $0x3cc] sm:$0xf0]  ;;  %v8933_v56 = vld [vmem:[#allocation4 + $0x194] sm:$0xf0]  ;;  %v8950_v60 = vld [vmem:[#allocation4 + $0x224] sm:$0xf] }
  0xef   :  { %2433 = vmatpush.bf16.msrb.mxu1 %v6749_v33  ;;  %v8918_v33 = vld [vmem:[#allocation4 + $0x124] sm:$0xf] }
  0xf0   :  { %2444 = vmatpush.bf16.msrb.mxu2 %v6909_v17 }
  0xf1   :  { %2420 = vmatpush.bf16.msrb.mxu3 %v6621_v27  ;;  %v8886_v27 = vld [vmem:[#allocation4 + $0x24] sm:$0xf] }
  0xf2   :  { %v1391_v21 = vpop.f32.mrf.mxu0  ;;  %v6641_v39 = vor.u32 %v8886_v27, %v6638_v28  ;;  %v8941_v27 = vld [vmem:[#allocation4 + $0x1d4] sm:$0xf0] }
  0xf3   :  { %2478 = vmatpush.bf16.msra.mxu1 %v6865_v40  ;;  %v1415_v18 = vpop.f32.mrf.mxu3  ;;  %v6622_v40 = vld [vmem:[#allocation4 + $0x10] sm:$0xf0]  ;;  %v6869_v21 = vor.u32 %v8945_v15, %v6868_v14  ;;  %v8885_v14 = vld [vmem:[#allocation4 + $0x14] sm:$0xf0]  ;;  %v8946_v15 = vld [vmem:[#allocation4 + $0x204] sm:$0xf] }
  0xf4   :  { %2421 = vmatmul.bf16.vlgmr.msrb.gmra.mxu3 %v9598_v51  ;;  %v1416_v54 = vadd.f32 %v1415_v18, %v1403_v52  ;;  %v6709_v18 = vor.u32 %v8905_v9, %v6708_v4  ;;  %v8893_v52 = vld [vmem:[#allocation4 + $0x54] sm:$0xf0]  ;;  %v7036_v4 = vld [vmem:[#allocation4 + $0x340] sm:$0xf] }
  0xf5   :  { %2465 = vmatpush.bf16.msra.mxu3 %v6737_v32  ;;  %v1404_v29 = vpop.f32.mrf.mxu1  ;;  %v6893_v32 = vor.u32 %v8952_v7, %v6892_v24  ;;  %v9000_v24 = vld [vmem:[#allocation4 + $0x3ac] sm:$0xf0]  ;;  %v6661_v58 = vor.u32 %v8893_v52, %v6660_v48  ;;  %v6710_v52 = vld [vmem:[#allocation4 + $0xb8] sm:$0xf0] }
  0xf7   :  { %2479 = vmatpush.bf16.msra.mxu1 %v6849_v49  ;;  %2445 = vmatpush.bf16.msrb.mxu2 %v6893_v32  ;;  %v8914_v49 = vld [vmem:[#allocation4 + $0x104] sm:$0xf]  ;;  %v6676_v32 = vld [vmem:[#allocation4 + $0x68] sm:$0xf] }
  0xf8   :  { %v1428_v22 = vpop.f32.mrf.mxu2 }
  0xf9   :  { %2466 = vmatpush.bf16.msra.mxu3 %v6721_v16  ;;  %v6769_v16 = vor.u32 %v8918_v33, %v6766_v34  ;;  %v1429_v1 = vadd.f32 %v1428_v22, %v1416_v54  ;;  %v6942_v22 = vld [vmem:[#allocation4 + $0x290] sm:$0xf0]  ;;  %v8958_v33 = vld [vmem:[#allocation4 + $0x264] sm:$0xf]  ;;  %v8992_v54 = vld [vmem:[#allocation4 + $0x36c] sm:$0xf0] }
  0xfa   :  { %v6945_v28 = vor.u32 %v8962_v20, %v6942_v22  ;;  %v6926_v34 = vld [vmem:[#allocation4 + $0x270] sm:$0xf0]  ;;  %v8984_v20 = vld [vmem:[#allocation4 + $0x32c] sm:$0xf0]  ;;  %v8911_v22 = vld [vmem:[#allocation4 + $0xec] sm:$0xf] }
  0xfb   :  { %2480 = vmatpush.bf16.msra.mxu1 %v6833_v35  ;;  %v1417_v47 = vpop.f32.mrf.mxu3  ;;  %2446 = vmatpush.bf16.msrb.mxu2 %v6877_v6  ;;  %v6753_v35 = vor.u32 %v8914_v49, %v6750_v50  ;;  %v6929_v41 = vor.u32 %v8958_v33, %v6926_v34  ;;  %v8937_v6 = vld [vmem:[#allocation4 + $0x1b4] sm:$0xf0]  ;;  %v8954_v49 = vld [vmem:[#allocation4 + $0x244] sm:$0xf]  ;;  %v6910_v50 = vld [vmem:[#allocation4 + $0x250] sm:$0xf0] }
  0xfd   :  { %2467 = vmatpush.bf16.msra.mxu3 %v6705_v53  ;;  %v6625_v53 = vor.u32 %v8882_v38, %v6622_v40  ;;  %v8897_v40 = vld [vmem:[#allocation4 + $0x74] sm:$0xf0] }
  0xfe   :  { %v6677_v47 = vor.u32 %v8897_v40, %v6676_v32  ;;  %v8907_v32 = vld [vmem:[#allocation4 + $0xcc] sm:$0xf]  ;;  %v6726_v40 = vld [vmem:[#allocation4 + $0xd8] sm:$0xf0] }
  0xff   :  { %2481 = vmatpush.bf16.msra.mxu1 %v6817_v37  ;;  %2491 = vmatpush.bf16.msra.mxu2 %v6993_v57  ;;  %v6958_v37 = vld [vmem:[#allocation4 + $0x2b0] sm:$0xf0]  ;;  %v6729_v48 = vor.u32 %v8907_v32, %v6726_v40  ;;  %v6646_v40 = vld [vmem:[#allocation4 + $0x38] sm:$0xf0] }
 0x100   :  { %v1430_v25 = vpop.f32.mrf.mxu2  ;;  %v6961_v10 = vor.u32 %v8966_v5, %v6958_v37  ;;  %v8988_v5 = vld [vmem:[#allocation4 + $0x34c] sm:$0xf0]  ;;  %v6804_v37 = vld [vmem:[#allocation4 + $0x168] sm:$0xf] }
 0x101   :  { %2468 = vmatpush.bf16.msra.mxu3 %v6689_v62  ;;  %v7116_v62 = vld [vmem:[#allocation4 + $0x3e0] sm:$0xf]  ;;  %v7037_v9 = vor.u32 %v8988_v5, %v7036_v4  ;;  %v8939_v5 = vld [vmem:[#allocation4 + $0x1cc] sm:$0xf] }
 0x102   :  { %v7117_v0 = vor.u32 %v9008_v63, %v7116_v62  ;;  %v7052_v25 = vld [vmem:[#allocation4 + $0x360] sm:$0xf] }
 0x103   :  { %2482 = vmatpush.bf16.msra.mxu1 %v6801_v45  ;;  %2492 = vmatpush.bf16.msra.mxu2 %v6977_v61  ;;  %v1441_v8 = vpop.f32.mrf.mxu3  ;;  %v6692_v45 = vld [vmem:[#allocation4 + $0x88] sm:$0xf]  ;;  %v6894_v61 = vld [vmem:[#allocation4 + $0x230] sm:$0xf0] }
 0x104   :  { %2452 = vmatpush.bf16.msrb.mxu0 %v7117_v0  ;;  %v1442_v13 = vadd.f32 %v1441_v8, %v1429_v1  ;;  %v6693_v29 = vor.u32 %v8901_v19, %v6692_v45  ;;  %v8889_v1 = vld [vmem:[#allocation4 + $0x34] sm:$0xf0]  ;;  %v7020_v19 = vld [vmem:[#allocation4 + $0x320] sm:$0xf] }
 0x105   :  { %2469 = vmatpush.bf16.msra.mxu3 %v6673_v11  ;;  %v7100_v11 = vld [vmem:[#allocation4 + $0x3c0] sm:$0xf]  ;;  %v8929_v8 = vld [vmem:[#allocation4 + $0x174] sm:$0xf0] }
 0x106   :  { %v7101_v55 = vor.u32 %v9004_v12, %v7100_v11  ;;  %v1628_v17 = vmax.f32 %v1442_v13, 0.0  ;;  %v6628_v11 = vld [vmem:[#allocation4 + $0x8] sm:$0xf]  ;;  %v6645_v13 = vor.u32 %v8889_v1, %v6644_v59  ;;  %v6805_v45 = vor.u32 %v8929_v8, %v6804_v37  ;;  %v8998_v1 = vld [vmem:[#allocation4 + $0x3a4] sm:$0xf] }
 0x107   :  { %2483 = vmatpush.bf16.msra.mxu1 %v6785_v31  ;;  %2493 = vmatpush.bf16.msra.mxu2 %v6961_v10 }
 0x108   :  { %2453 = vmatpush.bf16.msrb.mxu0 %v7101_v55  ;;  %v9605_v7 = vpack.c.bf16 %v1628_v17, %v1628_v17  ;;  %v6878_v55 = vld [vmem:[#allocation4 + $0x210] sm:$0xf0]  ;;  %v6788_v17 = vld [vmem:[#allocation4 + $0x148] sm:$0xf] }
 0x109   :  { %2470 = vmatpush.bf16.msra.mxu3 %v6657_v23  ;;  %v7084_v23 = vld [vmem:[#allocation4 + $0x3a0] sm:$0xf] }
 0x10a   :  { %v7085_v31 = vor.u32 %v9000_v24, %v7084_v23  ;;  %2434 = vmatmul.bf16.vlgmr.msrb.gmra.mxu1 %v9605_v7  ;;  %v9608_v38 = vpop.f32.mrf.mxu0  ;;  %v6742_v23 = vld [vmem:[#allocation4 + $0xf8] sm:$0xf0]  ;;  %v7021_v24 = vor.u32 %v8984_v20, %v7020_v19  ;;  %v8891_v19 = vld [vmem:[#allocation4 + $0x4c] sm:$0xf] }
 0x10b   :  { %2484 = vmatpush.bf16.msra.mxu1 %v6769_v16  ;;  %v1443_v36 = vpop.f32.mrf.mxu3  ;;  %2494 = vmatpush.bf16.msra.mxu2 %v6945_v28  ;;  %v6836_v16 = vld [vmem:[#allocation4 + $0x1a8] sm:$0xf]  ;;  %v8921_v28 = vld [vmem:[#allocation4 + $0x134] sm:$0xf0] }
 0x10c   :  { %2454 = vmatpush.bf16.msrb.mxu0 %v7085_v31  ;;  %v6837_v57 = vor.u32 %v8937_v6, %v6836_v16  ;;  %v7004_v36 = vld [vmem:[#allocation4 + $0x300] sm:$0xf]  ;;  %v273_v16 = vperm.slane %v9578_v2, 2 }
 0x10d   :  { %2471 = vmatpush.bf16.msra.mxu3 %v6641_v39  ;;  %v6853_v39 = vor.u32 %v8941_v27, %v6852_v26  ;;  %v9610_v46 = vpop.f32.mrf.mxu1  ;;  %v6629_v26 = vor.u32 %v8885_v14, %v6628_v11  ;;  %v6772_v27 = vld [vmem:[#allocation4 + $0x128] sm:$0xf]  ;;  %v8895_v11 = vld [vmem:[#allocation4 + $0x6c] sm:$0xf]  ;;  %v8994_v14 = vld [vmem:[#allocation4 + $0x384] sm:$0xf] }
 0x10f   :  { %2485 = vmatpush.bf16.msra.mxu1 %v6753_v35  ;;  %2495 = vmatpush.bf16.msra.mxu2 %v6929_v41  ;;  %v7053_v35 = vor.u32 %v8992_v54, %v7052_v25  ;;  %v7102_v25 = vld [vmem:[#allocation4 + $0x3d0] sm:$0xf0]  ;;  %v1455_v54 = vadd.f32 %v9610_v46, %v273_v16  ;;  %v6854_v46 = vld [vmem:[#allocation4 + $0x1d8] sm:$0xf0]  ;;  %v8927_v16 = vld [vmem:[#allocation4 + $0x16c] sm:$0xf] }
 0x110   :  { %2455 = vmatpush.bf16.msrb.mxu0 %v7069_v44  ;;  %v7121_v44 = vor.u32 %v9006_v42, %v7118_v43  ;;  %v7038_v42 = vld [vmem:[#allocation4 + $0x350] sm:$0xf0] }
 0x111   :  { %2472 = vmatpush.bf16.msra.mxu3 %v6625_v53  ;;  %v6913_v53 = vor.u32 %v8954_v49, %v6910_v50  ;;  %v6756_v49 = vld [vmem:[#allocation4 + $0x108] sm:$0xf]  ;;  %v8917_v50 = vld [vmem:[#allocation4 + $0x114] sm:$0xf0] }
 0x112   :  { %v1482_v63 = vpop.f32.mrf.mxu0 }
 0x113   :  { %2530 = vmatpush.bf16.msrb.mxu1 %v6869_v21  ;;  %2496 = vmatpush.bf16.msra.mxu2 %v6913_v53  ;;  %v8925_v21 = vld [vmem:[#allocation4 + $0x154] sm:$0xf0]  ;;  %v9002_v53 = vld [vmem:[#allocation4 + $0x3c4] sm:$0xf] }
 0x114   :  { %2473 = vmatmul.bf16.vlgmr.msra.gmra.mxu3 %v9598_v51  ;;  %2456 = vmatpush.bf16.msrb.mxu0 %v7053_v35  ;;  %v6789_v31 = vor.u32 %v8925_v21, %v6788_v17  ;;  %v7105_v35 = vor.u32 %v9002_v53, %v7102_v25  ;;  %v6838_v17 = vld [vmem:[#allocation4 + $0x1b8] sm:$0xf0]  ;;  %v8982_v25 = vld [vmem:[#allocation4 + $0x324] sm:$0xf] }
 0x115   :  { %2517 = vmatpush.bf16.msrb.mxu3 %v6741_v30  ;;  %v6820_v30 = vld [vmem:[#allocation4 + $0x188] sm:$0xf]  ;;  %v1456_v12 = vpop.f32.mrf.mxu1  ;;  %v6662_v21 = vld [vmem:[#allocation4 + $0x58] sm:$0xf0] }
 0x116   :  { %v6821_v0 = vor.u32 %v8933_v56, %v6820_v30  ;;  %v8943_v30 = vld [vmem:[#allocation4 + $0x1ec] sm:$0xf]  ;;  %v6870_v56 = vld [vmem:[#allocation4 + $0x1f8] sm:$0xf0]  ;;  %v6857_v12 = vor.u32 %v8939_v5, %v6854_v46  ;;  %v7006_v5 = vld [vmem:[#allocation4 + $0x310] sm:$0xf0] }
 0x117   :  { %2531 = vmatpush.bf16.msrb.mxu1 %v6853_v39  ;;  %v9612_v62 = vpop.f32.mrf.mxu3  ;;  %v8980_v39 = vld [vmem:[#allocation4 + $0x30c] sm:$0xf0]  ;;  %v6873_v63 = vor.u32 %v8943_v30, %v6870_v56  ;;  %v6630_v53 = vld [vmem:[#allocation4 + $0x18] sm:$0xf0]  ;;  %v8923_v56 = vld [vmem:[#allocation4 + $0x14c] sm:$0xf] }
 0x118   :  { %v9614_v10 = vpop.f32.mrf.mxu2  ;;  %2457 = vmatpush.bf16.msrb.mxu0 %v7037_v9  ;;  %v7005_v41 = vor.u32 %v8980_v39, %v7004_v36  ;;  %v1468_v4 = vadd.f32 %v9612_v62, %v1455_v54  ;;  %v7022_v54 = vld [vmem:[#allocation4 + $0x330] sm:$0xf0]  ;;  %v8919_v46 = vld [vmem:[#allocation4 + $0x12c] sm:$0xf] }
 0x119   :  { %2518 = vmatpush.bf16.msrb.mxu3 %v6725_v3  ;;  %v6897_v3 = vor.u32 %v8950_v60, %v6894_v61  ;;  %v8899_v60 = vld [vmem:[#allocation4 + $0x8c] sm:$0xf] }
 0x11a   :  { %2486 = vmatmul.bf16.vlgmr.msra.gmra.mxu1 %v9605_v7  ;;  %v9617_v34 = vpop.f32.mrf.mxu0 }
 0x11b   :  { %2532 = vmatpush.bf16.msrb.mxu1 %v6837_v57  ;;  %2497 = vmatpush.bf16.msra.mxu2 %v6897_v3  ;;  %v8903_v57 = vld [vmem:[#allocation4 + $0xac] sm:$0xf]  ;;  %v7086_v3 = vld [vmem:[#allocation4 + $0x3b0] sm:$0xf0] }
 0x11c   :  { %2458 = vmatpush.bf16.msrb.mxu0 %v7021_v24  ;;  %v6713_v59 = vor.u32 %v8903_v57, %v6710_v52  ;;  %v7089_v37 = vor.u32 %v8998_v1, %v7086_v3  ;;  %v8883_v57 = vld [vmem:[#allocation4 + $0xc] sm:$0xf] }
 0x11d   :  { %2519 = vmatpush.bf16.msrb.mxu3 %v6709_v18  ;;  %v6881_v18 = vor.u32 %v8946_v15, %v6878_v55  ;;  %v7070_v15 = vld [vmem:[#allocation4 + $0x390] sm:$0xf0]  ;;  %v1481_v55 = vadd.f32 %v9608_v38, %v1468_v4  ;;  %v8978_v4 = vld [vmem:[#allocation4 + $0x304] sm:$0xf] }
 0x11e   :  { %v7073_v62 = vor.u32 %v8994_v14, %v7070_v15  ;;  %v8915_v15 = vld [vmem:[#allocation4 + $0x10c] sm:$0xf] }
 0x11f   :  { %2533 = vmatpush.bf16.msrb.mxu1 %v6821_v0  ;;  %v1469_v33 = vpop.f32.mrf.mxu3  ;;  %2498 = vmatpush.bf16.msra.mxu2 %v6881_v18  ;;  %v6694_v0 = vld [vmem:[#allocation4 + $0x98] sm:$0xf0]  ;;  %v1494_v24 = vadd.f32 %v9614_v10, %v1481_v55 }
 0x120   :  { %v1495_v6 = vpop.f32.mrf.mxu2  ;;  %2459 = vmatpush.bf16.msrb.mxu0 %v7005_v41  ;;  %v6697_v9 = vor.u32 %v8899_v60, %v6694_v0  ;;  %v8887_v33 = vld [vmem:[#allocation4 + $0x2c] sm:$0xf]  ;;  %v8986_v41 = vld [vmem:[#allocation4 + $0x344] sm:$0xf]  ;;  %v6806_v10 = vld [vmem:[#allocation4 + $0x178] sm:$0xf0] }
 0x121   :  { %2520 = vmatpush.bf16.msrb.mxu3 %v6693_v29  ;;  %v6745_v29 = vor.u32 %v8911_v22, %v6742_v23  ;;  %v8990_v22 = vld [vmem:[#allocation4 + $0x364] sm:$0xf]  ;;  %v7054_v23 = vld [vmem:[#allocation4 + $0x370] sm:$0xf0]  ;;  %v6809_v52 = vor.u32 %v8927_v16, %v6806_v10  ;;  %v8973_v0 = vld [vmem:[#allocation4 + $0x2d4] sm:$0xf0] }
 0x122   :  { %v1534_v61 = vpop.f32.mrf.mxu0  ;;  %v7057_v38 = vor.u32 %v8990_v22, %v7054_v23  ;;  %v6758_v55 = vld [vmem:[#allocation4 + $0x118] sm:$0xf0]  ;;  %v8961_v22 = vld [vmem:[#allocation4 + $0x274] sm:$0xf0]  ;;  %v8975_v10 = vld [vmem:[#allocation4 + $0x2ec] sm:$0xf] }
 0x123   :  { %2534 = vmatpush.bf16.msrb.mxu1 %v6805_v45  ;;  %v8935_v45 = vld [vmem:[#allocation4 + $0x1ac] sm:$0xf] }
 0x124   :  { %2504 = vmatpush.bf16.msra.mxu0 %v7121_v44  ;;  %v6841_v20 = vor.u32 %v8935_v45, %v6838_v17  ;;  %v7041_v44 = vor.u32 %v8986_v41, %v7038_v42  ;;  %v6948_v17 = vld [vmem:[#allocation4 + $0x288] sm:$0xf] }
 0x125   :  { %2521 = vmatpush.bf16.msrb.mxu3 %v6677_v47  ;;  %v6773_v47 = vor.u32 %v8921_v28, %v6772_v27  ;;  %v6822_v27 = vld [vmem:[#allocation4 + $0x198] sm:$0xf0] }
 0x127   :  { %2535 = vmatpush.bf16.msrb.mxu1 %v6789_v31 }
 0x128   :  { %2505 = vmatpush.bf16.msra.mxu0 %v7105_v35  ;;  %v6790_v35 = vld [vmem:[#allocation4 + $0x158] sm:$0xf0] }
 0x129   :  { %2522 = vmatpush.bf16.msrb.mxu3 %v6661_v58  ;;  %v6757_v58 = vor.u32 %v8917_v50, %v6756_v49  ;;  %v6996_v49 = vld [vmem:[#allocation4 + $0x2e8] sm:$0xf]  ;;  %v8977_v50 = vld [vmem:[#allocation4 + $0x2f4] sm:$0xf0]  ;;  %v6793_v1 = vor.u32 %v8923_v56, %v6790_v35 }
 0x12a   :  { %v6997_v60 = vor.u32 %v8977_v50, %v6996_v49  ;;  %v8971_v50 = vld [vmem:[#allocation4 + $0x2cc] sm:$0xf] }
 0x12b   :  { %2536 = vmatpush.bf16.msrb.mxu1 %v6773_v47  ;;  %v1506_v8 = vpop.f32.mrf.mxu1 }
 0x12c   :  { %2506 = vmatpush.bf16.msra.mxu0 %v7089_v37  ;;  %v1507_v31 = vadd.f32 %v1506_v8, %v1494_v24  ;;  %v6774_v37 = vld [vmem:[#allocation4 + $0x138] sm:$0xf0] }
 0x12d   :  { %2523 = vmatpush.bf16.msrb.mxu3 %v6645_v13  ;;  %v6678_v13 = vld [vmem:[#allocation4 + $0x78] sm:$0xf0]  ;;  %v6777_v14 = vor.u32 %v8919_v46, %v6774_v37  ;;  %v7092_v37 = vld [vmem:[#allocation4 + $0x3a8] sm:$0xf] }
 0x12e   :  { %v6681_v18 = vor.u32 %v8895_v11, %v6678_v13  ;;  %v8969_v13 = vld [vmem:[#allocation4 + $0x2b4] sm:$0xf0]  ;;  %v6950_v46 = vld [vmem:[#allocation4 + $0x298] sm:$0xf0] }
 0x12f   :  { %2537 = vmatpush.bf16.msrb.mxu1 %v6757_v58  ;;  %v9626_v28 = vpop.f32.mrf.mxu0 }
 0x130   :  { %2507 = vmatpush.bf16.msra.mxu0 %v7073_v62  ;;  %v8965_v62 = vld [vmem:[#allocation4 + $0x294] sm:$0xf0] }
 0x131   :  { %2524 = vmatpush.bf16.msrb.mxu3 %v6629_v26  ;;  %v8931_v26 = vld [vmem:[#allocation4 + $0x18c] sm:$0xf] }
 0x132   :  { %2538 = vmatmul.bf16.vlgmr.msrb.gmra.mxu1 %v9605_v7  ;;  %v6825_v39 = vor.u32 %v8931_v26, %v6822_v27  ;;  %v6916_v27 = vld [vmem:[#allocation4 + $0x248] sm:$0xf] }
 0x133   :  { %2582 = vmatpush.bf16.msra.mxu1 %v6873_v63  ;;  %v1508_v32 = vpop.f32.mrf.mxu1  ;;  %v6980_v63 = vld [vmem:[#allocation4 + $0x2c8] sm:$0xf] }
 0x134   :  { %2525 = vmatmul.bf16.vlgmr.msrb.gmra.mxu3 %v9598_v51  ;;  %2508 = vmatpush.bf16.msra.mxu0 %v7057_v38  ;;  %v6981_v11 = vor.u32 %v8973_v0, %v6980_v63  ;;  %v8953_v32 = vld [vmem:[#allocation4 + $0x234] sm:$0xf0]  ;;  %v7108_v63 = vld [vmem:[#allocation4 + $0x3c8] sm:$0xf] }
 0x135   :  { %2569 = vmatpush.bf16.msra.mxu3 %v6745_v29  ;;  %v6665_v29 = vor.u32 %v8891_v19, %v6662_v21  ;;  %v6761_v19 = vor.u32 %v8915_v15, %v6758_v55  ;;  %v6932_v21 = vld [vmem:[#allocation4 + $0x268] sm:$0xf]  ;;  %v9005_v0 = vld [vmem:[#allocation4 + $0x3d4] sm:$0xf0] }
 0x136   :  { %v6933_v26 = vor.u32 %v8961_v22, %v6932_v21  ;;  %v8997_v15 = vld [vmem:[#allocation4 + $0x394] sm:$0xf0]  ;;  %v8951_v22 = vld [vmem:[#allocation4 + $0x22c] sm:$0xf] }
 0x137   :  { %2583 = vmatpush.bf16.msra.mxu1 %v6857_v12  ;;  %v1519_v36 = vpop.f32.mrf.mxu3  ;;  %v1560_v58 = vpop.f32.mrf.mxu0  ;;  %v6964_v12 = vld [vmem:[#allocation4 + $0x2a8] sm:$0xf] }
 0x138   :  { %v1520_v43 = vadd.f32 %v1519_v36, %v1507_v31  ;;  %v1545_v6 = vpop.f32.mrf.mxu2  ;;  %2509 = vmatpush.bf16.msra.mxu0 %v7041_v44  ;;  %v6965_v45 = vor.u32 %v8969_v13, %v6964_v12  ;;  %v8959_v12 = vld [vmem:[#allocation4 + $0x26c] sm:$0xf]  ;;  %v6934_v13 = vld [vmem:[#allocation4 + $0x278] sm:$0xf0] }
 0x139   :  { %2570 = vmatpush.bf16.msra.mxu3 %v6729_v48  ;;  %v6649_v48 = vor.u32 %v8887_v33, %v6646_v40  ;;  %v6937_v55 = vor.u32 %v8959_v12, %v6934_v13  ;;  %v9015_v13 = vld [vmem:[%s10068_s5 + $0x28] sm:$0xff] }
 0x13a   :  { %v1533_v47 = vadd.f32 %v9617_v34, %v1520_v43  ;;  %v6633_v34 = vor.u32 %v8883_v57, %v6630_v53  ;;  %v6884_v43 = vld [vmem:[#allocation4 + $0x208] sm:$0xf]  ;;  %v6982_v57 = vld [vmem:[#allocation4 + $0x2d8] sm:$0xf0] }
 0x13b   :  { %2584 = vmatpush.bf16.msra.mxu1 %v6841_v20  ;;  %v6949_v20 = vor.u32 %v8965_v62, %v6948_v17  ;;  %v6985_v35 = vor.u32 %v8971_v50, %v6982_v57  ;;  %v8955_v17 = vld [vmem:[#allocation4 + $0x24c] sm:$0xf]  ;;  %v6918_v62 = vld [vmem:[#allocation4 + $0x258] sm:$0xf0]  ;;  %v9647_v57 = vld [vmem:[%s10067_s4] sm:$0xf] }
 0x13c   :  { %v1629_v30 = vmax.f32 %v1533_v47, 0.0  ;;  %v7078_v50 = vld [vmem:[#allocation4 + $0x398] sm:$0xf0]  ;;  %v1766_v12 = vperm.slane %v9647_v57, 1 }
 0x13d   :  { %2571 = vmatpush.bf16.msra.mxu3 %v6713_v59  ;;  %v7025_v59 = vor.u32 %v8982_v25, %v7022_v54  ;;  %v7124_v25 = vld [vmem:[#allocation4 + $0x3e8] sm:$0xf]  ;;  %v9009_v54 = vld [vmem:[#allocation4 + $0x3f4] sm:$0xf0] }
 0x13e   :  { %v9629_v61 = vpack.c.bf16 %v1629_v30, %v1629_v30  ;;  %v7125_v58 = vor.u32 %v9009_v54, %v7124_v25  ;;  %v7062_v25 = vld [vmem:[#allocation4 + $0x378] sm:$0xf0] }
 0x13f   :  { %2585 = vmatpush.bf16.msra.mxu1 %v6825_v39  ;;  %v1521_v3 = vpop.f32.mrf.mxu3  ;;  %2510 = vmatpush.bf16.msra.mxu0 %v7025_v59  ;;  %v8967_v59 = vld [vmem:[#allocation4 + $0x2ac] sm:$0xf] }
 0x140   :  { %2447 = vmatmul.bf16.vlgmr.msrb.gmra.mxu2 %v9629_v61  ;;  %v1547_v8 = vpop.f32.mrf.mxu2 }
 0x141   :  { %2572 = vmatpush.bf16.msra.mxu3 %v6697_v9  ;;  %v7009_v9 = vor.u32 %v8978_v4, %v7006_v5  ;;  %2543 = vmatpush.bf16.msrb.mxu2 %v6997_v60  ;;  %v6966_v60 = vld [vmem:[#allocation4 + $0x2b8] sm:$0xf0]  ;;  %v7109_v4 = vor.u32 %v9005_v0, %v7108_v63  ;;  %v8963_v5 = vld [vmem:[#allocation4 + $0x28c] sm:$0xf]  ;;  %v9001_v8 = vld [vmem:[#allocation4 + $0x3b4] sm:$0xf0] }
 0x142   :  { %v8983_v0 = vld [vmem:[#allocation4 + $0x32c] sm:$0xf] }
 0x143   :  { %2586 = vmatpush.bf16.msra.mxu1 %v6809_v52  ;;  %2511 = vmatpush.bf16.msra.mxu0 %v7009_v9  ;;  %v6953_v9 = vor.u32 %v8963_v5, %v6950_v46  ;;  %v8979_v5 = vld [vmem:[#allocation4 + $0x30c] sm:$0xf]  ;;  %v7014_v46 = vld [vmem:[#allocation4 + $0x318] sm:$0xf0] }
 0x145   :  { %2573 = vmatpush.bf16.msra.mxu3 %v6681_v18  ;;  %2544 = vmatpush.bf16.msrb.mxu2 %v6981_v11  ;;  %v274_v18 = vperm.slane %v9578_v2, 3  ;;  %v7093_v11 = vor.u32 %v9001_v8, %v7092_v37 }
 0x147   :  { %2587 = vmatpush.bf16.msra.mxu1 %v6793_v1  ;;  %v1546_v23 = vadd.f32 %v1545_v6, %v274_v18  ;;  %v6998_v6 = vld [vmem:[#allocation4 + $0x2f8] sm:$0xf0]  ;;  %v6969_v1 = vor.u32 %v8967_v59, %v6966_v60  ;;  %v7060_v18 = vld [vmem:[#allocation4 + $0x368] sm:$0xf] }
 0x149   :  { %2574 = vmatpush.bf16.msra.mxu3 %v6665_v29  ;;  %2545 = vmatpush.bf16.msrb.mxu2 %v6965_v45  ;;  %v1559_v38 = vadd.f32 %v9626_v28, %v1546_v23  ;;  %v6900_v29 = vld [vmem:[#allocation4 + $0x228] sm:$0xf]  ;;  %v6902_v23 = vld [vmem:[#allocation4 + $0x238] sm:$0xf0] }
 0x14a   :  { %v6901_v42 = vor.u32 %v8953_v32, %v6900_v29  ;;  %v7028_v29 = vld [vmem:[#allocation4 + $0x328] sm:$0xf]  ;;  %v8985_v32 = vld [vmem:[#allocation4 + $0x334] sm:$0xf0] }
 0x14b   :  { %2588 = vmatpush.bf16.msra.mxu1 %v6777_v14  ;;  %v1571_v24 = vpop.f32.mrf.mxu1  ;;  %v7076_v14 = vld [vmem:[#allocation4 + $0x388] sm:$0xf] }
 0x14c   :  { %v1572_v33 = vadd.f32 %v1571_v24, %v1559_v38  ;;  %v7077_v45 = vor.u32 %v8997_v15, %v7076_v14  ;;  %v7044_v24 = vld [vmem:[#allocation4 + $0x348] sm:$0xf]  ;;  %v9014_v15 = vld [vmem:[%s10068_s5 + $0x20] sm:$0xff] }
 0x14d   :  { %2575 = vmatpush.bf16.msra.mxu3 %v6649_v48  ;;  %2546 = vmatpush.bf16.msrb.mxu2 %v6949_v20  ;;  %v7001_v48 = vor.u32 %v8975_v10, %v6998_v6  ;;  %v6921_v20 = vor.u32 %v8955_v17, %v6918_v62  ;;  %v9003_v10 = vld [vmem:[#allocation4 + $0x3cc] sm:$0xf]  ;;  %v7110_v6 = vld [vmem:[#allocation4 + $0x3d8] sm:$0xf0] }
 0x14e   :  { %v9013_v17 = vld [vmem:[%s10068_s5 + $0x18] sm:$0xff] }
 0x14f   :  { %2589 = vmatpush.bf16.msra.mxu1 %v6761_v19  ;;  %v1610_v2 = vpop.f32.mrf.mxu0  ;;  %v8993_v19 = vld [vmem:[#allocation4 + $0x374] sm:$0xf0] }
 0x150   :  { %2499 = vmatmul.bf16.vlgmr.msra.gmra.mxu2 %v9629_v61  ;;  %v7061_v21 = vor.u32 %v8993_v19, %v7060_v18  ;;  %v9012_v18 = vld [vmem:[%s10068_s5 + $0x10] sm:$0xff]  ;;  %v1767_v19 = vperm.slane %v9647_v57, 2 }
 0x151   :  { %2576 = vmatpush.bf16.msra.mxu3 %v6633_v34  ;;  %2547 = vmatpush.bf16.msrb.mxu2 %v6933_v26  ;;  %v8989_v26 = vld [vmem:[#allocation4 + $0x354] sm:$0xf0] }
 0x152   :  { %2590 = vmatmul.bf16.vlgmr.msra.gmra.mxu1 %v9605_v7  ;;  %v8949_v7 = vld [vmem:[#allocation4 + $0x214] sm:$0xf0]  ;;  %v7045_v38 = vor.u32 %v8989_v26, %v7044_v24  ;;  %v9010_v24 = vld [vmem:[%s10068_s5] sm:$0xff] }
 0x153   :  { %v1573_v36 = vpop.f32.mrf.mxu1  ;;  %v6885_v47 = vor.u32 %v8949_v7, %v6884_v43  ;;  %v7126_v43 = vld [vmem:[#allocation4 + $0x3f8] sm:$0xf0] }
 0x154   :  { %2577 = vmatmul.bf16.vlgmr.msra.gmra.mxu3 %v9598_v51  ;;  %v8957_v51 = vld [vmem:[#allocation4 + $0x254] sm:$0xf0]  ;;  %v7029_v36 = vor.u32 %v8985_v32, %v7028_v29  ;;  %v7356_v29 = vld [vmem:[#allocation2 + $0xc0] sm:$0xf]  ;;  %v9068_v32 = vld [vmem:[#allocation2 + $0xcc] sm:$0xf0] }
 0x155   :  { %v6917_v31 = vor.u32 %v8957_v51, %v6916_v27  ;;  %v6905_v51 = vor.u32 %v8951_v22, %v6902_v23  ;;  %v9025_v26 = vld [vmem:[%s10068_s5 + $0x78] sm:$0xff] }
 0x156   :  { %2902 = vmatpush.bf16.msrb.mxu1 %v9025_v26  ;;  %v7468_v26 = vld [vmem:[#allocation2 + $0x1a0] sm:$0xf] }
 0x157   :  { %v1584_v39 = vpop.f32.mrf.mxu3  ;;  %2548 = vmatpush.bf16.msrb.mxu2 %v6917_v31  ;;  %v1612_v28 = vpop.f32.mrf.mxu0  ;;  %v6886_v31 = vld [vmem:[#allocation4 + $0x218] sm:$0xf0] }
 0x158   :  { %v1585_v40 = vadd.f32 %v1584_v39, %v1572_v33  ;;  %v1597_v41 = vpop.f32.mrf.mxu2  ;;  %v7012_v39 = vld [vmem:[#allocation4 + $0x308] sm:$0xf]  ;;  %v7113_v28 = vor.u32 %v9003_v10, %v7110_v6  ;;  %v7324_v10 = vld [vmem:[#allocation2 + $0x80] sm:$0xf]  ;;  %v9060_v6 = vld [vmem:[#allocation2 + $0x8c] sm:$0xf0] }
 0x15a   :  { %v1598_v16 = vadd.f32 %v1597_v41, %v1585_v40  ;;  %v8981_v40 = vld [vmem:[#allocation4 + $0x314] sm:$0xf0] }
 0x15b   :  { %2549 = vmatpush.bf16.msrb.mxu2 %v6901_v42  ;;  %v1623_v49 = vpop.f32.mrf.mxu1  ;;  %v9007_v42 = vld [vmem:[#allocation4 + $0x3ec] sm:$0xf]  ;;  %v7013_v7 = vor.u32 %v8981_v40, %v7012_v39  ;;  %v7340_v39 = vld [vmem:[#allocation2 + $0xa0] sm:$0xf] }
 0x15c   :  { %v1611_v44 = vadd.f32 %v1610_v2, %v1598_v16  ;;  %v8947_v2 = vld [vmem:[#allocation4 + $0x20c] sm:$0xf]  ;;  %v7129_v16 = vor.u32 %v9007_v42, %v7126_v43 }
 0x15d   :  { %v6889_v33 = vor.u32 %v8947_v2, %v6886_v31  ;;  %v9024_v31 = vld [vmem:[%s10068_s5 + $0x70] sm:$0xff]  ;;  %v9023_v40 = vld [vmem:[%s10068_s5 + $0x68] sm:$0xff] }
 0x15e   :  { %v1624_v52 = vadd.f32 %v1623_v49, %v1611_v44  ;;  %v8999_v44 = vld [vmem:[#allocation4 + $0x3ac] sm:$0xf]  ;;  %2903 = vmatpush.bf16.msrb.mxu1 %v9024_v31  ;;  %v9136_v31 = vld [vmem:[#allocation2 + $0x2ec] sm:$0xf0] }
 0x15f   :  { %v1586_v53 = vpop.f32.mrf.mxu3  ;;  %2550 = vmatpush.bf16.msrb.mxu2 %v6885_v47  ;;  %v7094_v47 = vld [vmem:[#allocation4 + $0x3b8] sm:$0xf0]  ;;  %v8995_v49 = vld [vmem:[#allocation4 + $0x38c] sm:$0xf] }
 0x160   :  { %v1599_v30 = vpop.f32.mrf.mxu2  ;;  %v1630_v56 = vmax.f32 %v1624_v52, 0.0  ;;  %v1765_v52 = vperm.slane %v9647_v57, 0  ;;  %v8991_v53 = vld [vmem:[#allocation4 + $0x36c] sm:$0xf] }
 0x161   :  { %v7065_v54 = vor.u32 %v8991_v53, %v7062_v25  ;;  %v7292_v53 = vld [vmem:[#allocation2 + $0x40] sm:$0xf]  ;;  %v9052_v25 = vld [vmem:[#allocation2 + $0x4c] sm:$0xf0] }
 0x162   :  { %v9637_v34 = vpack.c.bf16 %v1630_v56, %v1630_v56  ;;  %2551 = vmatmul.bf16.vlgmr.msrb.gmra.mxu2 %v9629_v61  ;;  %v8987_v56 = vld [vmem:[#allocation4 + $0x34c] sm:$0xf]  ;;  %2904 = vmatpush.bf16.msrb.mxu1 %v9023_v40  ;;  %v7612_v40 = vld [vmem:[#allocation2 + $0x2c0] sm:$0xf] }
 0x163   :  { %2595 = vmatpush.bf16.msra.mxu2 %v7001_v48  ;;  %v1625_v3 = vpop.f32.mrf.mxu1  ;;  %v7097_v48 = vor.u32 %v8999_v44, %v7094_v47  ;;  %v9021_v44 = vld [vmem:[%s10068_s5 + $0x58] sm:$0xff]  ;;  %v7308_v47 = vld [vmem:[#allocation2 + $0x60] sm:$0xf] }
 0x164   :  { %2460 = vmatmul.bf16.vlgmr.msrb.gmra.mxu0 %v9637_v34  ;;  %v9017_v3 = vld [vmem:[%s10068_s5 + $0x38] sm:$0xff] }
 0x165   :  { %2556 = vmatpush.bf16.msrb.mxu0 %v7125_v58  ;;  %2889 = vmatpush.bf16.msrb.mxu3 %v9017_v3 }
 0x167   :  { %2596 = vmatpush.bf16.msra.mxu2 %v6985_v35  ;;  %v7046_v35 = vld [vmem:[#allocation4 + $0x358] sm:$0xf0] }
 0x168   :  { %v7049_v63 = vor.u32 %v8987_v56, %v7046_v35  ;;  %v1768_v56 = vperm.slane %v9647_v57, 3  ;;  %v9019_v35 = vld [vmem:[%s10068_s5 + $0x48] sm:$0xff] }
 0x169   :  { %2557 = vmatpush.bf16.msrb.mxu0 %v7109_v4 }
 0x16b   :  { %2597 = vmatpush.bf16.msra.mxu2 %v6969_v1  ;;  %v7030_v1 = vld [vmem:[#allocation4 + $0x338] sm:$0xf0] }
 0x16c   :  { %v7033_v4 = vor.u32 %v8983_v0, %v7030_v1  ;;  %v7276_v0 = vld [vmem:[#allocation2 + $0x20] sm:$0xf]  ;;  %v9048_v1 = vld [vmem:[#allocation2 + $0x2c] sm:$0xf0] }
 0x16d   :  { %2558 = vmatpush.bf16.msrb.mxu0 %v7093_v11  ;;  %v7017_v11 = vor.u32 %v8979_v5, %v7014_v46  ;;  %v7277_v57 = vor.u32 %v9048_v1, %v7276_v0  ;;  %v9018_v46 = vld [vmem:[%s10068_s5 + $0x40] sm:$0xff] }
 0x16e   :  { %v7868_v0 = vld [vmem:[#allocation2 + $0x4c0] sm:$0xf] }
 0x16f   :  { %2598 = vmatpush.bf16.msra.mxu2 %v6953_v9  ;;  %v9016_v9 = vld [vmem:[%s10068_s5 + $0x30] sm:$0xff] }
 0x170   :  { %2890 = vmatpush.bf16.msrb.mxu3 %v9016_v9 }
 0x171   :  { %2559 = vmatpush.bf16.msrb.mxu0 %v7077_v45 }
 0x173   :  { %2599 = vmatpush.bf16.msra.mxu2 %v6937_v55 }
 0x174   :  { %2512 = vmatmul.bf16.vlgmr.msra.gmra.mxu0 %v9637_v34  ;;  %2891 = vmatpush.bf16.msrb.mxu3 %v9015_v13  ;;  %v7500_v13 = vld [vmem:[#allocation2 + $0x1e0] sm:$0xf] }
 0x175   :  { %2560 = vmatpush.bf16.msrb.mxu0 %v7061_v21  ;;  %v9011_v21 = vld [vmem:[%s10068_s5 + $0x8] sm:$0xff] }
 0x177   :  { %v2422_v27 = vpop.f32.mrf.mxu3  ;;  %2600 = vmatpush.bf16.msra.mxu2 %v6921_v20 }
 0x178   :  { %v2423_v30 = vadd.f32 %v2422_v27, %v1765_v52  ;;  %2892 = vmatpush.bf16.msrb.mxu3 %v9014_v15  ;;  %v7372_v27 = vld [vmem:[#allocation2 + $0xe0] sm:$0xf]  ;;  %v9020_v52 = vld [vmem:[%s10068_s5 + $0x50] sm:$0xff] }
 0x179   :  { %2561 = vmatpush.bf16.msrb.mxu0 %v7045_v38  ;;  %v9104_v15 = vld [vmem:[#allocation2 + $0x1ec] sm:$0xf0] }
 0x17b   :  { %2601 = vmatpush.bf16.msra.mxu2 %v6905_v51  ;;  %v9072_v51 = vld [vmem:[#allocation2 + $0xec] sm:$0xf0] }
 0x17c   :  { %2893 = vmatpush.bf16.msrb.mxu3 %v9013_v17  ;;  %v7373_v38 = vor.u32 %v9072_v51, %v7372_v27  ;;  %v9039_v17 = vld [vmem:[%s10068_s5 + $0xe8] sm:$0xff]  ;;  %v9096_v27 = vld [vmem:[#allocation2 + $0x1ac] sm:$0xf0]  ;;  %v9026_v51 = vld [vmem:[%s10068_s5 + $0x80] sm:$0xff] }
 0x17d   :  { %2562 = vmatpush.bf16.msrb.mxu0 %v7029_v36  ;;  %v9033_v36 = vld [vmem:[%s10068_s5 + $0xb8] sm:$0xff] }
 0x17f   :  { %v2424_v41 = vpop.f32.mrf.mxu3  ;;  %2602 = vmatpush.bf16.msra.mxu2 %v6889_v33  ;;  %v7357_v33 = vor.u32 %v9068_v32, %v7356_v29  ;;  %v9037_v32 = vld [vmem:[%s10068_s5 + $0xd8] sm:$0xff] }
 0x180   :  { %2894 = vmatpush.bf16.msrb.mxu3 %v9012_v18  ;;  %v9064_v41 = vld [vmem:[#allocation2 + $0xac] sm:$0xf0] }
 0x181   :  { %2563 = vmatpush.bf16.msrb.mxu0 %v7013_v7  ;;  %v7341_v43 = vor.u32 %v9064_v41, %v7340_v39  ;;  %v9022_v7 = vld [vmem:[%s10068_s5 + $0x60] sm:$0xff]  ;;  %v9100_v18 = vld [vmem:[#allocation2 + $0x1cc] sm:$0xf0] }
 0x182   :  { %2603 = vmatmul.bf16.vlgmr.msra.gmra.mxu2 %v9629_v61  ;;  %v7081_v61 = vor.u32 %v8995_v49, %v7078_v50  ;;  %2905 = vmatpush.bf16.msrb.mxu1 %v9022_v7  ;;  %v9031_v49 = vld [vmem:[%s10068_s5 + $0xa8] sm:$0xff]  ;;  %v9132_v41 = vld [vmem:[#allocation2 + $0x2cc] sm:$0xf0]  ;;  %v7436_v7 = vld [vmem:[#allocation2 + $0x160] sm:$0xf] }
 0x183   :  { %2915 = vmatpush.bf16.msrb.mxu2 %v9033_v36  ;;  %v9092_v36 = vld [vmem:[#allocation2 + $0x18c] sm:$0xf0] }
 0x184   :  { %2564 = vmatmul.bf16.vlgmr.msrb.gmra.mxu0 %v9637_v34  ;;  %2895 = vmatpush.bf16.msrb.mxu3 %v9011_v21 }
 0x185   :  { %2608 = vmatpush.bf16.msra.mxu0 %v7129_v16  ;;  %v9032_v16 = vld [vmem:[%s10068_s5 + $0xb0] sm:$0xff] }
 0x186   :  { %2906 = vmatpush.bf16.msrb.mxu1 %v9021_v44 }
 0x187   :  { %v2435_v58 = vpop.f32.mrf.mxu1  ;;  %2916 = vmatpush.bf16.msrb.mxu2 %v9032_v16  ;;  %v9088_v16 = vld [vmem:[#allocation2 + $0x16c] sm:$0xf0] }
 0x188   :  { %v9650_v60 = vadd.f32 %v2435_v58, %v2423_v30  ;;  %2896 = vmatpush.bf16.msrb.mxu3 %v9010_v24  ;;  %v7293_v30 = vor.u32 %v9052_v25, %v7292_v53  ;;  %v9041_v58 = vld [vmem:[%s10068_s5 + $0xf8] sm:$0xff]  ;;  %v9038_v24 = vld [vmem:[%s10068_s5 + $0xe0] sm:$0xff]  ;;  %v9084_v25 = vld [vmem:[#allocation2 + $0x14c] sm:$0xf0] }
 0x189   :  { %2609 = vmatpush.bf16.msra.mxu0 %v7113_v28  ;;  %v7325_v28 = vor.u32 %v9060_v6, %v7324_v10  ;;  %v7596_v10 = vld [vmem:[#allocation2 + $0x2a0] sm:$0xf]  ;;  %v9128_v6 = vld [vmem:[#allocation2 + $0x2ac] sm:$0xf0] }
 0x18a   :  { %2907 = vmatpush.bf16.msrb.mxu1 %v9020_v52  ;;  %v7597_v44 = vor.u32 %v9128_v6, %v7596_v10  ;;  %v9035_v52 = vld [vmem:[%s10068_s5 + $0xc8] sm:$0xff]  ;;  %v7420_v53 = vld [vmem:[#allocation2 + $0x140] sm:$0xf] }
 0x18b   :  { %2917 = vmatpush.bf16.msrb.mxu2 %v9031_v49  ;;  %v7884_v49 = vld [vmem:[#allocation2 + $0x4e0] sm:$0xf] }
 0x18c   :  { %4145 = vmatpush.bf16.msra.mxu3 %v7373_v38  ;;  %v7469_v38 = vor.u32 %v9096_v27, %v7468_v26  ;;  %v9116_v26 = vld [vmem:[#allocation2 + $0x24c] sm:$0xf0] }
 0x18d   :  { %2610 = vmatpush.bf16.msra.mxu0 %v7097_v48  ;;  %v9056_v48 = vld [vmem:[#allocation2 + $0x6c] sm:$0xf0] }
 0x18e   :  { %v7309_v50 = vor.u32 %v9056_v48, %v7308_v47  ;;  %2908 = vmatpush.bf16.msrb.mxu1 %v9019_v35  ;;  %v7437_v47 = vor.u32 %v9088_v16, %v7436_v7  ;;  %v7580_v35 = vld [vmem:[#allocation2 + $0x280] sm:$0xf]  ;;  %v9156_v7 = vld [vmem:[#allocation2 + $0x38c] sm:$0xf0] }
 0x18f   :  { %v2437_v37 = vpop.f32.mrf.mxu1  ;;  %v7516_v16 = vld [vmem:[#allocation2 + $0x200] sm:$0xf] }
 0x190   :  { %4146 = vmatpush.bf16.msra.mxu3 %v7357_v33  ;;  %v9040_v37 = vld [vmem:[%s10068_s5 + $0xf0] sm:$0xff]  ;;  %v7452_v33 = vld [vmem:[#allocation2 + $0x180] sm:$0xf] }
 0x191   :  { %2611 = vmatpush.bf16.msra.mxu0 %v7081_v61  ;;  %v7453_v39 = vor.u32 %v9092_v36, %v7452_v33  ;;  %v9188_v33 = vld [vmem:[#allocation2 + $0x48c] sm:$0xf0] }
 0x192   :  { %2909 = vmatpush.bf16.msrb.mxu1 %v9018_v46 }
 0x194   :  { %4147 = vmatpush.bf16.msra.mxu3 %v7341_v43  ;;  %v9036_v43 = vld [vmem:[%s10068_s5 + $0xd0] sm:$0xff] }
 0x195   :  { %2612 = vmatpush.bf16.msra.mxu0 %v7065_v54  ;;  %v9030_v54 = vld [vmem:[%s10068_s5 + $0xa0] sm:$0xff] }
 0x196   :  { %2918 = vmatpush.bf16.msrb.mxu2 %v9030_v54 }
 0x197   :  { %v2474_v59 = vpop.f32.mrf.mxu3  ;;  %v2487_v55 = vpop.f32.mrf.mxu1 }
 0x198   :  { %v2475_v14 = vadd.f32 %v2474_v59, %v1766_v12  ;;  %4148 = vmatpush.bf16.msra.mxu3 %v7325_v28  ;;  %v9029_v59 = vld [vmem:[%s10068_s5 + $0x98] sm:$0xff]  ;;  %v9044_v12 = vld [vmem:[#allocation2 + $0xc] sm:$0xf0] }
 0x199   :  { %2613 = vmatpush.bf16.msra.mxu0 %v7049_v63 }
 0x19a   :  { %v9665_v45 = vadd.f32 %v2487_v55, %v2475_v14  ;;  %2919 = vmatpush.bf16.msrb.mxu2 %v9029_v59  ;;  %v7501_v55 = vor.u32 %v9104_v15, %v7500_v13  ;;  %v9120_v13 = vld [vmem:[#allocation2 + $0x26c] sm:$0xf0] }
 0x19b   :  { %v9192_v15 = vld [vmem:[#allocation2 + $0x4ac] sm:$0xf0] }
 0x19c   :  { %4149 = vmatpush.bf16.msra.mxu3 %v7309_v50  ;;  %4158 = vmatpush.bf16.msra.mxu1 %v7501_v55 }
 0x19d   :  { %2614 = vmatpush.bf16.msra.mxu0 %v7033_v4 }
 0x19f   :  { %v2476_v8 = vpop.f32.mrf.mxu3  ;;  %v2489_v62 = vpop.f32.mrf.mxu1 }
 0x1a0   :  { %4150 = vmatpush.bf16.msra.mxu3 %v7293_v30  ;;  %v9028_v8 = vld [vmem:[%s10068_s5 + $0x90] sm:$0xff]  ;;  %v7484_v62 = vld [vmem:[#allocation2 + $0x1c0] sm:$0xf] }
 0x1a1   :  { %2615 = vmatpush.bf16.msra.mxu0 %v7017_v11  ;;  %v7260_v11 = vld [vmem:[#allocation2] sm:$0xf]  ;;  %2920 = vmatpush.bf16.msrb.mxu2 %v9028_v8  ;;  %v7485_v21 = vor.u32 %v9100_v18, %v7484_v62  ;;  %v9200_v30 = vld [vmem:[#allocation2 + $0x4ec] sm:$0xf0] }
 0x1a2   :  { %v7261_v14 = vor.u32 %v9044_v12, %v7260_v11  ;;  %v7885_v1 = vor.u32 %v9200_v30, %v7884_v49  ;;  %v9168_v8 = vld [vmem:[#allocation2 + $0x3ec] sm:$0xf0]  ;;  %v7564_v11 = vld [vmem:[#allocation2 + $0x260] sm:$0xf] }
 0x1a3   :  { %4159 = vmatpush.bf16.msra.mxu1 %v7485_v21  ;;  %v7565_v55 = vor.u32 %v9120_v13, %v7564_v11  ;;  %v7388_v18 = vld [vmem:[#allocation2 + $0x100] sm:$0xf] }
 0x1a4   :  { %2616 = vmatmul.bf16.vlgmr.msra.gmra.mxu0 %v9637_v34  ;;  %4151 = vmatpush.bf16.msra.mxu3 %v7277_v57  ;;  %v7404_v57 = vld [vmem:[#allocation2 + $0x120] sm:$0xf] }
 0x1a5   :  { %2928 = vmatpush.bf16.msrb.mxu0 %v9041_v58  ;;  %v9124_v58 = vld [vmem:[#allocation2 + $0x28c] sm:$0xf0]  ;;  %v7980_v11 = vld [vmem:[#allocation2 + $0x5a0] sm:$0xf] }
 0x1a6   :  { %v7581_v59 = vor.u32 %v9124_v58, %v7580_v35  ;;  %v7804_v35 = vld [vmem:[#allocation2 + $0x440] sm:$0xf] }
 0x1a7   :  { %4160 = vmatpush.bf16.msra.mxu1 %v7469_v38 }
 0x1a8   :  { %4152 = vmatpush.bf16.msra.mxu3 %v7261_v14  ;;  %v7852_v14 = vld [vmem:[#allocation2 + $0x4a0] sm:$0xf] }
 0x1a9   :  { %2929 = vmatpush.bf16.msrb.mxu0 %v9040_v37  ;;  %v7756_v37 = vld [vmem:[#allocation2 + $0x3e0] sm:$0xf] }
 0x1aa   :  { %v7757_v12 = vor.u32 %v9168_v8, %v7756_v37  ;;  %v9148_v37 = vld [vmem:[#allocation2 + $0x34c] sm:$0xf0] }
 0x1ab   :  { %4161 = vmatpush.bf16.msra.mxu1 %v7453_v39  ;;  %v7532_v39 = vld [vmem:[#allocation2 + $0x220] sm:$0xf]  ;;  %v9176_v8 = vld [vmem:[#allocation2 + $0x42c] sm:$0xf0] }
 0x1ad   :  { %2930 = vmatpush.bf16.msrb.mxu0 %v9039_v17 }
 0x1af   :  { %v2539_v22 = vpop.f32.mrf.mxu1  ;;  %4162 = vmatpush.bf16.msra.mxu1 %v7437_v47 }
 0x1b1   :  { %2931 = vmatpush.bf16.msrb.mxu0 %v9038_v24  ;;  %v7548_v24 = vld [vmem:[#allocation2 + $0x240] sm:$0xf] }
 0x1b5   :  { %2932 = vmatpush.bf16.msrb.mxu0 %v9037_v32  ;;  %v9160_v32 = vld [vmem:[#allocation2 + $0x3ac] sm:$0xf0] }
 0x1b7   :  { %v2526_v20 = vpop.f32.mrf.mxu3  ;;  %v2541_v42 = vpop.f32.mrf.mxu1 }
 0x1b8   :  { %v2527_v34 = vadd.f32 %v2526_v20, %v1767_v19  ;;  %v9027_v20 = vld [vmem:[%s10068_s5 + $0x88] sm:$0xff]  ;;  %v7613_v42 = vor.u32 %v9132_v41, %v7612_v40  ;;  %v9112_v40 = vld [vmem:[#allocation2 + $0x22c] sm:$0xf0] }
 0x1b9   :  { %2921 = vmatpush.bf16.msrb.mxu2 %v9027_v20  ;;  %2933 = vmatpush.bf16.msrb.mxu0 %v9036_v43  ;;  %v7740_v20 = vld [vmem:[#allocation2 + $0x3c0] sm:$0xf]  ;;  %v7533_v41 = vor.u32 %v9112_v40, %v7532_v39  ;;  %v9236_v40 = vld [vmem:[#allocation2 + $0x60c] sm:$0xf0] }
 0x1ba   :  { %v9678_v23 = vadd.f32 %v2539_v22, %v2527_v34  ;;  %v7708_v43 = vld [vmem:[#allocation2 + $0x380] sm:$0xf] }
 0x1bb   :  { %v7709_v47 = vor.u32 %v9156_v7, %v7708_v43  ;;  %v7614_v43 = vld [vmem:[#allocation2 + $0x2d0] sm:$0xf0]  ;;  %v2943_v7 = vld [vmem:[%s10063_s0 + $0x40] sm:$0xff] }
 0x1bd   :  { %2922 = vmatpush.bf16.msrb.mxu2 %v9026_v51  ;;  %2934 = vmatpush.bf16.msrb.mxu0 %v9035_v52  ;;  %v7549_v51 = vor.u32 %v9116_v26, %v7548_v24  ;;  %v8012_v52 = vld [vmem:[#allocation2 + $0x5e0] sm:$0xf]  ;;  %v7630_v24 = vld [vmem:[#allocation2 + $0x2f0] sm:$0xf0] }
 0x1bf   :  { %v2528_v2 = vpop.f32.mrf.mxu3 }
 0x1c0   :  { %v7628_v2 = vld [vmem:[#allocation2 + $0x2e0] sm:$0xf] }
 0x1c1   :  { %v7629_v29 = vor.u32 %v9136_v31, %v7628_v2  ;;  %v7853_v2 = vor.u32 %v9192_v15, %v7852_v14  ;;  %v7836_v31 = vld [vmem:[#allocation2 + $0x480] sm:$0xf] }
 0x1c2   :  { %v7837_v6 = vor.u32 %v9188_v33, %v7836_v31  ;;  %v7772_v15 = vld [vmem:[#allocation2 + $0x400] sm:$0xf]  ;;  %v2946_v31 = vld [vmem:[%s10063_s0 + $0x58] sm:$0xff] }
 0x1c3   :  { %v9707_v61 = vpop.f32.mrf.mxu2  ;;  %4171 = vmatpush.bf16.msra.mxu2 %v7629_v29  ;;  %v7724_v29 = vld [vmem:[#allocation2 + $0x3a0] sm:$0xf] }
 0x1c4   :  { %v2449_v48 = vadd.f32 %v9707_v61, %v9650_v60  ;;  %v9196_v60 = vld [vmem:[#allocation2 + $0x4cc] sm:$0xf0]  ;;  %v7725_v36 = vor.u32 %v9160_v32, %v7724_v29  ;;  %v7644_v29 = vld [vmem:[#allocation2 + $0x300] sm:$0xf] }
 0x1c5   :  { %v7869_v62 = vor.u32 %v9196_v60, %v7868_v0  ;;  %v7996_v0 = vld [vmem:[#allocation2 + $0x5c0] sm:$0xf]  ;;  %v9228_v60 = vld [vmem:[#allocation2 + $0x5cc] sm:$0xf0] }
 0x1c6   :  { %v9140_v32 = vld [vmem:[#allocation2 + $0x30c] sm:$0xf0] }
 0x1c7   :  { %4172 = vmatpush.bf16.msra.mxu2 %v7613_v42 }
 0x1cb   :  { %v2450_v5 = vpop.f32.mrf.mxu2  ;;  %4173 = vmatpush.bf16.msra.mxu2 %v7597_v44  ;;  %v2942_v44 = vld [vmem:[%s10063_s0 + $0x38] sm:$0xff] }
 0x1cc   :  { %v9771_v30 = vpack.c.bf16 %v2942_v44, %v2942_v44 }
 0x1cf   :  { %v2591_v4 = vpop.f32.mrf.mxu1  ;;  %4174 = vmatpush.bf16.msra.mxu2 %v7581_v59 }
 0x1d3   :  { %v9742_v22 = vpop.f32.mrf.mxu2  ;;  %4175 = vmatpush.bf16.msra.mxu2 %v7565_v55 }
 0x1d4   :  { %v2501_v42 = vadd.f32 %v9742_v22, %v9665_v45  ;;  %v7692_v22 = vld [vmem:[#allocation2 + $0x360] sm:$0xf] }
 0x1d7   :  { %v2578_v63 = vpop.f32.mrf.mxu3  ;;  %v2593_v34 = vpop.f32.mrf.mxu1  ;;  %4176 = vmatpush.bf16.msra.mxu2 %v7549_v51 }
 0x1d8   :  { %v2579_v3 = vadd.f32 %v2578_v63, %v1768_v56  ;;  %v7421_v56 = vor.u32 %v9084_v25, %v7420_v53  ;;  %v9164_v34 = vld [vmem:[#allocation2 + $0x3cc] sm:$0xf0] }
 0x1d9   :  { %v7741_v27 = vor.u32 %v9164_v34, %v7740_v20  ;;  %v9232_v53 = vld [vmem:[#allocation2 + $0x5ec] sm:$0xf0]  ;;  %v9134_v34 = vld [vmem:[#allocation2 + $0x2e4] sm:$0xf] }
 0x1da   :  { %v9734_v9 = vadd.f32 %v2591_v4, %v2579_v3  ;;  %v9034_v3 = vld [vmem:[%s10068_s5 + $0xc0] sm:$0xff]  ;;  %v9080_v4 = vld [vmem:[#allocation2 + $0x12c] sm:$0xf0]  ;;  %4163 = vmatpush.bf16.msra.mxu1 %v7421_v56  ;;  %v8013_v58 = vor.u32 %v9232_v53, %v8012_v52  ;;  %v7633_v39 = vor.u32 %v9134_v34, %v7630_v24  ;;  %v7598_v53 = vld [vmem:[#allocation2 + $0x2b0] sm:$0xf0] }
 0x1db   :  { %v2502_v28 = vpop.f32.mrf.mxu2  ;;  %v7405_v46 = vor.u32 %v9080_v4, %v7404_v57  ;;  %2935 = vmatpush.bf16.msrb.mxu0 %v9034_v3  ;;  %4177 = vmatpush.bf16.msra.mxu2 %v7533_v41  ;;  %v9152_v25 = vld [vmem:[#allocation2 + $0x36c] sm:$0xf0]  ;;  %v7788_v4 = vld [vmem:[#allocation2 + $0x420] sm:$0xf]  ;;  %v9126_v52 = vld [vmem:[#allocation2 + $0x2a4] sm:$0xf] }
 0x1dc   :  { %v7820_v28 = vld [vmem:[#allocation2 + $0x460] sm:$0xf]  ;;  %v7789_v14 = vor.u32 %v9176_v8, %v7788_v4  ;;  %v9220_v20 = vld [vmem:[#allocation2 + $0x58c] sm:$0xf0]  ;;  %v9166_v4 = vld [vmem:[#allocation2 + $0x3e4] sm:$0xf] }
 0x1dd   :  { %v7948_v41 = vld [vmem:[#allocation2 + $0x560] sm:$0xf]  ;;  %v9102_v8 = vld [vmem:[#allocation2 + $0x1e4] sm:$0xf] }
 0x1de   :  { %4164 = vmatpush.bf16.msra.mxu1 %v7405_v46  ;;  %v7676_v46 = vld [vmem:[#allocation2 + $0x340] sm:$0xf]  ;;  %v9110_v34 = vld [vmem:[#allocation2 + $0x224] sm:$0xf] }
 0x1df   :  { %v2580_v19 = vpop.f32.mrf.mxu3  ;;  %4184 = vmatpush.bf16.msra.mxu0 %v7757_v12  ;;  %v9224_v12 = vld [vmem:[#allocation2 + $0x5ac] sm:$0xf0]  ;;  %v7677_v13 = vor.u32 %v9148_v37, %v7676_v46  ;;  %v2944_v46 = vld [vmem:[%s10063_s0 + $0x48] sm:$0xff] }
 0x1e0   :  { %v9076_v19 = vld [vmem:[#allocation2 + $0x10c] sm:$0xf0]  ;;  %v7981_v55 = vor.u32 %v9224_v12, %v7980_v11  ;;  %v7502_v11 = vld [vmem:[#allocation2 + $0x1f0] sm:$0xf0] }
 0x1e1   :  { %v2461_v50 = vpop.f32.mrf.mxu0  ;;  %v7389_v21 = vor.u32 %v9076_v19, %v7388_v18  ;;  %v9172_v18 = vld [vmem:[#allocation2 + $0x40c] sm:$0xf0]  ;;  %v7964_v19 = vld [vmem:[#allocation2 + $0x580] sm:$0xf] }
 0x1e2   :  { %v2462_v54 = vadd.f32 %v2461_v50, %v2449_v48  ;;  %v9108_v48 = vld [vmem:[#allocation2 + $0x20c] sm:$0xf0] }
 0x1e3   :  { %4185 = vmatpush.bf16.msra.mxu0 %v7741_v27  ;;  %4165 = vmatpush.bf16.msra.mxu1 %v7389_v21  ;;  %v9184_v50 = vld [vmem:[#allocation2 + $0x46c] sm:$0xf0]  ;;  %v7517_v45 = vor.u32 %v9108_v48, %v7516_v16  ;;  %v8028_v27 = vld [vmem:[#allocation2 + $0x600] sm:$0xf] }
 0x1e4   :  { %v2621_v63 = vmax.f32 %v2462_v54, 0.0  ;;  %v7821_v56 = vor.u32 %v9184_v50, %v7820_v28  ;;  %v7932_v48 = vld [vmem:[#allocation2 + $0x540] sm:$0xf]  ;;  %v9786_v50 = vpack.c.bf16 %v2943_v7, %v2943_v7 }
 0x1e5   :  { %v9761_v61 = vpop.f32.mrf.mxu2  ;;  %4178 = vmatpush.bf16.msra.mxu2 %v7517_v45 }
 0x1e6   :  { %v2625_v5 = vpack.c.bf16 %v2621_v63, %v2621_v63  ;;  %v9180_v63 = vld [vmem:[#allocation2 + $0x44c] sm:$0xf0]  ;;  %v2553_v26 = vadd.f32 %v9761_v61, %v9678_v23  ;;  %v7645_v23 = vor.u32 %v9140_v32, %v7644_v29  ;;  %v9130_v61 = vld [vmem:[#allocation2 + $0x2c4] sm:$0xf]  ;;  %v7470_v32 = vld [vmem:[#allocation2 + $0x1b0] sm:$0xf0] }
 0x1e7   :  { %4186 = vmatpush.bf16.msra.mxu0 %v7725_v36  ;;  %v7805_v57 = vor.u32 %v9180_v63, %v7804_v35  ;;  %v9208_v35 = vld [vmem:[#allocation2 + $0x52c] sm:$0xf0]  ;;  %v9094_v29 = vld [vmem:[#allocation2 + $0x1a4] sm:$0xf] }
 0x1e8   :  { %2897 = vmatmul.bf16.vlgmr.msrb.gmra.mxu3 %v2625_v5  ;;  %v7997_v5 = vor.u32 %v9228_v60, %v7996_v0  ;;  %v9118_v60 = vld [vmem:[#allocation2 + $0x264] sm:$0xf] }
 0x1e9   :  { %v2463_v17 = vpop.f32.mrf.mxu0  ;;  %4197 = vmatpush.bf16.msrb.mxu3 %v7885_v1  ;;  %v7693_v1 = vor.u32 %v9152_v25, %v7692_v22 }
 0x1ea   :  { %v7660_v17 = vld [vmem:[#allocation2 + $0x320] sm:$0xf] }
 0x1eb   :  { %4187 = vmatpush.bf16.msra.mxu0 %v7709_v47  ;;  %v7617_v47 = vor.u32 %v9130_v61, %v7614_v43  ;;  %v9234_v61 = vld [vmem:[#allocation2 + $0x604] sm:$0xf]  ;;  %v8030_v43 = vld [vmem:[#allocation2 + $0x610] sm:$0xf0] }
 0x1ed   :  { %v2554_v38 = vpop.f32.mrf.mxu2  ;;  %4198 = vmatpush.bf16.msrb.mxu3 %v7869_v62  ;;  %v9144_v62 = vld [vmem:[#allocation2 + $0x32c] sm:$0xf0] }
 0x1ee   :  { %v7661_v21 = vor.u32 %v9144_v62, %v7660_v17  ;;  %v7773_v38 = vor.u32 %v9172_v18, %v7772_v15  ;;  %v7550_v15 = vld [vmem:[#allocation2 + $0x250] sm:$0xf0]  ;;  %v9793_v62 = vpack.c.bf16 %v2944_v46, %v2944_v46  ;;  %v7505_v18 = vor.u32 %v9102_v8, %v7502_v11 }
 0x1ef   :  { %4188 = vmatpush.bf16.msra.mxu0 %v7693_v1  ;;  %v7900_v1 = vld [vmem:[#allocation2 + $0x500] sm:$0xf]  ;;  %v7742_v17 = vld [vmem:[#allocation2 + $0x3d0] sm:$0xf0] }
 0x1f0   :  { %v7678_v8 = vld [vmem:[#allocation2 + $0x350] sm:$0xf0] }
 0x1f1   :  { %v2513_v10 = vpop.f32.mrf.mxu0  ;;  %4199 = vmatpush.bf16.msrb.mxu3 %v7853_v2  ;;  %v7965_v2 = vor.u32 %v9220_v20, %v7964_v19  ;;  %v9098_v19 = vld [vmem:[#allocation2 + $0x1c4] sm:$0xf]  ;;  %v7486_v20 = vld [vmem:[#allocation2 + $0x1d0] sm:$0xf0] }
 0x1f2   :  { %v2514_v49 = vadd.f32 %v2513_v10, %v2501_v42  ;;  %v9216_v42 = vld [vmem:[#allocation2 + $0x56c] sm:$0xf0]  ;;  %v9784_v10 = vpack.c.bf16 %v2946_v31, %v2946_v31  ;;  %v7489_v31 = vor.u32 %v9098_v19, %v7486_v20  ;;  %v7476_v19 = vld [vmem:[#allocation2 + $0x1a8] sm:$0xf] }
 0x1f3   :  { %4189 = vmatpush.bf16.msra.mxu0 %v7677_v13  ;;  %v7949_v28 = vor.u32 %v9216_v42, %v7948_v41  ;;  %v9114_v13 = vld [vmem:[#allocation2 + $0x244] sm:$0xf]  ;;  %v7518_v41 = vld [vmem:[#allocation2 + $0x210] sm:$0xf0] }
 0x1f4   :  { %v2622_v54 = vmax.f32 %v2514_v49, 0.0  ;;  %v9212_v49 = vld [vmem:[#allocation2 + $0x54c] sm:$0xf0]  ;;  %v9154_v42 = vld [vmem:[#allocation2 + $0x384] sm:$0xf] }
 0x1f5   :  { %4200 = vmatpush.bf16.msrb.mxu3 %v7837_v6  ;;  %v8029_v6 = vor.u32 %v9236_v40, %v8028_v27  ;;  %v7933_v22 = vor.u32 %v9212_v49, %v7932_v48  ;;  %v7534_v27 = vld [vmem:[#allocation2 + $0x230] sm:$0xf0] }
 0x1f6   :  { %v2626_v59 = vpack.c.bf16 %v2622_v54, %v2622_v54  ;;  %v7601_v54 = vor.u32 %v9126_v52, %v7598_v53  ;;  %v9070_v52 = vld [vmem:[#allocation2 + $0xe4] sm:$0xf]  ;;  %v7374_v53 = vld [vmem:[#allocation2 + $0xf0] sm:$0xf0] }
 0x1f7   :  { %4190 = vmatpush.bf16.msra.mxu0 %v7661_v21  ;;  %v7553_v21 = vor.u32 %v9114_v13, %v7550_v15  ;;  %v7422_v15 = vld [vmem:[#allocation2 + $0x150] sm:$0xf0] }
 0x1f8   :  { %2910 = vmatmul.bf16.vlgmr.msrb.gmra.mxu1 %v2626_v59  ;;  %4153 = vmatmul.bf16.vlgmr.msra.gmra.mxu3 %v9771_v30  ;;  %v7582_v59 = vld [vmem:[#allocation2 + $0x290] sm:$0xf0] }
 0x1f9   :  { %v2515_v3 = vpop.f32.mrf.mxu0  ;;  %4201 = vmatpush.bf16.msrb.mxu3 %v7821_v56  ;;  %4210 = vmatpush.bf16.msrb.mxu1 %v8013_v58  ;;  %v7916_v56 = vld [vmem:[#allocation2 + $0x520] sm:$0xf]  ;;  %v9122_v58 = vld [vmem:[#allocation2 + $0x284] sm:$0xf] }
 0x1fa   :  { %v7917_v63 = vor.u32 %v9208_v35, %v7916_v56  ;;  %v7585_v0 = vor.u32 %v9122_v58, %v7582_v59  ;;  %v9204_v3 = vld [vmem:[#allocation2 + $0x50c] sm:$0xf0]  ;;  %v7694_v56 = vld [vmem:[#allocation2 + $0x370] sm:$0xf0]  ;;  %v7377_v58 = vor.u32 %v9070_v52, %v7374_v53  ;;  %v9086_v59 = vld [vmem:[#allocation2 + $0x164] sm:$0xf] }
 0x1fb   :  { %4191 = vmatpush.bf16.msra.mxu0 %v7645_v23  ;;  %v7901_v37 = vor.u32 %v9204_v3, %v7900_v1  ;;  %v7710_v23 = vld [vmem:[#allocation2 + $0x390] sm:$0xf0] }
 0x1fc   :  { %v7713_v48 = vor.u32 %v9154_v42, %v7710_v23  ;;  %v7358_v1 = vld [vmem:[#allocation2 + $0xd0] sm:$0xf0] }
 0x1fd   :  { %4202 = vmatpush.bf16.msrb.mxu3 %v7805_v57  ;;  %4211 = vmatpush.bf16.msrb.mxu1 %v7997_v5  ;;  %v7566_v57 = vld [vmem:[#allocation2 + $0x270] sm:$0xf0] }
 0x1fe   :  { %v7758_v5 = vld [vmem:[#allocation2 + $0x3f0] sm:$0xf0]  ;;  %v7569_v12 = vor.u32 %v9118_v60, %v7566_v57  ;;  %v9066_v60 = vld [vmem:[#allocation2 + $0xc4] sm:$0xf]  ;;  %v7492_v57 = vld [vmem:[#allocation2 + $0x1c8] sm:$0xf] }
 0x1ff   :  { %v7361_v13 = vor.u32 %v9066_v60, %v7358_v1  ;;  %v7646_v42 = vld [vmem:[#allocation2 + $0x310] sm:$0xf0] }
 0x200   :  { %v7998_v60 = vld [vmem:[#allocation2 + $0x5d0] sm:$0xf0] }
 0x201   :  { %v2565_v51 = vpop.f32.mrf.mxu0  ;;  %4203 = vmatpush.bf16.msrb.mxu3 %v7789_v14  ;;  %4212 = vmatpush.bf16.msrb.mxu1 %v7981_v55  ;;  %v7761_v14 = vor.u32 %v9166_v4, %v7758_v5  ;;  %v9162_v55 = vld [vmem:[#allocation2 + $0x3c4] sm:$0xf]  ;;  %v9101_v5 = vld [vmem:[#allocation2 + $0x1d4] sm:$0xf0] }
 0x202   :  { %v2566_v33 = vadd.f32 %v2565_v51, %v2553_v26  ;;  %v7745_v24 = vor.u32 %v9162_v55, %v7742_v17  ;;  %v2947_v26 = vld [vmem:[%s10063_s0 + $0x60] sm:$0xff]  ;;  %v7342_v17 = vld [vmem:[#allocation2 + $0xb0] sm:$0xf0] }
 0x203   :  { %v9158_v51 = vld [vmem:[#allocation2 + $0x3a4] sm:$0xf] }
 0x204   :  { %v2623_v16 = vmax.f32 %v2566_v33, 0.0  ;;  %v7537_v33 = vor.u32 %v9110_v34, %v7534_v27  ;;  %v9062_v55 = vld [vmem:[#allocation2 + $0xa4] sm:$0xf] }
 0x205   :  { %v9779_v36 = vpop.f32.mrf.mxu2  ;;  %4204 = vmatpush.bf16.msrb.mxu3 %v7773_v38  ;;  %4213 = vmatpush.bf16.msrb.mxu1 %v7965_v2  ;;  %v7726_v38 = vld [vmem:[#allocation2 + $0x3b0] sm:$0xf0]  ;;  %v9798_v2 = vpack.c.bf16 %v2947_v26, %v2947_v26  ;;  %v9142_v34 = vld [vmem:[#allocation2 + $0x324] sm:$0xf]  ;;  %v7345_v27 = vor.u32 %v9062_v55, %v7342_v17  ;;  %v7412_v17 = vld [vmem:[#allocation2 + $0x128] sm:$0xf] }
 0x206   :  { %v2627_v44 = vpack.c.bf16 %v2623_v16, %v2623_v16  ;;  %v7729_v40 = vor.u32 %v9158_v51, %v7726_v38  ;;  %v2605_v7 = vadd.f32 %v9779_v36, %v9734_v9  ;;  %v7473_v16 = vor.u32 %v9094_v29, %v7470_v32  ;;  %v2948_v36 = vld [vmem:[%s10063_s0 + $0x68] sm:$0xff]  ;;  %v9078_v51 = vld [vmem:[#allocation2 + $0x124] sm:$0xf]  ;;  %v7406_v38 = vld [vmem:[#allocation2 + $0x130] sm:$0xf0] }
 0x207   :  { %v9807_v46 = vpack.c.bf16 %v2948_v36, %v2948_v36  ;;  %v7326_v29 = vld [vmem:[#allocation2 + $0x90] sm:$0xf0]  ;;  %v7409_v23 = vor.u32 %v9078_v51, %v7406_v38  ;;  %v9198_v51 = vld [vmem:[#allocation2 + $0x4e4] sm:$0xf] }
 0x208   :  { %2923 = vmatmul.bf16.vlgmr.msrb.gmra.mxu2 %v2627_v44  ;;  %4205 = vmatmul.bf16.vlgmr.msrb.gmra.mxu3 %v9784_v10  ;;  %v7454_v44 = vld [vmem:[#allocation2 + $0x190] sm:$0xf0] }
 0x209   :  { %4262 = vmatpush.bf16.msra.mxu3 %v7633_v39  ;;  %v2567_v45 = vpop.f32.mrf.mxu0  ;;  %4230 = vmatpush.bf16.msrb.mxu2 %v8029_v6  ;;  %v9106_v39 = vld [vmem:[#allocation2 + $0x204] sm:$0xf]  ;;  %v7886_v38 = vld [vmem:[#allocation2 + $0x4f0] sm:$0xf0] }
 0x20a   :  { %4214 = vmatpush.bf16.msrb.mxu1 %v7949_v28  ;;  %v9090_v28 = vld [vmem:[#allocation2 + $0x184] sm:$0xf]  ;;  %v8033_v45 = vor.u32 %v9234_v61, %v8030_v43  ;;  %v2945_v61 = vld [vmem:[%s10063_s0 + $0x50] sm:$0xff]  ;;  %v7380_v43 = vld [vmem:[#allocation2 + $0xe8] sm:$0xf] }
 0x20b   :  { %4166 = vmatmul.bf16.vlgmr.msra.gmra.mxu1 %v9786_v50  ;;  %v7457_v9 = vor.u32 %v9090_v28, %v7454_v44  ;;  %v9074_v28 = vld [vmem:[#allocation2 + $0x104] sm:$0xf]  ;;  %v7390_v44 = vld [vmem:[#allocation2 + $0x110] sm:$0xf0] }
 0x20d   :  { %v2606_v25 = vpop.f32.mrf.mxu2  ;;  %4263 = vmatpush.bf16.msra.mxu3 %v7617_v47  ;;  %v7521_v47 = vor.u32 %v9106_v39, %v7518_v41  ;;  %v9138_v41 = vld [vmem:[#allocation2 + $0x304] sm:$0xf] }
 0x20e   :  { %4215 = vmatpush.bf16.msrb.mxu1 %v7933_v22  ;;  %v7508_v22 = vld [vmem:[#allocation2 + $0x1e8] sm:$0xf]  ;;  %v9105_v25 = vld [vmem:[#allocation2 + $0x1f4] sm:$0xf0]  ;;  %v7649_v53 = vor.u32 %v9138_v41, %v7646_v42 }
 0x20f   :  { %v7509_v3 = vor.u32 %v9105_v25, %v7508_v22  ;;  %v9089_v22 = vld [vmem:[#allocation2 + $0x174] sm:$0xf0] }
 0x210   :  { %v9233_v42 = vld [vmem:[#allocation2 + $0x5f4] sm:$0xf0] }
 0x211   :  { %4264 = vmatpush.bf16.msra.mxu3 %v7601_v54  ;;  %v9150_v54 = vld [vmem:[#allocation2 + $0x364] sm:$0xf] }
 0x212   :  { %4216 = vmatpush.bf16.msrb.mxu1 %v7917_v63  ;;  %v7438_v63 = vld [vmem:[#allocation2 + $0x170] sm:$0xf0]  ;;  %v7697_v4 = vor.u32 %v9150_v54, %v7694_v56  ;;  %v9815_v54 = vpack.c.bf16 %v2945_v61, %v2945_v61  ;;  %v7393_v56 = vor.u32 %v9074_v28, %v7390_v44  ;;  %v9057_v61 = vld [vmem:[#allocation2 + $0x74] sm:$0xf0] }
 0x213   :  { %v7441_v11 = vor.u32 %v9086_v59, %v7438_v63  ;;  %v9050_v59 = vld [vmem:[#allocation2 + $0x44] sm:$0xf]  ;;  %v7294_v63 = vld [vmem:[#allocation2 + $0x50] sm:$0xf0] }
 0x214   :  { %v7950_v28 = vld [vmem:[#allocation2 + $0x570] sm:$0xf0] }
 0x215   :  { %4265 = vmatpush.bf16.msra.mxu3 %v7585_v0 }
 0x216   :  { %4217 = vmatpush.bf16.msrb.mxu1 %v7901_v37  ;;  %v9146_v37 = vld [vmem:[#allocation2 + $0x344] sm:$0xf] }
 0x217   :  { %v7681_v20 = vor.u32 %v9146_v37, %v7678_v8  ;;  %v9065_v37 = vld [vmem:[#allocation2 + $0xb4] sm:$0xf0]  ;;  %v7297_v8 = vor.u32 %v9050_v59, %v7294_v63  ;;  %v7854_v59 = vld [vmem:[#allocation2 + $0x4b0] sm:$0xf0] }
 0x218   :  { %4179 = vmatmul.bf16.vlgmr.msra.gmra.mxu2 %v9793_v62 }
 0x219   :  { %4266 = vmatpush.bf16.msra.mxu3 %v7569_v12  ;;  %4249 = vmatpush.bf16.msra.mxu2 %v7505_v18  ;;  %v7493_v18 = vor.u32 %v9101_v5, %v7492_v57  ;;  %v9085_v57 = vld [vmem:[#allocation2 + $0x154] sm:$0xf0]  ;;  %v7348_v5 = vld [vmem:[#allocation2 + $0xa8] sm:$0xf] }
 0x21a   :  { %4275 = vmatpush.bf16.msra.mxu1 %v7761_v14  ;;  %v9082_v14 = vld [vmem:[#allocation2 + $0x144] sm:$0xf] }
 0x21b   :  { %4218 = vmatmul.bf16.vlgmr.msrb.gmra.mxu1 %v9798_v2  ;;  %v7425_v26 = vor.u32 %v9082_v14, %v7422_v15  ;;  %v9222_v14 = vld [vmem:[#allocation2 + $0x5a4] sm:$0xf]  ;;  %v7982_v15 = vld [vmem:[#allocation2 + $0x5b0] sm:$0xf0] }
 0x21d   :  { %4267 = vmatpush.bf16.msra.mxu3 %v7553_v21  ;;  %4250 = vmatpush.bf16.msra.mxu2 %v7489_v31  ;;  %v9097_v21 = vld [vmem:[#allocation2 + $0x1b4] sm:$0xf0]  ;;  %v9058_v31 = vld [vmem:[#allocation2 + $0x84] sm:$0xf] }
 0x21e   :  { %4276 = vmatpush.bf16.msra.mxu1 %v7745_v24  ;;  %v7662_v24 = vld [vmem:[#allocation2 + $0x330] sm:$0xf0]  ;;  %v7477_v32 = vor.u32 %v9097_v21, %v7476_v19  ;;  %v7349_v19 = vor.u32 %v9065_v37, %v7348_v5  ;;  %v9061_v21 = vld [vmem:[#allocation2 + $0x94] sm:$0xf0]  ;;  %v9206_v37 = vld [vmem:[#allocation2 + $0x524] sm:$0xf] }
 0x21f   :  { %v7665_v39 = vor.u32 %v9142_v34, %v7662_v24  ;;  %v7985_v24 = vor.u32 %v9222_v14, %v7982_v15  ;;  %v7972_v14 = vld [vmem:[#allocation2 + $0x588] sm:$0xf] }
 0x221   :  { %v2617_v6 = vpop.f32.mrf.mxu0  ;;  %4268 = vmatpush.bf16.msra.mxu3 %v7537_v33  ;;  %4251 = vmatpush.bf16.msra.mxu2 %v7473_v16  ;;  %v7460_v33 = vld [vmem:[#allocation2 + $0x188] sm:$0xf]  ;;  %v7329_v16 = vor.u32 %v9058_v31, %v7326_v29  ;;  %v9218_v31 = vld [vmem:[#allocation2 + $0x584] sm:$0xf]  ;;  %v7966_v29 = vld [vmem:[#allocation2 + $0x590] sm:$0xf0] }
 0x222   :  { %4277 = vmatpush.bf16.msra.mxu1 %v7729_v40  ;;  %v2618_v49 = vadd.f32 %v2617_v6, %v2605_v7  ;;  %v9093_v40 = vld [vmem:[#allocation2 + $0x194] sm:$0xf0]  ;;  %v9054_v6 = vld [vmem:[#allocation2 + $0x64] sm:$0xf] }
 0x223   :  { %v9073_v7 = vld [vmem:[#allocation2 + $0xf4] sm:$0xf0]  ;;  %v7461_v52 = vor.u32 %v9093_v40, %v7460_v33  ;;  %v7396_v33 = vld [vmem:[#allocation2 + $0x108] sm:$0xf] }
 0x224   :  { %v2624_v35 = vmax.f32 %v2618_v49, 0.0  ;;  %v8014_v49 = vld [vmem:[#allocation2 + $0x5f0] sm:$0xf0]  ;;  %v7381_v25 = vor.u32 %v9073_v7, %v7380_v43  ;;  %v8020_v40 = vld [vmem:[#allocation2 + $0x5e8] sm:$0xf]  ;;  %v7969_v7 = vor.u32 %v9218_v31, %v7966_v29 }
 0x225   :  { %4269 = vmatpush.bf16.msra.mxu3 %v7521_v47  ;;  %4252 = vmatpush.bf16.msra.mxu2 %v7457_v9  ;;  %v7310_v47 = vld [vmem:[#allocation2 + $0x70] sm:$0xf0]  ;;  %v9069_v9 = vld [vmem:[#allocation2 + $0xd4] sm:$0xf0] }
 0x226   :  { %4278 = vmatpush.bf16.msra.mxu1 %v7713_v48  ;;  %v2628_v0 = vpack.c.bf16 %v2624_v35, %v2624_v35  ;;  %v9230_v48 = vld [vmem:[#allocation2 + $0x5e4] sm:$0xf]  ;;  %v7364_v35 = vld [vmem:[#allocation2 + $0xc8] sm:$0xf]  ;;  %v7313_v36 = vor.u32 %v9054_v6, %v7310_v47  ;;  %v9169_v31 = vld [vmem:[#allocation2 + $0x3f4] sm:$0xf0] }
 0x227   :  { %v9214_v6 = vld [vmem:[#allocation2 + $0x564] sm:$0xf] }
 0x228   :  { %2936 = vmatmul.bf16.vlgmr.msrb.gmra.mxu0 %v2628_v0  ;;  %4270 = vmatmul.bf16.vlgmr.msra.gmra.mxu3 %v9793_v62  ;;  %v9226_v0 = vld [vmem:[#allocation2 + $0x5c4] sm:$0xf] }
 0x229   :  { %4321 = vmatpush.bf16.msrb.mxu3 %v8033_v45  ;;  %4236 = vmatpush.bf16.msrb.mxu0 %v7377_v58  ;;  %v2619_v12 = vpop.f32.mrf.mxu0  ;;  %v7444_v45 = vld [vmem:[#allocation2 + $0x168] sm:$0xf]  ;;  %v8017_v58 = vor.u32 %v9230_v48, %v8014_v49  ;;  %v9194_v47 = vld [vmem:[#allocation2 + $0x4c4] sm:$0xf]  ;;  %v7870_v48 = vld [vmem:[#allocation2 + $0x4d0] sm:$0xf0]  ;;  %v8021_v49 = vor.u32 %v9233_v42, %v8020_v40 }
 0x22a   :  { %4279 = vmatpush.bf16.msra.mxu1 %v7697_v4  ;;  %8042 = vmatmul.msk.bf16.vlgmr.msrb.gmra.mxu2 %vm1259_vm0, %v9807_v46  ;;  %v7445_v1 = vor.u32 %v9089_v22, %v7444_v45  ;;  %v7365_v4 = vor.u32 %v9069_v9, %v7364_v35  ;;  %v9046_v12 = vld [vmem:[#allocation2 + $0x24] sm:$0xf]  ;;  %v9229_v45 = vld [vmem:[#allocation2 + $0x5d4] sm:$0xf0]  ;;  %v7300_v22 = vld [vmem:[#allocation2 + $0x48] sm:$0xf]  ;;  %v7873_v35 = vor.u32 %v9194_v47, %v7870_v48 }
 0x22b   :  { %4253 = vmatpush.bf16.msra.mxu2 %v7441_v11  ;;  %v8001_v11 = vor.u32 %v9226_v0, %v7998_v60  ;;  %v9210_v9 = vld [vmem:[#allocation2 + $0x544] sm:$0xf]  ;;  %v7988_v0 = vld [vmem:[#allocation2 + $0x5a8] sm:$0xf]  ;;  %v9213_v48 = vld [vmem:[#allocation2 + $0x554] sm:$0xf0] }
 0x22c   :  { %v7876_v42 = vld [vmem:[#allocation2 + $0x4c8] sm:$0xf] }
 0x22d   :  { %4340 = vmatpush.bf16.msra.mxu3 %v7509_v3  ;;  %4237 = vmatpush.bf16.msrb.mxu0 %v7361_v13  ;;  %v7428_v3 = vld [vmem:[#allocation2 + $0x148] sm:$0xf]  ;;  %v7278_v13 = vld [vmem:[#allocation2 + $0x30] sm:$0xf0] }
 0x22e   :  { %4280 = vmatpush.bf16.msra.mxu1 %v7681_v20  ;;  %v7429_v55 = vor.u32 %v9085_v57, %v7428_v3  ;;  %v7332_v20 = vld [vmem:[#allocation2 + $0x88] sm:$0xf]  ;;  %v7281_v34 = vor.u32 %v9046_v12, %v7278_v13  ;;  %v9049_v57 = vld [vmem:[#allocation2 + $0x34] sm:$0xf0]  ;;  %v7838_v12 = vld [vmem:[#allocation2 + $0x490] sm:$0xf0] }
 0x22f   :  { %4254 = vmatpush.bf16.msra.mxu2 %v7425_v26  ;;  %v9042_v26 = vld [vmem:[#allocation2 + $0x4] sm:$0xf]  ;;  %v7333_v41 = vor.u32 %v9061_v21, %v7332_v20  ;;  %v7284_v3 = vld [vmem:[#allocation2 + $0x28] sm:$0xf]  ;;  %v9201_v21 = vld [vmem:[#allocation2 + $0x4f4] sm:$0xf0] }
 0x230   :  { %v7285_v15 = vor.u32 %v9049_v57, %v7284_v3  ;;  %v7892_v20 = vld [vmem:[#allocation2 + $0x4e8] sm:$0xf]  ;;  %v9170_v57 = vld [vmem:[#allocation2 + $0x404] sm:$0xf] }
 0x231   :  { %4341 = vmatpush.bf16.msra.mxu3 %v7493_v18  ;;  %4238 = vmatpush.bf16.msrb.mxu0 %v7345_v27  ;;  %v9081_v18 = vld [vmem:[#allocation2 + $0x134] sm:$0xf0]  ;;  %v7262_v27 = vld [vmem:[#allocation2 + $0x10] sm:$0xf0]  ;;  %v7893_v40 = vor.u32 %v9201_v21, %v7892_v20  ;;  %v7940_v47 = vld [vmem:[#allocation2 + $0x548] sm:$0xf] }
 0x232   :  { %4281 = vmatpush.bf16.msra.mxu1 %v7665_v39  ;;  %v9077_v39 = vld [vmem:[#allocation2 + $0x114] sm:$0xf0]  ;;  %v7265_v43 = vor.u32 %v9042_v26, %v7262_v27  ;;  %v9202_v26 = vld [vmem:[#allocation2 + $0x504] sm:$0xf]  ;;  %v7902_v27 = vld [vmem:[#allocation2 + $0x510] sm:$0xf0] }
 0x233   :  { %4255 = vmatpush.bf16.msra.mxu2 %v7409_v23  ;;  %v7316_v23 = vld [vmem:[#allocation2 + $0x68] sm:$0xf]  ;;  %v7397_v44 = vor.u32 %v9077_v39, %v7396_v33  ;;  %v9217_v39 = vld [vmem:[#allocation2 + $0x574] sm:$0xf0] }
 0x234   :  { %v7956_v33 = vld [vmem:[#allocation2 + $0x568] sm:$0xf] }
 0x235   :  { %4342 = vmatpush.bf16.msra.mxu3 %v7477_v32  ;;  %4239 = vmatpush.bf16.msrb.mxu0 %v7329_v16  ;;  %v7413_v32 = vor.u32 %v9081_v18, %v7412_v17  ;;  %v7889_v16 = vor.u32 %v9198_v51, %v7886_v38  ;;  %v7268_v17 = vld [vmem:[#allocation2 + $0x8] sm:$0xf]  ;;  %v9045_v18 = vld [vmem:[#allocation2 + $0x14] sm:$0xf0]  ;;  %v7822_v51 = vld [vmem:[#allocation2 + $0x470] sm:$0xf0] }
 0x236   :  { %4282 = vmatpush.bf16.msra.mxu1 %v7649_v53  ;;  %v7317_v53 = vor.u32 %v9057_v61, %v7316_v23  ;;  %v7764_v38 = vld [vmem:[#allocation2 + $0x3e8] sm:$0xf]  ;;  %v9197_v23 = vld [vmem:[#allocation2 + $0x4d4] sm:$0xf0] }
 0x237   :  { %4256 = vmatpush.bf16.msra.mxu2 %v7393_v56  ;;  %v7953_v56 = vor.u32 %v9214_v6, %v7950_v28  ;;  %v7748_v6 = vld [vmem:[#allocation2 + $0x3c8] sm:$0xf]  ;;  %v9165_v28 = vld [vmem:[#allocation2 + $0x3d4] sm:$0xf0] }
 0x238   :  { %4192 = vmatmul.bf16.vlgmr.msra.gmra.mxu0 %v9815_v54  ;;  %8043 = vmatmul.msk.bf16.vlgmr.msrb.gmra.mxu3 %vm1259_vm0, %v9807_v46 }
 0x239   :  { %4343 = vmatpush.bf16.msra.mxu3 %v7461_v52  ;;  %4240 = vmatpush.bf16.msrb.mxu0 %v7313_v36  ;;  %v8004_v52 = vld [vmem:[#allocation2 + $0x5c8] sm:$0xf]  ;;  %v7934_v36 = vld [vmem:[#allocation2 + $0x550] sm:$0xf0] }
 0x23a   :  { %4327 = vmatpush.bf16.msrb.mxu1 %v7381_v25  ;;  %4257 = vmatmul.bf16.vlgmr.msra.gmra.mxu2 %v9786_v50  ;;  %v9053_v25 = vld [vmem:[#allocation2 + $0x54] sm:$0xf0]  ;;  %v8005_v63 = vor.u32 %v9229_v45, %v8004_v52  ;;  %v7860_v52 = vld [vmem:[#allocation2 + $0x4a8] sm:$0xf] }
 0x23b   :  { %4301 = vmatpush.bf16.msrb.mxu2 %v8017_v58  ;;  %4283 = vmatmul.bf16.vlgmr.msra.gmra.mxu1 %v9815_v54  ;;  %v9190_v58 = vld [vmem:[#allocation2 + $0x4a4] sm:$0xf]  ;;  %v7301_v60 = vor.u32 %v9053_v25, %v7300_v22  ;;  %v7749_v22 = vor.u32 %v9165_v28, %v7748_v6  ;;  %v9159_v6 = vld [vmem:[#allocation2 + $0x3ac] sm:$0xf] }
 0x23c   :  { %v7857_v5 = vor.u32 %v9190_v58, %v7854_v59  ;;  %v9174_v25 = vld [vmem:[#allocation2 + $0x424] sm:$0xf]  ;;  %v7924_v58 = vld [vmem:[#allocation2 + $0x528] sm:$0xf]  ;;  %v9209_v59 = vld [vmem:[#allocation2 + $0x534] sm:$0xf0] }
 0x23d   :  { %4344 = vmatpush.bf16.msra.mxu3 %v7445_v1  ;;  %4241 = vmatpush.bf16.msrb.mxu0 %v7297_v8  ;;  %v9225_v1 = vld [vmem:[#allocation2 + $0x5b4] sm:$0xf0]  ;;  %v7918_v8 = vld [vmem:[#allocation2 + $0x530] sm:$0xf0] }
 0x23e   :  { %4328 = vmatpush.bf16.msrb.mxu1 %v7365_v4  ;;  %v7937_v4 = vor.u32 %v9210_v9, %v7934_v36  ;;  %v7989_v13 = vor.u32 %v9225_v1, %v7988_v0  ;;  %v9161_v9 = vld [vmem:[#allocation2 + $0x3b4] sm:$0xf0]  ;;  %v7941_v36 = vor.u32 %v9213_v48, %v7940_v47  ;;  %v7844_v0 = vld [vmem:[#allocation2 + $0x488] sm:$0xf] }
 0x23f   :  { %4302 = vmatpush.bf16.msrb.mxu2 %v8001_v11  ;;  %v9186_v11 = vld [vmem:[#allocation2 + $0x484] sm:$0xf]  ;;  %v7796_v47 = vld [vmem:[#allocation2 + $0x428] sm:$0xf]  ;;  %v9177_v48 = vld [vmem:[#allocation2 + $0x434] sm:$0xf0] }
 0x241   :  { %4345 = vmatpush.bf16.msra.mxu3 %v7429_v55  ;;  %4242 = vmatpush.bf16.msrb.mxu0 %v7281_v34  ;;  %v9221_v55 = vld [vmem:[#allocation2 + $0x594] sm:$0xf0]  ;;  %v7841_v34 = vor.u32 %v9186_v11, %v7838_v12  ;;  %v7925_v12 = vor.u32 %v9209_v59, %v7924_v58  ;;  %v7780_v58 = vld [vmem:[#allocation2 + $0x408] sm:$0xf] }
 0x242   :  { %4329 = vmatpush.bf16.msrb.mxu1 %v7349_v19  ;;  %v7921_v19 = vor.u32 %v9206_v37, %v7918_v8  ;;  %v7973_v29 = vor.u32 %v9221_v55, %v7972_v14  ;;  %v9137_v37 = vld [vmem:[#allocation2 + $0x2f4] sm:$0xf0]  ;;  %v7716_v8 = vld [vmem:[#allocation2 + $0x388] sm:$0xf] }
 0x243   :  { %4303 = vmatpush.bf16.msrb.mxu2 %v7985_v24  ;;  %v9182_v24 = vld [vmem:[#allocation2 + $0x464] sm:$0xf]  ;;  %v9157_v11 = vld [vmem:[#allocation2 + $0x394] sm:$0xf0] }
 0x244   :  { %v7825_v61 = vor.u32 %v9182_v24, %v7822_v51  ;;  %v9205_v14 = vld [vmem:[#allocation2 + $0x514] sm:$0xf0]  ;;  %v7717_v21 = vor.u32 %v9157_v11, %v7716_v8  ;;  %v7700_v24 = vld [vmem:[#allocation2 + $0x368] sm:$0xf]  ;;  %v7382_v8 = vld [vmem:[#allocation2 + $0xf8] sm:$0xf0] }
 0x245   :  { %4346 = vmatpush.bf16.msra.mxu3 %v7413_v32  ;;  %4243 = vmatpush.bf16.msrb.mxu0 %v7265_v43  ;;  %v7269_v32 = vor.u32 %v9045_v18, %v7268_v17  ;;  %v7765_v43 = vor.u32 %v9169_v31, %v7764_v38  ;;  %v7766_v17 = vld [vmem:[#allocation2 + $0x3f8] sm:$0xf0]  ;;  %v7828_v18 = vld [vmem:[#allocation2 + $0x468] sm:$0xf]  ;;  %v9133_v38 = vld [vmem:[#allocation2 + $0x2d4] sm:$0xf0] }
 0x246   :  { %4330 = vmatpush.bf16.msrb.mxu1 %v7333_v41  ;;  %v7905_v41 = vor.u32 %v9202_v26, %v7902_v27  ;;  %v9153_v26 = vld [vmem:[#allocation2 + $0x374] sm:$0xf0]  ;;  %v7620_v51 = vld [vmem:[#allocation2 + $0x2c8] sm:$0xf] }
 0x247   :  { %4304 = vmatpush.bf16.msrb.mxu2 %v7969_v7  ;;  %v9178_v7 = vld [vmem:[#allocation2 + $0x444] sm:$0xf]  ;;  %v9173_v59 = vld [vmem:[#allocation2 + $0x414] sm:$0xf0] }
 0x248   :  { %4244 = vmatmul.bf16.vlgmr.msrb.gmra.mxu0 %v9771_v30 }
 0x249   :  { %4288 = vmatpush.bf16.msra.mxu0 %v7889_v16  ;;  %4347 = vmatpush.bf16.msra.mxu3 %v7397_v44  ;;  %v7806_v16 = vld [vmem:[#allocation2 + $0x450] sm:$0xf0]  ;;  %v7957_v44 = vor.u32 %v9217_v39, %v7956_v33  ;;  %v7750_v33 = vld [vmem:[#allocation2 + $0x3d8] sm:$0xf0]  ;;  %v7812_v39 = vld [vmem:[#allocation2 + $0x448] sm:$0xf] }
 0x24a   :  { %4331 = vmatpush.bf16.msrb.mxu1 %v7317_v53  ;;  %v9193_v53 = vld [vmem:[#allocation2 + $0x4b4] sm:$0xf0]  ;;  %v7809_v45 = vor.u32 %v9178_v7, %v7806_v16 }
 0x24b   :  { %4305 = vmatpush.bf16.msrb.mxu2 %v7953_v56  ;;  %v7790_v56 = vld [vmem:[#allocation2 + $0x430] sm:$0xf0]  ;;  %v9129_v7 = vld [vmem:[#allocation2 + $0x2b4] sm:$0xf0] }
 0x24c   :  { %4348 = vmatmul.bf16.vlgmr.msra.gmra.mxu3 %v9786_v50  ;;  %v7793_v1 = vor.u32 %v9174_v25, %v7790_v56  ;;  %v9125_v25 = vld [vmem:[#allocation2 + $0x294] sm:$0xf0] }
 0x24d   :  { %4392 = vmatpush.bf16.msrb.mxu3 %v8021_v49  ;;  %4289 = vmatpush.bf16.msra.mxu0 %v7873_v35  ;;  %v7877_v49 = vor.u32 %v9197_v23, %v7876_v42  ;;  %v7732_v35 = vld [vmem:[#allocation2 + $0x3a8] sm:$0xf]  ;;  %v7621_v42 = vor.u32 %v9133_v38, %v7620_v51  ;;  %v9147_v38 = vld [vmem:[#allocation2 + $0x34c] sm:$0xf] }
 0x24e   :  { %4332 = vmatpush.bf16.msrb.mxu1 %v7301_v60  ;;  %v9189_v60 = vld [vmem:[#allocation2 + $0x494] sm:$0xf0]  ;;  %v7733_v3 = vor.u32 %v9161_v9, %v7732_v35  ;;  %v7684_v23 = vld [vmem:[#allocation2 + $0x348] sm:$0xf]  ;;  %v9155_v35 = vld [vmem:[#allocation2 + $0x38c] sm:$0xf]  ;;  %v7797_v9 = vor.u32 %v9177_v48, %v7796_v47 }
 0x24f   :  { %4306 = vmatpush.bf16.msrb.mxu2 %v7937_v4  ;;  %v7774_v4 = vld [vmem:[#allocation2 + $0x410] sm:$0xf0]  ;;  %v7845_v55 = vor.u32 %v9189_v60, %v7844_v0  ;;  %v9135_v0 = vld [vmem:[#allocation2 + $0x2ec] sm:$0xf]  ;;  %v7638_v60 = vld [vmem:[#allocation2 + $0x2f8] sm:$0xf0] }
 0x250   :  { %v7777_v20 = vor.u32 %v9170_v57, %v7774_v4  ;;  %v7652_v57 = vld [vmem:[#allocation2 + $0x308] sm:$0xf]  ;;  %v9141_v4 = vld [vmem:[#allocation2 + $0x314] sm:$0xf0]  ;;  %v7590_v47 = vld [vmem:[#allocation2 + $0x298] sm:$0xf0] }
 0x251   :  { %4393 = vmatpush.bf16.msrb.mxu3 %v8005_v63  ;;  %4290 = vmatpush.bf16.msra.mxu0 %v7857_v5  ;;  %v7861_v63 = vor.u32 %v9193_v53, %v7860_v52  ;;  %v7636_v5 = vld [vmem:[#allocation2 + $0x2e8] sm:$0xf] }
 0x252   :  { %4333 = vmatpush.bf16.msrb.mxu1 %v7285_v15  ;;  %v9167_v15 = vld [vmem:[#allocation2 + $0x3ec] sm:$0xf]  ;;  %v7668_v53 = vld [vmem:[#allocation2 + $0x328] sm:$0xf] }
 0x253   :  { %4307 = vmatpush.bf16.msrb.mxu2 %v7921_v19  ;;  %v9185_v19 = vld [vmem:[#allocation2 + $0x474] sm:$0xf0]  ;;  %v7769_v31 = vor.u32 %v9167_v15, %v7766_v17  ;;  %v7641_v15 = vor.u32 %v9135_v0, %v7638_v60  ;;  %v7653_v17 = vor.u32 %v9141_v4, %v7652_v57  ;;  %v9268_v0 = vld [vmem:[#allocation4 + $0xec] sm:$0xf0]  ;;  %v9119_v60 = vld [vmem:[#allocation2 + $0x26c] sm:$0xf] }
 0x254   :  { %v9103_v4 = vld [vmem:[#allocation2 + $0x1ec] sm:$0xf] }
 0x255   :  { %4394 = vmatpush.bf16.msrb.mxu3 %v7989_v13  ;;  %4291 = vmatpush.bf16.msra.mxu0 %v7841_v34  ;;  %v7908_v13 = vld [vmem:[#allocation2 + $0x508] sm:$0xf]  ;;  %v7637_v34 = vor.u32 %v9137_v37, %v7636_v5  ;;  %v9121_v5 = vld [vmem:[#allocation2 + $0x274] sm:$0xf0]  ;;  %v9071_v37 = vld [vmem:[#allocation2 + $0xec] sm:$0xf] }
 0x256   :  { %4334 = vmatpush.bf16.msrb.mxu1 %v7269_v32  ;;  %v7909_v27 = vor.u32 %v9205_v14, %v7908_v13  ;;  %v7829_v32 = vor.u32 %v9185_v19, %v7828_v18  ;;  %v9151_v13 = vld [vmem:[#allocation2 + $0x36c] sm:$0xf]  ;;  %v7702_v14 = vld [vmem:[#allocation2 + $0x378] sm:$0xf0] }
 0x257   :  { %4308 = vmatpush.bf16.msrb.mxu2 %v7905_v41  ;;  %v7701_v41 = vor.u32 %v9153_v26, %v7700_v24  ;;  %v9131_v18 = vld [vmem:[#allocation2 + $0x2cc] sm:$0xf]  ;;  %v7622_v19 = vld [vmem:[#allocation2 + $0x2d8] sm:$0xf0]  ;;  %v9117_v24 = vld [vmem:[#allocation2 + $0x254] sm:$0xf0]  ;;  %v7705_v51 = vor.u32 %v9151_v13, %v7702_v14 }
 0x258   :  { %v9067_v26 = vld [vmem:[#allocation2 + $0xcc] sm:$0xf]  ;;  %v8144_v14 = vld [vmem:[#allocation4 + $0xc0] sm:$0xf] }
 0x259   :  { %4395 = vmatpush.bf16.msrb.mxu3 %v7973_v29  ;;  %4292 = vmatpush.bf16.msra.mxu0 %v7825_v61  ;;  %v9163_v29 = vld [vmem:[#allocation2 + $0x3cc] sm:$0xf]  ;;  %v9149_v61 = vld [vmem:[#allocation2 + $0x354] sm:$0xf0] }
 0x25a   :  { %4379 = vmatpush.bf16.msra.mxu1 %v7893_v40  ;;  %4309 = vmatmul.bf16.vlgmr.msrb.gmra.mxu2 %v9798_v2  ;;  %v9181_v40 = vld [vmem:[#allocation2 + $0x454] sm:$0xf0]  ;;  %v7753_v16 = vor.u32 %v9163_v29, %v7750_v33  ;;  %v7625_v29 = vor.u32 %v9131_v18, %v7622_v19  ;;  %v7606_v33 = vld [vmem:[#allocation2 + $0x2b8] sm:$0xf0]  ;;  %v9115_v18 = vld [vmem:[#allocation2 + $0x24c] sm:$0xf] }
 0x25b   :  { %4366 = vmatpush.bf16.msra.mxu2 %v7765_v43  ;;  %4335 = vmatmul.bf16.vlgmr.msrb.gmra.mxu1 %v9771_v30  ;;  %v7604_v43 = vld [vmem:[#allocation2 + $0x2a8] sm:$0xf]  ;;  %v7813_v28 = vor.u32 %v9181_v40, %v7812_v39  ;;  %v7558_v19 = vld [vmem:[#allocation2 + $0x258] sm:$0xf0] }
 0x25c   :  { %v7605_v52 = vor.u32 %v9129_v7, %v7604_v43  ;;  %v9143_v7 = vld [vmem:[#allocation2 + $0x32c] sm:$0xf] }
 0x25d   :  { %4396 = vmatpush.bf16.msrb.mxu3 %v7957_v44  ;;  %4293 = vmatpush.bf16.msra.mxu0 %v7809_v45  ;;  %v7734_v44 = vld [vmem:[#allocation2 + $0x3b8] sm:$0xf0]  ;;  %v9145_v45 = vld [vmem:[#allocation2 + $0x334] sm:$0xf0] }
 0x25e   :  { %4380 = vmatpush.bf16.msra.mxu1 %v7877_v49  ;;  %v7685_v49 = vor.u32 %v9149_v61, %v7684_v23  ;;  %v7737_v56 = vor.u32 %v9159_v6, %v7734_v44  ;;  %v9063_v23 = vld [vmem:[#allocation2 + $0xac] sm:$0xf]  ;;  %v7350_v61 = vld [vmem:[#allocation2 + $0xb8] sm:$0xf0] }
 0x25f   :  { %4367 = vmatpush.bf16.msra.mxu2 %v7749_v22  ;;  %v7588_v22 = vld [vmem:[#allocation2 + $0x288] sm:$0xf]  ;;  %v9123_v44 = vld [vmem:[#allocation2 + $0x28c] sm:$0xf] }
 0x261   :  { %4397 = vmatpush.bf16.msrb.mxu3 %v7941_v36  ;;  %4294 = vmatpush.bf16.msra.mxu0 %v7793_v1  ;;  %v7718_v36 = vld [vmem:[#allocation2 + $0x398] sm:$0xf0]  ;;  %v7589_v1 = vor.u32 %v9125_v25, %v7588_v22 }
 0x262   :  { %4381 = vmatpush.bf16.msra.mxu1 %v7861_v63  ;;  %v7669_v63 = vor.u32 %v9145_v45, %v7668_v53  ;;  %v7721_v11 = vor.u32 %v9155_v35, %v7718_v36  ;;  %v9109_v53 = vld [vmem:[#allocation2 + $0x214] sm:$0xf0]  ;;  %v9059_v45 = vld [vmem:[#allocation2 + $0x8c] sm:$0xf]  ;;  %v7334_v25 = vld [vmem:[#allocation2 + $0x98] sm:$0xf0] }
 0x263   :  { %4368 = vmatpush.bf16.msra.mxu2 %v7733_v3  ;;  %v7572_v3 = vld [vmem:[#allocation2 + $0x268] sm:$0xf]  ;;  %v9237_v35 = vld [vmem:[#allocation2 + $0x614] sm:$0xf0]  ;;  %v9139_v36 = vld [vmem:[#allocation2 + $0x30c] sm:$0xf]  ;;  %v7337_v57 = vor.u32 %v9059_v45, %v7334_v25 }
 0x264   :  { %v7462_v45 = vld [vmem:[#allocation2 + $0x198] sm:$0xf0]  ;;  %v9043_v25 = vld [vmem:[#allocation2 + $0xc] sm:$0xf] }
 0x265   :  { %4398 = vmatpush.bf16.msrb.mxu3 %v7925_v12  ;;  %4295 = vmatpush.bf16.msra.mxu0 %v7777_v20  ;;  %v7781_v12 = vor.u32 %v9173_v59, %v7780_v58  ;;  %v7573_v20 = vor.u32 %v9121_v5, %v7572_v3  ;;  %v7654_v58 = vld [vmem:[#allocation2 + $0x318] sm:$0xf0]  ;;  %v8160_v59 = vld [vmem:[#allocation4 + $0xe0] sm:$0xf] }
 0x266   :  { %4382 = vmatpush.bf16.msra.mxu1 %v7845_v55  ;;  %v8161_v13 = vor.u32 %v9268_v0, %v8160_v59  ;;  %v8096_v59 = vld [vmem:[#allocation4 + $0x60] sm:$0xf] }
 0x267   :  { %4369 = vmatpush.bf16.msra.mxu2 %v7717_v21  ;;  %v7385_v21 = vor.u32 %v9071_v37, %v7382_v8  ;;  %v7510_v37 = vld [vmem:[#allocation2 + $0x1f8] sm:$0xf0]  ;;  %v9055_v8 = vld [vmem:[#allocation2 + $0x6c] sm:$0xf] }
 0x268   :  { %4296 = vmatmul.bf16.vlgmr.msra.gmra.mxu0 %v9784_v10 }
 0x269   :  { %4353 = vmatpush.bf16.msrb.mxu0 %v7637_v34  ;;  %4399 = vmatpush.bf16.msrb.mxu3 %v7909_v27  ;;  %v7556_v34 = vld [vmem:[#allocation2 + $0x248] sm:$0xf]  ;;  %v7366_v27 = vld [vmem:[#allocation2 + $0xd8] sm:$0xf0] }
 0x26a   :  { %4383 = vmatpush.bf16.msra.mxu1 %v7829_v32  ;;  %v9127_v32 = vld [vmem:[#allocation2 + $0x2ac] sm:$0xf]  ;;  %v7557_v39 = vor.u32 %v9117_v24, %v7556_v34  ;;  %v7369_v40 = vor.u32 %v9067_v26, %v7366_v27  ;;  %v7494_v26 = vld [vmem:[#allocation2 + $0x1d8] sm:$0xf0] }
 0x26b   :  { %4370 = vmatpush.bf16.msra.mxu2 %v7701_v41  ;;  %v9828_v55 = vpop.f32.mrf.mxu3  ;;  %v7540_v41 = vld [vmem:[#allocation2 + $0x228] sm:$0xf]  ;;  %v7609_v6 = vor.u32 %v9127_v32, %v7606_v33  ;;  %v9099_v34 = vld [vmem:[#allocation2 + $0x1cc] sm:$0xf]  ;;  %v7561_v32 = vor.u32 %v9115_v18, %v7558_v19  ;;  %v9260_v33 = vld [vmem:[#allocation4 + $0xac] sm:$0xf0] }
 0x26c   :  { %4400 = vmatmul.bf16.vlgmr.msrb.gmra.mxu3 %v9798_v2  ;;  %v9051_v27 = vld [vmem:[#allocation2 + $0x4c] sm:$0xf]  ;;  %v8038_v18 = vld [vmem:[#allocation2 + $0x618] sm:$0xf0] }
 0x26d   :  { %4457 = vmatpush.bf16.msra.mxu3 %v7769_v31  ;;  %4354 = vmatpush.bf16.msrb.mxu0 %v7621_v42  ;;  %v7686_v31 = vld [vmem:[#allocation2 + $0x358] sm:$0xf0]  ;;  %v9113_v42 = vld [vmem:[#allocation2 + $0x234] sm:$0xf0] }
 0x26e   :  { %4384 = vmatpush.bf16.msra.mxu1 %v7813_v28  ;;  %v7689_v43 = vor.u32 %v9147_v38, %v7686_v31  ;;  %v7541_v48 = vor.u32 %v9113_v42, %v7540_v41  ;;  %v7497_v41 = vor.u32 %v9099_v34, %v7494_v26  ;;  %v8288_v34 = vld [vmem:[#allocation4 + $0x1e0] sm:$0xf]  ;;  %v9191_v26 = vld [vmem:[#allocation2 + $0x4ac] sm:$0xf] }
 0x26f   :  { %4371 = vmatpush.bf16.msra.mxu2 %v7685_v49  ;;  %v7353_v49 = vor.u32 %v9063_v23, %v7350_v61  ;;  %v9095_v23 = vld [vmem:[#allocation2 + $0x1ac] sm:$0xf]  ;;  %v7478_v61 = vld [vmem:[#allocation2 + $0x1b8] sm:$0xf0] }
 0x271   :  { %4458 = vmatpush.bf16.msra.mxu3 %v7753_v16  ;;  %4355 = vmatpush.bf16.msrb.mxu0 %v7605_v52  ;;  %v7670_v16 = vld [vmem:[#allocation2 + $0x338] sm:$0xf0]  ;;  %v7524_v52 = vld [vmem:[#allocation2 + $0x208] sm:$0xf] }
 0x272   :  { %4385 = vmatpush.bf16.msra.mxu1 %v7797_v9  ;;  %v7673_v9 = vor.u32 %v9143_v7, %v7670_v16  ;;  %v7525_v3 = vor.u32 %v9109_v53, %v7524_v52  ;;  %v7286_v7 = vld [vmem:[#allocation2 + $0x38] sm:$0xf0]  ;;  %v9091_v53 = vld [vmem:[#allocation2 + $0x18c] sm:$0xf] }
 0x273   :  { %4372 = vmatpush.bf16.msra.mxu2 %v7669_v63  ;;  %v2900_v28 = vpop.f32.mrf.mxu3  ;;  %v7593_v63 = vor.u32 %v9123_v44, %v7590_v47  ;;  %v9256_v44 = vld [vmem:[#allocation4 + $0x8c] sm:$0xf0]  ;;  %v9107_v47 = vld [vmem:[#allocation2 + $0x20c] sm:$0xf] }
 0x275   :  { %4459 = vmatpush.bf16.msra.mxu3 %v7737_v56  ;;  %4356 = vmatpush.bf16.msrb.mxu0 %v7589_v1  ;;  %v9832_v22 = vpop.f32.mrf.mxu1  ;;  %v8036_v56 = vld [vmem:[#allocation2 + $0x608] sm:$0xf]  ;;  %v7574_v1 = vld [vmem:[#allocation2 + $0x278] sm:$0xf0] }
 0x276   :  { %4386 = vmatpush.bf16.msra.mxu1 %v7781_v12  ;;  %v8037_v5 = vor.u32 %v9237_v35, %v8036_v56  ;;  %v7657_v12 = vor.u32 %v9139_v36, %v7654_v58  ;;  %v7270_v56 = vld [vmem:[#allocation2 + $0x18] sm:$0xf0] }
 0x277   :  { %4373 = vmatpush.bf16.msra.mxu2 %v7653_v17  ;;  %v9264_v17 = vld [vmem:[#allocation4 + $0xcc] sm:$0xf0]  ;;  %v7894_v36 = vld [vmem:[#allocation2 + $0x4f8] sm:$0xf0] }
 0x278   :  { %v8145_v31 = vor.u32 %v9264_v17, %v8144_v14  ;;  %v9235_v17 = vld [vmem:[#allocation2 + $0x60c] sm:$0xf] }
 0x279   :  { %4460 = vmatpush.bf16.msra.mxu3 %v7721_v11  ;;  %4357 = vmatpush.bf16.msrb.mxu0 %v7573_v20  ;;  %v7318_v11 = vld [vmem:[#allocation2 + $0x78] sm:$0xf0]  ;;  %v7513_v20 = vor.u32 %v9103_v4, %v7510_v37 }
 0x27a   :  { %4444 = vmatpush.bf16.msrb.mxu1 %v7641_v15  ;;  %4374 = vmatmul.bf16.vlgmr.msra.gmra.mxu2 %v9815_v54  ;;  %v7577_v15 = vor.u32 %v9119_v60, %v7574_v1  ;;  %v7465_v60 = vor.u32 %v9091_v53, %v7462_v45  ;;  %v7273_v1 = vor.u32 %v9043_v25, %v7270_v56  ;;  %v7446_v4 = vld [vmem:[#allocation2 + $0x178] sm:$0xf0]  ;;  %v8162_v53 = vld [vmem:[#allocation4 + $0xf0] sm:$0xf0]  ;;  %v9231_v25 = vld [vmem:[#allocation2 + $0x5ec] sm:$0xf] }
 0x27b   :  { %4418 = vmatpush.bf16.msrb.mxu2 %v7385_v21  ;;  %4387 = vmatmul.bf16.vlgmr.msra.gmra.mxu1 %v9784_v10  ;;  %v7321_v21 = vor.u32 %v9055_v8, %v7318_v11  ;;  %v9834_v38 = vpop.f32.mrf.mxu3  ;;  %v7878_v37 = vld [vmem:[#allocation2 + $0x4d8] sm:$0xf0]  ;;  %v8256_v56 = vld [vmem:[#allocation4 + $0x1a0] sm:$0xf] }
 0x27d   :  { %4461 = vmatpush.bf16.msra.mxu3 %v7705_v51  ;;  %4358 = vmatpush.bf16.msrb.mxu0 %v7557_v39  ;;  %v2913_v24 = vpop.f32.mrf.mxu1  ;;  %v7302_v51 = vld [vmem:[#allocation2 + $0x58] sm:$0xf0]  ;;  %v9111_v39 = vld [vmem:[#allocation2 + $0x22c] sm:$0xf] }
 0x27e   :  { %4445 = vmatpush.bf16.msrb.mxu1 %v7625_v29  ;;  %v8128_v29 = vld [vmem:[#allocation4 + $0xa0] sm:$0xf]  ;;  %v7305_v42 = vor.u32 %v9051_v27, %v7302_v51  ;;  %v9300_v24 = vld [vmem:[#allocation4 + $0x1ec] sm:$0xf0]  ;;  %v7862_v27 = vld [vmem:[#allocation2 + $0x4b8] sm:$0xf0] }
 0x27f   :  { %4419 = vmatpush.bf16.msrb.mxu2 %v7369_v40  ;;  %v7542_v40 = vld [vmem:[#allocation2 + $0x238] sm:$0xf0]  ;;  %v8129_v16 = vor.u32 %v9260_v33, %v8128_v29  ;;  %v8064_v29 = vld [vmem:[#allocation4 + $0x20] sm:$0xf] }
 0x280   :  { %v7545_v28 = vor.u32 %v9111_v39, %v7542_v40  ;;  %v9079_v40 = vld [vmem:[#allocation2 + $0x12c] sm:$0xf] }
 0x281   :  { %4462 = vmatpush.bf16.msra.mxu3 %v7689_v43  ;;  %4359 = vmatpush.bf16.msrb.mxu0 %v7541_v48  ;;  %v9047_v43 = vld [vmem:[#allocation2 + $0x2c] sm:$0xf]  ;;  %v7526_v48 = vld [vmem:[#allocation2 + $0x218] sm:$0xf0] }
 0x282   :  { %4446 = vmatpush.bf16.msrb.mxu1 %v7609_v6  ;;  %v8112_v6 = vld [vmem:[#allocation4 + $0x80] sm:$0xf]  ;;  %v7289_v52 = vor.u32 %v9047_v43, %v7286_v7  ;;  %v7529_v58 = vor.u32 %v9107_v47, %v7526_v48  ;;  %v7846_v43 = vld [vmem:[#allocation2 + $0x498] sm:$0xf0] }
 0x283   :  { %4420 = vmatpush.bf16.msrb.mxu2 %v7353_v49  ;;  %v7481_v49 = vor.u32 %v9095_v23, %v7478_v61  ;;  %v4156_v35 = vpop.f32.mrf.mxu3  ;;  %v9296_v23 = vld [vmem:[#allocation4 + $0x1cc] sm:$0xf0]  ;;  %v9187_v61 = vld [vmem:[#allocation2 + $0x48c] sm:$0xf] }
 0x284   :  { %v7849_v45 = vor.u32 %v9187_v61, %v7846_v43  ;;  %v9292_v35 = vld [vmem:[#allocation4 + $0x1ac] sm:$0xf0] }
 0x285   :  { %4463 = vmatpush.bf16.msra.mxu3 %v7673_v9  ;;  %4360 = vmatpush.bf16.msrb.mxu0 %v7525_v3  ;;  %v9199_v9 = vld [vmem:[#allocation2 + $0x4ec] sm:$0xf] }
 0x286   :  { %4447 = vmatpush.bf16.msrb.mxu1 %v7593_v63  ;;  %v9252_v63 = vld [vmem:[#allocation4 + $0x6c] sm:$0xf0]  ;;  %v7897_v3 = vor.u32 %v9199_v9, %v7894_v36  ;;  %v8022_v9 = vld [vmem:[#allocation2 + $0x5f8] sm:$0xf0]  ;;  %v9183_v36 = vld [vmem:[#allocation2 + $0x46c] sm:$0xf] }
 0x287   :  { %4421 = vmatpush.bf16.msrb.mxu2 %v7337_v57  ;;  %v9087_v57 = vld [vmem:[#allocation2 + $0x16c] sm:$0xf]  ;;  %v8097_v8 = vor.u32 %v9252_v63, %v8096_v59  ;;  %v8257_v59 = vor.u32 %v9292_v35, %v8256_v56 }
 0x288   :  { %4361 = vmatmul.bf16.vlgmr.msrb.gmra.mxu0 %v9793_v62  ;;  %v9838_v0 = vpop.f32.mrf.mxu1  ;;  %v7449_v14 = vor.u32 %v9087_v57, %v7446_v4  ;;  %v8146_v57 = vld [vmem:[#allocation4 + $0xd0] sm:$0xf0] }
 0x289   :  { %4412 = vmatpush.bf16.msra.mxu0 %v8037_v5  ;;  %4464 = vmatpush.bf16.msra.mxu3 %v7657_v12  ;;  %v9195_v5 = vld [vmem:[#allocation2 + $0x4cc] sm:$0xf]  ;;  %v8080_v12 = vld [vmem:[#allocation4 + $0x40] sm:$0xf] }
 0x28a   :  { %4448 = vmatpush.bf16.msrb.mxu1 %v7577_v15  ;;  %v9083_v15 = vld [vmem:[#allocation2 + $0x14c] sm:$0xf]  ;;  %v7881_v19 = vor.u32 %v9195_v5, %v7878_v37  ;;  %v8025_v5 = vor.u32 %v9231_v25, %v8022_v9  ;;  %v8098_v25 = vld [vmem:[#allocation4 + $0x70] sm:$0xf0] }
 0x28b   :  { %4422 = vmatpush.bf16.msrb.mxu2 %v7321_v21  ;;  %v9840_v11 = vpop.f32.mrf.mxu2  ;;  %v8041_v21 = vor.u32 %v9235_v17, %v8038_v18  ;;  %v9846_v47 = vpop.f32.mrf.mxu3  ;;  %v7814_v17 = vld [vmem:[#allocation2 + $0x458] sm:$0xf0] }
 0x28c   :  { %4465 = vmatmul.bf16.vlgmr.msra.gmra.mxu3 %v9815_v54  ;;  %v8113_v54 = vor.u32 %v9256_v44, %v8112_v6  ;;  %v9240_v44 = vld [vmem:[#allocation4 + $0xc] sm:$0xf0] }
 0x28d   :  { %5295 = vmatpush.bf16.msrb.mxu3 %v8161_v13  ;;  %4431 = vmatpush.bf16.msrb.mxu0 %v7513_v20  ;;  %v9248_v13 = vld [vmem:[#allocation4 + $0x4c] sm:$0xf0]  ;;  %v7430_v20 = vld [vmem:[#allocation2 + $0x158] sm:$0xf0] }
 0x28e   :  { %4449 = vmatpush.bf16.msrb.mxu1 %v7561_v32  ;;  %v8081_v51 = vor.u32 %v9248_v13, %v8080_v12  ;;  %v9244_v32 = vld [vmem:[#allocation4 + $0x2c] sm:$0xf0]  ;;  %v7433_v39 = vor.u32 %v9083_v15, %v7430_v20  ;;  %v8240_v12 = vld [vmem:[#allocation4 + $0x180] sm:$0xf]  ;;  %v9179_v15 = vld [vmem:[#allocation2 + $0x44c] sm:$0xf] }
 0x28f   :  { %4423 = vmatpush.bf16.msrb.mxu2 %v7305_v42  ;;  %v8272_v42 = vld [vmem:[#allocation4 + $0x1c0] sm:$0xf]  ;;  %v8065_v7 = vor.u32 %v9244_v32, %v8064_v29  ;;  %v9288_v13 = vld [vmem:[#allocation4 + $0x18c] sm:$0xf0] }
 0x290   :  { %v4169_v33 = vpop.f32.mrf.mxu1  ;;  %v8224_v29 = vld [vmem:[#allocation4 + $0x160] sm:$0xf]  ;;  %v9284_v32 = vld [vmem:[#allocation4 + $0x16c] sm:$0xf0] }
 0x291   :  { %5296 = vmatpush.bf16.msrb.mxu3 %v8145_v31  ;;  %4432 = vmatpush.bf16.msrb.mxu0 %v7497_v41  ;;  %v8289_v31 = vor.u32 %v9300_v24, %v8288_v34  ;;  %v7414_v41 = vld [vmem:[#allocation2 + $0x138] sm:$0xf0]  ;;  %v8130_v34 = vld [vmem:[#allocation4 + $0xb0] sm:$0xf0]  ;;  %v8241_v24 = vor.u32 %v9288_v13, %v8240_v12  ;;  %v8225_v61 = vor.u32 %v9284_v32, %v8224_v29  ;;  %v9272_v12 = vld [vmem:[#allocation4 + $0x10c] sm:$0xf0] }
 0x292   :  { %4450 = vmatpush.bf16.msrb.mxu1 %v7545_v28  ;;  %v8048_v28 = vld [vmem:[#allocation4] sm:$0xf]  ;;  %v7417_v48 = vor.u32 %v9079_v40, %v7414_v41  ;;  %v7990_v33 = vld [vmem:[#allocation2 + $0x5b8] sm:$0xf0]  ;;  %v9294_v29 = vld [vmem:[#allocation4 + $0x1c4] sm:$0xf] }
 0x293   :  { %4424 = vmatpush.bf16.msrb.mxu2 %v7289_v52  ;;  %v2926_v6 = vpop.f32.mrf.mxu2  ;;  %v9266_v52 = vld [vmem:[#allocation4 + $0xe4] sm:$0xf]  ;;  %v4208_v20 = vpop.f32.mrf.mxu3  ;;  %v7798_v40 = vld [vmem:[#allocation2 + $0x438] sm:$0xf0]  ;;  %v8274_v32 = vld [vmem:[#allocation4 + $0x1d0] sm:$0xf0] }
 0x294   :  { %v8165_v63 = vor.u32 %v9266_v52, %v8162_v53  ;;  %v9280_v6 = vld [vmem:[#allocation4 + $0x14c] sm:$0xf0] }
 0x295   :  { %5297 = vmatpush.bf16.msrb.mxu3 %v8129_v16  ;;  %4433 = vmatpush.bf16.msrb.mxu0 %v7481_v49  ;;  %v8273_v16 = vor.u32 %v9296_v23, %v8272_v42  ;;  %v7398_v49 = vld [vmem:[#allocation2 + $0x118] sm:$0xf0]  ;;  %v9254_v42 = vld [vmem:[#allocation4 + $0x84] sm:$0xf]  ;;  %v8114_v23 = vld [vmem:[#allocation4 + $0x90] sm:$0xf0] }
 0x296   :  { %4451 = vmatpush.bf16.msrb.mxu1 %v7529_v58  ;;  %v8049_v58 = vor.u32 %v9240_v44, %v8048_v28  ;;  %v7974_v28 = vld [vmem:[#allocation2 + $0x598] sm:$0xf0]  ;;  %v9171_v44 = vld [vmem:[#allocation2 + $0x40c] sm:$0xf]  ;;  %v8117_v53 = vor.u32 %v9254_v42, %v8114_v23 }
 0x297   :  { %4425 = vmatpush.bf16.msrb.mxu2 %v7273_v1  ;;  %v9203_v42 = vld [vmem:[#allocation2 + $0x50c] sm:$0xf] }
 0x298   :  { %8044 = vmatmul.msk.bf16.vlgmr.msra.gmra.mxu0 %vm1259_vm0, %v9807_v46  ;;  %v9851_v4 = vpop.f32.mrf.mxu1 }
 0x299   :  { %5298 = vmatpush.bf16.msrb.mxu3 %v8113_v54  ;;  %4434 = vmatpush.bf16.msrb.mxu0 %v7465_v60  ;;  %v7830_v54 = vld [vmem:[#allocation2 + $0x478] sm:$0xf0]  ;;  %v9402_v60 = vld [vmem:[%s10069_s6] ss:$0 sm:$0xff] }
 0x29a   :  { %4452 = vmatmul.bf16.vlgmr.msrb.gmra.mxu1 %v9793_v62  ;;  %4426 = vmatmul.bf16.vlgmr.msrb.gmra.mxu2 %v9771_v30  ;;  %v7865_v62 = vor.u32 %v9191_v26, %v7862_v27  ;;  %v9075_v30 = vld [vmem:[#allocation2 + $0x10c] sm:$0xf]  ;;  %v7833_v37 = vor.u32 %v9183_v36, %v7830_v54  ;;  %v2899_v26 = vadd.f32 %v9402_v60, %v9828_v55  ;;  %v9863_v55 = vld [vmem:[%s10065_s2] sm:$0xf]  ;;  %v9276_v54 = vld [vmem:[#allocation4 + $0x12c] sm:$0xf0] }
 0x29b   :  { %4470 = vmatpush.bf16.msra.mxu2 %v7897_v3  ;;  %4503 = vmatpush.bf16.msra.mxu1 %v8041_v21  ;;  %v7401_v1 = vor.u32 %v9075_v30, %v7398_v49  ;;  %v9262_v3 = vld [vmem:[#allocation4 + $0xc4] sm:$0xf]  ;;  %v9853_v18 = vpop.f32.mrf.mxu2  ;;  %v8192_v36 = vld [vmem:[#allocation4 + $0x120] sm:$0xf] }
 0x29c   :  { %v9258_v21 = vld [vmem:[#allocation4 + $0xa4] sm:$0xf] }
 0x29d   :  { %5299 = vmatpush.bf16.msrb.mxu3 %v8097_v8  ;;  %4435 = vmatpush.bf16.msrb.mxu0 %v7449_v14  ;;  %v9227_v8 = vld [vmem:[#allocation2 + $0x5cc] sm:$0xf]  ;;  %v8006_v14 = vld [vmem:[#allocation2 + $0x5d8] sm:$0xf0]  ;;  %v8133_v41 = vor.u32 %v9258_v21, %v8130_v34  ;;  %v9246_v60 = vld [vmem:[#allocation4 + $0x44] sm:$0xf] }
 0x29e   :  { %v8009_v27 = vor.u32 %v9227_v8, %v8006_v14  ;;  %v8176_v8 = vld [vmem:[#allocation4 + $0x100] sm:$0xf]  ;;  %v7942_v14 = vld [vmem:[#allocation2 + $0x558] sm:$0xf0]  ;;  %v9242_v21 = vld [vmem:[#allocation4 + $0x24] sm:$0xf] }
 0x29f   :  { %4471 = vmatpush.bf16.msra.mxu2 %v7881_v19  ;;  %5308 = vmatpush.bf16.msrb.mxu1 %v8289_v31  ;;  %v8149_v19 = vor.u32 %v9262_v3, %v8146_v57  ;;  %v9223_v31 = vld [vmem:[#allocation2 + $0x5ac] sm:$0xf]  ;;  %v8193_v3 = vor.u32 %v9276_v54, %v8192_v36  ;;  %v8066_v34 = vld [vmem:[#allocation4 + $0x30] sm:$0xf0]  ;;  %v9282_v36 = vld [vmem:[#allocation4 + $0x164] sm:$0xf] }
 0x2a0   :  { %v4221_v43 = vpop.f32.mrf.mxu1 }
 0x2a1   :  { %5300 = vmatpush.bf16.msrb.mxu3 %v8081_v51  ;;  %4436 = vmatpush.bf16.msrb.mxu0 %v7433_v39  ;;  %v7817_v51 = vor.u32 %v9179_v15, %v7814_v17  ;;  %v9175_v39 = vld [vmem:[#allocation2 + $0x42c] sm:$0xf]  ;;  %v9298_v15 = vld [vmem:[#allocation4 + $0x1e4] sm:$0xf]  ;;  %v8290_v17 = vld [vmem:[#allocation4 + $0x1f0] sm:$0xf0] }
 0x2a2   :  { %v9290_v43 = vld [vmem:[#allocation4 + $0x1a4] sm:$0xf] }
 0x2a3   :  { %4472 = vmatpush.bf16.msra.mxu2 %v7865_v62  ;;  %5309 = vmatpush.bf16.msrb.mxu1 %v8273_v16  ;;  %v2912_v62 = vadd.f32 %v9832_v22, %v2899_v26  ;;  %v7801_v22 = vor.u32 %v9175_v39, %v7798_v40  ;;  %v9219_v16 = vld [vmem:[#allocation2 + $0x58c] sm:$0xf]  ;;  %v4182_v52 = vpop.f32.mrf.mxu2  ;;  %v9238_v39 = vld [vmem:[#allocation4 + $0x4] sm:$0xf]  ;;  %v8050_v40 = vld [vmem:[#allocation4 + $0x10] sm:$0xf0] }
 0x2a4   :  { %v7977_v35 = vor.u32 %v9219_v16, %v7974_v28  ;;  %v8416_v28 = vld [vmem:[#allocation4 + $0x2e0] sm:$0xf]  ;;  %v8242_v52 = vld [vmem:[#allocation4 + $0x190] sm:$0xf0] }
 0x2a5   :  { %5301 = vmatpush.bf16.msrb.mxu3 %v8065_v7  ;;  %4437 = vmatpush.bf16.msrb.mxu0 %v7417_v48  ;;  %v2925_v7 = vadd.f32 %v9840_v11, %v2912_v62  ;;  %v2937_v30 = vpop.f32.mrf.mxu0  ;;  %v7782_v48 = vld [vmem:[#allocation2 + $0x418] sm:$0xf0]  ;;  %v3154_v11 = vperm.slane %v9863_v55, 0 }
 0x2a6   :  { %v7785_v9 = vor.u32 %v9171_v44, %v7782_v48  ;;  %v9286_v44 = vld [vmem:[#allocation4 + $0x184] sm:$0xf] }
 0x2a7   :  { %4473 = vmatpush.bf16.msra.mxu2 %v7849_v45  ;;  %5310 = vmatpush.bf16.msrb.mxu1 %v8257_v59  ;;  %v2938_v49 = vadd.f32 %v2937_v30, %v2925_v7  ;;  %v9250_v45 = vld [vmem:[#allocation4 + $0x64] sm:$0xf]  ;;  %v7958_v59 = vld [vmem:[#allocation2 + $0x578] sm:$0xf0]  ;;  %v4155_v57 = vadd.f32 %v9834_v38, %v3154_v11  ;;  %v8258_v7 = vld [vmem:[#allocation4 + $0x1b0] sm:$0xf0]  ;;  %v8245_v11 = vor.u32 %v9286_v44, %v8242_v52 }
 0x2a8   :  { %v8261_v30 = vor.u32 %v9290_v43, %v8258_v7  ;;  %v9253_v43 = vld [vmem:[#allocation4 + $0x74] sm:$0xf0] }
 0x2a9   :  { %5302 = vmatpush.bf16.msrb.mxu3 %v8049_v58  ;;  %4438 = vmatpush.bf16.msrb.mxu0 %v7401_v1  ;;  %2941 = vst [vmem:[%s10070_s7] sm:$0xff] %v2938_v49  ;;  %v9215_v58 = vld [vmem:[#allocation2 + $0x56c] sm:$0xf]  ;;  %v8082_v1 = vld [vmem:[#allocation4 + $0x50] sm:$0xf0]  ;;  %v4168_v38 = vadd.f32 %v9838_v0, %v4155_v57  ;;  %v8277_v0 = vor.u32 %v9294_v29, %v8274_v32  ;;  %v9265_v57 = vld [vmem:[#allocation4 + $0xd4] sm:$0xf0] }
 0x2aa   :  { %8045 = vmatmul.msk.bf16.vlgmr.msra.gmra.mxu1 %vm1259_vm0, %v9807_v46  ;;  %v7993_v46 = vor.u32 %v9223_v31, %v7990_v33  ;;  %v7926_v31 = vld [vmem:[#allocation2 + $0x538] sm:$0xf0]  ;;  %v8069_v33 = vor.u32 %v9242_v21, %v8066_v34  ;;  %v8368_v34 = vld [vmem:[#allocation4 + $0x280] sm:$0xf]  ;;  %v8120_v32 = vld [vmem:[#allocation4 + $0x88] sm:$0xf] }
 0x2ab   :  { %4474 = vmatpush.bf16.msra.mxu2 %v7833_v37  ;;  %5311 = vmatpush.bf16.msrb.mxu1 %v8241_v24  ;;  %v9211_v37 = vld [vmem:[#allocation2 + $0x54c] sm:$0xf]  ;;  %v8177_v24 = vor.u32 %v9272_v12, %v8176_v8  ;;  %v9873_v62 = vpop.f32.mrf.mxu3  ;;  %v9324_v8 = vld [vmem:[#allocation4 + $0x2ac] sm:$0xf0]  ;;  %v9278_v12 = vld [vmem:[#allocation4 + $0x144] sm:$0xf] }
 0x2ac   :  { %4439 = vmatmul.bf16.vlgmr.msrb.gmra.mxu0 %v9786_v50  ;;  %v8208_v50 = vld [vmem:[#allocation4 + $0x140] sm:$0xf]  ;;  %v7945_v26 = vor.u32 %v9211_v37, %v7942_v14  ;;  %v8210_v14 = vld [vmem:[#allocation4 + $0x150] sm:$0xf0]  ;;  %v9249_v44 = vld [vmem:[#allocation4 + $0x54] sm:$0xf0] }
 0x2ad   :  { %5347 = vmatpush.bf16.msra.mxu3 %v8165_v63  ;;  %4483 = vmatpush.bf16.msra.mxu0 %v8025_v5  ;;  %v8209_v56 = vor.u32 %v9280_v6, %v8208_v50  ;;  %v8101_v63 = vor.u32 %v9250_v45, %v8098_v25  ;;  %v7961_v5 = vor.u32 %v9215_v58, %v7958_v59  ;;  %v2939_v13 = vpop.f32.mrf.mxu0  ;;  %v4232_v20 = vpop.f32.mrf.mxu2  ;;  %v8168_v25 = vld [vmem:[#allocation4 + $0xe8] sm:$0xf]  ;;  %v8226_v59 = vld [vmem:[#allocation4 + $0x170] sm:$0xf0]  ;;  %v8384_v37 = vld [vmem:[#allocation4 + $0x2a0] sm:$0xf] }
 0x2ae   :  { %v8385_v13 = vor.u32 %v9324_v8, %v8384_v37  ;;  %v9267_v37 = vld [vmem:[#allocation4 + $0xec] sm:$0xf]  ;;  %v8170_v8 = vld [vmem:[#allocation4 + $0xf8] sm:$0xf0] }
 0x2af   :  { %4475 = vmatpush.bf16.msra.mxu2 %v7817_v51  ;;  %5312 = vmatpush.bf16.msrb.mxu1 %v8225_v61  ;;  %v8293_v51 = vor.u32 %v9298_v15, %v8290_v17  ;;  %v7910_v61 = vld [vmem:[#allocation2 + $0x518] sm:$0xf0]  ;;  %v8136_v15 = vld [vmem:[#allocation4 + $0xa8] sm:$0xf]  ;;  %v9261_v17 = vld [vmem:[#allocation4 + $0xb4] sm:$0xf0] }
 0x2b0   :  { %v7913_v6 = vor.u32 %v9203_v42, %v7910_v61  ;;  %v8104_v61 = vld [vmem:[#allocation4 + $0x68] sm:$0xf] }
 0x2b1   :  { %5348 = vmatpush.bf16.msra.mxu3 %v8149_v19  ;;  %4484 = vmatpush.bf16.msra.mxu0 %v8009_v27  ;;  %v8085_v19 = vor.u32 %v9246_v60, %v8082_v1  ;;  %v9207_v27 = vld [vmem:[#allocation2 + $0x52c] sm:$0xf] }
 0x2b3   :  { %4476 = vmatpush.bf16.msra.mxu2 %v7801_v22  ;;  %5313 = vmatpush.bf16.msrb.mxu1 %v8209_v56  ;;  %v8053_v22 = vor.u32 %v9238_v39, %v8050_v40  ;;  %v9269_v56 = vld [vmem:[#allocation4 + $0xf4] sm:$0xf0]  ;;  %v8352_v40 = vld [vmem:[#allocation4 + $0x260] sm:$0xf] }
 0x2b5   :  { %5349 = vmatpush.bf16.msra.mxu3 %v8133_v41  ;;  %4485 = vmatpush.bf16.msra.mxu0 %v7993_v46  ;;  %v7929_v41 = vor.u32 %v9207_v27, %v7926_v31  ;;  %v4193_v23 = vpop.f32.mrf.mxu0  ;;  %v4234_v16 = vpop.f32.mrf.mxu2  ;;  %v8194_v27 = vld [vmem:[#allocation4 + $0x130] sm:$0xf0] }
 0x2b6   :  { %v8336_v16 = vld [vmem:[#allocation4 + $0x240] sm:$0xf] }
 0x2b7   :  { %4477 = vmatpush.bf16.msra.mxu2 %v7785_v9  ;;  %5314 = vmatpush.bf16.msrb.mxu1 %v8193_v3  ;;  %v9328_v9 = vld [vmem:[#allocation4 + $0x2cc] sm:$0xf0]  ;;  %v8152_v3 = vld [vmem:[#allocation4 + $0xc8] sm:$0xf] }
 0x2b8   :  { %v9881_v60 = vpop.f32.mrf.mxu1 }
 0x2b9   :  { %5350 = vmatpush.bf16.msra.mxu3 %v8117_v53  ;;  %4486 = vmatpush.bf16.msra.mxu0 %v7977_v35  ;;  %v4273_v53 = vpop.f32.mrf.mxu3  ;;  %v8400_v35 = vld [vmem:[#allocation4 + $0x2c0] sm:$0xf] }
 0x2ba   :  { %4478 = vmatmul.bf16.vlgmr.msra.gmra.mxu2 %v9784_v10  ;;  %v4181_v10 = vadd.f32 %v9853_v18, %v4168_v38  ;;  %v9332_v18 = vld [vmem:[#allocation4 + $0x2ec] sm:$0xf0]  ;;  %v8401_v58 = vor.u32 %v9328_v9, %v8400_v35  ;;  %v9274_v38 = vld [vmem:[#allocation4 + $0x124] sm:$0xf]  ;;  %v8304_v35 = vld [vmem:[#allocation4 + $0x200] sm:$0xf] }
 0x2bb   :  { %5315 = vmatpush.bf16.msrb.mxu1 %v8177_v24  ;;  %v8417_v49 = vor.u32 %v9332_v18, %v8416_v28  ;;  %v9320_v24 = vld [vmem:[#allocation4 + $0x28c] sm:$0xf0]  ;;  %v8197_v39 = vor.u32 %v9274_v38, %v8194_v27  ;;  %v8088_v18 = vld [vmem:[#allocation4 + $0x48] sm:$0xf]  ;;  %v8386_v27 = vld [vmem:[#allocation4 + $0x2b0] sm:$0xf0] }
 0x2bc   :  { %v4194_v46 = vadd.f32 %v4193_v23, %v4181_v10  ;;  %v9316_v10 = vld [vmem:[#allocation4 + $0x26c] sm:$0xf0]  ;;  %v8089_v53 = vor.u32 %v9249_v44, %v8088_v18  ;;  %v8544_v44 = vld [vmem:[#allocation4 + $0x3e0] sm:$0xf] }
 0x2bd   :  { %5351 = vmatpush.bf16.msra.mxu3 %v8101_v63  ;;  %4487 = vmatpush.bf16.msra.mxu0 %v7961_v5  ;;  %v9879_v63 = vpop.f32.mrf.mxu2  ;;  %v8229_v5 = vor.u32 %v9282_v36, %v8226_v59  ;;  %v8353_v42 = vor.u32 %v9316_v10, %v8352_v40  ;;  %v9304_v9 = vld [vmem:[#allocation4 + $0x20c] sm:$0xf0]  ;;  %v9330_v59 = vld [vmem:[#allocation4 + $0x2e4] sm:$0xf]  ;;  %v8370_v10 = vld [vmem:[#allocation4 + $0x290] sm:$0xf0] }
 0x2be   :  { %v4207_v50 = vadd.f32 %v9846_v47, %v4194_v46  ;;  %v4195_v47 = vpop.f32.mrf.mxu0  ;;  %5321 = vmatpush.bf16.msrb.mxu2 %v8417_v49  ;;  %v9308_v49 = vld [vmem:[#allocation4 + $0x22c] sm:$0xf0]  ;;  %v9318_v40 = vld [vmem:[#allocation4 + $0x284] sm:$0xf] }
 0x2bf   :  { %5360 = vmatpush.bf16.msra.mxu1 %v8293_v51  ;;  %v8137_v51 = vor.u32 %v9261_v17, %v8136_v15  ;;  %v8402_v15 = vld [vmem:[#allocation4 + $0x2d0] sm:$0xf0] }
 0x2c0   :  { %v4220_v48 = vadd.f32 %v9851_v4, %v4207_v50  ;;  %v8169_v4 = vor.u32 %v9269_v56, %v8168_v25  ;;  %v4286_v29 = vpop.f32.mrf.mxu1  ;;  %v9312_v50 = vld [vmem:[#allocation4 + $0x24c] sm:$0xf0]  ;;  %v8072_v25 = vld [vmem:[#allocation4 + $0x28] sm:$0xf]  ;;  %v9245_v56 = vld [vmem:[#allocation4 + $0x34] sm:$0xf0] }
 0x2c1   :  { %5352 = vmatpush.bf16.msra.mxu3 %v8085_v19  ;;  %4488 = vmatpush.bf16.msra.mxu0 %v7945_v26  ;;  %v8213_v19 = vor.u32 %v9278_v12, %v8210_v14  ;;  %v9886_v21 = vpop.f32.mrf.mxu3  ;;  %v8369_v26 = vor.u32 %v9320_v24, %v8368_v34  ;;  %v8337_v28 = vor.u32 %v9312_v50, %v8336_v16  ;;  %v8154_v34 = vld [vmem:[#allocation4 + $0xd8] sm:$0xf0]  ;;  %v9251_v50 = vld [vmem:[#allocation4 + $0x6c] sm:$0xf] }
 0x2c2   :  { %v4233_v45 = vadd.f32 %v4232_v20, %v4220_v48  ;;  %5322 = vmatpush.bf16.msrb.mxu2 %v8401_v58  ;;  %v8320_v48 = vld [vmem:[#allocation4 + $0x220] sm:$0xf]  ;;  %v8305_v58 = vor.u32 %v9304_v9, %v8304_v35  ;;  %v8138_v29 = vld [vmem:[#allocation4 + $0xb8] sm:$0xf0]  ;;  %v8338_v35 = vld [vmem:[#allocation4 + $0x250] sm:$0xf0] }
 0x2c3   :  { %5361 = vmatpush.bf16.msra.mxu1 %v8277_v0  ;;  %v8178_v0 = vld [vmem:[#allocation4 + $0x110] sm:$0xf0] }
 0x2c4   :  { %v4509_v54 = vmax.f32 %v4233_v45, 0.0  ;;  %v8321_v45 = vor.u32 %v9308_v49, %v8320_v48  ;;  %v9364_v48 = vld [vmem:[#allocation4 + $0x3ec] sm:$0xf0] }
 0x2c5   :  { %5353 = vmatpush.bf16.msra.mxu3 %v8069_v33  ;;  %4489 = vmatpush.bf16.msra.mxu0 %v7929_v41  ;;  %v4260_v31 = vpop.f32.mrf.mxu2  ;;  %v9257_v33 = vld [vmem:[#allocation4 + $0x94] sm:$0xf0]  ;;  %v9270_v41 = vld [vmem:[#allocation4 + $0x104] sm:$0xf] }
 0x2c6   :  { %v9883_v1 = vpack.c.bf16 %v4509_v54, %v4509_v54  ;;  %v4245_v20 = vpop.f32.mrf.mxu0  ;;  %5323 = vmatpush.bf16.msrb.mxu2 %v8385_v13  ;;  %v8121_v23 = vor.u32 %v9257_v33, %v8120_v32  ;;  %v8181_v7 = vor.u32 %v9270_v41, %v8178_v0  ;;  %v8073_v54 = vor.u32 %v9245_v56, %v8072_v25  ;;  %v9259_v31 = vld [vmem:[#allocation4 + $0xac] sm:$0xf]  ;;  %v9310_v56 = vld [vmem:[#allocation4 + $0x244] sm:$0xf] }
 0x2c7   :  { %5362 = vmatpush.bf16.msra.mxu1 %v8261_v30  ;;  %v8105_v30 = vor.u32 %v9253_v43, %v8104_v61  ;;  %v8141_v41 = vor.u32 %v9259_v31, %v8138_v29  ;;  %v8296_v61 = vld [vmem:[#allocation4 + $0x1e8] sm:$0xf]  ;;  %v9239_v31 = vld [vmem:[#allocation4 + $0xc] sm:$0xf] }
 0x2c8   :  { %5303 = vmatmul.bf16.vlgmr.msrb.gmra.mxu3 %v9883_v1 }
 0x2c9   :  { %5354 = vmatpush.bf16.msra.mxu3 %v8053_v22  ;;  %4490 = vmatpush.bf16.msra.mxu0 %v7913_v6  ;;  %v4325_v22 = vpop.f32.mrf.mxu3  ;;  %v3155_v6 = vperm.slane %v9863_v55, 1 }
 0x2ca   :  { %5324 = vmatpush.bf16.msrb.mxu2 %v8369_v26  ;;  %v9322_v26 = vld [vmem:[#allocation4 + $0x2a4] sm:$0xf]  ;;  %v8354_v22 = vld [vmem:[#allocation4 + $0x270] sm:$0xf0] }
 0x2cb   :  { %5363 = vmatpush.bf16.msra.mxu1 %v8245_v11  ;;  %v4246_v52 = vadd.f32 %v4245_v20, %v3155_v6  ;;  %v9263_v20 = vld [vmem:[#allocation4 + $0xcc] sm:$0xf]  ;;  %v8106_v6 = vld [vmem:[#allocation4 + $0x78] sm:$0xf0] }
 0x2cc   :  { %4491 = vmatmul.bf16.vlgmr.msra.gmra.mxu0 %v9798_v2  ;;  %v8153_v2 = vor.u32 %v9265_v57, %v8152_v3  ;;  %v8056_v3 = vld [vmem:[#allocation4 + $0x8] sm:$0xf]  ;;  %v9241_v57 = vld [vmem:[#allocation4 + $0x14] sm:$0xf0]  ;;  %v8109_v9 = vor.u32 %v9251_v50, %v8106_v6 }
 0x2cd   :  { %5399 = vmatpush.bf16.msrb.mxu3 %v8169_v4  ;;  %v4259_v36 = vadd.f32 %v9879_v63, %v4246_v52  ;;  %v8418_v4 = vld [vmem:[#allocation4 + $0x2f0] sm:$0xf0]  ;;  %v8057_v13 = vor.u32 %v9241_v57, %v8056_v3  ;;  %v8173_v63 = vor.u32 %v9267_v37, %v8170_v8  ;;  %v8264_v57 = vld [vmem:[#allocation4 + $0x1a8] sm:$0xf]  ;;  %v9293_v37 = vld [vmem:[#allocation4 + $0x1b4] sm:$0xf0] }
 0x2ce   :  { %v4247_v46 = vpop.f32.mrf.mxu0  ;;  %5325 = vmatpush.bf16.msrb.mxu2 %v8353_v42  ;;  %v8373_v42 = vor.u32 %v9318_v40, %v8370_v10  ;;  %v9306_v8 = vld [vmem:[#allocation4 + $0x224] sm:$0xf]  ;;  %v3156_v40 = vperm.slane %v9863_v55, 2  ;;  %v8216_v50 = vld [vmem:[#allocation4 + $0x148] sm:$0xf] }
 0x2cf   :  { %5364 = vmatpush.bf16.msra.mxu1 %v8229_v5  ;;  %v8421_v5 = vor.u32 %v9330_v59, %v8418_v4  ;;  %v4272_v12 = vadd.f32 %v9873_v62, %v4259_v36  ;;  %v8389_v62 = vor.u32 %v9322_v26, %v8386_v27  ;;  %v9314_v46 = vld [vmem:[#allocation4 + $0x264] sm:$0xf]  ;;  %v9247_v36 = vld [vmem:[#allocation4 + $0x4c] sm:$0xf]  ;;  %v8528_v59 = vld [vmem:[#allocation4 + $0x3c0] sm:$0xf] }
 0x2d0   :  { %v9360_v4 = vld [vmem:[#allocation4 + $0x3cc] sm:$0xf0]  ;;  %v9289_v26 = vld [vmem:[#allocation4 + $0x194] sm:$0xf0]  ;;  %v9302_v27 = vld [vmem:[#allocation4 + $0x204] sm:$0xf] }
 0x2d1   :  { %5400 = vmatpush.bf16.msrb.mxu3 %v8153_v2  ;;  %v9892_v47 = vpop.f32.mrf.mxu3  ;;  %v9326_v2 = vld [vmem:[#allocation4 + $0x2c4] sm:$0xf]  ;;  %v4285_v38 = vadd.f32 %v9881_v60, %v4272_v12  ;;  %v9255_v60 = vld [vmem:[#allocation4 + $0x8c] sm:$0xf]  ;;  %v8322_v12 = vld [vmem:[#allocation4 + $0x230] sm:$0xf0] }
 0x2d2   :  { %5326 = vmatpush.bf16.msrb.mxu2 %v8337_v28  ;;  %v9281_v6 = vld [vmem:[#allocation4 + $0x154] sm:$0xf0] }
 0x2d3   :  { %5365 = vmatpush.bf16.msra.mxu1 %v8213_v19  ;;  %v8405_v19 = vor.u32 %v9326_v2, %v8402_v15  ;;  %v8325_v2 = vor.u32 %v9306_v8, %v8322_v12  ;;  %v8074_v15 = vld [vmem:[#allocation4 + $0x38] sm:$0xf0]  ;;  %v8546_v8 = vld [vmem:[#allocation4 + $0x3f0] sm:$0xf0] }
 0x2d5   :  { %5401 = vmatpush.bf16.msrb.mxu3 %v8137_v51  ;;  %v8157_v51 = vor.u32 %v9263_v20, %v8154_v34  ;;  %v8265_v34 = vor.u32 %v9293_v37, %v8264_v57  ;;  %v9362_v37 = vld [vmem:[#allocation4 + $0x3e4] sm:$0xf] }
 0x2d6   :  { %5327 = vmatpush.bf16.msrb.mxu2 %v8321_v45  ;;  %v8545_v45 = vor.u32 %v9364_v48, %v8544_v44  ;;  %v8217_v48 = vor.u32 %v9281_v6, %v8216_v50  ;;  %v8234_v50 = vld [vmem:[#allocation4 + $0x178] sm:$0xf0] }
 0x2d7   :  { %5366 = vmatpush.bf16.msra.mxu1 %v8197_v39 }
 0x2d8   :  { %5355 = vmatmul.bf16.vlgmr.msra.gmra.mxu3 %v9883_v1  ;;  %v9890_v11 = vpop.f32.mrf.mxu1  ;;  %5334 = vmatpush.bf16.msrb.mxu0 %v8545_v45 }
 0x2d9   :  { %5402 = vmatpush.bf16.msrb.mxu3 %v8121_v23  ;;  %v4351_v24 = vpop.f32.mrf.mxu3  ;;  %v8122_v23 = vld [vmem:[#allocation4 + $0x98] sm:$0xf0] }
 0x2da   :  { %5328 = vmatpush.bf16.msrb.mxu2 %v8305_v58  ;;  %v8125_v16 = vor.u32 %v9255_v60, %v8122_v23  ;;  %v8090_v58 = vld [vmem:[#allocation4 + $0x58] sm:$0xf0]  ;;  %v8248_v24 = vld [vmem:[#allocation4 + $0x188] sm:$0xf] }
 0x2db   :  { %5367 = vmatpush.bf16.msra.mxu1 %v8181_v7  ;;  %v9301_v7 = vld [vmem:[#allocation4 + $0x1f4] sm:$0xf0]  ;;  %v8249_v10 = vor.u32 %v9289_v26, %v8248_v24  ;;  %v8266_v26 = vld [vmem:[#allocation4 + $0x1b8] sm:$0xf0] }
 0x2dc   :  { %v8297_v49 = vor.u32 %v9301_v7, %v8296_v61  ;;  %v8480_v61 = vld [vmem:[#allocation4 + $0x360] sm:$0xf] }
 0x2dd   :  { %5403 = vmatpush.bf16.msrb.mxu3 %v8105_v30  ;;  %v4310_v14 = vpop.f32.mrf.mxu2  ;;  %v8357_v30 = vor.u32 %v9314_v46, %v8354_v22  ;;  %v4337_v46 = vadd.f32 %v9890_v11, %v3156_v40  ;;  %v8200_v11 = vld [vmem:[#allocation4 + $0x128] sm:$0xf] }
 0x2de   :  { %5373 = vmatpush.bf16.msra.mxu2 %v8421_v5  ;;  %v8529_v5 = vor.u32 %v9360_v4, %v8528_v59  ;;  %v9299_v59 = vld [vmem:[#allocation4 + $0x1ec] sm:$0xf]  ;;  %v8432_v4 = vld [vmem:[#allocation4 + $0x300] sm:$0xf] }
 0x2df   :  { %v4350_v44 = vadd.f32 %v9892_v47, %v4337_v46  ;;  %v8298_v47 = vld [vmem:[#allocation4 + $0x1f8] sm:$0xf0] }
 0x2e0   :  { %v4338_v17 = vpop.f32.mrf.mxu1  ;;  %5335 = vmatpush.bf16.msrb.mxu0 %v8529_v5 }
 0x2e1   :  { %5404 = vmatpush.bf16.msrb.mxu3 %v8089_v53  ;;  %v8280_v53 = vld [vmem:[#allocation4 + $0x1c8] sm:$0xf]  ;;  %v8512_v17 = vld [vmem:[#allocation4 + $0x3a0] sm:$0xf] }
 0x2e2   :  { %5374 = vmatpush.bf16.msra.mxu2 %v8405_v19  ;;  %v9356_v19 = vld [vmem:[#allocation4 + $0x3ac] sm:$0xf0] }
 0x2e5   :  { %5405 = vmatpush.bf16.msrb.mxu3 %v8073_v54  ;;  %v4297_v32 = vpop.f32.mrf.mxu0  ;;  %v4312_v39 = vpop.f32.mrf.mxu2  ;;  %v8341_v54 = vor.u32 %v9310_v56, %v8338_v35  ;;  %v9340_v56 = vld [vmem:[#allocation4 + $0x32c] sm:$0xf0] }
 0x2e6   :  { %5375 = vmatpush.bf16.msra.mxu2 %v8389_v62  ;;  %v4298_v33 = vadd.f32 %v4297_v32, %v4285_v38  ;;  %v8513_v38 = vor.u32 %v9356_v19, %v8512_v17  ;;  %v8058_v32 = vld [vmem:[#allocation4 + $0x18] sm:$0xf0]  ;;  %v9352_v39 = vld [vmem:[#allocation4 + $0x38c] sm:$0xf0]  ;;  %v9358_v19 = vld [vmem:[#allocation4 + $0x3c4] sm:$0xf] }
 0x2e7   :  { %v8061_v60 = vor.u32 %v9239_v31, %v8058_v32  ;;  %v8514_v31 = vld [vmem:[#allocation4 + $0x3b0] sm:$0xf0]  ;;  %v8424_v32 = vld [vmem:[#allocation4 + $0x2e8] sm:$0xf] }
 0x2e8   :  { %v4311_v0 = vadd.f32 %v4310_v14, %v4298_v33  ;;  %v9243_v14 = vld [vmem:[#allocation4 + $0x2c] sm:$0xf]  ;;  %5336 = vmatpush.bf16.msrb.mxu0 %v8513_v38  ;;  %v8496_v33 = vld [vmem:[#allocation4 + $0x380] sm:$0xf] }
 0x2e9   :  { %5406 = vmatpush.bf16.msrb.mxu3 %v8057_v13  ;;  %v8093_v13 = vor.u32 %v9247_v36, %v8090_v58  ;;  %v8077_v62 = vor.u32 %v9243_v14, %v8074_v15  ;;  %v9273_v58 = vld [vmem:[#allocation4 + $0x114] sm:$0xf0]  ;;  %v8549_v14 = vor.u32 %v9362_v37, %v8546_v8  ;;  %v8282_v15 = vld [vmem:[#allocation4 + $0x1d8] sm:$0xf0]  ;;  %v9291_v38 = vld [vmem:[#allocation4 + $0x1ac] sm:$0xf] }
 0x2ea   :  { %5376 = vmatpush.bf16.msra.mxu2 %v8373_v42  ;;  %v4324_v43 = vadd.f32 %v9886_v21, %v4311_v0  ;;  %v9297_v21 = vld [vmem:[#allocation4 + $0x1d4] sm:$0xf0]  ;;  %v8232_v42 = vld [vmem:[#allocation4 + $0x168] sm:$0xf]  ;;  %v9338_v37 = vld [vmem:[#allocation4 + $0x324] sm:$0xf] }
 0x2eb   :  { %v8281_v3 = vor.u32 %v9297_v21, %v8280_v53  ;;  %v9285_v0 = vld [vmem:[#allocation4 + $0x174] sm:$0xf0]  ;;  %v8448_v21 = vld [vmem:[#allocation4 + $0x320] sm:$0xf]  ;;  %v8450_v8 = vld [vmem:[#allocation4 + $0x330] sm:$0xf0] }
 0x2ec   :  { %5407 = vmatmul.bf16.vlgmr.msrb.gmra.mxu3 %v9883_v1  ;;  %v4510_v28 = vmax.f32 %v4324_v43, 0.0  ;;  %v9348_v43 = vld [vmem:[#allocation4 + $0x36c] sm:$0xf0]  ;;  %v8233_v22 = vor.u32 %v9285_v0, %v8232_v42  ;;  %v9277_v53 = vld [vmem:[#allocation4 + $0x134] sm:$0xf0]  ;;  %v8449_v36 = vor.u32 %v9340_v56, %v8448_v21 }
 0x2ed   :  { %5451 = vmatpush.bf16.msra.mxu3 %v8173_v63  ;;  %v4299_v52 = vpop.f32.mrf.mxu0  ;;  %v8250_v42 = vld [vmem:[#allocation4 + $0x198] sm:$0xf0]  ;;  %v9325_v21 = vld [vmem:[#allocation4 + $0x2b4] sm:$0xf0]  ;;  %v9279_v56 = vld [vmem:[#allocation4 + $0x14c] sm:$0xf] }
 0x2ee   :  { %5377 = vmatpush.bf16.msra.mxu2 %v8357_v30  ;;  %v9901_v25 = vpack.c.bf16 %v4510_v28, %v4510_v28  ;;  %v8464_v30 = vld [vmem:[#allocation4 + $0x340] sm:$0xf]  ;;  %v9344_v28 = vld [vmem:[#allocation4 + $0x34c] sm:$0xf0] }
 0x2ef   :  { %v9899_v18 = vpop.f32.mrf.mxu3 }
 0x2f0   :  { %5316 = vmatmul.bf16.vlgmr.msrb.gmra.mxu1 %v9901_v25 }
 0x2f1   :  { %5452 = vmatpush.bf16.msra.mxu3 %v8157_v51  ;;  %5412 = vmatpush.bf16.msrb.mxu1 %v8297_v49  ;;  %v8306_v51 = vld [vmem:[#allocation4 + $0x210] sm:$0xf0]  ;;  %v8465_v49 = vor.u32 %v9344_v28, %v8464_v30  ;;  %v9346_v28 = vld [vmem:[#allocation4 + $0x364] sm:$0xf] }
 0x2f2   :  { %5378 = vmatpush.bf16.msra.mxu2 %v8341_v54  ;;  %v8309_v29 = vor.u32 %v9302_v27, %v8306_v51  ;;  %v8184_v54 = vld [vmem:[#allocation4 + $0x108] sm:$0xf] }
 0x2f5   :  { %5453 = vmatpush.bf16.msra.mxu3 %v8141_v41  ;;  %5413 = vmatpush.bf16.msrb.mxu1 %v8281_v3  ;;  %v8497_v41 = vor.u32 %v9352_v39, %v8496_v33  ;;  %v9336_v3 = vld [vmem:[#allocation4 + $0x30c] sm:$0xf0] }
 0x2f6   :  { %5379 = vmatpush.bf16.msra.mxu2 %v8325_v2  ;;  %v8433_v5 = vor.u32 %v9336_v3, %v8432_v4  ;;  %v9295_v2 = vld [vmem:[#allocation4 + $0x1cc] sm:$0xf]  ;;  %v9321_v4 = vld [vmem:[#allocation4 + $0x294] sm:$0xf0] }
 0x2f7   :  { %v4403_v20 = vpop.f32.mrf.mxu3  ;;  %5337 = vmatpush.bf16.msrb.mxu0 %v8497_v41  ;;  %v9287_v41 = vld [vmem:[#allocation4 + $0x18c] sm:$0xf] }
 0x2f8   :  { %v9904_v63 = vpop.f32.mrf.mxu1  ;;  %v8530_v20 = vld [vmem:[#allocation4 + $0x3d0] sm:$0xf0]  ;;  %v9275_v3 = vld [vmem:[#allocation4 + $0x12c] sm:$0xf] }
 0x2f9   :  { %5454 = vmatpush.bf16.msra.mxu3 %v8125_v16  ;;  %5414 = vmatpush.bf16.msrb.mxu1 %v8265_v34  ;;  %v8481_v16 = vor.u32 %v9348_v43, %v8480_v61  ;;  %v8285_v34 = vor.u32 %v9295_v2, %v8282_v15  ;;  %v8533_v24 = vor.u32 %v9358_v19, %v8530_v20  ;;  %v8408_v43 = vld [vmem:[#allocation4 + $0x2c8] sm:$0xf]  ;;  %v9271_v19 = vld [vmem:[#allocation4 + $0x10c] sm:$0xf]  ;;  %v8186_v20 = vld [vmem:[#allocation4 + $0x118] sm:$0xf0] }
 0x2fa   :  { %5380 = vmatpush.bf16.msra.mxu2 %v8309_v29  ;;  %v8360_v2 = vld [vmem:[#allocation4 + $0x268] sm:$0xf]  ;;  %v8453_v15 = vor.u32 %v9338_v37, %v8450_v8 }
 0x2fb   :  { %5338 = vmatpush.bf16.msrb.mxu0 %v8481_v16  ;;  %v9283_v16 = vld [vmem:[#allocation4 + $0x16c] sm:$0xf] }
 0x2fd   :  { %5455 = vmatpush.bf16.msra.mxu3 %v8109_v9  ;;  %v4375_v23 = vpop.f32.mrf.mxu2  ;;  %5415 = vmatpush.bf16.msrb.mxu1 %v8249_v10  ;;  %v8201_v9 = vor.u32 %v9277_v53, %v8200_v11  ;;  %v9333_v10 = vld [vmem:[#allocation4 + $0x2f4] sm:$0xf0]  ;;  %v8392_v11 = vld [vmem:[#allocation4 + $0x2a8] sm:$0xf] }
 0x2fe   :  { %v8425_v61 = vor.u32 %v9333_v10, %v8424_v32  ;;  %v9309_v10 = vld [vmem:[#allocation4 + $0x234] sm:$0xf0] }
 0x2ff   :  { %5339 = vmatpush.bf16.msrb.mxu0 %v8465_v49  ;;  %v8237_v49 = vor.u32 %v9283_v16, %v8234_v50 }
 0x300   :  { %v4390_v7 = vpop.f32.mrf.mxu1  ;;  %5368 = vmatmul.bf16.vlgmr.msra.gmra.mxu1 %v9901_v25 }
 0x301   :  { %5456 = vmatpush.bf16.msra.mxu3 %v8093_v13  ;;  %5416 = vmatpush.bf16.msrb.mxu1 %v8233_v22  ;;  %v8301_v13 = vor.u32 %v9299_v59, %v8298_v47  ;;  %v9329_v22 = vld [vmem:[#allocation4 + $0x2d4] sm:$0xf0]  ;;  %v8376_v59 = vld [vmem:[#allocation4 + $0x288] sm:$0xf] }
 0x303   :  { %5340 = vmatpush.bf16.msrb.mxu0 %v8449_v36  ;;  %v8466_v36 = vld [vmem:[#allocation4 + $0x350] sm:$0xf0] }
 0x305   :  { %5457 = vmatpush.bf16.msra.mxu3 %v8077_v62  ;;  %v4362_v52 = vpop.f32.mrf.mxu0  ;;  %v4377_v45 = vpop.f32.mrf.mxu2  ;;  %5417 = vmatpush.bf16.msrb.mxu1 %v8217_v48  ;;  %v9354_v62 = vld [vmem:[#allocation4 + $0x3a4] sm:$0xf]  ;;  %v8409_v48 = vor.u32 %v9329_v22, %v8408_v43  ;;  %v8410_v22 = vld [vmem:[#allocation4 + $0x2d8] sm:$0xf0] }
 0x306   :  { %v4363_v35 = vadd.f32 %v4362_v52, %v4350_v44  ;;  %v8517_v39 = vor.u32 %v9354_v62, %v8514_v31  ;;  %v8482_v44 = vld [vmem:[#allocation4 + $0x370] sm:$0xf0]  ;;  %v8344_v62 = vld [vmem:[#allocation4 + $0x248] sm:$0xf]  ;;  %v9313_v31 = vld [vmem:[#allocation4 + $0x254] sm:$0xf0] }
 0x307   :  { %5341 = vmatpush.bf16.msrb.mxu0 %v8433_v5  ;;  %v8485_v45 = vor.u32 %v9346_v28, %v8482_v44  ;;  %v8345_v32 = vor.u32 %v9313_v31, %v8344_v62  ;;  %v8488_v62 = vld [vmem:[#allocation4 + $0x368] sm:$0xf]  ;;  %v9349_v31 = vld [vmem:[#allocation4 + $0x374] sm:$0xf0] }
 0x308   :  { %v4376_v57 = vadd.f32 %v4375_v23, %v4363_v35  ;;  %v8498_v23 = vld [vmem:[#allocation4 + $0x390] sm:$0xf0]  ;;  %v8218_v35 = vld [vmem:[#allocation4 + $0x158] sm:$0xf0] }
 0x309   :  { %5458 = vmatpush.bf16.msra.mxu3 %v8061_v60  ;;  %5418 = vmatpush.bf16.msrb.mxu1 %v8201_v9  ;;  %v9350_v60 = vld [vmem:[#allocation4 + $0x384] sm:$0xf] }
 0x30a   :  { %v4389_v17 = vadd.f32 %v9904_v63, %v4376_v57  ;;  %v8269_v63 = vor.u32 %v9291_v38, %v8266_v26  ;;  %v8501_v7 = vor.u32 %v9350_v60, %v8498_v23  ;;  %v9342_v9 = vld [vmem:[#allocation4 + $0x344] sm:$0xf]  ;;  %v8202_v57 = vld [vmem:[#allocation4 + $0x138] sm:$0xf0]  ;;  %v8189_v26 = vor.u32 %v9271_v19, %v8186_v20  ;;  %v9305_v60 = vld [vmem:[#allocation4 + $0x214] sm:$0xf0] }
 0x30b   :  { %5386 = vmatpush.bf16.msra.mxu0 %v8549_v14  ;;  %v8469_v47 = vor.u32 %v9342_v9, %v8466_v36  ;;  %v9331_v23 = vld [vmem:[#allocation4 + $0x2ec] sm:$0xf]  ;;  %v8552_v9 = vld [vmem:[#allocation4 + $0x3e8] sm:$0xf]  ;;  %v9365_v36 = vld [vmem:[#allocation4 + $0x3f4] sm:$0xf0] }
 0x30c   :  { %5459 = vmatmul.bf16.vlgmr.msra.gmra.mxu3 %v9883_v1  ;;  %v8185_v1 = vor.u32 %v9273_v58, %v8184_v54  ;;  %v4402_v51 = vadd.f32 %v9899_v18, %v4389_v17  ;;  %v8253_v18 = vor.u32 %v9287_v41, %v8250_v42  ;;  %v8393_v54 = vor.u32 %v9325_v21, %v8392_v11  ;;  %v9317_v17 = vld [vmem:[#allocation4 + $0x274] sm:$0xf0]  ;;  %v8314_v19 = vld [vmem:[#allocation4 + $0x218] sm:$0xf0] }
 0x30d   :  { %v4364_v12 = vpop.f32.mrf.mxu0  ;;  %v8221_v58 = vor.u32 %v9279_v56, %v8218_v35  ;;  %v8361_v38 = vor.u32 %v9317_v17, %v8360_v2  ;;  %v8362_v56 = vld [vmem:[#allocation4 + $0x278] sm:$0xf0]  ;;  %v9357_v2 = vld [vmem:[#allocation4 + $0x3b4] sm:$0xf0]  ;;  %v9303_v17 = vld [vmem:[#allocation4 + $0x20c] sm:$0xf] }
 0x30e   :  { %5419 = vmatpush.bf16.msrb.mxu1 %v8185_v1  ;;  %v8377_v12 = vor.u32 %v9321_v4, %v8376_v59  ;;  %v8346_v59 = vld [vmem:[#allocation4 + $0x258] sm:$0xf0] }
 0x30f   :  { %5387 = vmatpush.bf16.msra.mxu0 %v8533_v24  ;;  %v9916_v33 = vpop.f32.mrf.mxu3  ;;  %v8434_v24 = vld [vmem:[#allocation4 + $0x310] sm:$0xf0] }
 0x311   :  { %5420 = vmatmul.bf16.vlgmr.msrb.gmra.mxu1 %v9901_v25 }
 0x312   :  { %5464 = vmatpush.bf16.msra.mxu1 %v8301_v13  ;;  %v8205_v13 = vor.u32 %v9275_v3, %v8202_v57  ;;  %v8536_v3 = vld [vmem:[#allocation4 + $0x3c8] sm:$0xf]  ;;  %v9361_v57 = vld [vmem:[#allocation4 + $0x3d4] sm:$0xf0] }
 0x313   :  { %5388 = vmatpush.bf16.msra.mxu0 %v8517_v39 }
 0x315   :  { %v4414_v29 = vpop.f32.mrf.mxu0 }
 0x316   :  { %5465 = vmatpush.bf16.msra.mxu1 %v8285_v34  ;;  %v4415_v40 = vadd.f32 %v4414_v29, %v4402_v51  ;;  %v9334_v34 = vld [vmem:[#allocation4 + $0x304] sm:$0xf] }
 0x317   :  { %v9913_v27 = vpop.f32.mrf.mxu1  ;;  %5389 = vmatpush.bf16.msra.mxu0 %v8501_v7  ;;  %v4468_v53 = vpop.f32.mrf.mxu3  ;;  %v8437_v51 = vor.u32 %v9334_v34, %v8434_v24  ;;  %v9327_v7 = vld [vmem:[#allocation4 + $0x2cc] sm:$0xf]  ;;  %v8504_v34 = vld [vmem:[#allocation4 + $0x388] sm:$0xf]  ;;  %v9353_v24 = vld [vmem:[#allocation4 + $0x394] sm:$0xf0] }
 0x318   :  { %v4511_v0 = vmax.f32 %v4415_v40, 0.0  ;;  %v8328_v40 = vld [vmem:[#allocation4 + $0x228] sm:$0xf] }
 0x319   :  { %v8329_v42 = vor.u32 %v9309_v10, %v8328_v40  ;;  %v8456_v10 = vld [vmem:[#allocation4 + $0x328] sm:$0xf] }
 0x31a   :  { %5466 = vmatpush.bf16.msra.mxu1 %v8269_v63  ;;  %v9918_v46 = vpack.c.bf16 %v4511_v0, %v4511_v0  ;;  %v3157_v63 = vperm.slane %v9863_v55, 3  ;;  %v8312_v0 = vld [vmem:[#allocation4 + $0x208] sm:$0xf] }
 0x31b   :  { %5390 = vmatpush.bf16.msra.mxu0 %v8485_v45  ;;  %v8313_v43 = vor.u32 %v9305_v60, %v8312_v0  ;;  %v8440_v0 = vld [vmem:[#allocation4 + $0x308] sm:$0xf]  ;;  %v9337_v60 = vld [vmem:[#allocation4 + $0x314] sm:$0xf0] }
 0x31c   :  { %5329 = vmatmul.bf16.vlgmr.msrb.gmra.mxu2 %v9918_v46 }
 0x31d   :  { %v9920_v6 = vpop.f32.mrf.mxu2  ;;  %5425 = vmatpush.bf16.msrb.mxu2 %v8425_v61  ;;  %v4416_v52 = vpop.f32.mrf.mxu0  ;;  %v8426_v61 = vld [vmem:[#allocation4 + $0x2f8] sm:$0xf0] }
 0x31e   :  { %5467 = vmatpush.bf16.msra.mxu1 %v8253_v18  ;;  %v4428_v41 = vadd.f32 %v9920_v6, %v3157_v63  ;;  %v8429_v55 = vor.u32 %v9331_v23, %v8426_v61  ;;  %v8394_v6 = vld [vmem:[#allocation4 + $0x2b8] sm:$0xf0]  ;;  %v8472_v63 = vld [vmem:[#allocation4 + $0x348] sm:$0xf]  ;;  %v9363_v23 = vld [vmem:[#allocation4 + $0x3ec] sm:$0xf] }
 0x31f   :  { %v4455_v30 = vpop.f32.mrf.mxu1  ;;  %5391 = vmatpush.bf16.msra.mxu0 %v8469_v47  ;;  %v8553_v47 = vor.u32 %v9365_v36, %v8552_v9  ;;  %v8554_v61 = vld [vmem:[#allocation4 + $0x3f8] sm:$0xf0] }
 0x320   :  { %v9323_v30 = vld [vmem:[#allocation4 + $0x2ac] sm:$0xf]  ;;  %v8474_v9 = vld [vmem:[#allocation4 + $0x358] sm:$0xf0] }
 0x321   :  { %5426 = vmatpush.bf16.msrb.mxu2 %v8409_v48  ;;  %v8397_v44 = vor.u32 %v9323_v30, %v8394_v6  ;;  %v9319_v48 = vld [vmem:[#allocation4 + $0x28c] sm:$0xf] }
 0x322   :  { %5468 = vmatpush.bf16.msra.mxu1 %v8237_v49  ;;  %v8378_v49 = vld [vmem:[#allocation4 + $0x298] sm:$0xf0] }
 0x323   :  { %5392 = vmatpush.bf16.msra.mxu0 %v8453_v15  ;;  %v8381_v45 = vor.u32 %v9319_v48, %v8378_v49  ;;  %v8506_v48 = vld [vmem:[#allocation4 + $0x398] sm:$0xf0] }
 0x325   :  { %v4429_v1 = vpop.f32.mrf.mxu2  ;;  %5427 = vmatpush.bf16.msrb.mxu2 %v8393_v54 }
 0x326   :  { %5469 = vmatpush.bf16.msra.mxu1 %v8221_v58 }
 0x327   :  { %v9923_v5 = vpop.f32.mrf.mxu1  ;;  %5393 = vmatpush.bf16.msra.mxu0 %v8437_v51  ;;  %v8505_v51 = vor.u32 %v9353_v24, %v8504_v34  ;;  %v9372_v34 = vld [vmem:[%s10068_s5 + $0x30] sm:$0xff] }
 0x329   :  { %v4440_v14 = vpop.f32.mrf.mxu0  ;;  %5428 = vmatpush.bf16.msrb.mxu2 %v8377_v12  ;;  %v9307_v12 = vld [vmem:[#allocation4 + $0x22c] sm:$0xf] }
 0x32a   :  { %5470 = vmatpush.bf16.msra.mxu1 %v8205_v13  ;;  %v4441_v18 = vadd.f32 %v4440_v14, %v4428_v41  ;;  %v8537_v13 = vor.u32 %v9361_v57, %v8536_v3  ;;  %v8520_v14 = vld [vmem:[#allocation4 + $0x3a8] sm:$0xf]  ;;  %v9341_v41 = vld [vmem:[#allocation4 + $0x334] sm:$0xf0]  ;;  %v9335_v3 = vld [vmem:[#allocation4 + $0x30c] sm:$0xf] }
 0x32b   :  { %v8521_v20 = vor.u32 %v9357_v2, %v8520_v14  ;;  %v8442_v57 = vld [vmem:[#allocation4 + $0x318] sm:$0xf0] }
 0x32c   :  { %5381 = vmatmul.bf16.vlgmr.msra.gmra.mxu2 %v9918_v46  ;;  %v4454_v50 = vadd.f32 %v9913_v27, %v4441_v18  ;;  %v9315_v27 = vld [vmem:[#allocation4 + $0x26c] sm:$0xf] }
 0x32d   :  { %5429 = vmatpush.bf16.msrb.mxu2 %v8361_v38  ;;  %v8365_v54 = vor.u32 %v9315_v27, %v8362_v56  ;;  %v8317_v38 = vor.u32 %v9303_v17, %v8314_v19 }
 0x32e   :  { %5471 = vmatpush.bf16.msra.mxu1 %v8189_v26  ;;  %v4467_v28 = vadd.f32 %v9916_v33, %v4454_v50  ;;  %v9311_v33 = vld [vmem:[#allocation4 + $0x24c] sm:$0xf] }
 0x32f   :  { %v4507_v29 = vpop.f32.mrf.mxu1  ;;  %v8349_v37 = vor.u32 %v9311_v33, %v8346_v59  ;;  %v9355_v50 = vld [vmem:[#allocation4 + $0x3ac] sm:$0xf]  ;;  %v8458_v33 = vld [vmem:[#allocation4 + $0x338] sm:$0xf0] }
 0x330   :  { %v8489_v29 = vor.u32 %v9349_v31, %v8488_v62  ;;  %v9381_v62 = vld [vmem:[%s10068_s5 + $0x78] sm:$0xff]  ;;  %v9368_v31 = vld [vmem:[%s10068_s5 + $0x10] sm:$0xff] }
 0x331   :  { %v4442_v39 = vpop.f32.mrf.mxu0  ;;  %5472 = vmatmul.bf16.vlgmr.msra.gmra.mxu1 %v9901_v25  ;;  %5430 = vmatpush.bf16.msrb.mxu2 %v8345_v32  ;;  %v8413_v25 = vor.u32 %v9327_v7, %v8410_v22  ;;  %v9345_v32 = vld [vmem:[#allocation4 + $0x354] sm:$0xf0]  ;;  %v8538_v7 = vld [vmem:[#allocation4 + $0x3d8] sm:$0xf0]  ;;  %v9941_v22 = vld [vmem:[%s10067_s4] sm:$0xf] }
 0x332   :  { %v8473_v40 = vor.u32 %v9345_v32, %v8472_v63  ;;  %v4647_v30 = vperm.slane %v9941_v22, 0  ;;  %v4648_v59 = vperm.slane %v9941_v22, 1  ;;  %v4649_v14 = vperm.slane %v9941_v22, 2  ;;  %5784 = vmatpush.bf16.msrb.mxu1 %v9381_v62  ;;  %v9367_v32 = vld [vmem:[%s10068_s5 + $0x8] sm:$0xff] }
 0x335   :  { %5431 = vmatpush.bf16.msrb.mxu2 %v8329_v42  ;;  %v8457_v42 = vor.u32 %v9341_v41, %v8456_v10  ;;  %v9366_v10 = vld [vmem:[%s10068_s5] sm:$0xff] }
 0x336   :  { %v9378_v41 = vld [vmem:[%s10068_s5 + $0x60] sm:$0xff] }
 0x339   :  { %5432 = vmatpush.bf16.msrb.mxu2 %v8313_v43  ;;  %v8441_v43 = vor.u32 %v9337_v60, %v8440_v0 }
 0x33c   :  { %5433 = vmatmul.bf16.vlgmr.msrb.gmra.mxu2 %v9918_v46 }
 0x33d   :  { %v4479_v16 = vpop.f32.mrf.mxu2  ;;  %5477 = vmatpush.bf16.msra.mxu2 %v8429_v55  ;;  %v8557_v55 = vor.u32 %v9363_v23, %v8554_v61  ;;  %v9377_v61 = vld [vmem:[%s10068_s5 + $0x58] sm:$0xff] }
 0x33e   :  { %v4480_v11 = vadd.f32 %v4479_v16, %v4467_v28 }
 0x341   :  { %5478 = vmatpush.bf16.msra.mxu2 %v8413_v25  ;;  %v8522_v25 = vld [vmem:[#allocation4 + $0x3b8] sm:$0xf0] }
 0x342   :  { %v8525_v28 = vor.u32 %v9355_v50, %v8522_v25  ;;  %v9374_v50 = vld [vmem:[%s10068_s5 + $0x40] sm:$0xff] }
 0x343   :  { %v9386_v25 = vld [vmem:[%s10068_s5 + $0xa0] sm:$0xff] }
 0x345   :  { %v4481_v52 = vpop.f32.mrf.mxu2  ;;  %5479 = vmatpush.bf16.msra.mxu2 %v8397_v44  ;;  %v9351_v44 = vld [vmem:[#allocation4 + $0x38c] sm:$0xf] }
 0x349   :  { %v4492_v53 = vpop.f32.mrf.mxu0  ;;  %5480 = vmatpush.bf16.msra.mxu2 %v8381_v45  ;;  %v9347_v45 = vld [vmem:[#allocation4 + $0x36c] sm:$0xf] }
 0x34a   :  { %v4493_v21 = vadd.f32 %v4492_v53, %v4480_v11  ;;  %v8509_v53 = vor.u32 %v9351_v44, %v8506_v48 }
 0x34b   :  { %v5304_v8 = vpop.f32.mrf.mxu3 }
 0x34c   :  { %v4506_v35 = vadd.f32 %v9923_v5, %v4493_v21  ;;  %v8330_v5 = vld [vmem:[#allocation4 + $0x238] sm:$0xf0]  ;;  %v5305_v49 = vadd.f32 %v5304_v8, %v4647_v30 }
 0x34d   :  { %5481 = vmatpush.bf16.msra.mxu2 %v8365_v54  ;;  %v8333_v15 = vor.u32 %v9307_v12, %v8330_v5  ;;  %v8490_v21 = vld [vmem:[#allocation4 + $0x378] sm:$0xf0]  ;;  %v8445_v12 = vor.u32 %v9335_v3, %v8442_v57 }
 0x34e   :  { %v4512_v58 = vmax.f32 %v4506_v35, 0.0  ;;  %v8493_v56 = vor.u32 %v9347_v45, %v8490_v21  ;;  %v9343_v35 = vld [vmem:[#allocation4 + $0x34c] sm:$0xf]  ;;  %v9382_v21 = vld [vmem:[%s10068_s5 + $0x80] sm:$0xff] }
 0x34f   :  { %v8477_v54 = vor.u32 %v9343_v35, %v8474_v9  ;;  %v9395_v9 = vld [vmem:[%s10068_s5 + $0xe8] sm:$0xff] }
 0x350   :  { %v9933_v4 = vpack.c.bf16 %v4512_v58, %v4512_v58  ;;  %v9339_v58 = vld [vmem:[#allocation4 + $0x32c] sm:$0xf] }
 0x351   :  { %v4494_v1 = vpop.f32.mrf.mxu0  ;;  %5482 = vmatpush.bf16.msra.mxu2 %v8349_v37 }
 0x352   :  { %5342 = vmatmul.bf16.vlgmr.msrb.gmra.mxu0 %v9933_v4 }
 0x353   :  { %5438 = vmatpush.bf16.msrb.mxu0 %v8553_v47  ;;  %v5306_v26 = vpop.f32.mrf.mxu3  ;;  %v8461_v47 = vor.u32 %v9339_v58, %v8458_v33 }
 0x355   :  { %5483 = vmatpush.bf16.msra.mxu2 %v8333_v15  ;;  %v9373_v15 = vld [vmem:[%s10068_s5 + $0x38] sm:$0xff] }
 0x356   :  { %5771 = vmatpush.bf16.msrb.mxu3 %v9373_v15 }
 0x357   :  { %5439 = vmatpush.bf16.msrb.mxu0 %v8537_v13 }
 0x359   :  { %5484 = vmatpush.bf16.msra.mxu2 %v8317_v38  ;;  %v9370_v38 = vld [vmem:[%s10068_s5 + $0x20] sm:$0xff] }
 0x35a   :  { %5772 = vmatpush.bf16.msrb.mxu3 %v9372_v34 }
 0x35b   :  { %5440 = vmatpush.bf16.msrb.mxu0 %v8521_v20  ;;  %v5356_v39 = vpop.f32.mrf.mxu3 }
 0x35c   :  { %5485 = vmatmul.bf16.vlgmr.msra.gmra.mxu2 %v9918_v46  ;;  %v9359_v46 = vld [vmem:[#allocation4 + $0x3cc] sm:$0xf]  ;;  %v5357_v1 = vadd.f32 %v5356_v39, %v4648_v59  ;;  %v9393_v59 = vld [vmem:[%s10068_s5 + $0xd8] sm:$0xff] }
 0x35d   :  { %v8541_v16 = vor.u32 %v9359_v46, %v8538_v7  ;;  %v9379_v39 = vld [vmem:[%s10068_s5 + $0x68] sm:$0xff] }
 0x35f   :  { %5441 = vmatpush.bf16.msrb.mxu0 %v8505_v51  ;;  %v9369_v51 = vld [vmem:[%s10068_s5 + $0x18] sm:$0xff] }
 0x362   :  { %5394 = vmatmul.bf16.vlgmr.msra.gmra.mxu0 %v9933_v4 }
 0x363   :  { %5442 = vmatpush.bf16.msrb.mxu0 %v8489_v29  ;;  %v5358_v18 = vpop.f32.mrf.mxu3  ;;  %v9380_v29 = vld [vmem:[%s10068_s5 + $0x70] sm:$0xff] }
 0x364   :  { %5785 = vmatpush.bf16.msrb.mxu1 %v9380_v29  ;;  %v9389_v18 = vld [vmem:[%s10068_s5 + $0xb8] sm:$0xff] }
 0x365   :  { %5797 = vmatpush.bf16.msrb.mxu2 %v9389_v18 }
 0x367   :  { %5443 = vmatpush.bf16.msrb.mxu0 %v8473_v40  ;;  %v4650_v40 = vperm.slane %v9941_v22, 3  ;;  %v9375_v22 = vld [vmem:[%s10068_s5 + $0x48] sm:$0xff] }
 0x368   :  { %5786 = vmatpush.bf16.msrb.mxu1 %v9379_v39  ;;  %v9403_v39 = vld [vmem:[%s10069_s6] ss:$0 sm:$0xff] }
 0x36b   :  { %5444 = vmatpush.bf16.msrb.mxu0 %v8457_v42 }
 0x36c   :  { %5787 = vmatpush.bf16.msrb.mxu1 %v9378_v41 }
 0x36d   :  { %v5317_v52 = vpop.f32.mrf.mxu1 }
 0x36e   :  { %v9945_v11 = vadd.f32 %v5317_v52, %v5305_v49  ;;  %v9383_v49 = vld [vmem:[%s10068_s5 + $0x88] sm:$0xff] }
 0x36f   :  { %5445 = vmatpush.bf16.msrb.mxu0 %v8441_v43  ;;  %v5408_v6 = vpop.f32.mrf.mxu3  ;;  %v9376_v43 = vld [vmem:[%s10068_s5 + $0x50] sm:$0xff] }
 0x370   :  { %v5409_v2 = vadd.f32 %v5408_v6, %v4649_v14  ;;  %5788 = vmatpush.bf16.msrb.mxu1 %v9377_v61  ;;  %v9385_v6 = vld [vmem:[%s10068_s5 + $0x98] sm:$0xff] }
 0x372   :  { %5446 = vmatmul.bf16.vlgmr.msrb.gmra.mxu0 %v9933_v4 }
 0x373   :  { %5490 = vmatpush.bf16.msra.mxu0 %v8557_v55  ;;  %v9388_v55 = vld [vmem:[%s10068_s5 + $0xb0] sm:$0xff] }
 0x374   :  { %5789 = vmatpush.bf16.msrb.mxu1 %v9376_v43  ;;  %5798 = vmatpush.bf16.msrb.mxu2 %v9388_v55 }
 0x375   :  { %v5319_v36 = vpop.f32.mrf.mxu1 }
 0x376   :  { %v9394_v36 = vld [vmem:[%s10068_s5 + $0xe0] sm:$0xff] }
 0x377   :  { %5491 = vmatpush.bf16.msra.mxu0 %v8541_v16  ;;  %v5410_v27 = vpop.f32.mrf.mxu3  ;;  %v9387_v16 = vld [vmem:[%s10068_s5 + $0xa8] sm:$0xff] }
 0x378   :  { %5790 = vmatpush.bf16.msrb.mxu1 %v9375_v22  ;;  %5799 = vmatpush.bf16.msrb.mxu2 %v9387_v16  ;;  %v9397_v27 = vld [vmem:[%s10068_s5 + $0xf8] sm:$0xff] }
 0x37b   :  { %5492 = vmatpush.bf16.msra.mxu0 %v8525_v28  ;;  %v9384_v28 = vld [vmem:[%s10068_s5 + $0x90] sm:$0xff] }
 0x37c   :  { %5791 = vmatpush.bf16.msrb.mxu1 %v9374_v50  ;;  %5800 = vmatpush.bf16.msrb.mxu2 %v9386_v25 }
 0x37d   :  { %v5369_v37 = vpop.f32.mrf.mxu1 }
 0x37e   :  { %v9948_v8 = vadd.f32 %v5369_v37, %v5357_v1  ;;  %v9392_v1 = vld [vmem:[%s10068_s5 + $0xd0] sm:$0xff] }
 0x37f   :  { %5493 = vmatpush.bf16.msra.mxu0 %v8509_v53 }
 0x380   :  { %5801 = vmatpush.bf16.msrb.mxu2 %v9385_v6 }
 0x383   :  { %5494 = vmatpush.bf16.msra.mxu0 %v8493_v56 }
 0x384   :  { %5802 = vmatpush.bf16.msrb.mxu2 %v9384_v28 }
 0x385   :  { %v5371_v5 = vpop.f32.mrf.mxu1 }
 0x387   :  { %5495 = vmatpush.bf16.msra.mxu0 %v8477_v54 }
 0x388   :  { %5803 = vmatpush.bf16.msrb.mxu2 %v9383_v49 }
 0x38b   :  { %5496 = vmatpush.bf16.msra.mxu0 %v8461_v47 }
 0x38c   :  { %5804 = vmatpush.bf16.msrb.mxu2 %v9382_v21 }
 0x38e   :  { %v5421_v17 = vpop.f32.mrf.mxu1 }
 0x38f   :  { %5497 = vmatpush.bf16.msra.mxu0 %v8445_v12  ;;  %v5460_v13 = vpop.f32.mrf.mxu3  ;;  %v9955_v20 = vadd.f32 %v5421_v17, %v5409_v2 }
 0x390   :  { %v5461_v42 = vadd.f32 %v5460_v13, %v4650_v40  ;;  %v9390_v13 = vld [vmem:[%s10068_s5 + $0xc0] sm:$0xff] }
 0x392   :  { %5498 = vmatmul.bf16.vlgmr.msra.gmra.mxu0 %v9933_v4  ;;  %v9371_v4 = vld [vmem:[%s10068_s5 + $0x28] sm:$0xff] }
 0x393   :  { %5773 = vmatpush.bf16.msrb.mxu3 %v9371_v4  ;;  %5810 = vmatpush.bf16.msrb.mxu0 %v9397_v27 }
 0x396   :  { %v5423_v24 = vpop.f32.mrf.mxu1 }
 0x397   :  { %v5462_v19 = vpop.f32.mrf.mxu3  ;;  %5774 = vmatpush.bf16.msrb.mxu3 %v9370_v38 }
 0x39b   :  { %5775 = vmatpush.bf16.msrb.mxu3 %v9369_v51 }
 0x39f   :  { %v5330_v26 = vpop.f32.mrf.mxu2  ;;  %5776 = vmatpush.bf16.msrb.mxu3 %v9368_v31 }
 0x3a0   :  { %v5331_v44 = vadd.f32 %v5330_v26, %v9945_v11  ;;  %v9396_v11 = vld [vmem:[%s10068_s5 + $0xf0] sm:$0xff] }
 0x3a1   :  { %5811 = vmatpush.bf16.msrb.mxu0 %v9396_v11 }
 0x3a3   :  { %5777 = vmatpush.bf16.msrb.mxu3 %v9367_v32 }
 0x3a5   :  { %5812 = vmatpush.bf16.msrb.mxu0 %v9395_v9 }
 0x3a7   :  { %v5332_v63 = vpop.f32.mrf.mxu2  ;;  %5778 = vmatpush.bf16.msrb.mxu3 %v9366_v10 }
 0x3a9   :  { %5813 = vmatpush.bf16.msrb.mxu0 %v9394_v36 }
 0x3ad   :  { %5814 = vmatpush.bf16.msrb.mxu0 %v9393_v59 }
 0x3ae   :  { %v5473_v0 = vpop.f32.mrf.mxu1 }
 0x3af   :  { %v9991_v60 = vadd.f32 %v5473_v0, %v5461_v42  ;;  %v5382_v23 = vpop.f32.mrf.mxu2 }
 0x3b0   :  { %v5383_v54 = vadd.f32 %v5382_v23, %v9948_v8  ;;  %v9391_v8 = vld [vmem:[%s10068_s5 + $0xc8] sm:$0xff] }
 0x3b1   :  { %5815 = vmatpush.bf16.msrb.mxu0 %v9392_v1 }
 0x3b5   :  { %5816 = vmatpush.bf16.msrb.mxu0 %v9391_v8 }
 0x3b6   :  { %v5475_v46 = vpop.f32.mrf.mxu1 }
 0x3b7   :  { %v5384_v7 = vpop.f32.mrf.mxu2 }
 0x3b9   :  { %5817 = vmatpush.bf16.msrb.mxu0 %v9390_v13 }
 0x3bf   :  { %v5434_v30 = vpop.f32.mrf.mxu2 }
 0x3c0   :  { %v5435_v5 = vadd.f32 %v5434_v30, %v9955_v20 }
 0x3c7   :  { %v5436_v48 = vpop.f32.mrf.mxu2 }
 0x3cf   :  { %v5343_v52 = vpop.f32.mrf.mxu0 }
 0x3d0   :  { %v5344_v53 = vadd.f32 %v5343_v52, %v5331_v44 }
 0x3d2   :  { %v5503_v45 = vmax.f32 %v5344_v53, 0.0 }
 0x3d4   :  { %v5507_v56 = vpack.c.bf16 %v5503_v45, %v5503_v45 }
 0x3d6   :  { %5779 = vmatmul.bf16.vlgmr.msrb.gmra.mxu3 %v5507_v56 }
 0x3d7   :  { %v5345_v35 = vpop.f32.mrf.mxu0 }
 0x3df   :  { %v5395_v58 = vpop.f32.mrf.mxu0  ;;  %v5486_v3 = vpop.f32.mrf.mxu2 }
 0x3e0   :  { %v5396_v33 = vadd.f32 %v5395_v58, %v5383_v54  ;;  %v5487_v34 = vadd.f32 %v5486_v3, %v9991_v60 }
 0x3e2   :  { %v5504_v47 = vmax.f32 %v5396_v33, 0.0 }
 0x3e4   :  { %v5508_v57 = vpack.c.bf16 %v5504_v47, %v5504_v47 }
 0x3e6   :  { %5792 = vmatmul.bf16.vlgmr.msrb.gmra.mxu1 %v5508_v57 }
 0x3e7   :  { %v5397_v37 = vpop.f32.mrf.mxu0  ;;  %v5488_v12 = vpop.f32.mrf.mxu2 }
 0x3ef   :  { %v5447_v14 = vpop.f32.mrf.mxu0 }
 0x3f0   :  { %v5448_v2 = vadd.f32 %v5447_v14, %v5435_v5 }
 0x3f2   :  { %v5505_v15 = vmax.f32 %v5448_v2, 0.0 }
 0x3f4   :  { %v5509_v17 = vpack.c.bf16 %v5505_v15, %v5505_v15 }
 0x3f6   :  { %5805 = vmatmul.bf16.vlgmr.msrb.gmra.mxu2 %v5509_v17 }
 0x3f7   :  { %v5449_v19 = vpop.f32.mrf.mxu0 }
 0x40f   :  { %v5499_v4 = vpop.f32.mrf.mxu0 }
 0x410   :  { %v5500_v24 = vadd.f32 %v5499_v4, %v5487_v34 }
 0x412   :  { %v5506_v38 = vmax.f32 %v5500_v24, 0.0 }
 0x414   :  { %v5510_v26 = vpack.c.bf16 %v5506_v38, %v5506_v38 }
 0x416   :  { %5818 = vmatmul.bf16.vlgmr.msrb.gmra.mxu0 %v5510_v26 }
 0x417   :  { %v5501_v51 = vpop.f32.mrf.mxu0 }
 0x459   :  { %v5780_v20 = vpop.f32.mrf.mxu3 }
 0x45a   :  { %v5781_v40 = vadd.f32 %v9403_v39, %v5780_v20 }
 0x461   :  { %v5782_v62 = vpop.f32.mrf.mxu3 }
 0x463   :  { %v5793_v31 = vpop.f32.mrf.mxu1 }
 0x464   :  { %v5794_v10 = vadd.f32 %v5793_v31, %v5781_v40 }
 0x46b   :  { %v5795_v29 = vpop.f32.mrf.mxu1 }
 0x479   :  { %v5806_v63 = vpop.f32.mrf.mxu2 }
 0x47a   :  { %v5807_v41 = vadd.f32 %v5806_v63, %v5794_v10 }
 0x481   :  { %v5808_v32 = vpop.f32.mrf.mxu2 }
 0x493   :  { %v5819_v42 = vpop.f32.mrf.mxu0 }
 0x494   :  { %v5820_v0 = vadd.f32 %v5819_v42, %v5807_v41 }
 0x496   :  { %5823 = vst [vmem:[%s10070_s7 + $0x8] sm:$0xff] %v5820_v0 }
 0x49b   :  { %v5821_v60 = vpop.f32.mrf.mxu0 }
 0x49c   :  { %5828 = vsyncpa [#allocation3], 1 }
 0x49d   :  { %5829 = vsyncpa [#allocation5], 1 }

</bundles_post_ra>
